<compile_context>
chip_gen: v7x
topology: tpu7x:2x2x1
jax: 0.10.0
libtpu: 0.0.40
codegen_flags: <defaults>
</compile_context>

<pallas_src>
import math
import functools

import jax
import jax.numpy as jnp
from jax.experimental import pallas as pl
from jax.experimental.pallas import tpu as pltpu


LANE = 128
SUBLANE = 8


def _round_up(n, m):
    return ((n + m - 1) // m) * m


def _resident_spec(block_shape, index_map):
    """BlockSpec for a grid-invariant operand: single-buffered (Buffered(1)) so the
    resident weights don't reserve 2x VMEM for double-buffering."""
    buffered = getattr(pl, "Buffered", None)
    if buffered is not None:
        try:
            return pl.BlockSpec(block_shape, index_map, pipeline_mode=buffered(1))
        except TypeError:  # pipeline_mode kwarg not available -> default buffering
            pass
    return pl.BlockSpec(block_shape, index_map)


# ----------------------------------------------------------------------------
# Fused kernel: input projection + recurrence for G stacked encoders.
# One grid step = time_block LSTM steps.  h/c live in VMEM scratch across grid
# steps and in vregs inside the unrolled inner loop.  GX never touches HBM.
# ----------------------------------------------------------------------------
def _fused_lstm_kernel(x_ref, wih_ref, whh_ref, bias_ref, h_out_ref, h_sc, c_sc):
    """Shapes (per block):
      x_ref:     (TB, G, Bp, E)      raw-dtype input, cast to bf16 in-kernel
      wih_ref:   (G, E,  4*Hp)       resident input-projection weights (bf16)
      whh_ref:   (G, Hp, 4*Hp)       resident recurrent weights (bf16)
      bias_ref:  (G, 1,  4*Hp)       folded b_ih + b_hh (f32)
      h_out_ref: (TB, G, Bp, Hp)     per-step hidden states (out dtype)
      h_sc/c_sc: (G, Bp, Hp)         f32 state carried across grid steps
    """
    @pl.when(pl.program_id(0) == 0)
    def _():
        h_sc[...] = jnp.zeros_like(h_sc)
        c_sc[...] = jnp.zeros_like(c_sc)

    TB, G, Bp, _ = x_ref.shape
    Hp = h_sc.shape[-1]
    mm_dtype = whh_ref.dtype

    # Hoisted broadcast (broadcast_in_dim is not CSE'd if left inside the loop).
    bias = jnp.broadcast_to(bias_ref[...], (G, Bp, 4 * Hp))

    def step(t, carry):
        h, c = carry                                            # (G, Bp, Hp) f32
        x_t = x_ref[t].astype(mm_dtype)                         # (G, Bp, E)
        # Fused input projection (independent of h -> schedulable off the
        # serial h-dependency chain by the unrolled scheduler).
        gx = jnp.einsum("gbe,gef->gbf", x_t, wih_ref[...],
                        preferred_element_type=jnp.float32)
        hh = jnp.einsum("gbh,ghf->gbf", h.astype(mm_dtype), whh_ref[...],
                        preferred_element_type=jnp.float32)
        gates = gx + hh + bias                                  # (G, Bp, 4*Hp) f32
        # Gate slices are exactly 128-lane-aligned column blocks -> no lane shuffles.
        i_g = jax.nn.sigmoid(gates[..., 0 * Hp:1 * Hp])
        f_g = jax.nn.sigmoid(gates[..., 1 * Hp:2 * Hp])
        g_g = jnp.tanh(gates[..., 2 * Hp:3 * Hp])
        o_g = jax.nn.sigmoid(gates[..., 3 * Hp:4 * Hp])
        c_new = f_g * c + i_g * g_g
        h_new = o_g * jnp.tanh(c_new)
        h_out_ref[t] = h_new.astype(h_out_ref.dtype)            # lane-dense store
        return h_new, c_new

    h, c = jax.lax.fori_loop(0, TB, step, (h_sc[...], c_sc[...]), unroll=True)
    h_sc[...] = h
    c_sc[...] = c


# ----------------------------------------------------------------------------
# Parameter padding: lay gates out as 4 contiguous 128-lane-aligned blocks.
# ----------------------------------------------------------------------------
def _pad_gate_weights(w, H, H_pad, in_pad=None):
    """w: (4H, in_dim) PyTorch layout -> (in_pad, 4*H_pad) transposed, gate-aligned."""
    in_dim = w.shape[1]
    in_pad = in_dim if in_pad is None else in_pad
    out = jnp.zeros((in_pad, 4 * H_pad), dtype=jnp.float32)
    for g in range(4):
        blk = jnp.transpose(w[g * H:(g + 1) * H, :])            # (in_dim, H)
        out = out.at[:in_dim, g * H_pad:g * H_pad + H].set(blk)
    return out


def _pad_gate_bias(b, H, H_pad):
    out = jnp.zeros((1, 4 * H_pad), dtype=jnp.float32)
    for g in range(4):
        out = out.at[0, g * H_pad:g * H_pad + H].set(b[g * H:(g + 1) * H])
    return out


# ----------------------------------------------------------------------------
# Wrapper: G independent single-layer unidirectional LSTMs (PyTorch nn.LSTM
# semantics, h0=c0=0), each with its own weights, fused into one pallas_call.
# ----------------------------------------------------------------------------
def pallas_multi_lstm(xs, params, *, time_block=16, matmul_dtype=jnp.bfloat16,
                      out_dtype=None):
    """xs: list of G arrays (T_g, B, E), time-major (T_g may differ per encoder).
    params: list of G tuples (w_ih (4H,E), w_hh (4H,H), b_ih (4H,), b_hh (4H,)).
    Returns list of G arrays (T_g, B, H) of all hidden states."""
    G = len(xs)
    assert G == len(params) and G >= 1
    B, E = xs[0].shape[1], xs[0].shape[2]
    assert all(x.shape[1] == B and x.shape[2] == E for x in xs)
    H = params[0][1].shape[1]
    out_dtype = xs[0].dtype if out_dtype is None else out_dtype

    Hp = _round_up(H, LANE)                       # each gate slice -> 128-lane aligned
    Bp = _round_up(max(B, SUBLANE), SUBLANE)
    T_max = max(x.shape[0] for x in xs)
    Tp = _round_up(T_max, time_block)

    # ---- stack inputs: (T_pad, G, B_pad, E); bf16 cast happens inside the kernel ----
    x_stack = jnp.stack(
        [jnp.pad(x, ((0, Tp - x.shape[0]), (0, Bp - B), (0, 0))) for x in xs],
        axis=1)

    # ---- parameter prep (gate-block aligned; matmul operands in bf16) ----
    wih = jnp.stack([_pad_gate_weights(p[0], H, Hp) for p in params]
                    ).astype(matmul_dtype)                         # (G, E, 4*Hp)
    whh = jnp.stack([_pad_gate_weights(p[1], H, Hp, in_pad=Hp) for p in params]
                    ).astype(matmul_dtype)                         # (G, Hp, 4*Hp)
    bias = jnp.stack([_pad_gate_bias((p[2] + p[3]).astype(jnp.float32), H, Hp)
                      for p in params])                            # (G, 1, 4*Hp) f32

    # ---- explicit scoped-VMEM budget (matters at large H, esp. v5e's 16 MiB default) ----
    x_item = jnp.dtype(x_stack.dtype).itemsize
    o_item = jnp.dtype(out_dtype).itemsize
    vmem_need = (2 * time_block * G * Bp * E * x_item          # x blocks (double-buffered)
                 + 2 * time_block * G * Bp * Hp * o_item       # out blocks (double-buffered)
                 + wih.size * 2 + whh.size * 2 + bias.size * 4  # resident (single-buffered)
                 + 2 * G * Bp * Hp * 4)                        # h/c scratch
    vmem_limit = int(min(64 * 1024 * 1024, max(32 * 1024 * 1024, 2 * vmem_need)))

    h_all = pl.pallas_call(
        _fused_lstm_kernel,
        out_shape=jax.ShapeDtypeStruct((Tp, G, Bp, Hp), out_dtype),
        grid_spec=pltpu.PrefetchScalarGridSpec(
            num_scalar_prefetch=0,
            grid=(Tp // time_block,),
            in_specs=[
                # time_block steps of raw input per grid iteration
                pl.BlockSpec((time_block, G, Bp, E), lambda t: (t, 0, 0, 0)),
                # resident, grid-invariant operands: single-buffered
                _resident_spec((G, E, 4 * Hp), lambda t: (0, 0, 0)),
                _resident_spec((G, Hp, 4 * Hp), lambda t: (0, 0, 0)),
                _resident_spec((G, 1, 4 * Hp), lambda t: (0, 0, 0)),
            ],
            out_specs=pl.BlockSpec((time_block, G, Bp, Hp), lambda t: (t, 0, 0, 0)),
            scratch_shapes=[
                pltpu.VMEM((G, Bp, Hp), jnp.float32),   # h state
                pltpu.VMEM((G, Bp, Hp), jnp.float32),   # c state
            ],
        ),
        compiler_params=pltpu.CompilerParams(
            dimension_semantics=("arbitrary",),          # sequential recurrence
            vmem_limit_bytes=vmem_limit,
        ),
    )(x_stack, wih, whh, bias)

    return [h_all[:xs[g].shape[0], g, :B, :H] for g in range(G)]


# ----------------------------------------------------------------------------
# Pure-JAX f32 reference (lax.scan) for correctness checking.
# ----------------------------------------------------------------------------
def ref_lstm(x, w_ih, w_hh, b_ih, b_hh):
    H = w_hh.shape[1]
    B = x.shape[1]

    def step(carry, x_t):
        h, c = carry
        gates = x_t @ w_ih.T + h @ w_hh.T + b_ih + b_hh
        i = jax.nn.sigmoid(gates[:, 0 * H:1 * H])
        f = jax.nn.sigmoid(gates[:, 1 * H:2 * H])
        g = jnp.tanh(gates[:, 2 * H:3 * H])
        o = jax.nn.sigmoid(gates[:, 3 * H:4 * H])
        c = f * c + i * g
        h = o * jnp.tanh(c)
        return (h, c), h

    init = (jnp.zeros((B, H), jnp.float32), jnp.zeros((B, H), jnp.float32))
    _, hs = jax.lax.scan(step, init, x.astype(jnp.float32))
    return hs


# ----------------------------------------------------------------------------
# Module analogue: embeddings + two preprocessing LSTMs (one fused Pallas call).
# ----------------------------------------------------------------------------
class MatchLSTMPallas:
    def __init__(self, embedding_passage, embedding_question, hidden_size, key):
        self.P = embedding_passage            # (vocab_p, emb)
        self.Q = embedding_question           # (vocab_q, emb)
        emb_dim = embedding_passage.shape[1]
        self.H = hidden_size

        def init_lstm(k):
            k1, k2, k3, k4 = jax.random.split(k, 4)
            bound = 1.0 / math.sqrt(hidden_size)     # PyTorch nn.LSTM init
            u = functools.partial(jax.random.uniform,
                                  minval=-bound, maxval=bound, dtype=jnp.float32)
            return (u(k1, (4 * hidden_size, emb_dim)),
                    u(k2, (4 * hidden_size, hidden_size)),
                    u(k3, (4 * hidden_size,)),
                    u(k4, (4 * hidden_size,)))

        kp, kq = jax.random.split(key)
        self.lstm_params = {"passage": init_lstm(kp), "question": init_lstm(kq)}

    def forward(self, passage_ids, question_ids):
        # embedding lookup is glue (plain JAX)
        p_emb = self.P[passage_ids]           # (T_p, B, E)
        q_emb = self.Q[question_ids]          # (T_q, B, E)
        # Both encoders run in a single fused kernel call (shared serial time loop).
        H_p, H_q = pallas_multi_lstm(
            [p_emb, q_emb],
            [self.lstm_params["passage"], self.lstm_params["question"]])
        # TODO(synk): match/attention decoder not present in the reference stub.
        return H_p, H_q


if __name__ == "__main__":
    key = jax.random.PRNGKey(0)
    k_embP, k_embQ, k_model, k_pids, k_qids = jax.random.split(key, 5)

    VOCAB, EMB, HIDDEN = 50, 32, 32
    T_P, T_Q, B = 16, 8, 2

    embedding_passage = jax.random.normal(k_embP, (VOCAB, EMB), dtype=jnp.float32)
    embedding_question = jax.random.normal(k_embQ, (VOCAB, EMB), dtype=jnp.float32)

    model = MatchLSTMPallas(embedding_passage, embedding_question,
                            hidden_size=HIDDEN, key=k_model)

    passage_ids = jax.random.randint(k_pids, (T_P, B), 0, VOCAB)
    question_ids = jax.random.randint(k_qids, (T_Q, B), 0, VOCAB)

    H_p, H_q = model.forward(passage_ids, question_ids)
    H_p = jax.block_until_ready(H_p)
    H_q = jax.block_until_ready(H_q)

    # correctness check against pure-JAX f32 reference (matmuls run in bf16 with
    # f32 accumulation inside the kernel, so tolerances are loosened accordingly)
    H_p_ref = ref_lstm(embedding_passage[passage_ids], *model.lstm_params["passage"])
    H_q_ref = ref_lstm(embedding_question[question_ids], *model.lstm_params["question"])
    assert H_p.shape == (T_P, B, HIDDEN) and H_q.shape == (T_Q, B, HIDDEN)
    assert jnp.allclose(H_p, H_p_ref, atol=5e-2, rtol=5e-2)
    assert jnp.allclose(H_q, H_q_ref, atol=5e-2, rtol=5e-2)

    print("KERNEL_OK")
</pallas_src>

<mosaic_0001>
module attributes {stable_mosaic.version = 11 : i64} {
  func.func @_fused_lstm_kernel(%arg0: i32, %arg1: memref<16x2x8x32xf32, #tpu.memory_space<vmem>>, %arg2: memref<2x32x512xbf16, #tpu.memory_space<vmem>>, %arg3: memref<2x128x512xbf16, #tpu.memory_space<vmem>>, %arg4: memref<2x1x512xf32, #tpu.memory_space<vmem>>, %arg5: memref<16x2x8x128xf32, #tpu.memory_space<vmem>>, %arg6: memref<2x8x128xf32, #tpu.memory_space<vmem>>, %arg7: memref<2x8x128xf32, #tpu.memory_space<vmem>>) attributes {dimension_semantics = [#tpu.dimension_semantics<arbitrary>], iteration_bounds = array<i64: 1>, scalar_prefetch = 0 : i64, scratch_operands = 2 : i64, tpu.core_type = #tpu.core_type<tc>, window_params = [{transform_indices = @transform_0, window_bounds = array<i64: 16, 2, 8, 32>}, {pipeline_mode = #tpu.pipeline_mode<synchronous>, transform_indices = @transform_1, window_bounds = array<i64: 2, 32, 512>}, {pipeline_mode = #tpu.pipeline_mode<synchronous>, transform_indices = @transform_2, window_bounds = array<i64: 2, 128, 512>}, {pipeline_mode = #tpu.pipeline_mode<synchronous>, transform_indices = @transform_3, window_bounds = array<i64: 2, 1, 512>}, {transform_indices = @transform_4, window_bounds = array<i64: 16, 2, 8, 128>}]} {
    %c0_i32 = arith.constant 0 : i32
    %0 = arith.cmpi eq, %arg0, %c0_i32 : i32
    %1 = arith.extui %0 : i1 to i32
    %c0_i32_0 = arith.constant 0 : i32
    %2 = arith.cmpi ne, %1, %c0_i32_0 : i32
    scf.if %2 {
      %cst_287 = arith.constant 0.000000e+00 : f32
      %650 = vector.broadcast %cst_287 : f32 to vector<2x8x128xf32>
      %c0_288 = arith.constant 0 : index
      %c0_289 = arith.constant 0 : index
      %c0_290 = arith.constant 0 : index
      %651 = vector.load %arg6[%c0_288, %c0_289, %c0_290] : memref<2x8x128xf32, #tpu.memory_space<vmem>>, vector<2x8x128xf32>
      tpu.vector_store %arg6[%c0_288, %c0_289, %c0_290], %650 {strides = array<i32>} : memref<2x8x128xf32, #tpu.memory_space<vmem>>, vector<2x8x128xf32>,
      %cst_291 = arith.constant 0.000000e+00 : f32
      %652 = vector.broadcast %cst_291 : f32 to vector<2x8x128xf32>
      %c0_292 = arith.constant 0 : index
      %c0_293 = arith.constant 0 : index
      %c0_294 = arith.constant 0 : index
      %653 = vector.load %arg7[%c0_292, %c0_293, %c0_294] : memref<2x8x128xf32, #tpu.memory_space<vmem>>, vector<2x8x128xf32>
      tpu.vector_store %arg7[%c0_292, %c0_293, %c0_294], %652 {strides = array<i32>} : memref<2x8x128xf32, #tpu.memory_space<vmem>>, vector<2x8x128xf32>,
    } else {
    }
    %c0 = arith.constant 0 : index
    %c0_1 = arith.constant 0 : index
    %c0_2 = arith.constant 0 : index
    %3 = vector.load %arg4[%c0, %c0_1, %c0_2] : memref<2x1x512xf32, #tpu.memory_space<vmem>>, vector<2x1x512xf32>
    %4 = vector.shape_cast %3 : vector<2x1x512xf32> to vector<2x1x512xf32>
    %5 = vector.broadcast %4 : vector<2x1x512xf32> to vector<2x8x512xf32>
    %c0_3 = arith.constant 0 : index
    %c0_4 = arith.constant 0 : index
    %c0_5 = arith.constant 0 : index
    %6 = vector.load %arg6[%c0_3, %c0_4, %c0_5] : memref<2x8x128xf32, #tpu.memory_space<vmem>>, vector<2x8x128xf32>
    %c0_6 = arith.constant 0 : index
    %c0_7 = arith.constant 0 : index
    %c0_8 = arith.constant 0 : index
    %7 = vector.load %arg7[%c0_6, %c0_7, %c0_8] : memref<2x8x128xf32, #tpu.memory_space<vmem>>, vector<2x8x128xf32>
    %c0_i32_9 = arith.constant 0 : i32
    %8 = arith.index_cast %c0_i32_9 : i32 to index
    %c0_10 = arith.constant 0 : index
    %c0_11 = arith.constant 0 : index
    %c0_12 = arith.constant 0 : index
    %9 = vector.load %arg1[%8, %c0_10, %c0_11, %c0_12] : memref<16x2x8x32xf32, #tpu.memory_space<vmem>>, vector<1x2x8x32xf32>
    %10 = vector.shape_cast %9 : vector<1x2x8x32xf32> to vector<2x8x32xf32>
    %11 = arith.truncf %10 : vector<2x8x32xf32> to vector<2x8x32xbf16>
    %c0_13 = arith.constant 0 : index
    %c0_14 = arith.constant 0 : index
    %c0_15 = arith.constant 0 : index
    %12 = vector.load %arg2[%c0_13, %c0_14, %c0_15] : memref<2x32x512xbf16, #tpu.memory_space<vmem>>, vector<2x32x512xbf16>
    "tpu.trace_start"() <{level = 10 : i32, message = "gbe,gef->gbf"}> : () -> ()
    %cst = arith.constant dense<0.000000e+00> : vector<2x8x512xf32>
    %13 = tpu.matmul %11, %12, %cst {dimension_numbers = #tpu.dot_dimension_numbers<[2], [1], [1], [2], [0, 0, 0, 1, 1, 2], [0], [0]>} : vector<2x8x32xbf16>, vector<2x32x512xbf16>, vector<2x8x512xf32> -> vector<2x8x512xf32>
    "tpu.trace_stop"() : () -> ()
    %14 = arith.truncf %6 : vector<2x8x128xf32> to vector<2x8x128xbf16>
    %c0_16 = arith.constant 0 : index
    %c0_17 = arith.constant 0 : index
    %c0_18 = arith.constant 0 : index
    %15 = vector.load %arg3[%c0_16, %c0_17, %c0_18] : memref<2x128x512xbf16, #tpu.memory_space<vmem>>, vector<2x128x512xbf16>
    "tpu.trace_start"() <{level = 10 : i32, message = "gbh,ghf->gbf"}> : () -> ()
    %cst_19 = arith.constant dense<0.000000e+00> : vector<2x8x512xf32>
    %16 = tpu.matmul %14, %15, %cst_19 {dimension_numbers = #tpu.dot_dimension_numbers<[2], [1], [1], [2], [0, 0, 0, 1, 1, 2], [0], [0]>} : vector<2x8x128xbf16>, vector<2x128x512xbf16>, vector<2x8x512xf32> -> vector<2x8x512xf32>
    "tpu.trace_stop"() : () -> ()
    %17 = arith.addf %13, %16 : vector<2x8x512xf32>
    %18 = arith.addf %17, %5 : vector<2x8x512xf32>
    %19 = vector.extract_strided_slice %18 {offsets = [0, 0, 0], sizes = [2, 8, 128], strides = [1, 1, 1]} : vector<2x8x512xf32> to vector<2x8x128xf32>
    %20 = arith.negf %19 : vector<2x8x128xf32>
    %21 = math.exp %20 : vector<2x8x128xf32>
    %cst_20 = arith.constant 1.000000e+00 : f32
    %22 = vector.broadcast %cst_20 : f32 to vector<2x8x128xf32>
    %23 = arith.addf %22, %21 : vector<2x8x128xf32>
    %24 = arith.divf %22, %23 : vector<2x8x128xf32>
    %25 = vector.extract_strided_slice %18 {offsets = [0, 0, 128], sizes = [2, 8, 128], strides = [1, 1, 1]} : vector<2x8x512xf32> to vector<2x8x128xf32>
    %26 = arith.negf %25 : vector<2x8x128xf32>
    %27 = math.exp %26 : vector<2x8x128xf32>
    %cst_21 = arith.constant 1.000000e+00 : f32
    %28 = vector.broadcast %cst_21 : f32 to vector<2x8x128xf32>
    %29 = arith.addf %28, %27 : vector<2x8x128xf32>
    %30 = arith.divf %28, %29 : vector<2x8x128xf32>
    %31 = vector.extract_strided_slice %18 {offsets = [0, 0, 256], sizes = [2, 8, 128], strides = [1, 1, 1]} : vector<2x8x512xf32> to vector<2x8x128xf32>
    %32 = math.tanh %31 : vector<2x8x128xf32>
    %33 = vector.extract_strided_slice %18 {offsets = [0, 0, 384], sizes = [2, 8, 128], strides = [1, 1, 1]} : vector<2x8x512xf32> to vector<2x8x128xf32>
    %34 = arith.negf %33 : vector<2x8x128xf32>
    %35 = math.exp %34 : vector<2x8x128xf32>
    %cst_22 = arith.constant 1.000000e+00 : f32
    %36 = vector.broadcast %cst_22 : f32 to vector<2x8x128xf32>
    %37 = arith.addf %36, %35 : vector<2x8x128xf32>
    %38 = arith.divf %36, %37 : vector<2x8x128xf32>
    %39 = arith.mulf %30, %7 : vector<2x8x128xf32>
    %40 = arith.mulf %24, %32 : vector<2x8x128xf32>
    %41 = arith.addf %39, %40 : vector<2x8x128xf32>
    %42 = math.tanh %41 : vector<2x8x128xf32>
    %43 = arith.mulf %38, %42 : vector<2x8x128xf32>
    %44 = arith.index_cast %c0_i32_9 : i32 to index
    %c0_23 = arith.constant 0 : index
    %c0_24 = arith.constant 0 : index
    %c0_25 = arith.constant 0 : index
    %45 = vector.load %arg5[%44, %c0_23, %c0_24, %c0_25] : memref<16x2x8x128xf32, #tpu.memory_space<vmem>>, vector<1x2x8x128xf32>
    %46 = vector.shape_cast %45 : vector<1x2x8x128xf32> to vector<2x8x128xf32>
    %47 = vector.shape_cast %43 : vector<2x8x128xf32> to vector<1x2x8x128xf32>
    tpu.vector_store %arg5[%44, %c0_23, %c0_24, %c0_25], %47 {strides = array<i32>} : memref<16x2x8x128xf32, #tpu.memory_space<vmem>>, vector<1x2x8x128xf32>,
    %c1_i32 = arith.constant 1 : i32
    %48 = arith.index_cast %c1_i32 : i32 to index
    %c0_26 = arith.constant 0 : index
    %c0_27 = arith.constant 0 : index
    %c0_28 = arith.constant 0 : index
    %49 = vector.load %arg1[%48, %c0_26, %c0_27, %c0_28] : memref<16x2x8x32xf32, #tpu.memory_space<vmem>>, vector<1x2x8x32xf32>
    %50 = vector.shape_cast %49 : vector<1x2x8x32xf32> to vector<2x8x32xf32>
    %51 = arith.truncf %50 : vector<2x8x32xf32> to vector<2x8x32xbf16>
    %c0_29 = arith.constant 0 : index
    %c0_30 = arith.constant 0 : index
    %c0_31 = arith.constant 0 : index
    %52 = vector.load %arg2[%c0_29, %c0_30, %c0_31] : memref<2x32x512xbf16, #tpu.memory_space<vmem>>, vector<2x32x512xbf16>
    "tpu.trace_start"() <{level = 10 : i32, message = "gbe,gef->gbf"}> : () -> ()
    %cst_32 = arith.constant dense<0.000000e+00> : vector<2x8x512xf32>
    %53 = tpu.matmul %51, %52, %cst_32 {dimension_numbers = #tpu.dot_dimension_numbers<[2], [1], [1], [2], [0, 0, 0, 1, 1, 2], [0], [0]>} : vector<2x8x32xbf16>, vector<2x32x512xbf16>, vector<2x8x512xf32> -> vector<2x8x512xf32>
    "tpu.trace_stop"() : () -> ()
    %54 = arith.truncf %43 : vector<2x8x128xf32> to vector<2x8x128xbf16>
    %c0_33 = arith.constant 0 : index
    %c0_34 = arith.constant 0 : index
    %c0_35 = arith.constant 0 : index
    %55 = vector.load %arg3[%c0_33, %c0_34, %c0_35] : memref<2x128x512xbf16, #tpu.memory_space<vmem>>, vector<2x128x512xbf16>
    "tpu.trace_start"() <{level = 10 : i32, message = "gbh,ghf->gbf"}> : () -> ()
    %cst_36 = arith.constant dense<0.000000e+00> : vector<2x8x512xf32>
    %56 = tpu.matmul %54, %55, %cst_36 {dimension_numbers = #tpu.dot_dimension_numbers<[2], [1], [1], [2], [0, 0, 0, 1, 1, 2], [0], [0]>} : vector<2x8x128xbf16>, vector<2x128x512xbf16>, vector<2x8x512xf32> -> vector<2x8x512xf32>
    "tpu.trace_stop"() : () -> ()
    %57 = arith.addf %53, %56 : vector<2x8x512xf32>
    %58 = arith.addf %57, %5 : vector<2x8x512xf32>
    %59 = vector.extract_strided_slice %58 {offsets = [0, 0, 0], sizes = [2, 8, 128], strides = [1, 1, 1]} : vector<2x8x512xf32> to vector<2x8x128xf32>
    %60 = arith.negf %59 : vector<2x8x128xf32>
    %61 = math.exp %60 : vector<2x8x128xf32>
    %cst_37 = arith.constant 1.000000e+00 : f32
    %62 = vector.broadcast %cst_37 : f32 to vector<2x8x128xf32>
    %63 = arith.addf %62, %61 : vector<2x8x128xf32>
    %64 = arith.divf %62, %63 : vector<2x8x128xf32>
    %65 = vector.extract_strided_slice %58 {offsets = [0, 0, 128], sizes = [2, 8, 128], strides = [1, 1, 1]} : vector<2x8x512xf32> to vector<2x8x128xf32>
    %66 = arith.negf %65 : vector<2x8x128xf32>
    %67 = math.exp %66 : vector<2x8x128xf32>
    %cst_38 = arith.constant 1.000000e+00 : f32
    %68 = vector.broadcast %cst_38 : f32 to vector<2x8x128xf32>
    %69 = arith.addf %68, %67 : vector<2x8x128xf32>
    %70 = arith.divf %68, %69 : vector<2x8x128xf32>
    %71 = vector.extract_strided_slice %58 {offsets = [0, 0, 256], sizes = [2, 8, 128], strides = [1, 1, 1]} : vector<2x8x512xf32> to vector<2x8x128xf32>
    %72 = math.tanh %71 : vector<2x8x128xf32>
    %73 = vector.extract_strided_slice %58 {offsets = [0, 0, 384], sizes = [2, 8, 128], strides = [1, 1, 1]} : vector<2x8x512xf32> to vector<2x8x128xf32>
    %74 = arith.negf %73 : vector<2x8x128xf32>
    %75 = math.exp %74 : vector<2x8x128xf32>
    %cst_39 = arith.constant 1.000000e+00 : f32
    %76 = vector.broadcast %cst_39 : f32 to vector<2x8x128xf32>
    %77 = arith.addf %76, %75 : vector<2x8x128xf32>
    %78 = arith.divf %76, %77 : vector<2x8x128xf32>
    %79 = arith.mulf %70, %41 : vector<2x8x128xf32>
    %80 = arith.mulf %64, %72 : vector<2x8x128xf32>
    %81 = arith.addf %79, %80 : vector<2x8x128xf32>
    %82 = math.tanh %81 : vector<2x8x128xf32>
    %83 = arith.mulf %78, %82 : vector<2x8x128xf32>
    %84 = arith.index_cast %c1_i32 : i32 to index
    %c0_40 = arith.constant 0 : index
    %c0_41 = arith.constant 0 : index
    %c0_42 = arith.constant 0 : index
    %85 = vector.load %arg5[%84, %c0_40, %c0_41, %c0_42] : memref<16x2x8x128xf32, #tpu.memory_space<vmem>>, vector<1x2x8x128xf32>
    %86 = vector.shape_cast %85 : vector<1x2x8x128xf32> to vector<2x8x128xf32>
    %87 = vector.shape_cast %83 : vector<2x8x128xf32> to vector<1x2x8x128xf32>
    tpu.vector_store %arg5[%84, %c0_40, %c0_41, %c0_42], %87 {strides = array<i32>} : memref<16x2x8x128xf32, #tpu.memory_space<vmem>>, vector<1x2x8x128xf32>,
    %c2_i32 = arith.constant 2 : i32
    %88 = arith.index_cast %c2_i32 : i32 to index
    %c0_43 = arith.constant 0 : index
    %c0_44 = arith.constant 0 : index
    %c0_45 = arith.constant 0 : index
    %89 = vector.load %arg1[%88, %c0_43, %c0_44, %c0_45] : memref<16x2x8x32xf32, #tpu.memory_space<vmem>>, vector<1x2x8x32xf32>
    %90 = vector.shape_cast %89 : vector<1x2x8x32xf32> to vector<2x8x32xf32>
    %91 = arith.truncf %90 : vector<2x8x32xf32> to vector<2x8x32xbf16>
    %c0_46 = arith.constant 0 : index
    %c0_47 = arith.constant 0 : index
    %c0_48 = arith.constant 0 : index
    %92 = vector.load %arg2[%c0_46, %c0_47, %c0_48] : memref<2x32x512xbf16, #tpu.memory_space<vmem>>, vector<2x32x512xbf16>
    "tpu.trace_start"() <{level = 10 : i32, message = "gbe,gef->gbf"}> : () -> ()
    %cst_49 = arith.constant dense<0.000000e+00> : vector<2x8x512xf32>
    %93 = tpu.matmul %91, %92, %cst_49 {dimension_numbers = #tpu.dot_dimension_numbers<[2], [1], [1], [2], [0, 0, 0, 1, 1, 2], [0], [0]>} : vector<2x8x32xbf16>, vector<2x32x512xbf16>, vector<2x8x512xf32> -> vector<2x8x512xf32>
    "tpu.trace_stop"() : () -> ()
    %94 = arith.truncf %83 : vector<2x8x128xf32> to vector<2x8x128xbf16>
    %c0_50 = arith.constant 0 : index
    %c0_51 = arith.constant 0 : index
    %c0_52 = arith.constant 0 : index
    %95 = vector.load %arg3[%c0_50, %c0_51, %c0_52] : memref<2x128x512xbf16, #tpu.memory_space<vmem>>, vector<2x128x512xbf16>
    "tpu.trace_start"() <{level = 10 : i32, message = "gbh,ghf->gbf"}> : () -> ()
    %cst_53 = arith.constant dense<0.000000e+00> : vector<2x8x512xf32>
    %96 = tpu.matmul %94, %95, %cst_53 {dimension_numbers = #tpu.dot_dimension_numbers<[2], [1], [1], [2], [0, 0, 0, 1, 1, 2], [0], [0]>} : vector<2x8x128xbf16>, vector<2x128x512xbf16>, vector<2x8x512xf32> -> vector<2x8x512xf32>
    "tpu.trace_stop"() : () -> ()
    %97 = arith.addf %93, %96 : vector<2x8x512xf32>
    %98 = arith.addf %97, %5 : vector<2x8x512xf32>
    %99 = vector.extract_strided_slice %98 {offsets = [0, 0, 0], sizes = [2, 8, 128], strides = [1, 1, 1]} : vector<2x8x512xf32> to vector<2x8x128xf32>
    %100 = arith.negf %99 : vector<2x8x128xf32>
    %101 = math.exp %100 : vector<2x8x128xf32>
    %cst_54 = arith.constant 1.000000e+00 : f32
    %102 = vector.broadcast %cst_54 : f32 to vector<2x8x128xf32>
    %103 = arith.addf %102, %101 : vector<2x8x128xf32>
    %104 = arith.divf %102, %103 : vector<2x8x128xf32>
    %105 = vector.extract_strided_slice %98 {offsets = [0, 0, 128], sizes = [2, 8, 128], strides = [1, 1, 1]} : vector<2x8x512xf32> to vector<2x8x128xf32>
    %106 = arith.negf %105 : vector<2x8x128xf32>
    %107 = math.exp %106 : vector<2x8x128xf32>
    %cst_55 = arith.constant 1.000000e+00 : f32
    %108 = vector.broadcast %cst_55 : f32 to vector<2x8x128xf32>
    %109 = arith.addf %108, %107 : vector<2x8x128xf32>
    %110 = arith.divf %108, %109 : vector<2x8x128xf32>
    %111 = vector.extract_strided_slice %98 {offsets = [0, 0, 256], sizes = [2, 8, 128], strides = [1, 1, 1]} : vector<2x8x512xf32> to vector<2x8x128xf32>
    %112 = math.tanh %111 : vector<2x8x128xf32>
    %113 = vector.extract_strided_slice %98 {offsets = [0, 0, 384], sizes = [2, 8, 128], strides = [1, 1, 1]} : vector<2x8x512xf32> to vector<2x8x128xf32>
    %114 = arith.negf %113 : vector<2x8x128xf32>
    %115 = math.exp %114 : vector<2x8x128xf32>
    %cst_56 = arith.constant 1.000000e+00 : f32
    %116 = vector.broadcast %cst_56 : f32 to vector<2x8x128xf32>
    %117 = arith.addf %116, %115 : vector<2x8x128xf32>
    %118 = arith.divf %116, %117 : vector<2x8x128xf32>
    %119 = arith.mulf %110, %81 : vector<2x8x128xf32>
    %120 = arith.mulf %104, %112 : vector<2x8x128xf32>
    %121 = arith.addf %119, %120 : vector<2x8x128xf32>
    %122 = math.tanh %121 : vector<2x8x128xf32>
    %123 = arith.mulf %118, %122 : vector<2x8x128xf32>
    %124 = arith.index_cast %c2_i32 : i32 to index
    %c0_57 = arith.constant 0 : index
    %c0_58 = arith.constant 0 : index
    %c0_59 = arith.constant 0 : index
    %125 = vector.load %arg5[%124, %c0_57, %c0_58, %c0_59] : memref<16x2x8x128xf32, #tpu.memory_space<vmem>>, vector<1x2x8x128xf32>
    %126 = vector.shape_cast %125 : vector<1x2x8x128xf32> to vector<2x8x128xf32>
    %127 = vector.shape_cast %123 : vector<2x8x128xf32> to vector<1x2x8x128xf32>
    tpu.vector_store %arg5[%124, %c0_57, %c0_58, %c0_59], %127 {strides = array<i32>} : memref<16x2x8x128xf32, #tpu.memory_space<vmem>>, vector<1x2x8x128xf32>,
    %c3_i32 = arith.constant 3 : i32
    %128 = arith.index_cast %c3_i32 : i32 to index
    %c0_60 = arith.constant 0 : index
    %c0_61 = arith.constant 0 : index
    %c0_62 = arith.constant 0 : index
    %129 = vector.load %arg1[%128, %c0_60, %c0_61, %c0_62] : memref<16x2x8x32xf32, #tpu.memory_space<vmem>>, vector<1x2x8x32xf32>
    %130 = vector.shape_cast %129 : vector<1x2x8x32xf32> to vector<2x8x32xf32>
    %131 = arith.truncf %130 : vector<2x8x32xf32> to vector<2x8x32xbf16>
    %c0_63 = arith.constant 0 : index
    %c0_64 = arith.constant 0 : index
    %c0_65 = arith.constant 0 : index
    %132 = vector.load %arg2[%c0_63, %c0_64, %c0_65] : memref<2x32x512xbf16, #tpu.memory_space<vmem>>, vector<2x32x512xbf16>
    "tpu.trace_start"() <{level = 10 : i32, message = "gbe,gef->gbf"}> : () -> ()
    %cst_66 = arith.constant dense<0.000000e+00> : vector<2x8x512xf32>
    %133 = tpu.matmul %131, %132, %cst_66 {dimension_numbers = #tpu.dot_dimension_numbers<[2], [1], [1], [2], [0, 0, 0, 1, 1, 2], [0], [0]>} : vector<2x8x32xbf16>, vector<2x32x512xbf16>, vector<2x8x512xf32> -> vector<2x8x512xf32>
    "tpu.trace_stop"() : () -> ()
    %134 = arith.truncf %123 : vector<2x8x128xf32> to vector<2x8x128xbf16>
    %c0_67 = arith.constant 0 : index
    %c0_68 = arith.constant 0 : index
    %c0_69 = arith.constant 0 : index
    %135 = vector.load %arg3[%c0_67, %c0_68, %c0_69] : memref<2x128x512xbf16, #tpu.memory_space<vmem>>, vector<2x128x512xbf16>
    "tpu.trace_start"() <{level = 10 : i32, message = "gbh,ghf->gbf"}> : () -> ()
    %cst_70 = arith.constant dense<0.000000e+00> : vector<2x8x512xf32>
    %136 = tpu.matmul %134, %135, %cst_70 {dimension_numbers = #tpu.dot_dimension_numbers<[2], [1], [1], [2], [0, 0, 0, 1, 1, 2], [0], [0]>} : vector<2x8x128xbf16>, vector<2x128x512xbf16>, vector<2x8x512xf32> -> vector<2x8x512xf32>
    "tpu.trace_stop"() : () -> ()
    %137 = arith.addf %133, %136 : vector<2x8x512xf32>
    %138 = arith.addf %137, %5 : vector<2x8x512xf32>
    %139 = vector.extract_strided_slice %138 {offsets = [0, 0, 0], sizes = [2, 8, 128], strides = [1, 1, 1]} : vector<2x8x512xf32> to vector<2x8x128xf32>
    %140 = arith.negf %139 : vector<2x8x128xf32>
    %141 = math.exp %140 : vector<2x8x128xf32>
    %cst_71 = arith.constant 1.000000e+00 : f32
    %142 = vector.broadcast %cst_71 : f32 to vector<2x8x128xf32>
    %143 = arith.addf %142, %141 : vector<2x8x128xf32>
    %144 = arith.divf %142, %143 : vector<2x8x128xf32>
    %145 = vector.extract_strided_slice %138 {offsets = [0, 0, 128], sizes = [2, 8, 128], strides = [1, 1, 1]} : vector<2x8x512xf32> to vector<2x8x128xf32>
    %146 = arith.negf %145 : vector<2x8x128xf32>
    %147 = math.exp %146 : vector<2x8x128xf32>
    %cst_72 = arith.constant 1.000000e+00 : f32
    %148 = vector.broadcast %cst_72 : f32 to vector<2x8x128xf32>
    %149 = arith.addf %148, %147 : vector<2x8x128xf32>
    %150 = arith.divf %148, %149 : vector<2x8x128xf32>
    %151 = vector.extract_strided_slice %138 {offsets = [0, 0, 256], sizes = [2, 8, 128], strides = [1, 1, 1]} : vector<2x8x512xf32> to vector<2x8x128xf32>
    %152 = math.tanh %151 : vector<2x8x128xf32>
    %153 = vector.extract_strided_slice %138 {offsets = [0, 0, 384], sizes = [2, 8, 128], strides = [1, 1, 1]} : vector<2x8x512xf32> to vector<2x8x128xf32>
    %154 = arith.negf %153 : vector<2x8x128xf32>
    %155 = math.exp %154 : vector<2x8x128xf32>
    %cst_73 = arith.constant 1.000000e+00 : f32
    %156 = vector.broadcast %cst_73 : f32 to vector<2x8x128xf32>
    %157 = arith.addf %156, %155 : vector<2x8x128xf32>
    %158 = arith.divf %156, %157 : vector<2x8x128xf32>
    %159 = arith.mulf %150, %121 : vector<2x8x128xf32>
    %160 = arith.mulf %144, %152 : vector<2x8x128xf32>
    %161 = arith.addf %159, %160 : vector<2x8x128xf32>
    %162 = math.tanh %161 : vector<2x8x128xf32>
    %163 = arith.mulf %158, %162 : vector<2x8x128xf32>
    %164 = arith.index_cast %c3_i32 : i32 to index
    %c0_74 = arith.constant 0 : index
    %c0_75 = arith.constant 0 : index
    %c0_76 = arith.constant 0 : index
    %165 = vector.load %arg5[%164, %c0_74, %c0_75, %c0_76] : memref<16x2x8x128xf32, #tpu.memory_space<vmem>>, vector<1x2x8x128xf32>
    %166 = vector.shape_cast %165 : vector<1x2x8x128xf32> to vector<2x8x128xf32>
    %167 = vector.shape_cast %163 : vector<2x8x128xf32> to vector<1x2x8x128xf32>
    tpu.vector_store %arg5[%164, %c0_74, %c0_75, %c0_76], %167 {strides = array<i32>} : memref<16x2x8x128xf32, #tpu.memory_space<vmem>>, vector<1x2x8x128xf32>,
    %c4_i32 = arith.constant 4 : i32
    %168 = arith.index_cast %c4_i32 : i32 to index
    %c0_77 = arith.constant 0 : index
    %c0_78 = arith.constant 0 : index
    %c0_79 = arith.constant 0 : index
    %169 = vector.load %arg1[%168, %c0_77, %c0_78, %c0_79] : memref<16x2x8x32xf32, #tpu.memory_space<vmem>>, vector<1x2x8x32xf32>
    %170 = vector.shape_cast %169 : vector<1x2x8x32xf32> to vector<2x8x32xf32>
    %171 = arith.truncf %170 : vector<2x8x32xf32> to vector<2x8x32xbf16>
    %c0_80 = arith.constant 0 : index
    %c0_81 = arith.constant 0 : index
    %c0_82 = arith.constant 0 : index
    %172 = vector.load %arg2[%c0_80, %c0_81, %c0_82] : memref<2x32x512xbf16, #tpu.memory_space<vmem>>, vector<2x32x512xbf16>
    "tpu.trace_start"() <{level = 10 : i32, message = "gbe,gef->gbf"}> : () -> ()
    %cst_83 = arith.constant dense<0.000000e+00> : vector<2x8x512xf32>
    %173 = tpu.matmul %171, %172, %cst_83 {dimension_numbers = #tpu.dot_dimension_numbers<[2], [1], [1], [2], [0, 0, 0, 1, 1, 2], [0], [0]>} : vector<2x8x32xbf16>, vector<2x32x512xbf16>, vector<2x8x512xf32> -> vector<2x8x512xf32>
    "tpu.trace_stop"() : () -> ()
    %174 = arith.truncf %163 : vector<2x8x128xf32> to vector<2x8x128xbf16>
    %c0_84 = arith.constant 0 : index
    %c0_85 = arith.constant 0 : index
    %c0_86 = arith.constant 0 : index
    %175 = vector.load %arg3[%c0_84, %c0_85, %c0_86] : memref<2x128x512xbf16, #tpu.memory_space<vmem>>, vector<2x128x512xbf16>
    "tpu.trace_start"() <{level = 10 : i32, message = "gbh,ghf->gbf"}> : () -> ()
    %cst_87 = arith.constant dense<0.000000e+00> : vector<2x8x512xf32>
    %176 = tpu.matmul %174, %175, %cst_87 {dimension_numbers = #tpu.dot_dimension_numbers<[2], [1], [1], [2], [0, 0, 0, 1, 1, 2], [0], [0]>} : vector<2x8x128xbf16>, vector<2x128x512xbf16>, vector<2x8x512xf32> -> vector<2x8x512xf32>
    "tpu.trace_stop"() : () -> ()
    %177 = arith.addf %173, %176 : vector<2x8x512xf32>
    %178 = arith.addf %177, %5 : vector<2x8x512xf32>
    %179 = vector.extract_strided_slice %178 {offsets = [0, 0, 0], sizes = [2, 8, 128], strides = [1, 1, 1]} : vector<2x8x512xf32> to vector<2x8x128xf32>
    %180 = arith.negf %179 : vector<2x8x128xf32>
    %181 = math.exp %180 : vector<2x8x128xf32>
    %cst_88 = arith.constant 1.000000e+00 : f32
    %182 = vector.broadcast %cst_88 : f32 to vector<2x8x128xf32>
    %183 = arith.addf %182, %181 : vector<2x8x128xf32>
    %184 = arith.divf %182, %183 : vector<2x8x128xf32>
    %185 = vector.extract_strided_slice %178 {offsets = [0, 0, 128], sizes = [2, 8, 128], strides = [1, 1, 1]} : vector<2x8x512xf32> to vector<2x8x128xf32>
    %186 = arith.negf %185 : vector<2x8x128xf32>
    %187 = math.exp %186 : vector<2x8x128xf32>
    %cst_89 = arith.constant 1.000000e+00 : f32
    %188 = vector.broadcast %cst_89 : f32 to vector<2x8x128xf32>
    %189 = arith.addf %188, %187 : vector<2x8x128xf32>
    %190 = arith.divf %188, %189 : vector<2x8x128xf32>
    %191 = vector.extract_strided_slice %178 {offsets = [0, 0, 256], sizes = [2, 8, 128], strides = [1, 1, 1]} : vector<2x8x512xf32> to vector<2x8x128xf32>
    %192 = math.tanh %191 : vector<2x8x128xf32>
    %193 = vector.extract_strided_slice %178 {offsets = [0, 0, 384], sizes = [2, 8, 128], strides = [1, 1, 1]} : vector<2x8x512xf32> to vector<2x8x128xf32>
    %194 = arith.negf %193 : vector<2x8x128xf32>
    %195 = math.exp %194 : vector<2x8x128xf32>
    %cst_90 = arith.constant 1.000000e+00 : f32
    %196 = vector.broadcast %cst_90 : f32 to vector<2x8x128xf32>
    %197 = arith.addf %196, %195 : vector<2x8x128xf32>
    %198 = arith.divf %196, %197 : vector<2x8x128xf32>
    %199 = arith.mulf %190, %161 : vector<2x8x128xf32>
    %200 = arith.mulf %184, %192 : vector<2x8x128xf32>
    %201 = arith.addf %199, %200 : vector<2x8x128xf32>
    %202 = math.tanh %201 : vector<2x8x128xf32>
    %203 = arith.mulf %198, %202 : vector<2x8x128xf32>
    %204 = arith.index_cast %c4_i32 : i32 to index
    %c0_91 = arith.constant 0 : index
    %c0_92 = arith.constant 0 : index
    %c0_93 = arith.constant 0 : index
    %205 = vector.load %arg5[%204, %c0_91, %c0_92, %c0_93] : memref<16x2x8x128xf32, #tpu.memory_space<vmem>>, vector<1x2x8x128xf32>
    %206 = vector.shape_cast %205 : vector<1x2x8x128xf32> to vector<2x8x128xf32>
    %207 = vector.shape_cast %203 : vector<2x8x128xf32> to vector<1x2x8x128xf32>
    tpu.vector_store %arg5[%204, %c0_91, %c0_92, %c0_93], %207 {strides = array<i32>} : memref<16x2x8x128xf32, #tpu.memory_space<vmem>>, vector<1x2x8x128xf32>,
    %c5_i32 = arith.constant 5 : i32
    %208 = arith.index_cast %c5_i32 : i32 to index
    %c0_94 = arith.constant 0 : index
    %c0_95 = arith.constant 0 : index
    %c0_96 = arith.constant 0 : index
    %209 = vector.load %arg1[%208, %c0_94, %c0_95, %c0_96] : memref<16x2x8x32xf32, #tpu.memory_space<vmem>>, vector<1x2x8x32xf32>
    %210 = vector.shape_cast %209 : vector<1x2x8x32xf32> to vector<2x8x32xf32>
    %211 = arith.truncf %210 : vector<2x8x32xf32> to vector<2x8x32xbf16>
    %c0_97 = arith.constant 0 : index
    %c0_98 = arith.constant 0 : index
    %c0_99 = arith.constant 0 : index
    %212 = vector.load %arg2[%c0_97, %c0_98, %c0_99] : memref<2x32x512xbf16, #tpu.memory_space<vmem>>, vector<2x32x512xbf16>
    "tpu.trace_start"() <{level = 10 : i32, message = "gbe,gef->gbf"}> : () -> ()
    %cst_100 = arith.constant dense<0.000000e+00> : vector<2x8x512xf32>
    %213 = tpu.matmul %211, %212, %cst_100 {dimension_numbers = #tpu.dot_dimension_numbers<[2], [1], [1], [2], [0, 0, 0, 1, 1, 2], [0], [0]>} : vector<2x8x32xbf16>, vector<2x32x512xbf16>, vector<2x8x512xf32> -> vector<2x8x512xf32>
    "tpu.trace_stop"() : () -> ()
    %214 = arith.truncf %203 : vector<2x8x128xf32> to vector<2x8x128xbf16>
    %c0_101 = arith.constant 0 : index
    %c0_102 = arith.constant 0 : index
    %c0_103 = arith.constant 0 : index
    %215 = vector.load %arg3[%c0_101, %c0_102, %c0_103] : memref<2x128x512xbf16, #tpu.memory_space<vmem>>, vector<2x128x512xbf16>
    "tpu.trace_start"() <{level = 10 : i32, message = "gbh,ghf->gbf"}> : () -> ()
    %cst_104 = arith.constant dense<0.000000e+00> : vector<2x8x512xf32>
    %216 = tpu.matmul %214, %215, %cst_104 {dimension_numbers = #tpu.dot_dimension_numbers<[2], [1], [1], [2], [0, 0, 0, 1, 1, 2], [0], [0]>} : vector<2x8x128xbf16>, vector<2x128x512xbf16>, vector<2x8x512xf32> -> vector<2x8x512xf32>
    "tpu.trace_stop"() : () -> ()
    %217 = arith.addf %213, %216 : vector<2x8x512xf32>
    %218 = arith.addf %217, %5 : vector<2x8x512xf32>
    %219 = vector.extract_strided_slice %218 {offsets = [0, 0, 0], sizes = [2, 8, 128], strides = [1, 1, 1]} : vector<2x8x512xf32> to vector<2x8x128xf32>
    %220 = arith.negf %219 : vector<2x8x128xf32>
    %221 = math.exp %220 : vector<2x8x128xf32>
    %cst_105 = arith.constant 1.000000e+00 : f32
    %222 = vector.broadcast %cst_105 : f32 to vector<2x8x128xf32>
    %223 = arith.addf %222, %221 : vector<2x8x128xf32>
    %224 = arith.divf %222, %223 : vector<2x8x128xf32>
    %225 = vector.extract_strided_slice %218 {offsets = [0, 0, 128], sizes = [2, 8, 128], strides = [1, 1, 1]} : vector<2x8x512xf32> to vector<2x8x128xf32>
    %226 = arith.negf %225 : vector<2x8x128xf32>
    %227 = math.exp %226 : vector<2x8x128xf32>
    %cst_106 = arith.constant 1.000000e+00 : f32
    %228 = vector.broadcast %cst_106 : f32 to vector<2x8x128xf32>
    %229 = arith.addf %228, %227 : vector<2x8x128xf32>
    %230 = arith.divf %228, %229 : vector<2x8x128xf32>
    %231 = vector.extract_strided_slice %218 {offsets = [0, 0, 256], sizes = [2, 8, 128], strides = [1, 1, 1]} : vector<2x8x512xf32> to vector<2x8x128xf32>
    %232 = math.tanh %231 : vector<2x8x128xf32>
    %233 = vector.extract_strided_slice %218 {offsets = [0, 0, 384], sizes = [2, 8, 128], strides = [1, 1, 1]} : vector<2x8x512xf32> to vector<2x8x128xf32>
    %234 = arith.negf %233 : vector<2x8x128xf32>
    %235 = math.exp %234 : vector<2x8x128xf32>
    %cst_107 = arith.constant 1.000000e+00 : f32
    %236 = vector.broadcast %cst_107 : f32 to vector<2x8x128xf32>
    %237 = arith.addf %236, %235 : vector<2x8x128xf32>
    %238 = arith.divf %236, %237 : vector<2x8x128xf32>
    %239 = arith.mulf %230, %201 : vector<2x8x128xf32>
    %240 = arith.mulf %224, %232 : vector<2x8x128xf32>
    %241 = arith.addf %239, %240 : vector<2x8x128xf32>
    %242 = math.tanh %241 : vector<2x8x128xf32>
    %243 = arith.mulf %238, %242 : vector<2x8x128xf32>
    %244 = arith.index_cast %c5_i32 : i32 to index
    %c0_108 = arith.constant 0 : index
    %c0_109 = arith.constant 0 : index
    %c0_110 = arith.constant 0 : index
    %245 = vector.load %arg5[%244, %c0_108, %c0_109, %c0_110] : memref<16x2x8x128xf32, #tpu.memory_space<vmem>>, vector<1x2x8x128xf32>
    %246 = vector.shape_cast %245 : vector<1x2x8x128xf32> to vector<2x8x128xf32>
    %247 = vector.shape_cast %243 : vector<2x8x128xf32> to vector<1x2x8x128xf32>
    tpu.vector_store %arg5[%244, %c0_108, %c0_109, %c0_110], %247 {strides = array<i32>} : memref<16x2x8x128xf32, #tpu.memory_space<vmem>>, vector<1x2x8x128xf32>,
    %c6_i32 = arith.constant 6 : i32
    %248 = arith.index_cast %c6_i32 : i32 to index
    %c0_111 = arith.constant 0 : index
    %c0_112 = arith.constant 0 : index
    %c0_113 = arith.constant 0 : index
    %249 = vector.load %arg1[%248, %c0_111, %c0_112, %c0_113] : memref<16x2x8x32xf32, #tpu.memory_space<vmem>>, vector<1x2x8x32xf32>
    %250 = vector.shape_cast %249 : vector<1x2x8x32xf32> to vector<2x8x32xf32>
    %251 = arith.truncf %250 : vector<2x8x32xf32> to vector<2x8x32xbf16>
    %c0_114 = arith.constant 0 : index
    %c0_115 = arith.constant 0 : index
    %c0_116 = arith.constant 0 : index
    %252 = vector.load %arg2[%c0_114, %c0_115, %c0_116] : memref<2x32x512xbf16, #tpu.memory_space<vmem>>, vector<2x32x512xbf16>
    "tpu.trace_start"() <{level = 10 : i32, message = "gbe,gef->gbf"}> : () -> ()
    %cst_117 = arith.constant dense<0.000000e+00> : vector<2x8x512xf32>
    %253 = tpu.matmul %251, %252, %cst_117 {dimension_numbers = #tpu.dot_dimension_numbers<[2], [1], [1], [2], [0, 0, 0, 1, 1, 2], [0], [0]>} : vector<2x8x32xbf16>, vector<2x32x512xbf16>, vector<2x8x512xf32> -> vector<2x8x512xf32>
    "tpu.trace_stop"() : () -> ()
    %254 = arith.truncf %243 : vector<2x8x128xf32> to vector<2x8x128xbf16>
    %c0_118 = arith.constant 0 : index
    %c0_119 = arith.constant 0 : index
    %c0_120 = arith.constant 0 : index
    %255 = vector.load %arg3[%c0_118, %c0_119, %c0_120] : memref<2x128x512xbf16, #tpu.memory_space<vmem>>, vector<2x128x512xbf16>
    "tpu.trace_start"() <{level = 10 : i32, message = "gbh,ghf->gbf"}> : () -> ()
    %cst_121 = arith.constant dense<0.000000e+00> : vector<2x8x512xf32>
    %256 = tpu.matmul %254, %255, %cst_121 {dimension_numbers = #tpu.dot_dimension_numbers<[2], [1], [1], [2], [0, 0, 0, 1, 1, 2], [0], [0]>} : vector<2x8x128xbf16>, vector<2x128x512xbf16>, vector<2x8x512xf32> -> vector<2x8x512xf32>
    "tpu.trace_stop"() : () -> ()
    %257 = arith.addf %253, %256 : vector<2x8x512xf32>
    %258 = arith.addf %257, %5 : vector<2x8x512xf32>
    %259 = vector.extract_strided_slice %258 {offsets = [0, 0, 0], sizes = [2, 8, 128], strides = [1, 1, 1]} : vector<2x8x512xf32> to vector<2x8x128xf32>
    %260 = arith.negf %259 : vector<2x8x128xf32>
    %261 = math.exp %260 : vector<2x8x128xf32>
    %cst_122 = arith.constant 1.000000e+00 : f32
    %262 = vector.broadcast %cst_122 : f32 to vector<2x8x128xf32>
    %263 = arith.addf %262, %261 : vector<2x8x128xf32>
    %264 = arith.divf %262, %263 : vector<2x8x128xf32>
    %265 = vector.extract_strided_slice %258 {offsets = [0, 0, 128], sizes = [2, 8, 128], strides = [1, 1, 1]} : vector<2x8x512xf32> to vector<2x8x128xf32>
    %266 = arith.negf %265 : vector<2x8x128xf32>
    %267 = math.exp %266 : vector<2x8x128xf32>
    %cst_123 = arith.constant 1.000000e+00 : f32
    %268 = vector.broadcast %cst_123 : f32 to vector<2x8x128xf32>
    %269 = arith.addf %268, %267 : vector<2x8x128xf32>
    %270 = arith.divf %268, %269 : vector<2x8x128xf32>
    %271 = vector.extract_strided_slice %258 {offsets = [0, 0, 256], sizes = [2, 8, 128], strides = [1, 1, 1]} : vector<2x8x512xf32> to vector<2x8x128xf32>
    %272 = math.tanh %271 : vector<2x8x128xf32>
    %273 = vector.extract_strided_slice %258 {offsets = [0, 0, 384], sizes = [2, 8, 128], strides = [1, 1, 1]} : vector<2x8x512xf32> to vector<2x8x128xf32>
    %274 = arith.negf %273 : vector<2x8x128xf32>
    %275 = math.exp %274 : vector<2x8x128xf32>
    %cst_124 = arith.constant 1.000000e+00 : f32
    %276 = vector.broadcast %cst_124 : f32 to vector<2x8x128xf32>
    %277 = arith.addf %276, %275 : vector<2x8x128xf32>
    %278 = arith.divf %276, %277 : vector<2x8x128xf32>
    %279 = arith.mulf %270, %241 : vector<2x8x128xf32>
    %280 = arith.mulf %264, %272 : vector<2x8x128xf32>
    %281 = arith.addf %279, %280 : vector<2x8x128xf32>
    %282 = math.tanh %281 : vector<2x8x128xf32>
    %283 = arith.mulf %278, %282 : vector<2x8x128xf32>
    %284 = arith.index_cast %c6_i32 : i32 to index
    %c0_125 = arith.constant 0 : index
    %c0_126 = arith.constant 0 : index
    %c0_127 = arith.constant 0 : index
    %285 = vector.load %arg5[%284, %c0_125, %c0_126, %c0_127] : memref<16x2x8x128xf32, #tpu.memory_space<vmem>>, vector<1x2x8x128xf32>
    %286 = vector.shape_cast %285 : vector<1x2x8x128xf32> to vector<2x8x128xf32>
    %287 = vector.shape_cast %283 : vector<2x8x128xf32> to vector<1x2x8x128xf32>
    tpu.vector_store %arg5[%284, %c0_125, %c0_126, %c0_127], %287 {strides = array<i32>} : memref<16x2x8x128xf32, #tpu.memory_space<vmem>>, vector<1x2x8x128xf32>,
    %c7_i32 = arith.constant 7 : i32
    %288 = arith.index_cast %c7_i32 : i32 to index
    %c0_128 = arith.constant 0 : index
    %c0_129 = arith.constant 0 : index
    %c0_130 = arith.constant 0 : index
    %289 = vector.load %arg1[%288, %c0_128, %c0_129, %c0_130] : memref<16x2x8x32xf32, #tpu.memory_space<vmem>>, vector<1x2x8x32xf32>
    %290 = vector.shape_cast %289 : vector<1x2x8x32xf32> to vector<2x8x32xf32>
    %291 = arith.truncf %290 : vector<2x8x32xf32> to vector<2x8x32xbf16>
    %c0_131 = arith.constant 0 : index
    %c0_132 = arith.constant 0 : index
    %c0_133 = arith.constant 0 : index
    %292 = vector.load %arg2[%c0_131, %c0_132, %c0_133] : memref<2x32x512xbf16, #tpu.memory_space<vmem>>, vector<2x32x512xbf16>
    "tpu.trace_start"() <{level = 10 : i32, message = "gbe,gef->gbf"}> : () -> ()
    %cst_134 = arith.constant dense<0.000000e+00> : vector<2x8x512xf32>
    %293 = tpu.matmul %291, %292, %cst_134 {dimension_numbers = #tpu.dot_dimension_numbers<[2], [1], [1], [2], [0, 0, 0, 1, 1, 2], [0], [0]>} : vector<2x8x32xbf16>, vector<2x32x512xbf16>, vector<2x8x512xf32> -> vector<2x8x512xf32>
    "tpu.trace_stop"() : () -> ()
    %294 = arith.truncf %283 : vector<2x8x128xf32> to vector<2x8x128xbf16>
    %c0_135 = arith.constant 0 : index
    %c0_136 = arith.constant 0 : index
    %c0_137 = arith.constant 0 : index
    %295 = vector.load %arg3[%c0_135, %c0_136, %c0_137] : memref<2x128x512xbf16, #tpu.memory_space<vmem>>, vector<2x128x512xbf16>
    "tpu.trace_start"() <{level = 10 : i32, message = "gbh,ghf->gbf"}> : () -> ()
    %cst_138 = arith.constant dense<0.000000e+00> : vector<2x8x512xf32>
    %296 = tpu.matmul %294, %295, %cst_138 {dimension_numbers = #tpu.dot_dimension_numbers<[2], [1], [1], [2], [0, 0, 0, 1, 1, 2], [0], [0]>} : vector<2x8x128xbf16>, vector<2x128x512xbf16>, vector<2x8x512xf32> -> vector<2x8x512xf32>
    "tpu.trace_stop"() : () -> ()
    %297 = arith.addf %293, %296 : vector<2x8x512xf32>
    %298 = arith.addf %297, %5 : vector<2x8x512xf32>
    %299 = vector.extract_strided_slice %298 {offsets = [0, 0, 0], sizes = [2, 8, 128], strides = [1, 1, 1]} : vector<2x8x512xf32> to vector<2x8x128xf32>
    %300 = arith.negf %299 : vector<2x8x128xf32>
    %301 = math.exp %300 : vector<2x8x128xf32>
    %cst_139 = arith.constant 1.000000e+00 : f32
    %302 = vector.broadcast %cst_139 : f32 to vector<2x8x128xf32>
    %303 = arith.addf %302, %301 : vector<2x8x128xf32>
    %304 = arith.divf %302, %303 : vector<2x8x128xf32>
    %305 = vector.extract_strided_slice %298 {offsets = [0, 0, 128], sizes = [2, 8, 128], strides = [1, 1, 1]} : vector<2x8x512xf32> to vector<2x8x128xf32>
    %306 = arith.negf %305 : vector<2x8x128xf32>
    %307 = math.exp %306 : vector<2x8x128xf32>
    %cst_140 = arith.constant 1.000000e+00 : f32
    %308 = vector.broadcast %cst_140 : f32 to vector<2x8x128xf32>
    %309 = arith.addf %308, %307 : vector<2x8x128xf32>
    %310 = arith.divf %308, %309 : vector<2x8x128xf32>
    %311 = vector.extract_strided_slice %298 {offsets = [0, 0, 256], sizes = [2, 8, 128], strides = [1, 1, 1]} : vector<2x8x512xf32> to vector<2x8x128xf32>
    %312 = math.tanh %311 : vector<2x8x128xf32>
    %313 = vector.extract_strided_slice %298 {offsets = [0, 0, 384], sizes = [2, 8, 128], strides = [1, 1, 1]} : vector<2x8x512xf32> to vector<2x8x128xf32>
    %314 = arith.negf %313 : vector<2x8x128xf32>
    %315 = math.exp %314 : vector<2x8x128xf32>
    %cst_141 = arith.constant 1.000000e+00 : f32
    %316 = vector.broadcast %cst_141 : f32 to vector<2x8x128xf32>
    %317 = arith.addf %316, %315 : vector<2x8x128xf32>
    %318 = arith.divf %316, %317 : vector<2x8x128xf32>
    %319 = arith.mulf %310, %281 : vector<2x8x128xf32>
    %320 = arith.mulf %304, %312 : vector<2x8x128xf32>
    %321 = arith.addf %319, %320 : vector<2x8x128xf32>
    %322 = math.tanh %321 : vector<2x8x128xf32>
    %323 = arith.mulf %318, %322 : vector<2x8x128xf32>
    %324 = arith.index_cast %c7_i32 : i32 to index
    %c0_142 = arith.constant 0 : index
    %c0_143 = arith.constant 0 : index
    %c0_144 = arith.constant 0 : index
    %325 = vector.load %arg5[%324, %c0_142, %c0_143, %c0_144] : memref<16x2x8x128xf32, #tpu.memory_space<vmem>>, vector<1x2x8x128xf32>
    %326 = vector.shape_cast %325 : vector<1x2x8x128xf32> to vector<2x8x128xf32>
    %327 = vector.shape_cast %323 : vector<2x8x128xf32> to vector<1x2x8x128xf32>
    tpu.vector_store %arg5[%324, %c0_142, %c0_143, %c0_144], %327 {strides = array<i32>} : memref<16x2x8x128xf32, #tpu.memory_space<vmem>>, vector<1x2x8x128xf32>,
    %c8_i32 = arith.constant 8 : i32
    %328 = arith.index_cast %c8_i32 : i32 to index
    %c0_145 = arith.constant 0 : index
    %c0_146 = arith.constant 0 : index
    %c0_147 = arith.constant 0 : index
    %329 = vector.load %arg1[%328, %c0_145, %c0_146, %c0_147] : memref<16x2x8x32xf32, #tpu.memory_space<vmem>>, vector<1x2x8x32xf32>
    %330 = vector.shape_cast %329 : vector<1x2x8x32xf32> to vector<2x8x32xf32>
    %331 = arith.truncf %330 : vector<2x8x32xf32> to vector<2x8x32xbf16>
    %c0_148 = arith.constant 0 : index
    %c0_149 = arith.constant 0 : index
    %c0_150 = arith.constant 0 : index
    %332 = vector.load %arg2[%c0_148, %c0_149, %c0_150] : memref<2x32x512xbf16, #tpu.memory_space<vmem>>, vector<2x32x512xbf16>
    "tpu.trace_start"() <{level = 10 : i32, message = "gbe,gef->gbf"}> : () -> ()
    %cst_151 = arith.constant dense<0.000000e+00> : vector<2x8x512xf32>
    %333 = tpu.matmul %331, %332, %cst_151 {dimension_numbers = #tpu.dot_dimension_numbers<[2], [1], [1], [2], [0, 0, 0, 1, 1, 2], [0], [0]>} : vector<2x8x32xbf16>, vector<2x32x512xbf16>, vector<2x8x512xf32> -> vector<2x8x512xf32>
    "tpu.trace_stop"() : () -> ()
    %334 = arith.truncf %323 : vector<2x8x128xf32> to vector<2x8x128xbf16>
    %c0_152 = arith.constant 0 : index
    %c0_153 = arith.constant 0 : index
    %c0_154 = arith.constant 0 : index
    %335 = vector.load %arg3[%c0_152, %c0_153, %c0_154] : memref<2x128x512xbf16, #tpu.memory_space<vmem>>, vector<2x128x512xbf16>
    "tpu.trace_start"() <{level = 10 : i32, message = "gbh,ghf->gbf"}> : () -> ()
    %cst_155 = arith.constant dense<0.000000e+00> : vector<2x8x512xf32>
    %336 = tpu.matmul %334, %335, %cst_155 {dimension_numbers = #tpu.dot_dimension_numbers<[2], [1], [1], [2], [0, 0, 0, 1, 1, 2], [0], [0]>} : vector<2x8x128xbf16>, vector<2x128x512xbf16>, vector<2x8x512xf32> -> vector<2x8x512xf32>
    "tpu.trace_stop"() : () -> ()
    %337 = arith.addf %333, %336 : vector<2x8x512xf32>
    %338 = arith.addf %337, %5 : vector<2x8x512xf32>
    %339 = vector.extract_strided_slice %338 {offsets = [0, 0, 0], sizes = [2, 8, 128], strides = [1, 1, 1]} : vector<2x8x512xf32> to vector<2x8x128xf32>
    %340 = arith.negf %339 : vector<2x8x128xf32>
    %341 = math.exp %340 : vector<2x8x128xf32>
    %cst_156 = arith.constant 1.000000e+00 : f32
    %342 = vector.broadcast %cst_156 : f32 to vector<2x8x128xf32>
    %343 = arith.addf %342, %341 : vector<2x8x128xf32>
    %344 = arith.divf %342, %343 : vector<2x8x128xf32>
    %345 = vector.extract_strided_slice %338 {offsets = [0, 0, 128], sizes = [2, 8, 128], strides = [1, 1, 1]} : vector<2x8x512xf32> to vector<2x8x128xf32>
    %346 = arith.negf %345 : vector<2x8x128xf32>
    %347 = math.exp %346 : vector<2x8x128xf32>
    %cst_157 = arith.constant 1.000000e+00 : f32
    %348 = vector.broadcast %cst_157 : f32 to vector<2x8x128xf32>
    %349 = arith.addf %348, %347 : vector<2x8x128xf32>
    %350 = arith.divf %348, %349 : vector<2x8x128xf32>
    %351 = vector.extract_strided_slice %338 {offsets = [0, 0, 256], sizes = [2, 8, 128], strides = [1, 1, 1]} : vector<2x8x512xf32> to vector<2x8x128xf32>
    %352 = math.tanh %351 : vector<2x8x128xf32>
    %353 = vector.extract_strided_slice %338 {offsets = [0, 0, 384], sizes = [2, 8, 128], strides = [1, 1, 1]} : vector<2x8x512xf32> to vector<2x8x128xf32>
    %354 = arith.negf %353 : vector<2x8x128xf32>
    %355 = math.exp %354 : vector<2x8x128xf32>
    %cst_158 = arith.constant 1.000000e+00 : f32
    %356 = vector.broadcast %cst_158 : f32 to vector<2x8x128xf32>
    %357 = arith.addf %356, %355 : vector<2x8x128xf32>
    %358 = arith.divf %356, %357 : vector<2x8x128xf32>
    %359 = arith.mulf %350, %321 : vector<2x8x128xf32>
    %360 = arith.mulf %344, %352 : vector<2x8x128xf32>
    %361 = arith.addf %359, %360 : vector<2x8x128xf32>
    %362 = math.tanh %361 : vector<2x8x128xf32>
    %363 = arith.mulf %358, %362 : vector<2x8x128xf32>
    %364 = arith.index_cast %c8_i32 : i32 to index
    %c0_159 = arith.constant 0 : index
    %c0_160 = arith.constant 0 : index
    %c0_161 = arith.constant 0 : index
    %365 = vector.load %arg5[%364, %c0_159, %c0_160, %c0_161] : memref<16x2x8x128xf32, #tpu.memory_space<vmem>>, vector<1x2x8x128xf32>
    %366 = vector.shape_cast %365 : vector<1x2x8x128xf32> to vector<2x8x128xf32>
    %367 = vector.shape_cast %363 : vector<2x8x128xf32> to vector<1x2x8x128xf32>
    tpu.vector_store %arg5[%364, %c0_159, %c0_160, %c0_161], %367 {strides = array<i32>} : memref<16x2x8x128xf32, #tpu.memory_space<vmem>>, vector<1x2x8x128xf32>,
    %c9_i32 = arith.constant 9 : i32
    %368 = arith.index_cast %c9_i32 : i32 to index
    %c0_162 = arith.constant 0 : index
    %c0_163 = arith.constant 0 : index
    %c0_164 = arith.constant 0 : index
    %369 = vector.load %arg1[%368, %c0_162, %c0_163, %c0_164] : memref<16x2x8x32xf32, #tpu.memory_space<vmem>>, vector<1x2x8x32xf32>
    %370 = vector.shape_cast %369 : vector<1x2x8x32xf32> to vector<2x8x32xf32>
    %371 = arith.truncf %370 : vector<2x8x32xf32> to vector<2x8x32xbf16>
    %c0_165 = arith.constant 0 : index
    %c0_166 = arith.constant 0 : index
    %c0_167 = arith.constant 0 : index
    %372 = vector.load %arg2[%c0_165, %c0_166, %c0_167] : memref<2x32x512xbf16, #tpu.memory_space<vmem>>, vector<2x32x512xbf16>
    "tpu.trace_start"() <{level = 10 : i32, message = "gbe,gef->gbf"}> : () -> ()
    %cst_168 = arith.constant dense<0.000000e+00> : vector<2x8x512xf32>
    %373 = tpu.matmul %371, %372, %cst_168 {dimension_numbers = #tpu.dot_dimension_numbers<[2], [1], [1], [2], [0, 0, 0, 1, 1, 2], [0], [0]>} : vector<2x8x32xbf16>, vector<2x32x512xbf16>, vector<2x8x512xf32> -> vector<2x8x512xf32>
    "tpu.trace_stop"() : () -> ()
    %374 = arith.truncf %363 : vector<2x8x128xf32> to vector<2x8x128xbf16>
    %c0_169 = arith.constant 0 : index
    %c0_170 = arith.constant 0 : index
    %c0_171 = arith.constant 0 : index
    %375 = vector.load %arg3[%c0_169, %c0_170, %c0_171] : memref<2x128x512xbf16, #tpu.memory_space<vmem>>, vector<2x128x512xbf16>
    "tpu.trace_start"() <{level = 10 : i32, message = "gbh,ghf->gbf"}> : () -> ()
    %cst_172 = arith.constant dense<0.000000e+00> : vector<2x8x512xf32>
    %376 = tpu.matmul %374, %375, %cst_172 {dimension_numbers = #tpu.dot_dimension_numbers<[2], [1], [1], [2], [0, 0, 0, 1, 1, 2], [0], [0]>} : vector<2x8x128xbf16>, vector<2x128x512xbf16>, vector<2x8x512xf32> -> vector<2x8x512xf32>
    "tpu.trace_stop"() : () -> ()
    %377 = arith.addf %373, %376 : vector<2x8x512xf32>
    %378 = arith.addf %377, %5 : vector<2x8x512xf32>
    %379 = vector.extract_strided_slice %378 {offsets = [0, 0, 0], sizes = [2, 8, 128], strides = [1, 1, 1]} : vector<2x8x512xf32> to vector<2x8x128xf32>
    %380 = arith.negf %379 : vector<2x8x128xf32>
    %381 = math.exp %380 : vector<2x8x128xf32>
    %cst_173 = arith.constant 1.000000e+00 : f32
    %382 = vector.broadcast %cst_173 : f32 to vector<2x8x128xf32>
    %383 = arith.addf %382, %381 : vector<2x8x128xf32>
    %384 = arith.divf %382, %383 : vector<2x8x128xf32>
    %385 = vector.extract_strided_slice %378 {offsets = [0, 0, 128], sizes = [2, 8, 128], strides = [1, 1, 1]} : vector<2x8x512xf32> to vector<2x8x128xf32>
    %386 = arith.negf %385 : vector<2x8x128xf32>
    %387 = math.exp %386 : vector<2x8x128xf32>
    %cst_174 = arith.constant 1.000000e+00 : f32
    %388 = vector.broadcast %cst_174 : f32 to vector<2x8x128xf32>
    %389 = arith.addf %388, %387 : vector<2x8x128xf32>
    %390 = arith.divf %388, %389 : vector<2x8x128xf32>
    %391 = vector.extract_strided_slice %378 {offsets = [0, 0, 256], sizes = [2, 8, 128], strides = [1, 1, 1]} : vector<2x8x512xf32> to vector<2x8x128xf32>
    %392 = math.tanh %391 : vector<2x8x128xf32>
    %393 = vector.extract_strided_slice %378 {offsets = [0, 0, 384], sizes = [2, 8, 128], strides = [1, 1, 1]} : vector<2x8x512xf32> to vector<2x8x128xf32>
    %394 = arith.negf %393 : vector<2x8x128xf32>
    %395 = math.exp %394 : vector<2x8x128xf32>
    %cst_175 = arith.constant 1.000000e+00 : f32
    %396 = vector.broadcast %cst_175 : f32 to vector<2x8x128xf32>
    %397 = arith.addf %396, %395 : vector<2x8x128xf32>
    %398 = arith.divf %396, %397 : vector<2x8x128xf32>
    %399 = arith.mulf %390, %361 : vector<2x8x128xf32>
    %400 = arith.mulf %384, %392 : vector<2x8x128xf32>
    %401 = arith.addf %399, %400 : vector<2x8x128xf32>
    %402 = math.tanh %401 : vector<2x8x128xf32>
    %403 = arith.mulf %398, %402 : vector<2x8x128xf32>
    %404 = arith.index_cast %c9_i32 : i32 to index
    %c0_176 = arith.constant 0 : index
    %c0_177 = arith.constant 0 : index
    %c0_178 = arith.constant 0 : index
    %405 = vector.load %arg5[%404, %c0_176, %c0_177, %c0_178] : memref<16x2x8x128xf32, #tpu.memory_space<vmem>>, vector<1x2x8x128xf32>
    %406 = vector.shape_cast %405 : vector<1x2x8x128xf32> to vector<2x8x128xf32>
    %407 = vector.shape_cast %403 : vector<2x8x128xf32> to vector<1x2x8x128xf32>
    tpu.vector_store %arg5[%404, %c0_176, %c0_177, %c0_178], %407 {strides = array<i32>} : memref<16x2x8x128xf32, #tpu.memory_space<vmem>>, vector<1x2x8x128xf32>,
    %c10_i32 = arith.constant 10 : i32
    %408 = arith.index_cast %c10_i32 : i32 to index
    %c0_179 = arith.constant 0 : index
    %c0_180 = arith.constant 0 : index
    %c0_181 = arith.constant 0 : index
    %409 = vector.load %arg1[%408, %c0_179, %c0_180, %c0_181] : memref<16x2x8x32xf32, #tpu.memory_space<vmem>>, vector<1x2x8x32xf32>
    %410 = vector.shape_cast %409 : vector<1x2x8x32xf32> to vector<2x8x32xf32>
    %411 = arith.truncf %410 : vector<2x8x32xf32> to vector<2x8x32xbf16>
    %c0_182 = arith.constant 0 : index
    %c0_183 = arith.constant 0 : index
    %c0_184 = arith.constant 0 : index
    %412 = vector.load %arg2[%c0_182, %c0_183, %c0_184] : memref<2x32x512xbf16, #tpu.memory_space<vmem>>, vector<2x32x512xbf16>
    "tpu.trace_start"() <{level = 10 : i32, message = "gbe,gef->gbf"}> : () -> ()
    %cst_185 = arith.constant dense<0.000000e+00> : vector<2x8x512xf32>
    %413 = tpu.matmul %411, %412, %cst_185 {dimension_numbers = #tpu.dot_dimension_numbers<[2], [1], [1], [2], [0, 0, 0, 1, 1, 2], [0], [0]>} : vector<2x8x32xbf16>, vector<2x32x512xbf16>, vector<2x8x512xf32> -> vector<2x8x512xf32>
    "tpu.trace_stop"() : () -> ()
    %414 = arith.truncf %403 : vector<2x8x128xf32> to vector<2x8x128xbf16>
    %c0_186 = arith.constant 0 : index
    %c0_187 = arith.constant 0 : index
    %c0_188 = arith.constant 0 : index
    %415 = vector.load %arg3[%c0_186, %c0_187, %c0_188] : memref<2x128x512xbf16, #tpu.memory_space<vmem>>, vector<2x128x512xbf16>
    "tpu.trace_start"() <{level = 10 : i32, message = "gbh,ghf->gbf"}> : () -> ()
    %cst_189 = arith.constant dense<0.000000e+00> : vector<2x8x512xf32>
    %416 = tpu.matmul %414, %415, %cst_189 {dimension_numbers = #tpu.dot_dimension_numbers<[2], [1], [1], [2], [0, 0, 0, 1, 1, 2], [0], [0]>} : vector<2x8x128xbf16>, vector<2x128x512xbf16>, vector<2x8x512xf32> -> vector<2x8x512xf32>
    "tpu.trace_stop"() : () -> ()
    %417 = arith.addf %413, %416 : vector<2x8x512xf32>
    %418 = arith.addf %417, %5 : vector<2x8x512xf32>
    %419 = vector.extract_strided_slice %418 {offsets = [0, 0, 0], sizes = [2, 8, 128], strides = [1, 1, 1]} : vector<2x8x512xf32> to vector<2x8x128xf32>
    %420 = arith.negf %419 : vector<2x8x128xf32>
    %421 = math.exp %420 : vector<2x8x128xf32>
    %cst_190 = arith.constant 1.000000e+00 : f32
    %422 = vector.broadcast %cst_190 : f32 to vector<2x8x128xf32>
    %423 = arith.addf %422, %421 : vector<2x8x128xf32>
    %424 = arith.divf %422, %423 : vector<2x8x128xf32>
    %425 = vector.extract_strided_slice %418 {offsets = [0, 0, 128], sizes = [2, 8, 128], strides = [1, 1, 1]} : vector<2x8x512xf32> to vector<2x8x128xf32>
    %426 = arith.negf %425 : vector<2x8x128xf32>
    %427 = math.exp %426 : vector<2x8x128xf32>
    %cst_191 = arith.constant 1.000000e+00 : f32
    %428 = vector.broadcast %cst_191 : f32 to vector<2x8x128xf32>
    %429 = arith.addf %428, %427 : vector<2x8x128xf32>
    %430 = arith.divf %428, %429 : vector<2x8x128xf32>
    %431 = vector.extract_strided_slice %418 {offsets = [0, 0, 256], sizes = [2, 8, 128], strides = [1, 1, 1]} : vector<2x8x512xf32> to vector<2x8x128xf32>
    %432 = math.tanh %431 : vector<2x8x128xf32>
    %433 = vector.extract_strided_slice %418 {offsets = [0, 0, 384], sizes = [2, 8, 128], strides = [1, 1, 1]} : vector<2x8x512xf32> to vector<2x8x128xf32>
    %434 = arith.negf %433 : vector<2x8x128xf32>
    %435 = math.exp %434 : vector<2x8x128xf32>
    %cst_192 = arith.constant 1.000000e+00 : f32
    %436 = vector.broadcast %cst_192 : f32 to vector<2x8x128xf32>
    %437 = arith.addf %436, %435 : vector<2x8x128xf32>
    %438 = arith.divf %436, %437 : vector<2x8x128xf32>
    %439 = arith.mulf %430, %401 : vector<2x8x128xf32>
    %440 = arith.mulf %424, %432 : vector<2x8x128xf32>
    %441 = arith.addf %439, %440 : vector<2x8x128xf32>
    %442 = math.tanh %441 : vector<2x8x128xf32>
    %443 = arith.mulf %438, %442 : vector<2x8x128xf32>
    %444 = arith.index_cast %c10_i32 : i32 to index
    %c0_193 = arith.constant 0 : index
    %c0_194 = arith.constant 0 : index
    %c0_195 = arith.constant 0 : index
    %445 = vector.load %arg5[%444, %c0_193, %c0_194, %c0_195] : memref<16x2x8x128xf32, #tpu.memory_space<vmem>>, vector<1x2x8x128xf32>
    %446 = vector.shape_cast %445 : vector<1x2x8x128xf32> to vector<2x8x128xf32>
    %447 = vector.shape_cast %443 : vector<2x8x128xf32> to vector<1x2x8x128xf32>
    tpu.vector_store %arg5[%444, %c0_193, %c0_194, %c0_195], %447 {strides = array<i32>} : memref<16x2x8x128xf32, #tpu.memory_space<vmem>>, vector<1x2x8x128xf32>,
    %c11_i32 = arith.constant 11 : i32
    %448 = arith.index_cast %c11_i32 : i32 to index
    %c0_196 = arith.constant 0 : index
    %c0_197 = arith.constant 0 : index
    %c0_198 = arith.constant 0 : index
    %449 = vector.load %arg1[%448, %c0_196, %c0_197, %c0_198] : memref<16x2x8x32xf32, #tpu.memory_space<vmem>>, vector<1x2x8x32xf32>
    %450 = vector.shape_cast %449 : vector<1x2x8x32xf32> to vector<2x8x32xf32>
    %451 = arith.truncf %450 : vector<2x8x32xf32> to vector<2x8x32xbf16>
    %c0_199 = arith.constant 0 : index
    %c0_200 = arith.constant 0 : index
    %c0_201 = arith.constant 0 : index
    %452 = vector.load %arg2[%c0_199, %c0_200, %c0_201] : memref<2x32x512xbf16, #tpu.memory_space<vmem>>, vector<2x32x512xbf16>
    "tpu.trace_start"() <{level = 10 : i32, message = "gbe,gef->gbf"}> : () -> ()
    %cst_202 = arith.constant dense<0.000000e+00> : vector<2x8x512xf32>
    %453 = tpu.matmul %451, %452, %cst_202 {dimension_numbers = #tpu.dot_dimension_numbers<[2], [1], [1], [2], [0, 0, 0, 1, 1, 2], [0], [0]>} : vector<2x8x32xbf16>, vector<2x32x512xbf16>, vector<2x8x512xf32> -> vector<2x8x512xf32>
    "tpu.trace_stop"() : () -> ()
    %454 = arith.truncf %443 : vector<2x8x128xf32> to vector<2x8x128xbf16>
    %c0_203 = arith.constant 0 : index
    %c0_204 = arith.constant 0 : index
    %c0_205 = arith.constant 0 : index
    %455 = vector.load %arg3[%c0_203, %c0_204, %c0_205] : memref<2x128x512xbf16, #tpu.memory_space<vmem>>, vector<2x128x512xbf16>
    "tpu.trace_start"() <{level = 10 : i32, message = "gbh,ghf->gbf"}> : () -> ()
    %cst_206 = arith.constant dense<0.000000e+00> : vector<2x8x512xf32>
    %456 = tpu.matmul %454, %455, %cst_206 {dimension_numbers = #tpu.dot_dimension_numbers<[2], [1], [1], [2], [0, 0, 0, 1, 1, 2], [0], [0]>} : vector<2x8x128xbf16>, vector<2x128x512xbf16>, vector<2x8x512xf32> -> vector<2x8x512xf32>
    "tpu.trace_stop"() : () -> ()
    %457 = arith.addf %453, %456 : vector<2x8x512xf32>
    %458 = arith.addf %457, %5 : vector<2x8x512xf32>
    %459 = vector.extract_strided_slice %458 {offsets = [0, 0, 0], sizes = [2, 8, 128], strides = [1, 1, 1]} : vector<2x8x512xf32> to vector<2x8x128xf32>
    %460 = arith.negf %459 : vector<2x8x128xf32>
    %461 = math.exp %460 : vector<2x8x128xf32>
    %cst_207 = arith.constant 1.000000e+00 : f32
    %462 = vector.broadcast %cst_207 : f32 to vector<2x8x128xf32>
    %463 = arith.addf %462, %461 : vector<2x8x128xf32>
    %464 = arith.divf %462, %463 : vector<2x8x128xf32>
    %465 = vector.extract_strided_slice %458 {offsets = [0, 0, 128], sizes = [2, 8, 128], strides = [1, 1, 1]} : vector<2x8x512xf32> to vector<2x8x128xf32>
    %466 = arith.negf %465 : vector<2x8x128xf32>
    %467 = math.exp %466 : vector<2x8x128xf32>
    %cst_208 = arith.constant 1.000000e+00 : f32
    %468 = vector.broadcast %cst_208 : f32 to vector<2x8x128xf32>
    %469 = arith.addf %468, %467 : vector<2x8x128xf32>
    %470 = arith.divf %468, %469 : vector<2x8x128xf32>
    %471 = vector.extract_strided_slice %458 {offsets = [0, 0, 256], sizes = [2, 8, 128], strides = [1, 1, 1]} : vector<2x8x512xf32> to vector<2x8x128xf32>
    %472 = math.tanh %471 : vector<2x8x128xf32>
    %473 = vector.extract_strided_slice %458 {offsets = [0, 0, 384], sizes = [2, 8, 128], strides = [1, 1, 1]} : vector<2x8x512xf32> to vector<2x8x128xf32>
    %474 = arith.negf %473 : vector<2x8x128xf32>
    %475 = math.exp %474 : vector<2x8x128xf32>
    %cst_209 = arith.constant 1.000000e+00 : f32
    %476 = vector.broadcast %cst_209 : f32 to vector<2x8x128xf32>
    %477 = arith.addf %476, %475 : vector<2x8x128xf32>
    %478 = arith.divf %476, %477 : vector<2x8x128xf32>
    %479 = arith.mulf %470, %441 : vector<2x8x128xf32>
    %480 = arith.mulf %464, %472 : vector<2x8x128xf32>
    %481 = arith.addf %479, %480 : vector<2x8x128xf32>
    %482 = math.tanh %481 : vector<2x8x128xf32>
    %483 = arith.mulf %478, %482 : vector<2x8x128xf32>
    %484 = arith.index_cast %c11_i32 : i32 to index
    %c0_210 = arith.constant 0 : index
    %c0_211 = arith.constant 0 : index
    %c0_212 = arith.constant 0 : index
    %485 = vector.load %arg5[%484, %c0_210, %c0_211, %c0_212] : memref<16x2x8x128xf32, #tpu.memory_space<vmem>>, vector<1x2x8x128xf32>
    %486 = vector.shape_cast %485 : vector<1x2x8x128xf32> to vector<2x8x128xf32>
    %487 = vector.shape_cast %483 : vector<2x8x128xf32> to vector<1x2x8x128xf32>
    tpu.vector_store %arg5[%484, %c0_210, %c0_211, %c0_212], %487 {strides = array<i32>} : memref<16x2x8x128xf32, #tpu.memory_space<vmem>>, vector<1x2x8x128xf32>,
    %c12_i32 = arith.constant 12 : i32
    %488 = arith.index_cast %c12_i32 : i32 to index
    %c0_213 = arith.constant 0 : index
    %c0_214 = arith.constant 0 : index
    %c0_215 = arith.constant 0 : index
    %489 = vector.load %arg1[%488, %c0_213, %c0_214, %c0_215] : memref<16x2x8x32xf32, #tpu.memory_space<vmem>>, vector<1x2x8x32xf32>
    %490 = vector.shape_cast %489 : vector<1x2x8x32xf32> to vector<2x8x32xf32>
    %491 = arith.truncf %490 : vector<2x8x32xf32> to vector<2x8x32xbf16>
    %c0_216 = arith.constant 0 : index
    %c0_217 = arith.constant 0 : index
    %c0_218 = arith.constant 0 : index
    %492 = vector.load %arg2[%c0_216, %c0_217, %c0_218] : memref<2x32x512xbf16, #tpu.memory_space<vmem>>, vector<2x32x512xbf16>
    "tpu.trace_start"() <{level = 10 : i32, message = "gbe,gef->gbf"}> : () -> ()
    %cst_219 = arith.constant dense<0.000000e+00> : vector<2x8x512xf32>
    %493 = tpu.matmul %491, %492, %cst_219 {dimension_numbers = #tpu.dot_dimension_numbers<[2], [1], [1], [2], [0, 0, 0, 1, 1, 2], [0], [0]>} : vector<2x8x32xbf16>, vector<2x32x512xbf16>, vector<2x8x512xf32> -> vector<2x8x512xf32>
    "tpu.trace_stop"() : () -> ()
    %494 = arith.truncf %483 : vector<2x8x128xf32> to vector<2x8x128xbf16>
    %c0_220 = arith.constant 0 : index
    %c0_221 = arith.constant 0 : index
    %c0_222 = arith.constant 0 : index
    %495 = vector.load %arg3[%c0_220, %c0_221, %c0_222] : memref<2x128x512xbf16, #tpu.memory_space<vmem>>, vector<2x128x512xbf16>
    "tpu.trace_start"() <{level = 10 : i32, message = "gbh,ghf->gbf"}> : () -> ()
    %cst_223 = arith.constant dense<0.000000e+00> : vector<2x8x512xf32>
    %496 = tpu.matmul %494, %495, %cst_223 {dimension_numbers = #tpu.dot_dimension_numbers<[2], [1], [1], [2], [0, 0, 0, 1, 1, 2], [0], [0]>} : vector<2x8x128xbf16>, vector<2x128x512xbf16>, vector<2x8x512xf32> -> vector<2x8x512xf32>
    "tpu.trace_stop"() : () -> ()
    %497 = arith.addf %493, %496 : vector<2x8x512xf32>
    %498 = arith.addf %497, %5 : vector<2x8x512xf32>
    %499 = vector.extract_strided_slice %498 {offsets = [0, 0, 0], sizes = [2, 8, 128], strides = [1, 1, 1]} : vector<2x8x512xf32> to vector<2x8x128xf32>
    %500 = arith.negf %499 : vector<2x8x128xf32>
    %501 = math.exp %500 : vector<2x8x128xf32>
    %cst_224 = arith.constant 1.000000e+00 : f32
    %502 = vector.broadcast %cst_224 : f32 to vector<2x8x128xf32>
    %503 = arith.addf %502, %501 : vector<2x8x128xf32>
    %504 = arith.divf %502, %503 : vector<2x8x128xf32>
    %505 = vector.extract_strided_slice %498 {offsets = [0, 0, 128], sizes = [2, 8, 128], strides = [1, 1, 1]} : vector<2x8x512xf32> to vector<2x8x128xf32>
    %506 = arith.negf %505 : vector<2x8x128xf32>
    %507 = math.exp %506 : vector<2x8x128xf32>
    %cst_225 = arith.constant 1.000000e+00 : f32
    %508 = vector.broadcast %cst_225 : f32 to vector<2x8x128xf32>
    %509 = arith.addf %508, %507 : vector<2x8x128xf32>
    %510 = arith.divf %508, %509 : vector<2x8x128xf32>
    %511 = vector.extract_strided_slice %498 {offsets = [0, 0, 256], sizes = [2, 8, 128], strides = [1, 1, 1]} : vector<2x8x512xf32> to vector<2x8x128xf32>
    %512 = math.tanh %511 : vector<2x8x128xf32>
    %513 = vector.extract_strided_slice %498 {offsets = [0, 0, 384], sizes = [2, 8, 128], strides = [1, 1, 1]} : vector<2x8x512xf32> to vector<2x8x128xf32>
    %514 = arith.negf %513 : vector<2x8x128xf32>
    %515 = math.exp %514 : vector<2x8x128xf32>
    %cst_226 = arith.constant 1.000000e+00 : f32
    %516 = vector.broadcast %cst_226 : f32 to vector<2x8x128xf32>
    %517 = arith.addf %516, %515 : vector<2x8x128xf32>
    %518 = arith.divf %516, %517 : vector<2x8x128xf32>
    %519 = arith.mulf %510, %481 : vector<2x8x128xf32>
    %520 = arith.mulf %504, %512 : vector<2x8x128xf32>
    %521 = arith.addf %519, %520 : vector<2x8x128xf32>
    %522 = math.tanh %521 : vector<2x8x128xf32>
    %523 = arith.mulf %518, %522 : vector<2x8x128xf32>
    %524 = arith.index_cast %c12_i32 : i32 to index
    %c0_227 = arith.constant 0 : index
    %c0_228 = arith.constant 0 : index
    %c0_229 = arith.constant 0 : index
    %525 = vector.load %arg5[%524, %c0_227, %c0_228, %c0_229] : memref<16x2x8x128xf32, #tpu.memory_space<vmem>>, vector<1x2x8x128xf32>
    %526 = vector.shape_cast %525 : vector<1x2x8x128xf32> to vector<2x8x128xf32>
    %527 = vector.shape_cast %523 : vector<2x8x128xf32> to vector<1x2x8x128xf32>
    tpu.vector_store %arg5[%524, %c0_227, %c0_228, %c0_229], %527 {strides = array<i32>} : memref<16x2x8x128xf32, #tpu.memory_space<vmem>>, vector<1x2x8x128xf32>,
    %c13_i32 = arith.constant 13 : i32
    %528 = arith.index_cast %c13_i32 : i32 to index
    %c0_230 = arith.constant 0 : index
    %c0_231 = arith.constant 0 : index
    %c0_232 = arith.constant 0 : index
    %529 = vector.load %arg1[%528, %c0_230, %c0_231, %c0_232] : memref<16x2x8x32xf32, #tpu.memory_space<vmem>>, vector<1x2x8x32xf32>
    %530 = vector.shape_cast %529 : vector<1x2x8x32xf32> to vector<2x8x32xf32>
    %531 = arith.truncf %530 : vector<2x8x32xf32> to vector<2x8x32xbf16>
    %c0_233 = arith.constant 0 : index
    %c0_234 = arith.constant 0 : index
    %c0_235 = arith.constant 0 : index
    %532 = vector.load %arg2[%c0_233, %c0_234, %c0_235] : memref<2x32x512xbf16, #tpu.memory_space<vmem>>, vector<2x32x512xbf16>
    "tpu.trace_start"() <{level = 10 : i32, message = "gbe,gef->gbf"}> : () -> ()
    %cst_236 = arith.constant dense<0.000000e+00> : vector<2x8x512xf32>
    %533 = tpu.matmul %531, %532, %cst_236 {dimension_numbers = #tpu.dot_dimension_numbers<[2], [1], [1], [2], [0, 0, 0, 1, 1, 2], [0], [0]>} : vector<2x8x32xbf16>, vector<2x32x512xbf16>, vector<2x8x512xf32> -> vector<2x8x512xf32>
    "tpu.trace_stop"() : () -> ()
    %534 = arith.truncf %523 : vector<2x8x128xf32> to vector<2x8x128xbf16>
    %c0_237 = arith.constant 0 : index
    %c0_238 = arith.constant 0 : index
    %c0_239 = arith.constant 0 : index
    %535 = vector.load %arg3[%c0_237, %c0_238, %c0_239] : memref<2x128x512xbf16, #tpu.memory_space<vmem>>, vector<2x128x512xbf16>
    "tpu.trace_start"() <{level = 10 : i32, message = "gbh,ghf->gbf"}> : () -> ()
    %cst_240 = arith.constant dense<0.000000e+00> : vector<2x8x512xf32>
    %536 = tpu.matmul %534, %535, %cst_240 {dimension_numbers = #tpu.dot_dimension_numbers<[2], [1], [1], [2], [0, 0, 0, 1, 1, 2], [0], [0]>} : vector<2x8x128xbf16>, vector<2x128x512xbf16>, vector<2x8x512xf32> -> vector<2x8x512xf32>
    "tpu.trace_stop"() : () -> ()
    %537 = arith.addf %533, %536 : vector<2x8x512xf32>
    %538 = arith.addf %537, %5 : vector<2x8x512xf32>
    %539 = vector.extract_strided_slice %538 {offsets = [0, 0, 0], sizes = [2, 8, 128], strides = [1, 1, 1]} : vector<2x8x512xf32> to vector<2x8x128xf32>
    %540 = arith.negf %539 : vector<2x8x128xf32>
    %541 = math.exp %540 : vector<2x8x128xf32>
    %cst_241 = arith.constant 1.000000e+00 : f32
    %542 = vector.broadcast %cst_241 : f32 to vector<2x8x128xf32>
    %543 = arith.addf %542, %541 : vector<2x8x128xf32>
    %544 = arith.divf %542, %543 : vector<2x8x128xf32>
    %545 = vector.extract_strided_slice %538 {offsets = [0, 0, 128], sizes = [2, 8, 128], strides = [1, 1, 1]} : vector<2x8x512xf32> to vector<2x8x128xf32>
    %546 = arith.negf %545 : vector<2x8x128xf32>
    %547 = math.exp %546 : vector<2x8x128xf32>
    %cst_242 = arith.constant 1.000000e+00 : f32
    %548 = vector.broadcast %cst_242 : f32 to vector<2x8x128xf32>
    %549 = arith.addf %548, %547 : vector<2x8x128xf32>
    %550 = arith.divf %548, %549 : vector<2x8x128xf32>
    %551 = vector.extract_strided_slice %538 {offsets = [0, 0, 256], sizes = [2, 8, 128], strides = [1, 1, 1]} : vector<2x8x512xf32> to vector<2x8x128xf32>
    %552 = math.tanh %551 : vector<2x8x128xf32>
    %553 = vector.extract_strided_slice %538 {offsets = [0, 0, 384], sizes = [2, 8, 128], strides = [1, 1, 1]} : vector<2x8x512xf32> to vector<2x8x128xf32>
    %554 = arith.negf %553 : vector<2x8x128xf32>
    %555 = math.exp %554 : vector<2x8x128xf32>
    %cst_243 = arith.constant 1.000000e+00 : f32
    %556 = vector.broadcast %cst_243 : f32 to vector<2x8x128xf32>
    %557 = arith.addf %556, %555 : vector<2x8x128xf32>
    %558 = arith.divf %556, %557 : vector<2x8x128xf32>
    %559 = arith.mulf %550, %521 : vector<2x8x128xf32>
    %560 = arith.mulf %544, %552 : vector<2x8x128xf32>
    %561 = arith.addf %559, %560 : vector<2x8x128xf32>
    %562 = math.tanh %561 : vector<2x8x128xf32>
    %563 = arith.mulf %558, %562 : vector<2x8x128xf32>
    %564 = arith.index_cast %c13_i32 : i32 to index
    %c0_244 = arith.constant 0 : index
    %c0_245 = arith.constant 0 : index
    %c0_246 = arith.constant 0 : index
    %565 = vector.load %arg5[%564, %c0_244, %c0_245, %c0_246] : memref<16x2x8x128xf32, #tpu.memory_space<vmem>>, vector<1x2x8x128xf32>
    %566 = vector.shape_cast %565 : vector<1x2x8x128xf32> to vector<2x8x128xf32>
    %567 = vector.shape_cast %563 : vector<2x8x128xf32> to vector<1x2x8x128xf32>
    tpu.vector_store %arg5[%564, %c0_244, %c0_245, %c0_246], %567 {strides = array<i32>} : memref<16x2x8x128xf32, #tpu.memory_space<vmem>>, vector<1x2x8x128xf32>,
    %c14_i32 = arith.constant 14 : i32
    %568 = arith.index_cast %c14_i32 : i32 to index
    %c0_247 = arith.constant 0 : index
    %c0_248 = arith.constant 0 : index
    %c0_249 = arith.constant 0 : index
    %569 = vector.load %arg1[%568, %c0_247, %c0_248, %c0_249] : memref<16x2x8x32xf32, #tpu.memory_space<vmem>>, vector<1x2x8x32xf32>
    %570 = vector.shape_cast %569 : vector<1x2x8x32xf32> to vector<2x8x32xf32>
    %571 = arith.truncf %570 : vector<2x8x32xf32> to vector<2x8x32xbf16>
    %c0_250 = arith.constant 0 : index
    %c0_251 = arith.constant 0 : index
    %c0_252 = arith.constant 0 : index
    %572 = vector.load %arg2[%c0_250, %c0_251, %c0_252] : memref<2x32x512xbf16, #tpu.memory_space<vmem>>, vector<2x32x512xbf16>
    "tpu.trace_start"() <{level = 10 : i32, message = "gbe,gef->gbf"}> : () -> ()
    %cst_253 = arith.constant dense<0.000000e+00> : vector<2x8x512xf32>
    %573 = tpu.matmul %571, %572, %cst_253 {dimension_numbers = #tpu.dot_dimension_numbers<[2], [1], [1], [2], [0, 0, 0, 1, 1, 2], [0], [0]>} : vector<2x8x32xbf16>, vector<2x32x512xbf16>, vector<2x8x512xf32> -> vector<2x8x512xf32>
    "tpu.trace_stop"() : () -> ()
    %574 = arith.truncf %563 : vector<2x8x128xf32> to vector<2x8x128xbf16>
    %c0_254 = arith.constant 0 : index
    %c0_255 = arith.constant 0 : index
    %c0_256 = arith.constant 0 : index
    %575 = vector.load %arg3[%c0_254, %c0_255, %c0_256] : memref<2x128x512xbf16, #tpu.memory_space<vmem>>, vector<2x128x512xbf16>
    "tpu.trace_start"() <{level = 10 : i32, message = "gbh,ghf->gbf"}> : () -> ()
    %cst_257 = arith.constant dense<0.000000e+00> : vector<2x8x512xf32>
    %576 = tpu.matmul %574, %575, %cst_257 {dimension_numbers = #tpu.dot_dimension_numbers<[2], [1], [1], [2], [0, 0, 0, 1, 1, 2], [0], [0]>} : vector<2x8x128xbf16>, vector<2x128x512xbf16>, vector<2x8x512xf32> -> vector<2x8x512xf32>
    "tpu.trace_stop"() : () -> ()
    %577 = arith.addf %573, %576 : vector<2x8x512xf32>
    %578 = arith.addf %577, %5 : vector<2x8x512xf32>
    %579 = vector.extract_strided_slice %578 {offsets = [0, 0, 0], sizes = [2, 8, 128], strides = [1, 1, 1]} : vector<2x8x512xf32> to vector<2x8x128xf32>
    %580 = arith.negf %579 : vector<2x8x128xf32>
    %581 = math.exp %580 : vector<2x8x128xf32>
    %cst_258 = arith.constant 1.000000e+00 : f32
    %582 = vector.broadcast %cst_258 : f32 to vector<2x8x128xf32>
    %583 = arith.addf %582, %581 : vector<2x8x128xf32>
    %584 = arith.divf %582, %583 : vector<2x8x128xf32>
    %585 = vector.extract_strided_slice %578 {offsets = [0, 0, 128], sizes = [2, 8, 128], strides = [1, 1, 1]} : vector<2x8x512xf32> to vector<2x8x128xf32>
    %586 = arith.negf %585 : vector<2x8x128xf32>
    %587 = math.exp %586 : vector<2x8x128xf32>
    %cst_259 = arith.constant 1.000000e+00 : f32
    %588 = vector.broadcast %cst_259 : f32 to vector<2x8x128xf32>
    %589 = arith.addf %588, %587 : vector<2x8x128xf32>
    %590 = arith.divf %588, %589 : vector<2x8x128xf32>
    %591 = vector.extract_strided_slice %578 {offsets = [0, 0, 256], sizes = [2, 8, 128], strides = [1, 1, 1]} : vector<2x8x512xf32> to vector<2x8x128xf32>
    %592 = math.tanh %591 : vector<2x8x128xf32>
    %593 = vector.extract_strided_slice %578 {offsets = [0, 0, 384], sizes = [2, 8, 128], strides = [1, 1, 1]} : vector<2x8x512xf32> to vector<2x8x128xf32>
    %594 = arith.negf %593 : vector<2x8x128xf32>
    %595 = math.exp %594 : vector<2x8x128xf32>
    %cst_260 = arith.constant 1.000000e+00 : f32
    %596 = vector.broadcast %cst_260 : f32 to vector<2x8x128xf32>
    %597 = arith.addf %596, %595 : vector<2x8x128xf32>
    %598 = arith.divf %596, %597 : vector<2x8x128xf32>
    %599 = arith.mulf %590, %561 : vector<2x8x128xf32>
    %600 = arith.mulf %584, %592 : vector<2x8x128xf32>
    %601 = arith.addf %599, %600 : vector<2x8x128xf32>
    %602 = math.tanh %601 : vector<2x8x128xf32>
    %603 = arith.mulf %598, %602 : vector<2x8x128xf32>
    %604 = arith.index_cast %c14_i32 : i32 to index
    %c0_261 = arith.constant 0 : index
    %c0_262 = arith.constant 0 : index
    %c0_263 = arith.constant 0 : index
    %605 = vector.load %arg5[%604, %c0_261, %c0_262, %c0_263] : memref<16x2x8x128xf32, #tpu.memory_space<vmem>>, vector<1x2x8x128xf32>
    %606 = vector.shape_cast %605 : vector<1x2x8x128xf32> to vector<2x8x128xf32>
    %607 = vector.shape_cast %603 : vector<2x8x128xf32> to vector<1x2x8x128xf32>
    tpu.vector_store %arg5[%604, %c0_261, %c0_262, %c0_263], %607 {strides = array<i32>} : memref<16x2x8x128xf32, #tpu.memory_space<vmem>>, vector<1x2x8x128xf32>,
    %c15_i32 = arith.constant 15 : i32
    %608 = arith.index_cast %c15_i32 : i32 to index
    %c0_264 = arith.constant 0 : index
    %c0_265 = arith.constant 0 : index
    %c0_266 = arith.constant 0 : index
    %609 = vector.load %arg1[%608, %c0_264, %c0_265, %c0_266] : memref<16x2x8x32xf32, #tpu.memory_space<vmem>>, vector<1x2x8x32xf32>
    %610 = vector.shape_cast %609 : vector<1x2x8x32xf32> to vector<2x8x32xf32>
    %611 = arith.truncf %610 : vector<2x8x32xf32> to vector<2x8x32xbf16>
    %c0_267 = arith.constant 0 : index
    %c0_268 = arith.constant 0 : index
    %c0_269 = arith.constant 0 : index
    %612 = vector.load %arg2[%c0_267, %c0_268, %c0_269] : memref<2x32x512xbf16, #tpu.memory_space<vmem>>, vector<2x32x512xbf16>
    "tpu.trace_start"() <{level = 10 : i32, message = "gbe,gef->gbf"}> : () -> ()
    %cst_270 = arith.constant dense<0.000000e+00> : vector<2x8x512xf32>
    %613 = tpu.matmul %611, %612, %cst_270 {dimension_numbers = #tpu.dot_dimension_numbers<[2], [1], [1], [2], [0, 0, 0, 1, 1, 2], [0], [0]>} : vector<2x8x32xbf16>, vector<2x32x512xbf16>, vector<2x8x512xf32> -> vector<2x8x512xf32>
    "tpu.trace_stop"() : () -> ()
    %614 = arith.truncf %603 : vector<2x8x128xf32> to vector<2x8x128xbf16>
    %c0_271 = arith.constant 0 : index
    %c0_272 = arith.constant 0 : index
    %c0_273 = arith.constant 0 : index
    %615 = vector.load %arg3[%c0_271, %c0_272, %c0_273] : memref<2x128x512xbf16, #tpu.memory_space<vmem>>, vector<2x128x512xbf16>
    "tpu.trace_start"() <{level = 10 : i32, message = "gbh,ghf->gbf"}> : () -> ()
    %cst_274 = arith.constant dense<0.000000e+00> : vector<2x8x512xf32>
    %616 = tpu.matmul %614, %615, %cst_274 {dimension_numbers = #tpu.dot_dimension_numbers<[2], [1], [1], [2], [0, 0, 0, 1, 1, 2], [0], [0]>} : vector<2x8x128xbf16>, vector<2x128x512xbf16>, vector<2x8x512xf32> -> vector<2x8x512xf32>
    "tpu.trace_stop"() : () -> ()
    %617 = arith.addf %613, %616 : vector<2x8x512xf32>
    %618 = arith.addf %617, %5 : vector<2x8x512xf32>
    %619 = vector.extract_strided_slice %618 {offsets = [0, 0, 0], sizes = [2, 8, 128], strides = [1, 1, 1]} : vector<2x8x512xf32> to vector<2x8x128xf32>
    %620 = arith.negf %619 : vector<2x8x128xf32>
    %621 = math.exp %620 : vector<2x8x128xf32>
    %cst_275 = arith.constant 1.000000e+00 : f32
    %622 = vector.broadcast %cst_275 : f32 to vector<2x8x128xf32>
    %623 = arith.addf %622, %621 : vector<2x8x128xf32>
    %624 = arith.divf %622, %623 : vector<2x8x128xf32>
    %625 = vector.extract_strided_slice %618 {offsets = [0, 0, 128], sizes = [2, 8, 128], strides = [1, 1, 1]} : vector<2x8x512xf32> to vector<2x8x128xf32>
    %626 = arith.negf %625 : vector<2x8x128xf32>
    %627 = math.exp %626 : vector<2x8x128xf32>
    %cst_276 = arith.constant 1.000000e+00 : f32
    %628 = vector.broadcast %cst_276 : f32 to vector<2x8x128xf32>
    %629 = arith.addf %628, %627 : vector<2x8x128xf32>
    %630 = arith.divf %628, %629 : vector<2x8x128xf32>
    %631 = vector.extract_strided_slice %618 {offsets = [0, 0, 256], sizes = [2, 8, 128], strides = [1, 1, 1]} : vector<2x8x512xf32> to vector<2x8x128xf32>
    %632 = math.tanh %631 : vector<2x8x128xf32>
    %633 = vector.extract_strided_slice %618 {offsets = [0, 0, 384], sizes = [2, 8, 128], strides = [1, 1, 1]} : vector<2x8x512xf32> to vector<2x8x128xf32>
    %634 = arith.negf %633 : vector<2x8x128xf32>
    %635 = math.exp %634 : vector<2x8x128xf32>
    %cst_277 = arith.constant 1.000000e+00 : f32
    %636 = vector.broadcast %cst_277 : f32 to vector<2x8x128xf32>
    %637 = arith.addf %636, %635 : vector<2x8x128xf32>
    %638 = arith.divf %636, %637 : vector<2x8x128xf32>
    %639 = arith.mulf %630, %601 : vector<2x8x128xf32>
    %640 = arith.mulf %624, %632 : vector<2x8x128xf32>
    %641 = arith.addf %639, %640 : vector<2x8x128xf32>
    %642 = math.tanh %641 : vector<2x8x128xf32>
    %643 = arith.mulf %638, %642 : vector<2x8x128xf32>
    %644 = arith.index_cast %c15_i32 : i32 to index
    %c0_278 = arith.constant 0 : index
    %c0_279 = arith.constant 0 : index
    %c0_280 = arith.constant 0 : index
    %645 = vector.load %arg5[%644, %c0_278, %c0_279, %c0_280] : memref<16x2x8x128xf32, #tpu.memory_space<vmem>>, vector<1x2x8x128xf32>
    %646 = vector.shape_cast %645 : vector<1x2x8x128xf32> to vector<2x8x128xf32>
    %647 = vector.shape_cast %643 : vector<2x8x128xf32> to vector<1x2x8x128xf32>
    tpu.vector_store %arg5[%644, %c0_278, %c0_279, %c0_280], %647 {strides = array<i32>} : memref<16x2x8x128xf32, #tpu.memory_space<vmem>>, vector<1x2x8x128xf32>,
    %c16_i32 = arith.constant 16 : i32
    %c0_281 = arith.constant 0 : index
    %c0_282 = arith.constant 0 : index
    %c0_283 = arith.constant 0 : index
    %648 = vector.load %arg6[%c0_281, %c0_282, %c0_283] : memref<2x8x128xf32, #tpu.memory_space<vmem>>, vector<2x8x128xf32>
    tpu.vector_store %arg6[%c0_281, %c0_282, %c0_283], %643 {strides = array<i32>} : memref<2x8x128xf32, #tpu.memory_space<vmem>>, vector<2x8x128xf32>,
    %c0_284 = arith.constant 0 : index
    %c0_285 = arith.constant 0 : index
    %c0_286 = arith.constant 0 : index
    %649 = vector.load %arg7[%c0_284, %c0_285, %c0_286] : memref<2x8x128xf32, #tpu.memory_space<vmem>>, vector<2x8x128xf32>
    tpu.vector_store %arg7[%c0_284, %c0_285, %c0_286], %641 {strides = array<i32>} : memref<2x8x128xf32, #tpu.memory_space<vmem>>, vector<2x8x128xf32>,
    return
  }
  func.func @transform_0(%arg0: i32) -> (i32, i32, i32, i32) {
    %c0_i32 = arith.constant 0 : i32
    %c0_i32_0 = arith.constant 0 : i32
    %c0_i32_1 = arith.constant 0 : i32
    %c0_i32_2 = arith.constant 0 : i32
    return %arg0, %c0_i32, %c0_i32_0, %c0_i32_1 : i32, i32, i32, i32
  }
  func.func @transform_1(%arg0: i32) -> (i32, i32, i32) {
    %c0_i32 = arith.constant 0 : i32
    %c0_i32_0 = arith.constant 0 : i32
    %c0_i32_1 = arith.constant 0 : i32
    %c0_i32_2 = arith.constant 0 : i32
    return %c0_i32, %c0_i32_0, %c0_i32_1 : i32, i32, i32
  }
  func.func @transform_2(%arg0: i32) -> (i32, i32, i32) {
    %c0_i32 = arith.constant 0 : i32
    %c0_i32_0 = arith.constant 0 : i32
    %c0_i32_1 = arith.constant 0 : i32
    %c0_i32_2 = arith.constant 0 : i32
    return %c0_i32, %c0_i32_0, %c0_i32_1 : i32, i32, i32
  }
  func.func @transform_3(%arg0: i32) -> (i32, i32, i32) {
    %c0_i32 = arith.constant 0 : i32
    %c0_i32_0 = arith.constant 0 : i32
    %c0_i32_1 = arith.constant 0 : i32
    %c0_i32_2 = arith.constant 0 : i32
    return %c0_i32, %c0_i32_0, %c0_i32_1 : i32, i32, i32
  }
  func.func @transform_4(%arg0: i32) -> (i32, i32, i32, i32) {
    %c0_i32 = arith.constant 0 : i32
    %c0_i32_0 = arith.constant 0 : i32
    %c0_i32_1 = arith.constant 0 : i32
    %c0_i32_2 = arith.constant 0 : i32
    return %arg0, %c0_i32, %c0_i32_0, %c0_i32_1 : i32, i32, i32, i32
  }
}

</mosaic_0001>

<bundles_post_ra>
// kernel: tpu_custom_call.1
= control target key start
LH: loop header
LB: loop body
LE: loop exit
PB: predicated region body
PF: predicated region fallthrough
CT: control target
= control target key end

     0   :  { %9 = vsyncpa [#allocation5], 0  ;;  %s20222_s0 = inlined_call_operand.hbm [shape: f32[16,2,8,32], index: 0, kind: input, shape index: {}]   ;;  %s20223_s1 = inlined_call_operand.hbm [shape: bf16[2,32,512], index: 1, kind: input, shape index: {}]   ;;  %s20224_s2 = inlined_call_operand.hbm [shape: bf16[2,128,512], index: 2, kind: input, shape index: {}]   ;;  %s20225_s3 = inlined_call_operand.vmem [shape: f32[2,1,512], index: 3, kind: input, shape index: {}]   ;;  %s20226_s4 = inlined_call_operand.hbm [shape: f32[16,2,8,128], index: 4, kind: output, shape index: {}]  }
   0x1   :  { %10 = vsyncpa [#allocation8], 0 }
   0x2   :  { %11 = vsyncpa [#allocation6], 0  ;;  %s17279_s15 = smov [#allocation7]   ;;  %s17185_s19 = scalar_lea.hbm %s20223_s1, 2048 }
   0x3   :  { %s29_s16 = sshll.u32 %s17279_s15, 4  ;;  %p17186_p0 = scmp.ne.s32.totalorder %s20223_s1, %s17185_s19  ;;  %s30_s16 = int_to_ptr.vmem [resolvable:$true] %s29_s16 }
   0x4   :  { %p17189_p1 = scmp.lt.u32.totalorder %s17185_s19, %s20223_s1 }
   0x6   :  { %p17191_p2 = pnand %p17189_p1, %p17186_p0 }
   0x8   :  { %17194 = shalt.err (!%p17191_p2)
}
   0x9   :  { %s17195_s24 = scalar_lea.vmem %s30_s16, 2048  ;;  %p17200_p4 = scmp.lt.s32.totalorder %s30_s16, %s30_s16 }
   0xa   :  { %p17196_p3 = scmp.ne.s32.totalorder %s30_s16, %s17195_s24  ;;  %p17201_p5 = scmp.lt.s32.totalorder %s17195_s24, %s17195_s24 }
   0xc   :  { %p17202_p6 = por %p17201_p5, %p17200_p4 }
   0xe   :  { %p17203_p7 = pnand %p17202_p6, %p17196_p3 }
  0x10   :  { %17206 = shalt.err (!%p17203_p7)
}
  0x11   :  { %s17280_s25 = smov 256   ;;  %s17281_s26 = smov 16  }
  0x12   :  { %35 = dma.hbm_to_vmem [thread:$0]  %s20223_s1, 2048, %s30_s16, [#allocation8], %s17280_s25, %s17280_s25, %s17281_s26  }
  0x13   :  { %s17282_s29 = smov [#allocation4]   ;;  %s17207_s7 = scalar_lea.hbm %s20222_s0, 4096 }
  0x14   :  { %s17_s30 = sshll.u32 %s17282_s29, 4  ;;  %p17208_p8 = scmp.ne.s32.totalorder %s20222_s0, %s17207_s7  ;;  %s18_s30 = int_to_ptr.vmem [resolvable:$true] %s17_s30 }
  0x15   :  { %p17211_p9 = scmp.lt.u32.totalorder %s17207_s7, %s20222_s0 }
  0x17   :  { %p17213_p10 = pnand %p17211_p9, %p17208_p8 }
  0x19   :  { %17216 = shalt.err (!%p17213_p10)
}
  0x1a   :  { %s17217_s12 = scalar_lea.vmem %s18_s30, 4096  ;;  %p17222_p12 = scmp.lt.s32.totalorder %s18_s30, %s18_s30 }
  0x1b   :  { %p17218_p11 = scmp.ne.s32.totalorder %s18_s30, %s17217_s12  ;;  %p17223_p13 = scmp.lt.s32.totalorder %s17217_s12, %s17217_s12 }
  0x1d   :  { %p17224_p0 = por %p17223_p13, %p17222_p12 }
  0x1f   :  { %p17225_p1 = pnand %p17224_p0, %p17218_p11 }
  0x21   :  { %17228 = shalt.err (!%p17225_p1)
}
  0x22   :  { %s17283_s1 = smov 128   ;;  %s17284_s13 = smov 8  }
  0x23   :  { %23 = dma.hbm_to_vmem [thread:$0]  %s20222_s0, 4096, %s18_s30, [#allocation5], %s17283_s1, %s17283_s1, %s17284_s13  }
  0x24   :  { %s17285_s16 = smov [#allocation9]   ;;  %s17229_s20 = scalar_lea.hbm %s20224_s2, 8192 }
  0x25   :  { %s41_s17 = sshll.u32 %s17285_s16, 4  ;;  %p17230_p2 = scmp.ne.s32.totalorder %s20224_s2, %s17229_s20  ;;  %s42_s17 = int_to_ptr.vmem [resolvable:$true] %s41_s17 }
  0x26   :  { %p17233_p3 = scmp.lt.u32.totalorder %s17229_s20, %s20224_s2 }
  0x28   :  { %p17235_p4 = pnand %p17233_p3, %p17230_p2 }
  0x2a   :  { %17238 = shalt.err (!%p17235_p4)
}
  0x2b   :  { %s17239_s27 = scalar_lea.vmem %s42_s17, 8192  ;;  %p17244_p6 = scmp.lt.s32.totalorder %s42_s17, %s42_s17 }
  0x2c   :  { %p17240_p5 = scmp.ne.s32.totalorder %s42_s17, %s17239_s27  ;;  %p17245_p7 = scmp.lt.s32.totalorder %s17239_s27, %s17239_s27 }
  0x2e   :  { %p17246_p8 = por %p17245_p7, %p17244_p6 }
  0x30   :  { %p17247_p9 = pnand %p17246_p8, %p17240_p5 }
  0x32   :  { %17250 = shalt.err (!%p17247_p9)
}
  0x33   :  { %47 = dma.hbm_to_vmem [thread:$0]  %s20224_s2, 8192, %s42_s17, [#allocation8], %s17280_s25, %s17280_s25, %s17281_s26  }
  0x34   :  { %17273 = dma.done.wait [#allocation5], 4096  }
  0x35   :  { %17274 = vsyncadd [#allocation5], 4294963200 }
  0x36   :  { %17275 = dma.done.wait [#allocation8], 10240  }
  0x37   :  { %17276 = vsyncadd [#allocation8], 4294957056  ;;  %v20227_v0 = vmov 0   ;;  %v17361_v1 = vld [vmem:[#allocation9 + $0x4] ss:$16 sps:$4 sm:$0xff]   ;;  %v17287_v39 = vmov 0.0|0.0  }
  0x38   :  { %394 = vmatprep.mubr.bf16.mxu0 %v20227_v0  ;;  %435 = vmatprep.mubr.bf16.mxu1 %v20227_v0  ;;  %v17363_v2 = vld [vmem:[#allocation9 + $0xc] ss:$16 sps:$4 sm:$0xff]   ;;  %v17366_v3 = vld [vmem:[#allocation9] ss:$16 sps:$4 sm:$0xff]   ;;  %v17368_v4 = vld [vmem:[#allocation9 + $0x8] ss:$16 sps:$4 sm:$0xff]  }
  0x39   :  { %362 = vmatprep.subr.bf16.mxu0 %v17361_v1  ;;  %403 = vmatprep.subr.bf16.mxu1 %v17363_v2  ;;  %v17371_v5 = vld [vmem:[#allocation9 + $0x24] ss:$16 sps:$4 sm:$0xff]   ;;  %v17375_v6 = vld [vmem:[#allocation9 + $0x2c] ss:$16 sps:$4 sm:$0xff]   ;;  %v17377_v7 = vld [vmem:[#allocation9 + $0x20] ss:$16 sps:$4 sm:$0xff]  }
  0x3a   :  { %363 = vmatpush1.bf16.msra.mxu0 %v17366_v3  ;;  %404 = vmatpush1.bf16.msra.mxu1 %v17368_v4  ;;  %v17380_v8 = vld [vmem:[#allocation9 + $0x28] ss:$16 sps:$4 sm:$0xff]   ;;  %v17383_v9 = vld [vmem:[#allocation9 + $0x44] ss:$16 sps:$4 sm:$0xff]   ;;  %v17385_v10 = vld [vmem:[#allocation9 + $0x4c] ss:$16 sps:$4 sm:$0xff]  }
  0x3b   :  { %364 = vmatprep.subr.bf16.mxu0 %v17371_v5  ;;  %405 = vmatprep.subr.bf16.mxu1 %v17375_v6  ;;  %v17387_v11 = vld [vmem:[#allocation9 + $0x40] ss:$16 sps:$4 sm:$0xff]   ;;  %v17389_v12 = vld [vmem:[#allocation9 + $0x48] ss:$16 sps:$4 sm:$0xff]   ;;  %v17393_v13 = vld [vmem:[#allocation9 + $0x64] ss:$16 sps:$4 sm:$0xff]  }
  0x3c   :  { %v17397_v14 = vld [vmem:[#allocation9 + $0x6c] ss:$16 sps:$4 sm:$0xff]   ;;  %v17399_v15 = vld [vmem:[#allocation9 + $0x60] ss:$16 sps:$4 sm:$0xff]   ;;  %v17403_v16 = vld [vmem:[#allocation9 + $0x68] ss:$16 sps:$4 sm:$0xff]  }
  0x3d   :  { %v17405_v17 = vld [vmem:[#allocation9 + $0x84] ss:$16 sps:$4 sm:$0xff]   ;;  %v17409_v18 = vld [vmem:[#allocation9 + $0x8c] ss:$16 sps:$4 sm:$0xff]   ;;  %v17411_v19 = vld [vmem:[#allocation9 + $0x80] ss:$16 sps:$4 sm:$0xff]  }
  0x3e   :  { %365 = vmatpush1.bf16.msra.mxu0 %v17377_v7  ;;  %406 = vmatpush1.bf16.msra.mxu1 %v17380_v8  ;;  %v17413_v20 = vld [vmem:[#allocation9 + $0x88] ss:$16 sps:$4 sm:$0xff]   ;;  %v17417_v21 = vld [vmem:[#allocation9 + $0xa4] ss:$16 sps:$4 sm:$0xff]   ;;  %v17421_v22 = vld [vmem:[#allocation9 + $0xac] ss:$16 sps:$4 sm:$0xff]  }
  0x3f   :  { %366 = vmatprep.subr.bf16.mxu0 %v17383_v9  ;;  %407 = vmatprep.subr.bf16.mxu1 %v17385_v10  ;;  %v17423_v23 = vld [vmem:[#allocation9 + $0xa0] ss:$16 sps:$4 sm:$0xff]   ;;  %v17427_v24 = vld [vmem:[#allocation9 + $0xa8] ss:$16 sps:$4 sm:$0xff]   ;;  %v17429_v25 = vld [vmem:[#allocation9 + $0xc4] ss:$16 sps:$4 sm:$0xff]  }
  0x40   :  { %v17433_v26 = vld [vmem:[#allocation9 + $0xcc] ss:$16 sps:$4 sm:$0xff]   ;;  %v17435_v27 = vld [vmem:[#allocation9 + $0xc0] ss:$16 sps:$4 sm:$0xff]   ;;  %v17437_v28 = vld [vmem:[#allocation9 + $0xc8] ss:$16 sps:$4 sm:$0xff]  }
  0x41   :  { %v17441_v29 = vld [vmem:[#allocation9 + $0xe4] ss:$16 sps:$4 sm:$0xff]   ;;  %v17445_v30 = vld [vmem:[#allocation9 + $0xec] ss:$16 sps:$4 sm:$0xff]   ;;  %v17447_v31 = vld [vmem:[#allocation9 + $0xe0] ss:$16 sps:$4 sm:$0xff]  }
  0x42   :  { %367 = vmatpush1.bf16.msra.mxu0 %v17387_v11  ;;  %408 = vmatpush1.bf16.msra.mxu1 %v17389_v12  ;;  %v17449_v32 = vld [vmem:[#allocation9 + $0xe8] ss:$16 sps:$4 sm:$0xff]   ;;  %v17453_v33 = vld [vmem:[#allocation9 + $0x104] ss:$16 sps:$4 sm:$0xff]   ;;  %v17457_v34 = vld [vmem:[#allocation9 + $0x10c] ss:$16 sps:$4 sm:$0xff]  }
  0x43   :  { %368 = vmatprep.subr.bf16.mxu0 %v17393_v13  ;;  %409 = vmatprep.subr.bf16.mxu1 %v17397_v14  ;;  %v15715_v35 = vld [vmem:[#allocation9 + $0x100] ss:$16 sps:$4 sm:$0xff]   ;;  %v15718_v36 = vld [vmem:[#allocation9 + $0x108] ss:$16 sps:$4 sm:$0xff]   ;;  %v15723_v37 = vld [vmem:[#allocation9 + $0x124] ss:$16 sps:$4 sm:$0xff]  }
  0x44   :  { %v15726_v38 = vld [vmem:[#allocation9 + $0x12c] ss:$16 sps:$4 sm:$0xff]   ;;  %v15721_v40 = vld [vmem:[#allocation9 + $0x120] ss:$16 sps:$4 sm:$0xff]   ;;  %v15724_v41 = vld [vmem:[#allocation9 + $0x128] ss:$16 sps:$4 sm:$0xff]  }
  0x45   :  { %v15729_v42 = vld [vmem:[#allocation9 + $0x144] ss:$16 sps:$4 sm:$0xff]   ;;  %v15732_v43 = vld [vmem:[#allocation9 + $0x14c] ss:$16 sps:$4 sm:$0xff]   ;;  %v15727_v44 = vld [vmem:[#allocation9 + $0x140] ss:$16 sps:$4 sm:$0xff]  }
  0x46   :  { %369 = vmatpush1.bf16.msra.mxu0 %v17399_v15  ;;  %410 = vmatpush1.bf16.msra.mxu1 %v17403_v16  ;;  %v15730_v45 = vld [vmem:[#allocation9 + $0x148] ss:$16 sps:$4 sm:$0xff]   ;;  %v15735_v46 = vld [vmem:[#allocation9 + $0x164] ss:$16 sps:$4 sm:$0xff]   ;;  %v15738_v47 = vld [vmem:[#allocation9 + $0x16c] ss:$16 sps:$4 sm:$0xff]  }
  0x47   :  { %370 = vmatprep.subr.bf16.mxu0 %v17405_v17  ;;  %411 = vmatprep.subr.bf16.mxu1 %v17409_v18  ;;  %v15733_v48 = vld [vmem:[#allocation9 + $0x160] ss:$16 sps:$4 sm:$0xff]   ;;  %v15736_v49 = vld [vmem:[#allocation9 + $0x168] ss:$16 sps:$4 sm:$0xff]   ;;  %v15741_v50 = vld [vmem:[#allocation9 + $0x184] ss:$16 sps:$4 sm:$0xff]  }
  0x48   :  { %v15744_v51 = vld [vmem:[#allocation9 + $0x18c] ss:$16 sps:$4 sm:$0xff]   ;;  %v15739_v52 = vld [vmem:[#allocation9 + $0x180] ss:$16 sps:$4 sm:$0xff]   ;;  %v15742_v53 = vld [vmem:[#allocation9 + $0x188] ss:$16 sps:$4 sm:$0xff]  }
  0x49   :  { %v15747_v54 = vld [vmem:[#allocation9 + $0x1a4] ss:$16 sps:$4 sm:$0xff]   ;;  %v15750_v55 = vld [vmem:[#allocation9 + $0x1ac] ss:$16 sps:$4 sm:$0xff]   ;;  %v15745_v56 = vld [vmem:[#allocation9 + $0x1a0] ss:$16 sps:$4 sm:$0xff]  }
  0x4a   :  { %371 = vmatpush1.bf16.msra.mxu0 %v17411_v19  ;;  %412 = vmatpush1.bf16.msra.mxu1 %v17413_v20  ;;  %v15748_v57 = vld [vmem:[#allocation9 + $0x1a8] ss:$16 sps:$4 sm:$0xff]   ;;  %v15753_v58 = vld [vmem:[#allocation9 + $0x1c4] ss:$16 sps:$4 sm:$0xff]   ;;  %v15756_v59 = vld [vmem:[#allocation9 + $0x1cc] ss:$16 sps:$4 sm:$0xff]  }
  0x4b   :  { %372 = vmatprep.subr.bf16.mxu0 %v17417_v21  ;;  %413 = vmatprep.subr.bf16.mxu1 %v17421_v22  ;;  %v15751_v60 = vld [vmem:[#allocation9 + $0x1c0] ss:$16 sps:$4 sm:$0xff]   ;;  %v15754_v61 = vld [vmem:[#allocation9 + $0x1c8] ss:$16 sps:$4 sm:$0xff]   ;;  %v15759_v62 = vld [vmem:[#allocation9 + $0x1e4] ss:$16 sps:$4 sm:$0xff]  }
  0x4c   :  { %v15762_v63 = vld [vmem:[#allocation9 + $0x1ec] ss:$16 sps:$4 sm:$0xff]   ;;  %vm726_vm0 = vcmask 261120  }
  0x4e   :  { %373 = vmatpush1.bf16.msra.mxu0 %v17423_v23  ;;  %414 = vmatpush1.bf16.msra.mxu1 %v17427_v24 }
  0x4f   :  { %374 = vmatprep.subr.bf16.mxu0 %v17429_v25  ;;  %415 = vmatprep.subr.bf16.mxu1 %v17433_v26 }
  0x52   :  { %375 = vmatpush1.bf16.msra.mxu0 %v17435_v27  ;;  %416 = vmatpush1.bf16.msra.mxu1 %v17437_v28 }
  0x53   :  { %376 = vmatprep.subr.bf16.mxu0 %v17441_v29  ;;  %417 = vmatprep.subr.bf16.mxu1 %v17445_v30 }
  0x56   :  { %377 = vmatpush1.bf16.msra.mxu0 %v17447_v31  ;;  %418 = vmatpush1.bf16.msra.mxu1 %v17449_v32 }
  0x57   :  { %604 = vmatprep.subr.bf16.mxu0 %v17453_v33  ;;  %645 = vmatprep.subr.bf16.mxu1 %v17457_v34 }
  0x59   :  { %395 = vmatmul.mubr.bf16.vlgmr.msra.gmra.mrb[0].mxu0 %v17287_v39  ;;  %436 = vmatmul.mubr.bf16.vlgmr.msra.gmra.mrb[0].mxu1 %v17287_v39 }
  0x5a   :  { %605 = vmatpush1.bf16.msra.mxu0 %v15715_v35  ;;  %646 = vmatpush1.bf16.msra.mxu1 %v15718_v36  ;;  %v15757_v35 = vld [vmem:[#allocation9 + $0x1e0] ss:$16 sps:$4 sm:$0xff]   ;;  %v15760_v36 = vld [vmem:[#allocation9 + $0x1e8] ss:$16 sps:$4 sm:$0xff]  }
  0x5b   :  { %606 = vmatprep.subr.bf16.mxu0 %v15723_v37  ;;  %647 = vmatprep.subr.bf16.mxu1 %v15726_v38  ;;  %v15765_v37 = vld [vmem:[#allocation7 + $0x4] ss:$16 sps:$4 sm:$0xff]   ;;  %v15768_v38 = vld [vmem:[#allocation7 + $0xc] ss:$16 sps:$4 sm:$0xff]  }
  0x5c   :  { %636 = vmatprep.mubr.bf16.mxu0 %v20227_v0  ;;  %677 = vmatprep.mubr.bf16.mxu1 %v20227_v0 }
  0x5e   :  { %607 = vmatpush1.bf16.msra.mxu0 %v15721_v40  ;;  %648 = vmatpush1.bf16.msra.mxu1 %v15724_v41  ;;  %v15763_v40 = vld [vmem:[#allocation7] ss:$16 sps:$4 sm:$0xff]   ;;  %v15766_v41 = vld [vmem:[#allocation7 + $0x8] ss:$16 sps:$4 sm:$0xff]  }
  0x5f   :  { %608 = vmatprep.subr.bf16.mxu0 %v15729_v42  ;;  %649 = vmatprep.subr.bf16.mxu1 %v15732_v43  ;;  %v15771_v42 = vld [vmem:[#allocation7 + $0x24] ss:$16 sps:$4 sm:$0xff]   ;;  %v15774_v43 = vld [vmem:[#allocation7 + $0x2c] ss:$16 sps:$4 sm:$0xff]  }
  0x62   :  { %609 = vmatpush1.bf16.msra.mxu0 %v15727_v44  ;;  %650 = vmatpush1.bf16.msra.mxu1 %v15730_v45  ;;  %v15769_v44 = vld [vmem:[#allocation7 + $0x20] ss:$16 sps:$4 sm:$0xff]   ;;  %v15772_v45 = vld [vmem:[#allocation7 + $0x28] ss:$16 sps:$4 sm:$0xff]  }
  0x63   :  { %610 = vmatprep.subr.bf16.mxu0 %v15735_v46  ;;  %651 = vmatprep.subr.bf16.mxu1 %v15738_v47  ;;  %v116_v46 = vld [vmem:[#allocation4] sm:$0xff] }
  0x64   :  { %v15777_v47 = vld [vmem:[#allocation7 + $0x44] ss:$16 sps:$4 sm:$0xff]  }
  0x66   :  { %611 = vmatpush1.bf16.msra.mxu0 %v15733_v48  ;;  %652 = vmatpush1.bf16.msra.mxu1 %v15736_v49  ;;  %v15780_v48 = vld [vmem:[#allocation7 + $0x4c] ss:$16 sps:$4 sm:$0xff]   ;;  %v15775_v49 = vld [vmem:[#allocation7 + $0x40] ss:$16 sps:$4 sm:$0xff]  }
  0x67   :  { %612 = vmatprep.subr.bf16.mxu0 %v15741_v50  ;;  %653 = vmatprep.subr.bf16.mxu1 %v15744_v51  ;;  %v15778_v50 = vld [vmem:[#allocation7 + $0x48] ss:$16 sps:$4 sm:$0xff]   ;;  %v118_v51 = vpack.c.bf16 %v116_v46, %v116_v46 }
  0x6a   :  { %613 = vmatpush1.bf16.msra.mxu0 %v15739_v52  ;;  %654 = vmatpush1.bf16.msra.mxu1 %v15742_v53  ;;  %v15783_v52 = vld [vmem:[#allocation7 + $0x64] ss:$16 sps:$4 sm:$0xff]   ;;  %v15786_v53 = vld [vmem:[#allocation7 + $0x6c] ss:$16 sps:$4 sm:$0xff]  }
  0x6b   :  { %614 = vmatprep.subr.bf16.mxu0 %v15747_v54  ;;  %655 = vmatprep.subr.bf16.mxu1 %v15750_v55  ;;  %v15784_v54 = vld [vmem:[#allocation7 + $0x68] ss:$16 sps:$4 sm:$0xff]  }
  0x6c   :  { %v117_v55 = vld [vmem:[#allocation4 + $0x8] sm:$0xff] }
  0x6e   :  { %615 = vmatpush1.bf16.msra.mxu0 %v15745_v56  ;;  %656 = vmatpush1.bf16.msra.mxu1 %v15748_v57  ;;  %v119_v56 = vpack.c.bf16 %v117_v55, %v117_v55 }
  0x6f   :  { %616 = vmatprep.subr.bf16.mxu0 %v15753_v58  ;;  %657 = vmatprep.subr.bf16.mxu1 %v15756_v59 }
  0x72   :  { %617 = vmatpush1.bf16.msra.mxu0 %v15751_v60  ;;  %658 = vmatpush1.bf16.msra.mxu1 %v15754_v61  ;;  %v69_v61 = vld [vmem:[%s20225_s3 + $0x4] sm:$0xf] }
  0x73   :  { %618 = vmatprep.subr.bf16.mxu0 %v15759_v62  ;;  %659 = vmatprep.subr.bf16.mxu1 %v15762_v63 }
  0x76   :  { %619 = vmatpush1.bf16.msra.mxu0 %v15757_v35  ;;  %660 = vmatpush1.bf16.msra.mxu1 %v15760_v36 }
  0x77   :  { %730 = vmatprep.subr.bf16.mxu0 %v15765_v37  ;;  %771 = vmatprep.subr.bf16.mxu1 %v15768_v38 }
  0x79   :  { %637 = vmatmul.mubr.bf16.vlgmr.msra.gmra.mrb[4].mxu0 %v17287_v39  ;;  %678 = vmatmul.mubr.bf16.vlgmr.msra.gmra.mrb[4].mxu1 %v17287_v39  ;;  %v15781_v39 = vld [vmem:[#allocation7 + $0x60] ss:$16 sps:$4 sm:$0xff]  }
  0x7a   :  { %731 = vmatpush1.bf16.msra.mxu0 %v15763_v40  ;;  %772 = vmatpush1.bf16.msra.mxu1 %v15766_v41 }
  0x7b   :  { %732 = vmatprep.subr.bf16.mxu0 %v15771_v42  ;;  %773 = vmatprep.subr.bf16.mxu1 %v15774_v43 }
  0x7c   :  { %762 = vmatprep.mubr.bf16.mxu0 %v20227_v0  ;;  %803 = vmatprep.mubr.bf16.mxu1 %v20227_v0 }
  0x7e   :  { %733 = vmatpush1.bf16.msra.mxu0 %v15769_v44  ;;  %774 = vmatpush1.bf16.msra.mxu1 %v15772_v45 }
  0x7f   :  { %855 = vmatprep.subr.bf16.mxu0 %v15777_v47  ;;  %896 = vmatprep.subr.bf16.mxu1 %v15780_v48 }
  0x81   :  { %14289 = vmatmul.mubr.msk.bf16.vlgmr.msra.gmra.mrb[8].mxu0 %vm726_vm0, %v118_v51  ;;  %14290 = vmatmul.mubr.msk.bf16.vlgmr.msra.gmra.mrb[8].mxu1 %vm726_vm0, %v118_v51 }
  0x82   :  { %856 = vmatpush1.bf16.msra.mxu0 %v15775_v49  ;;  %897 = vmatpush1.bf16.msra.mxu1 %v15778_v50 }
  0x83   :  { %857 = vmatprep.subr.bf16.mxu0 %v15783_v52  ;;  %898 = vmatprep.subr.bf16.mxu1 %v15786_v53 }
  0x84   :  { %887 = vmatprep.mubr.bf16.mxu0 %v20227_v0  ;;  %928 = vmatprep.mubr.bf16.mxu1 %v20227_v0 }
  0x86   :  { %858 = vmatpush1.bf16.msra.mxu0 %v15781_v39  ;;  %899 = vmatpush1.bf16.msra.mxu1 %v15784_v54 }
  0x87   :  { %1242 = vmatprep.subr.bf16.mxu0 %v17361_v1  ;;  %1283 = vmatprep.subr.bf16.mxu1 %v17363_v2 }
  0x89   :  { %14299 = vmatmul.mubr.msk.bf16.vlgmr.msra.gmra.mrb[12].mxu0 %vm726_vm0, %v119_v56  ;;  %14300 = vmatmul.mubr.msk.bf16.vlgmr.msra.gmra.mrb[12].mxu1 %vm726_vm0, %v119_v56 }
  0x8a   :  { %1243 = vmatpush1.bf16.msra.mxu0 %v17366_v3  ;;  %1284 = vmatpush1.bf16.msra.mxu1 %v17368_v4 }
  0x8b   :  { %1244 = vmatprep.subr.bf16.mxu0 %v17371_v5  ;;  %1285 = vmatprep.subr.bf16.mxu1 %v17375_v6 }
  0x8c   :  { %1274 = vmatprep.mubr.bf16.mxu0 %v20227_v0  ;;  %1315 = vmatprep.mubr.bf16.mxu1 %v20227_v0 }
  0x8e   :  { %1245 = vmatpush1.bf16.msra.mxu0 %v17377_v7  ;;  %1286 = vmatpush1.bf16.msra.mxu1 %v17380_v8 }
  0x8f   :  { %1246 = vmatprep.subr.bf16.mxu0 %v17383_v9  ;;  %1287 = vmatprep.subr.bf16.mxu1 %v17385_v10  ;;  %v72_v9 = vlaneseq }
  0x91   :  { %v17513_v10 = vshrl.u32 %v72_v9, 7 }
  0x92   :  { %1247 = vmatpush1.bf16.msra.mxu0 %v17387_v11  ;;  %1288 = vmatpush1.bf16.msra.mxu1 %v17389_v12 }
  0x93   :  { %1248 = vmatprep.subr.bf16.mxu0 %v17393_v13  ;;  %1289 = vmatprep.subr.bf16.mxu1 %v17397_v14  ;;  %v82_v36 = vsub.s32 2, %v17513_v10 }
  0x95   :  { %v17546_v9 = vrot.slane %v69_v61, %v82_v36 }
  0x96   :  { %1249 = vmatpush1.bf16.msra.mxu0 %v17399_v15  ;;  %1290 = vmatpush1.bf16.msra.mxu1 %v17403_v16 }
  0x97   :  { %1250 = vmatprep.subr.bf16.mxu0 %v17405_v17  ;;  %1291 = vmatprep.subr.bf16.mxu1 %v17409_v18 }
  0x9a   :  { %1251 = vmatpush1.bf16.msra.mxu0 %v17411_v19  ;;  %1292 = vmatpush1.bf16.msra.mxu1 %v17413_v20  ;;  %v74_v19 = vsub.s32 0, %v17513_v10  ;;  %v68_v20 = vld [vmem:[%s20225_s3] sm:$0xf]  ;;  %s17288_s3 = smov [#allocation10]  }
  0x9b   :  { %1252 = vmatprep.subr.bf16.mxu0 %v17417_v21  ;;  %1293 = vmatprep.subr.bf16.mxu1 %v17421_v22  ;;  %v78_v21 = vsub.s32 1, %v17513_v10  ;;  %v17538_v51 = vrot.slane %v68_v20, %v82_v36  ;;  %v17142_v36 = vld [vmem:[#allocation9 + $0x12c] ss:$16 sps:$4 sm:$0xff]   ;;  %s14204_s30 = sshll.u32 %s17288_s3, 4  ;;  %s14205_s30 = int_to_ptr.vmem [resolvable:$true] %s14204_s30 }
  0x9c   :  { %v17520_v22 = vrot.slane %v68_v20, %v74_v19  ;;  %v17533_v37 = vrot.slane %v69_v61, %v74_v19  ;;  %s17251_s5 = scalar_lea.vmem %s14205_s30, 4096  ;;  %p17256_p11 = scmp.lt.s32.totalorder %s14205_s30, %s14205_s30 }
  0x9d   :  { %v17535_v41 = vrot.slane %v69_v61, %v78_v21  ;;  %p17252_p10 = scmp.ne.s32.totalorder %s14205_s30, %s17251_s5  ;;  %p17257_p12 = scmp.lt.s32.totalorder %s17251_s5, %s17251_s5 }
  0x9e   :  { %1253 = vmatpush1.bf16.msra.mxu0 %v17423_v23  ;;  %1294 = vmatpush1.bf16.msra.mxu1 %v17427_v24 }
  0x9f   :  { %1254 = vmatprep.subr.bf16.mxu0 %v17429_v25  ;;  %1295 = vmatprep.subr.bf16.mxu1 %v17433_v26  ;;  %v17522_v25 = vrot.slane %v68_v20, %v78_v21  ;;  %p17258_p13 = por %p17257_p12, %p17256_p11 }
  0xa1   :  { %p17259_p0 = pnand %p17258_p13, %p17252_p10 }
  0xa2   :  { %1255 = vmatpush1.bf16.msra.mxu0 %v17435_v27  ;;  %1296 = vmatpush1.bf16.msra.mxu1 %v17437_v28 }
  0xa3   :  { %1256 = vmatprep.subr.bf16.mxu0 %v17441_v29  ;;  %1297 = vmatprep.subr.bf16.mxu1 %v17445_v30 }
  0xa6   :  { %1257 = vmatpush1.bf16.msra.mxu0 %v17447_v31  ;;  %1298 = vmatpush1.bf16.msra.mxu1 %v17449_v32  ;;  %v86_v31 = vsub.s32 3, %v17513_v10 }
  0xa7   :  { %1484 = vmatprep.subr.bf16.mxu0 %v17453_v33  ;;  %1525 = vmatprep.subr.bf16.mxu1 %v17457_v34 }
  0xa8   :  { %v17530_v35 = vrot.slane %v68_v20, %v86_v31 }
 0x12c   :  { %v396_v1 = vpop.f32.mrb[0].mxu0  ;;  %v437_v2 = vpop.f32.mrb[0].mxu1 }
 0x12d   :  { %v398_v3 = vpop.f32.mrb[1].mxu0  ;;  %v439_v4 = vpop.f32.mrb[1].mxu1 }
 0x12e   :  { %v400_v5 = vpop.f32.mrb[2].mxu0  ;;  %v441_v6 = vpop.f32.mrb[2].mxu1 }
 0x12f   :  { %v401_v7 = vpop.f32.mrb[3].mxu0  ;;  %v442_v8 = vpop.f32.mrb[3].mxu1 }
 0x14c   :  { %v638_v11 = vpop.f32.mrb[4].mxu0  ;;  %v679_v12 = vpop.f32.mrb[4].mxu1 }
 0x14d   :  { %v640_v13 = vpop.f32.mrb[5].mxu0  ;;  %v681_v14 = vpop.f32.mrb[5].mxu1 }
 0x14e   :  { %v642_v15 = vpop.f32.mrb[6].mxu0  ;;  %v683_v16 = vpop.f32.mrb[6].mxu1 }
 0x14f   :  { %v643_v17 = vpop.f32.mrb[7].mxu0  ;;  %v684_v18 = vpop.f32.mrb[7].mxu1 }
 0x154   :  { %v764_v23 = vpop.f32.mrb[8].mxu0  ;;  %v805_v24 = vpop.f32.mrb[8].mxu1 }
 0x155   :  { %v765_v26 = vadd.f32 %v764_v23, %v396_v1  ;;  %v806_v27 = vadd.f32 %v805_v24, %v437_v2  ;;  %v766_v28 = vpop.f32.mrb[9].mxu0  ;;  %v807_v29 = vpop.f32.mrb[9].mxu1  ;;  %v17542_v2 = vrot.slane %v69_v61, %v86_v31  ;;  %v17140_v61 = vld [vmem:[#allocation9 + $0x108] ss:$16 sps:$4 sm:$0xff]  }
 0x156   :  { %v767_v30 = vadd.f32 %v766_v28, %v398_v3  ;;  %v808_v32 = vadd.f32 %v807_v29, %v439_v4  ;;  %v768_v33 = vpop.f32.mrb[10].mxu0  ;;  %v809_v34 = vpop.f32.mrb[10].mxu1 }
 0x157   :  { %v937_v57 = vadd.f32 %v765_v26, %v17520_v22  ;;  %v769_v58 = vpop.f32.mrb[11].mxu0  ;;  %v810_v59 = vpop.f32.mrb[11].mxu1  ;;  %v939_v3 = vadd.f32 %v806_v27, %v17538_v51 }
 0x158   :  { %v938_v60 = vadd.f32 %v767_v30, %v17522_v25  ;;  %v940_v46 = vadd.f32 %v808_v32, %v17530_v35 }
 0x159   :  { %v14301_v62 = vmul.f32 -1.442695, %v937_v57 }
 0x15a   :  { %v14303_v63 = vmul.f32 -1.442695, %v938_v60  ;;  %v14305_v56 = vmul.f32 -1.442695, %v940_v46  ;;  %v17139_v60 = vld [vmem:[#allocation9 + $0x100] ss:$16 sps:$4 sm:$0xff]  }
 0x15b   :  { %16627 = vpow2.f32 %v14301_v62  ;;  %v17147_v46 = vld [vmem:[#allocation9 + $0x140] ss:$16 sps:$4 sm:$0xff]  }
 0x15c   :  { %16629 = vpow2.f32 %v14303_v63  ;;  %v889_v38 = vpop.f32.mrb[12].mxu0  ;;  %v930_v40 = vpop.f32.mrb[12].mxu1  ;;  %v17141_v63 = vld [vmem:[#allocation9 + $0x124] ss:$16 sps:$4 sm:$0xff]  }
 0x15d   :  { %v890_v42 = vadd.f32 %v889_v38, %v638_v11  ;;  %v931_v43 = vadd.f32 %v930_v40, %v679_v12  ;;  %v891_v44 = vpop.f32.mrb[13].mxu0  ;;  %v932_v45 = vpop.f32.mrb[13].mxu1 }
 0x15e   :  { %v892_v47 = vadd.f32 %v891_v44, %v640_v13  ;;  %v933_v48 = vadd.f32 %v932_v45, %v681_v14  ;;  %v893_v49 = vpop.f32.mrb[14].mxu0  ;;  %v934_v50 = vpop.f32.mrb[14].mxu1  ;;  %v17145_v44 = vld [vmem:[#allocation9 + $0x144] ss:$16 sps:$4 sm:$0xff]   ;;  %v17146_v45 = vld [vmem:[#allocation9 + $0x14c] ss:$16 sps:$4 sm:$0xff]  }
 0x15f   :  { %v941_v52 = vadd.f32 %v890_v42, %v17533_v37  ;;  %v894_v53 = vpop.f32.mrb[15].mxu0  ;;  %v935_v39 = vpop.f32.mrb[15].mxu1  ;;  %v943_v11 = vadd.f32 %v931_v43, %v17546_v9  ;;  %v17143_v42 = vld [vmem:[#allocation9 + $0x120] ss:$16 sps:$4 sm:$0xff]   ;;  %v17144_v43 = vld [vmem:[#allocation9 + $0x128] ss:$16 sps:$4 sm:$0xff]  }
 0x160   :  { %v942_v54 = vadd.f32 %v892_v47, %v17535_v41  ;;  %v944_v7 = vadd.f32 %v933_v48, %v17542_v2  ;;  %v17148_v47 = vld [vmem:[#allocation9 + $0x148] ss:$16 sps:$4 sm:$0xff]   ;;  %v17149_v48 = vld [vmem:[#allocation9 + $0x164] ss:$16 sps:$4 sm:$0xff]   ;;  %v17150_v49 = vld [vmem:[#allocation9 + $0x16c] ss:$16 sps:$4 sm:$0xff]  }
 0x161   :  { %v14302_v55 = vmul.f32 -1.442695, %v941_v52  ;;  %v17151_v50 = vld [vmem:[#allocation9 + $0x160] ss:$16 sps:$4 sm:$0xff]   ;;  %v17152_v52 = vld [vmem:[#allocation9 + $0x168] ss:$16 sps:$4 sm:$0xff]  }
 0x162   :  { %v14304_v1 = vmul.f32 -1.442695, %v942_v54  ;;  %v14306_v10 = vmul.f32 -1.442695, %v944_v7  ;;  %v17153_v53 = vld [vmem:[#allocation9 + $0x184] ss:$16 sps:$4 sm:$0xff]  }
 0x163   :  { %16631 = vpow2.f32 %v14302_v55  ;;  %v17154_v39 = vld [vmem:[#allocation9 + $0x18c] ss:$16 sps:$4 sm:$0xff]   ;;  %v17155_v54 = vld [vmem:[#allocation9 + $0x180] ss:$16 sps:$4 sm:$0xff]   ;;  %v17156_v55 = vld [vmem:[#allocation9 + $0x188] ss:$16 sps:$4 sm:$0xff]  }
 0x164   :  { %16633 = vpow2.f32 %v14304_v1  ;;  %v17158_v1 = vld [vmem:[#allocation9 + $0x1ac] ss:$16 sps:$4 sm:$0xff]   ;;  %v17163_v7 = vld [vmem:[#allocation9 + $0x1c0] ss:$16 sps:$4 sm:$0xff]  }
 0x165   :  { %v16628_v4 = vpop.eup %16627  ;;  %16635 = vpow2.f32 %v14305_v56  ;;  %v17157_v56 = vld [vmem:[#allocation9 + $0x1a4] ss:$16 sps:$4 sm:$0xff]  }
 0x166   :  { %v16630_v5 = vpop.eup %16629  ;;  %v951_v6 = vadd.f32 1.0, %v16628_v4  ;;  %16637 = vtanh.f32 %v939_v3  ;;  %v17159_v3 = vld [vmem:[#allocation9 + $0x1a0] ss:$16 sps:$4 sm:$0xff]   ;;  %v17160_v4 = vld [vmem:[#allocation9 + $0x1a8] ss:$16 sps:$4 sm:$0xff]  }
 0x167   :  { %v963_v8 = vadd.f32 1.0, %v16630_v5  ;;  %v17161_v5 = vld [vmem:[#allocation9 + $0x1c4] ss:$16 sps:$4 sm:$0xff]  }
 0x168   :  { %16639 = vrcp.f32 %v951_v6  ;;  %v17162_v6 = vld [vmem:[#allocation9 + $0x1cc] ss:$16 sps:$4 sm:$0xff]  }
 0x169   :  { %16641 = vrcp.f32 %v963_v8  ;;  %v17164_v8 = vld [vmem:[#allocation9 + $0x1c8] ss:$16 sps:$4 sm:$0xff]  }
 0x16a   :  { %16643 = vpow2.f32 %v14306_v10  ;;  %v17165_v10 = vld [vmem:[#allocation9 + $0x1e4] ss:$16 sps:$4 sm:$0xff]  }
 0x16b   :  { %16645 = vtanh.f32 %v943_v11  ;;  %v17166_v11 = vld [vmem:[#allocation9 + $0x1ec] ss:$16 sps:$4 sm:$0xff]  }
 0x16d   :  { %v16632_v12 = vpop.eup %16631 }
 0x16e   :  { %v16634_v13 = vpop.eup %16633  ;;  %v952_v14 = vadd.f32 1.0, %v16632_v12  ;;  %v17167_v12 = vld [vmem:[#allocation9 + $0x1e0] ss:$16 sps:$4 sm:$0xff]  }
 0x16f   :  { %v964_v15 = vadd.f32 1.0, %v16634_v13  ;;  %v16636_v16 = vpop.eup %16635  ;;  %v17168_v13 = vld [vmem:[#allocation9 + $0x1e8] ss:$16 sps:$4 sm:$0xff]  }
 0x170   :  { %16647 = vrcp.f32 %v952_v14  ;;  %v16638_v17 = vpop.eup %16637  ;;  %v977_v21 = vadd.f32 1.0, %v16636_v16  ;;  %v17170_v16 = vld [vmem:[#allocation7 + $0xc] ss:$16 sps:$4 sm:$0xff]  }
 0x171   :  { %16649 = vrcp.f32 %v964_v15  ;;  %v17169_v15 = vld [vmem:[#allocation7 + $0x4] ss:$16 sps:$4 sm:$0xff]  }
 0x172   :  { %v16640_v18 = vpop.eup %16639  ;;  %16651 = vrcp.f32 %v977_v21  ;;  %v17174_v21 = vld [vmem:[#allocation7 + $0x2c] ss:$16 sps:$4 sm:$0xff]  }
 0x173   :  { %v16642_v19 = vpop.eup %16641  ;;  %v985_v20 = vmul.f32 %v16640_v18, %v16638_v17  ;;  %v17171_v17 = vld [vmem:[#allocation7] ss:$16 sps:$4 sm:$0xff]   ;;  %v17172_v18 = vld [vmem:[#allocation7 + $0x8] ss:$16 sps:$4 sm:$0xff]  }
 0x174   :  { %v983_v23 = vmul.f32 0.0, %v16642_v19  ;;  %v16644_v26 = vpop.eup %16643  ;;  %v996_v19 = vld [vmem:[#allocation4 + $0x10] sm:$0xff] }
 0x175   :  { %v16646_v27 = vpop.eup %16645  ;;  %v978_v31 = vadd.f32 1.0, %v16644_v26  ;;  %v17175_v26 = vld [vmem:[#allocation7 + $0x20] ss:$16 sps:$4 sm:$0xff]  }
 0x176   :  { %v17549_v24 = vadd.f32 %v985_v20, %v983_v23  ;;  %v17173_v20 = vld [vmem:[#allocation7 + $0x24] ss:$16 sps:$4 sm:$0xff]   ;;  %v998_v23 = vpack.c.bf16 %v996_v19, %v996_v19 }
 0x178   :  { %16653 = vtanh.f32 %v17549_v24 }
 0x179   :  { %16655 = vrcp.f32 %v978_v31  ;;  %v17180_v31 = vld [vmem:[#allocation7 + $0x48] ss:$16 sps:$4 sm:$0xff]  }
 0x17a   :  { %v16648_v28 = vpop.eup %16647 }
 0x17b   :  { %v16650_v29 = vpop.eup %16649  ;;  %v986_v30 = vmul.f32 %v16648_v28, %v16646_v27  ;;  %v17176_v27 = vld [vmem:[#allocation7 + $0x28] ss:$16 sps:$4 sm:$0xff]   ;;  %v17177_v28 = vld [vmem:[#allocation7 + $0x44] ss:$16 sps:$4 sm:$0xff]  }
 0x17c   :  { %v984_v32 = vmul.f32 0.0, %v16650_v29  ;;  %v16652_v34 = vpop.eup %16651  ;;  %v17178_v29 = vld [vmem:[#allocation7 + $0x4c] ss:$16 sps:$4 sm:$0xff]  }
 0x17e   :  { %v17552_v33 = vadd.f32 %v986_v30, %v984_v32  ;;  %v17179_v30 = vld [vmem:[#allocation7 + $0x40] ss:$16 sps:$4 sm:$0xff]   ;;  %v997_v32 = vld [vmem:[#allocation4 + $0x18] sm:$0xff] }
 0x180   :  { %16657 = vtanh.f32 %v17552_v33 }
 0x182   :  { %v16654_v57 = vpop.eup %16653 }
 0x183   :  { %v991_v58 = vmul.f32 %v16654_v57, %v16652_v34  ;;  %v16656_v62 = vpop.eup %16655  ;;  %v17181_v34 = vld [vmem:[#allocation7 + $0x64] ss:$16 sps:$4 sm:$0xff]   ;;  %v17182_v57 = vld [vmem:[#allocation7 + $0x6c] ss:$16 sps:$4 sm:$0xff]  }
 0x185   :  { %993 = vst [vmem:[#allocation10] sm:$0xff] %v991_v58  ;;  %v1016_v59 = vpack.c.bf16 %v991_v58, %v991_v58  ;;  %v999_v58 = vpack.c.bf16 %v997_v32, %v997_v32 }
 0x187   :  { %1275 = vmatmul.mubr.bf16.vlgmr.msra.gmra.mrb[16].mxu0 %v1016_v59  ;;  %1316 = vmatmul.mubr.bf16.vlgmr.msra.gmra.mrb[16].mxu1 %v1016_v59  ;;  %v17183_v59 = vld [vmem:[#allocation7 + $0x60] ss:$16 sps:$4 sm:$0xff]  }
 0x188   :  { %1485 = vmatpush1.bf16.msra.mxu0 %v17139_v60  ;;  %1526 = vmatpush1.bf16.msra.mxu1 %v17140_v61  ;;  %v17184_v60 = vld [vmem:[#allocation7 + $0x68] ss:$16 sps:$4 sm:$0xff]   ;;  %v17567_v61 = vld [vmem:[#allocation9 + $0x4] ss:$16 sps:$4 sm:$0xff]  }
 0x189   :  { %1486 = vmatprep.subr.bf16.mxu0 %v17141_v63  ;;  %1527 = vmatprep.subr.bf16.mxu1 %v17142_v36  ;;  %v17571_v63 = vld [vmem:[#allocation9] ss:$16 sps:$4 sm:$0xff]   ;;  %v17573_v36 = vld [vmem:[#allocation9 + $0x8] ss:$16 sps:$4 sm:$0xff]  }
 0x18a   :  { %v16658_v38 = vpop.eup %16657  ;;  %1516 = vmatprep.mubr.bf16.mxu0 %v20227_v0  ;;  %1557 = vmatprep.mubr.bf16.mxu1 %v20227_v0 }
 0x18b   :  { %v992_v40 = vmul.f32 %v16658_v38, %v16656_v62  ;;  %v17569_v62 = vld [vmem:[#allocation9 + $0xc] ss:$16 sps:$4 sm:$0xff]   ;;  %v17579_v38 = vld [vmem:[#allocation9 + $0x24] ss:$16 sps:$4 sm:$0xff]  }
 0x18c   :  { %1487 = vmatpush1.bf16.msra.mxu0 %v17143_v42  ;;  %1528 = vmatpush1.bf16.msra.mxu1 %v17144_v43  ;;  %v17583_v42 = vld [vmem:[#allocation9 + $0x20] ss:$16 sps:$4 sm:$0xff]   ;;  %v17585_v43 = vld [vmem:[#allocation9 + $0x28] ss:$16 sps:$4 sm:$0xff]  }
 0x18d   :  { %1488 = vmatprep.subr.bf16.mxu0 %v17145_v44  ;;  %1529 = vmatprep.subr.bf16.mxu1 %v17146_v45  ;;  %994 = vst [vmem:[#allocation10 + $0x8] sm:$0xff] %v992_v40  ;;  %v1017_v14 = vpack.c.bf16 %v992_v40, %v992_v40  ;;  %v17581_v40 = vld [vmem:[#allocation9 + $0x2c] ss:$16 sps:$4 sm:$0xff]   ;;  %v17591_v44 = vld [vmem:[#allocation9 + $0x44] ss:$16 sps:$4 sm:$0xff]  }
 0x18e   :  { %v17593_v45 = vld [vmem:[#allocation9 + $0x4c] ss:$16 sps:$4 sm:$0xff]  }
 0x190   :  { %1489 = vmatpush1.bf16.msra.mxu0 %v17147_v46  ;;  %1530 = vmatpush1.bf16.msra.mxu1 %v17148_v47  ;;  %v17595_v46 = vld [vmem:[#allocation9 + $0x40] ss:$16 sps:$4 sm:$0xff]   ;;  %v17597_v47 = vld [vmem:[#allocation9 + $0x48] ss:$16 sps:$4 sm:$0xff]  }
 0x191   :  { %1490 = vmatprep.subr.bf16.mxu0 %v17149_v48  ;;  %1531 = vmatprep.subr.bf16.mxu1 %v17150_v49  ;;  %v17603_v48 = vld [vmem:[#allocation9 + $0x64] ss:$16 sps:$4 sm:$0xff]   ;;  %v17605_v49 = vld [vmem:[#allocation9 + $0x6c] ss:$16 sps:$4 sm:$0xff]  }
 0x194   :  { %1491 = vmatpush1.bf16.msra.mxu0 %v17151_v50  ;;  %1532 = vmatpush1.bf16.msra.mxu1 %v17152_v52  ;;  %v17607_v50 = vld [vmem:[#allocation9 + $0x60] ss:$16 sps:$4 sm:$0xff]   ;;  %v17609_v52 = vld [vmem:[#allocation9 + $0x68] ss:$16 sps:$4 sm:$0xff]  }
 0x195   :  { %1492 = vmatprep.subr.bf16.mxu0 %v17153_v53  ;;  %1533 = vmatprep.subr.bf16.mxu1 %v17154_v39  ;;  %v17615_v53 = vld [vmem:[#allocation9 + $0x84] ss:$16 sps:$4 sm:$0xff]   ;;  %v17617_v39 = vld [vmem:[#allocation9 + $0x8c] ss:$16 sps:$4 sm:$0xff]  }
 0x198   :  { %1493 = vmatpush1.bf16.msra.mxu0 %v17155_v54  ;;  %1534 = vmatpush1.bf16.msra.mxu1 %v17156_v55  ;;  %v17619_v54 = vld [vmem:[#allocation9 + $0x80] ss:$16 sps:$4 sm:$0xff]   ;;  %v17621_v55 = vld [vmem:[#allocation9 + $0x88] ss:$16 sps:$4 sm:$0xff]  }
 0x199   :  { %1494 = vmatprep.subr.bf16.mxu0 %v17157_v56  ;;  %1535 = vmatprep.subr.bf16.mxu1 %v17158_v1  ;;  %v17627_v56 = vld [vmem:[#allocation9 + $0xa4] ss:$16 sps:$4 sm:$0xff]   ;;  %v17629_v1 = vld [vmem:[#allocation9 + $0xac] ss:$16 sps:$4 sm:$0xff]  }
 0x19c   :  { %1495 = vmatpush1.bf16.msra.mxu0 %v17159_v3  ;;  %1536 = vmatpush1.bf16.msra.mxu1 %v17160_v4  ;;  %v17631_v3 = vld [vmem:[#allocation9 + $0xa0] ss:$16 sps:$4 sm:$0xff]   ;;  %v17633_v4 = vld [vmem:[#allocation9 + $0xa8] ss:$16 sps:$4 sm:$0xff]  }
 0x19d   :  { %1496 = vmatprep.subr.bf16.mxu0 %v17161_v5  ;;  %1537 = vmatprep.subr.bf16.mxu1 %v17162_v6  ;;  %v17639_v5 = vld [vmem:[#allocation9 + $0xc4] ss:$16 sps:$4 sm:$0xff]   ;;  %v17641_v6 = vld [vmem:[#allocation9 + $0xcc] ss:$16 sps:$4 sm:$0xff]  }
 0x1a0   :  { %1497 = vmatpush1.bf16.msra.mxu0 %v17163_v7  ;;  %1538 = vmatpush1.bf16.msra.mxu1 %v17164_v8  ;;  %v17643_v7 = vld [vmem:[#allocation9 + $0xc0] ss:$16 sps:$4 sm:$0xff]   ;;  %v17645_v8 = vld [vmem:[#allocation9 + $0xc8] ss:$16 sps:$4 sm:$0xff]  }
 0x1a1   :  { %1498 = vmatprep.subr.bf16.mxu0 %v17165_v10  ;;  %1539 = vmatprep.subr.bf16.mxu1 %v17166_v11  ;;  %v17649_v10 = vld [vmem:[#allocation9 + $0xe4] ss:$16 sps:$4 sm:$0xff]   ;;  %v17651_v11 = vld [vmem:[#allocation9 + $0xec] ss:$16 sps:$4 sm:$0xff]  }
 0x1a2   :  { %20439 = vst [vmem:[#allocation14_spill] sm:$0xff] %v17649_v10  ;;  %20440 = vst [vmem:[#allocation15_spill] sm:$0xff] %v17651_v11 }
 0x1a4   :  { %1499 = vmatpush1.bf16.msra.mxu0 %v17167_v12  ;;  %1540 = vmatpush1.bf16.msra.mxu1 %v17168_v13  ;;  %v17655_v12 = vld [vmem:[#allocation9 + $0xe0] ss:$16 sps:$4 sm:$0xff]   ;;  %v17657_v13 = vld [vmem:[#allocation9 + $0xe8] ss:$16 sps:$4 sm:$0xff]  }
 0x1a5   :  { %1609 = vmatprep.subr.bf16.mxu0 %v17169_v15  ;;  %1650 = vmatprep.subr.bf16.mxu1 %v17170_v16  ;;  %20441 = vst [vmem:[#allocation16_spill] sm:$0xff] %v17655_v12  ;;  %20442 = vst [vmem:[#allocation17_spill] sm:$0xff] %v17657_v13  ;;  %v17663_v15 = vld [vmem:[#allocation9 + $0x10c] ss:$16 sps:$4 sm:$0xff]  }
 0x1a6   :  { %20444 = vst [vmem:[#allocation19_spill] sm:$0xff] %v17663_v15 }
 0x1a7   :  { %1517 = vmatmul.mubr.bf16.vlgmr.msra.gmra.mrb[20].mxu0 %v1017_v14  ;;  %1558 = vmatmul.mubr.bf16.vlgmr.msra.gmra.mrb[20].mxu1 %v1017_v14  ;;  %v17661_v14 = vld [vmem:[#allocation9 + $0x104] ss:$16 sps:$4 sm:$0xff]  }
 0x1a8   :  { %1610 = vmatpush1.bf16.msra.mxu0 %v17171_v17  ;;  %1651 = vmatpush1.bf16.msra.mxu1 %v17172_v18  ;;  %20443 = vst [vmem:[#allocation18_spill] sm:$0xff] %v17661_v14 }
 0x1a9   :  { %1611 = vmatprep.subr.bf16.mxu0 %v17173_v20  ;;  %1652 = vmatprep.subr.bf16.mxu1 %v17174_v21 }
 0x1aa   :  { %1641 = vmatprep.mubr.bf16.mxu0 %v20227_v0  ;;  %1682 = vmatprep.mubr.bf16.mxu1 %v20227_v0 }
 0x1ac   :  { %1612 = vmatpush1.bf16.msra.mxu0 %v17175_v26  ;;  %1653 = vmatpush1.bf16.msra.mxu1 %v17176_v27 }
 0x1ad   :  { %1734 = vmatprep.subr.bf16.mxu0 %v17177_v28  ;;  %1775 = vmatprep.subr.bf16.mxu1 %v17178_v29 }
 0x1af   :  { %14379 = vmatmul.mubr.msk.bf16.vlgmr.msra.gmra.mrb[24].mxu0 %vm726_vm0, %v998_v23  ;;  %14380 = vmatmul.mubr.msk.bf16.vlgmr.msra.gmra.mrb[24].mxu1 %vm726_vm0, %v998_v23 }
 0x1b0   :  { %1735 = vmatpush1.bf16.msra.mxu0 %v17179_v30  ;;  %1776 = vmatpush1.bf16.msra.mxu1 %v17180_v31 }
 0x1b1   :  { %1736 = vmatprep.subr.bf16.mxu0 %v17181_v34  ;;  %1777 = vmatprep.subr.bf16.mxu1 %v17182_v57 }
 0x1b2   :  { %1766 = vmatprep.mubr.bf16.mxu0 %v20227_v0  ;;  %1807 = vmatprep.mubr.bf16.mxu1 %v20227_v0 }
 0x1b4   :  { %1737 = vmatpush1.bf16.msra.mxu0 %v17183_v59  ;;  %1778 = vmatpush1.bf16.msra.mxu1 %v17184_v60 }
 0x1b5   :  { %2122 = vmatprep.subr.bf16.mxu0 %v17567_v61  ;;  %2163 = vmatprep.subr.bf16.mxu1 %v17569_v62 }
 0x1b7   :  { %14389 = vmatmul.mubr.msk.bf16.vlgmr.msra.gmra.mrb[28].mxu0 %vm726_vm0, %v999_v58  ;;  %14390 = vmatmul.mubr.msk.bf16.vlgmr.msra.gmra.mrb[28].mxu1 %vm726_vm0, %v999_v58 }
 0x1b8   :  { %2154 = vmatprep.mubr.bf16.mxu0 %v20227_v0  ;;  %2195 = vmatprep.mubr.bf16.mxu1 %v20227_v0 }
 0x1b9   :  { %2123 = vmatpush1.bf16.msra.mxu0 %v17571_v63  ;;  %2164 = vmatpush1.bf16.msra.mxu1 %v17573_v36 }
 0x1ba   :  { %2124 = vmatprep.subr.bf16.mxu0 %v17579_v38  ;;  %2165 = vmatprep.subr.bf16.mxu1 %v17581_v40 }
 0x1bd   :  { %2125 = vmatpush1.bf16.msra.mxu0 %v17583_v42  ;;  %2166 = vmatpush1.bf16.msra.mxu1 %v17585_v43 }
 0x1be   :  { %2126 = vmatprep.subr.bf16.mxu0 %v17591_v44  ;;  %2167 = vmatprep.subr.bf16.mxu1 %v17593_v45 }
 0x1c1   :  { %2127 = vmatpush1.bf16.msra.mxu0 %v17595_v46  ;;  %2168 = vmatpush1.bf16.msra.mxu1 %v17597_v47 }
 0x1c2   :  { %2128 = vmatprep.subr.bf16.mxu0 %v17603_v48  ;;  %2169 = vmatprep.subr.bf16.mxu1 %v17605_v49 }
 0x1c5   :  { %2129 = vmatpush1.bf16.msra.mxu0 %v17607_v50  ;;  %2170 = vmatpush1.bf16.msra.mxu1 %v17609_v52 }
 0x1c6   :  { %2130 = vmatprep.subr.bf16.mxu0 %v17615_v53  ;;  %2171 = vmatprep.subr.bf16.mxu1 %v17617_v39 }
 0x1c9   :  { %2131 = vmatpush1.bf16.msra.mxu0 %v17619_v54  ;;  %2172 = vmatpush1.bf16.msra.mxu1 %v17621_v55 }
 0x1ca   :  { %2132 = vmatprep.subr.bf16.mxu0 %v17627_v56  ;;  %2173 = vmatprep.subr.bf16.mxu1 %v17629_v1 }
 0x1cd   :  { %2133 = vmatpush1.bf16.msra.mxu0 %v17631_v3  ;;  %2174 = vmatpush1.bf16.msra.mxu1 %v17633_v4 }
 0x1ce   :  { %2134 = vmatprep.subr.bf16.mxu0 %v17639_v5  ;;  %2175 = vmatprep.subr.bf16.mxu1 %v17641_v6 }
 0x1d1   :  { %2135 = vmatpush1.bf16.msra.mxu0 %v17643_v7  ;;  %2176 = vmatpush1.bf16.msra.mxu1 %v17645_v8 }
 0x1d2   :  { %2136 = vmatprep.subr.bf16.mxu0 %v17649_v10  ;;  %2177 = vmatprep.subr.bf16.mxu1 %v17651_v11 }
 0x1d5   :  { %2137 = vmatpush1.bf16.msra.mxu0 %v17655_v12  ;;  %2178 = vmatpush1.bf16.msra.mxu1 %v17657_v13 }
 0x1d6   :  { %2364 = vmatprep.subr.bf16.mxu0 %v17661_v14  ;;  %2405 = vmatprep.subr.bf16.mxu1 %v17663_v15 }
 0x25a   :  { %v1276_v16 = vpop.f32.mrb[16].mxu0  ;;  %v1317_v17 = vpop.f32.mrb[16].mxu1 }
 0x25b   :  { %v1278_v18 = vpop.f32.mrb[17].mxu0  ;;  %v1319_v19 = vpop.f32.mrb[17].mxu1 }
 0x25c   :  { %v1280_v20 = vpop.f32.mrb[18].mxu0  ;;  %v1321_v21 = vpop.f32.mrb[18].mxu1 }
 0x25d   :  { %v1281_v23 = vpop.f32.mrb[19].mxu0  ;;  %v1322_v26 = vpop.f32.mrb[19].mxu1 }
 0x27a   :  { %v1518_v27 = vpop.f32.mrb[20].mxu0  ;;  %v1559_v28 = vpop.f32.mrb[20].mxu1 }
 0x27b   :  { %v1520_v29 = vpop.f32.mrb[21].mxu0  ;;  %v1561_v30 = vpop.f32.mrb[21].mxu1 }
 0x27c   :  { %v1522_v31 = vpop.f32.mrb[22].mxu0  ;;  %v1563_v32 = vpop.f32.mrb[22].mxu1 }
 0x27d   :  { %v1523_v34 = vpop.f32.mrb[23].mxu0  ;;  %v1564_v57 = vpop.f32.mrb[23].mxu1 }
 0x282   :  { %v1643_v58 = vpop.f32.mrb[24].mxu0  ;;  %v1684_v59 = vpop.f32.mrb[24].mxu1 }
 0x283   :  { %v1644_v60 = vadd.f32 %v1643_v58, %v1276_v16  ;;  %v1685_v0 = vadd.f32 %v1684_v59, %v1317_v17  ;;  %v1645_v15 = vpop.f32.mrb[25].mxu0  ;;  %v1686_v14 = vpop.f32.mrb[25].mxu1 }
 0x284   :  { %v1646_v13 = vadd.f32 %v1645_v15, %v1278_v18  ;;  %v1687_v12 = vadd.f32 %v1686_v14, %v1319_v19  ;;  %v1647_v20 = vpop.f32.mrb[26].mxu0  ;;  %v1688_v21 = vpop.f32.mrb[26].mxu1 }
 0x285   :  { %v1816_v23 = vadd.f32 %v1644_v60, %v17520_v22  ;;  %v1648_v26 = vpop.f32.mrb[27].mxu0  ;;  %v1689_v11 = vpop.f32.mrb[27].mxu1 }
 0x286   :  { %v1817_v10 = vadd.f32 %v1646_v13, %v17522_v25  ;;  %v1819_v14 = vadd.f32 %v1687_v12, %v17530_v35 }
 0x287   :  { %v14391_v31 = vmul.f32 -1.442695, %v1816_v23 }
 0x288   :  { %v14393_v32 = vmul.f32 -1.442695, %v1817_v10  ;;  %v14395_v23 = vmul.f32 -1.442695, %v1819_v14 }
 0x289   :  { %16659 = vpow2.f32 %v14391_v31 }
 0x28a   :  { %16661 = vpow2.f32 %v14393_v32  ;;  %v1768_v34 = vpop.f32.mrb[28].mxu0  ;;  %v1809_v57 = vpop.f32.mrb[28].mxu1 }
 0x28b   :  { %v1769_v16 = vadd.f32 %v1768_v34, %v1518_v27  ;;  %v1810_v17 = vadd.f32 %v1809_v57, %v1559_v28  ;;  %v1770_v58 = vpop.f32.mrb[29].mxu0  ;;  %v1811_v59 = vpop.f32.mrb[29].mxu1  ;;  %v1818_v27 = vadd.f32 %v1685_v0, %v17538_v51 }
 0x28c   :  { %v1771_v15 = vadd.f32 %v1770_v58, %v1520_v29  ;;  %v1812_v18 = vadd.f32 %v1811_v59, %v1561_v30  ;;  %v1772_v19 = vpop.f32.mrb[30].mxu0  ;;  %v1813_v60 = vpop.f32.mrb[30].mxu1 }
 0x28d   :  { %v1820_v11 = vadd.f32 %v1769_v16, %v17533_v37  ;;  %v1773_v20 = vpop.f32.mrb[31].mxu0  ;;  %v1814_v13 = vpop.f32.mrb[31].mxu1  ;;  %v1822_v34 = vadd.f32 %v1810_v17, %v17546_v9 }
 0x28e   :  { %v1821_v10 = vadd.f32 %v1771_v15, %v17535_v41  ;;  %v1823_v29 = vadd.f32 %v1812_v18, %v17542_v2 }
 0x28f   :  { %v14392_v21 = vmul.f32 -1.442695, %v1820_v11 }
 0x290   :  { %v14394_v26 = vmul.f32 -1.442695, %v1821_v10  ;;  %v14396_v32 = vmul.f32 -1.442695, %v1823_v29  ;;  %v17685_v29 = vld [vmem:[#allocation9 + $0x100] ss:$16 sps:$4 sm:$0xff]  }
 0x291   :  { %16663 = vpow2.f32 %v14392_v21 }
 0x292   :  { %16665 = vpow2.f32 %v14394_v26 }
 0x293   :  { %v16660_v28 = vpop.eup %16659  ;;  %16667 = vpow2.f32 %v14395_v23 }
 0x294   :  { %v16662_v31 = vpop.eup %16661  ;;  %v1830_v12 = vadd.f32 1.0, %v16660_v28  ;;  %16669 = vtanh.f32 %v1818_v27 }
 0x295   :  { %v1842_v30 = vadd.f32 1.0, %v16662_v31 }
 0x296   :  { %16671 = vrcp.f32 %v1830_v12 }
 0x297   :  { %16673 = vrcp.f32 %v1842_v30  ;;  %v17687_v30 = vld [vmem:[#allocation9 + $0x108] ss:$16 sps:$4 sm:$0xff]  }
 0x298   :  { %16675 = vpow2.f32 %v14396_v32 }
 0x299   :  { %16677 = vtanh.f32 %v1822_v34  ;;  %v17689_v34 = vld [vmem:[#allocation9 + $0x124] ss:$16 sps:$4 sm:$0xff]  }
 0x29b   :  { %v16664_v57 = vpop.eup %16663 }
 0x29c   :  { %v16666_v16 = vpop.eup %16665  ;;  %v1831_v58 = vadd.f32 1.0, %v16664_v57  ;;  %v17691_v57 = vld [vmem:[#allocation9 + $0x12c] ss:$16 sps:$4 sm:$0xff]  }
 0x29d   :  { %v1843_v0 = vadd.f32 1.0, %v16666_v16  ;;  %v16668_v59 = vpop.eup %16667  ;;  %v17697_v16 = vld [vmem:[#allocation9 + $0x128] ss:$16 sps:$4 sm:$0xff]  }
 0x29e   :  { %16679 = vrcp.f32 %v1831_v58  ;;  %v16670_v14 = vpop.eup %16669  ;;  %v1856_v60 = vadd.f32 1.0, %v16668_v59  ;;  %v17703_v59 = vld [vmem:[#allocation9 + $0x14c] ss:$16 sps:$4 sm:$0xff]  }
 0x29f   :  { %16681 = vrcp.f32 %v1843_v0  ;;  %v17701_v0 = vld [vmem:[#allocation9 + $0x144] ss:$16 sps:$4 sm:$0xff]  }
 0x2a0   :  { %v16672_v15 = vpop.eup %16671  ;;  %16683 = vrcp.f32 %v1856_v60  ;;  %v17711_v60 = vld [vmem:[#allocation9 + $0x148] ss:$16 sps:$4 sm:$0xff]  }
 0x2a1   :  { %v16674_v19 = vpop.eup %16673  ;;  %v1864_v18 = vmul.f32 %v16672_v15, %v16670_v14  ;;  %v20445_v15 = vmov 0  }
 0x2a2   :  { %v1862_v11 = vmul.f32 %v16674_v19, %v17549_v24  ;;  %v16676_v17 = vpop.eup %16675 }
 0x2a3   :  { %v16678_v13 = vpop.eup %16677  ;;  %v1857_v26 = vadd.f32 1.0, %v16676_v17  ;;  %v17717_v17 = vld [vmem:[#allocation9 + $0x16c] ss:$16 sps:$4 sm:$0xff]  }
 0x2a4   :  { %v17678_v20 = vadd.f32 %v1864_v18, %v1862_v11  ;;  %v17709_v18 = vld [vmem:[#allocation9 + $0x140] ss:$16 sps:$4 sm:$0xff]   ;;  %v17715_v11 = vld [vmem:[#allocation9 + $0x164] ss:$16 sps:$4 sm:$0xff]  }
 0x2a6   :  { %16685 = vtanh.f32 %v17678_v20 }
 0x2a7   :  { %16687 = vrcp.f32 %v1857_v26  ;;  %v17733_v26 = vld [vmem:[#allocation9 + $0x180] ss:$16 sps:$4 sm:$0xff]  }
 0x2a8   :  { %v16680_v10 = vpop.eup %16679  ;;  %20448 = vst [vmem:[#allocation22_spill] sm:$0xff] %v17733_v26 }
 0x2a9   :  { %v16682_v21 = vpop.eup %16681  ;;  %v1865_v23 = vmul.f32 %v16680_v10, %v16678_v13  ;;  %v17721_v13 = vld [vmem:[#allocation9 + $0x160] ss:$16 sps:$4 sm:$0xff]   ;;  %v17723_v10 = vld [vmem:[#allocation9 + $0x168] ss:$16 sps:$4 sm:$0xff]  }
 0x2aa   :  { %v1863_v27 = vmul.f32 %v16682_v21, %v17552_v33  ;;  %v16684_v31 = vpop.eup %16683  ;;  %v17695_v33 = vld [vmem:[#allocation9 + $0x120] ss:$16 sps:$4 sm:$0xff]   ;;  %v17727_v21 = vld [vmem:[#allocation9 + $0x184] ss:$16 sps:$4 sm:$0xff]  }
 0x2ab   :  { %20446 = vst [vmem:[#allocation20_spill] sm:$0xff] %v17727_v21 }
 0x2ac   :  { %v17682_v28 = vadd.f32 %v1865_v23, %v1863_v27  ;;  %v17729_v23 = vld [vmem:[#allocation9 + $0x18c] ss:$16 sps:$4 sm:$0xff]   ;;  %v17735_v27 = vld [vmem:[#allocation9 + $0x188] ss:$16 sps:$4 sm:$0xff]  }
 0x2ad   :  { %20447 = vst [vmem:[#allocation21_spill] sm:$0xff] %v17729_v23  ;;  %20449 = vst [vmem:[#allocation23_spill] sm:$0xff] %v17735_v27 }
 0x2ae   :  { %16689 = vtanh.f32 %v17682_v28 }
 0x2b0   :  { %v16686_v24 = vpop.eup %16685 }
 0x2b1   :  { %v1870_v12 = vmul.f32 %v16686_v24, %v16684_v31  ;;  %v16688_v58 = vpop.eup %16687  ;;  %v17739_v31 = vld [vmem:[#allocation9 + $0x1a4] ss:$16 sps:$4 sm:$0xff]   ;;  %v17741_v24 = vld [vmem:[#allocation9 + $0x1ac] ss:$16 sps:$4 sm:$0xff]  }
 0x2b2   :  { %20450 = vst [vmem:[#allocation24_spill] sm:$0xff] %v17739_v31  ;;  %20451 = vst [vmem:[#allocation25_spill] sm:$0xff] %v17741_v24 }
 0x2b3   :  { %1873 = vst [vmem:[#allocation10 + $0x10] sm:$0xff] %v1870_v12  ;;  %v1896_v32 = vpack.c.bf16 %v1870_v12, %v1870_v12  ;;  %v17745_v12 = vld [vmem:[#allocation9 + $0x1a0] ss:$16 sps:$4 sm:$0xff]  }
 0x2b4   :  { %20452 = vst [vmem:[#allocation26_spill] sm:$0xff] %v17745_v12 }
 0x2b5   :  { %2155 = vmatmul.mubr.bf16.vlgmr.msra.gmra.mrb[32].mxu0 %v1896_v32  ;;  %2196 = vmatmul.mubr.bf16.vlgmr.msra.gmra.mrb[32].mxu1 %v1896_v32  ;;  %v17747_v32 = vld [vmem:[#allocation9 + $0x1a8] ss:$16 sps:$4 sm:$0xff]  }
 0x2b6   :  { %2365 = vmatpush1.bf16.msra.mxu0 %v17685_v29  ;;  %2406 = vmatpush1.bf16.msra.mxu1 %v17687_v30  ;;  %20453 = vst [vmem:[#allocation27_spill] sm:$0xff] %v17747_v32 }
 0x2b7   :  { %2366 = vmatprep.subr.bf16.mxu0 %v17689_v34  ;;  %2407 = vmatprep.subr.bf16.mxu1 %v17691_v57 }
 0x2b8   :  { %v16690_v14 = vpop.eup %16689  ;;  %2396 = vmatprep.mubr.bf16.mxu0 %v20445_v15  ;;  %2437 = vmatprep.mubr.bf16.mxu1 %v20445_v15 }
 0x2b9   :  { %v1871_v19 = vmul.f32 %v16690_v14, %v16688_v58  ;;  %v17751_v58 = vld [vmem:[#allocation9 + $0x1c4] ss:$16 sps:$4 sm:$0xff]   ;;  %v17753_v14 = vld [vmem:[#allocation9 + $0x1cc] ss:$16 sps:$4 sm:$0xff]  }
 0x2ba   :  { %2367 = vmatpush1.bf16.msra.mxu0 %v17695_v33  ;;  %2408 = vmatpush1.bf16.msra.mxu1 %v17697_v16  ;;  %20454 = vst [vmem:[#allocation28_spill] sm:$0xff] %v17751_v58  ;;  %20455 = vst [vmem:[#allocation29_spill] sm:$0xff] %v17753_v14 }
 0x2bb   :  { %2368 = vmatprep.subr.bf16.mxu0 %v17701_v0  ;;  %2409 = vmatprep.subr.bf16.mxu1 %v17703_v59  ;;  %1874 = vst [vmem:[#allocation10 + $0x18] sm:$0xff] %v1871_v19 }
 0x2be   :  { %2369 = vmatpush1.bf16.msra.mxu0 %v17709_v18  ;;  %2410 = vmatpush1.bf16.msra.mxu1 %v17711_v60 }
 0x2bf   :  { %2370 = vmatprep.subr.bf16.mxu0 %v17715_v11  ;;  %2411 = vmatprep.subr.bf16.mxu1 %v17717_v17 }
 0x2c2   :  { %2371 = vmatpush1.bf16.msra.mxu0 %v17721_v13  ;;  %2412 = vmatpush1.bf16.msra.mxu1 %v17723_v10 }
 0x2c3   :  { %2372 = vmatprep.subr.bf16.mxu0 %v17727_v21  ;;  %2413 = vmatprep.subr.bf16.mxu1 %v17729_v23  ;;  %v17757_v23 = vld [vmem:[#allocation9 + $0x1c0] ss:$16 sps:$4 sm:$0xff]  }
 0x2c4   :  { %20456 = vst [vmem:[#allocation30_spill] sm:$0xff] %v17757_v23  ;;  %v1876_v21 = vld [vmem:[#allocation4 + $0x20] sm:$0xff] }
 0x2c6   :  { %2373 = vmatpush1.bf16.msra.mxu0 %v17733_v26  ;;  %2414 = vmatpush1.bf16.msra.mxu1 %v17735_v27  ;;  %v17759_v26 = vld [vmem:[#allocation9 + $0x1c8] ss:$16 sps:$4 sm:$0xff]   ;;  %v17763_v27 = vld [vmem:[#allocation9 + $0x1e4] ss:$16 sps:$4 sm:$0xff]  }
 0x2c7   :  { %2374 = vmatprep.subr.bf16.mxu0 %v17739_v31  ;;  %2415 = vmatprep.subr.bf16.mxu1 %v17741_v24  ;;  %20457 = vst [vmem:[#allocation31_spill] sm:$0xff] %v17759_v26  ;;  %20458 = vst [vmem:[#allocation32_spill] sm:$0xff] %v17763_v27  ;;  %v17765_v31 = vld [vmem:[#allocation9 + $0x1ec] ss:$16 sps:$4 sm:$0xff]   ;;  %v17769_v24 = vld [vmem:[#allocation9 + $0x1e0] ss:$16 sps:$4 sm:$0xff]  }
 0x2c8   :  { %20459 = vst [vmem:[#allocation33_spill] sm:$0xff] %v17765_v31  ;;  %20460 = vst [vmem:[#allocation34_spill] sm:$0xff] %v17769_v24 }
 0x2ca   :  { %2375 = vmatpush1.bf16.msra.mxu0 %v17745_v12  ;;  %2416 = vmatpush1.bf16.msra.mxu1 %v17747_v32  ;;  %v17771_v12 = vld [vmem:[#allocation9 + $0x1e8] ss:$16 sps:$4 sm:$0xff]   ;;  %v17775_v32 = vld [vmem:[#allocation7 + $0x4] ss:$16 sps:$4 sm:$0xff]  }
 0x2cb   :  { %2376 = vmatprep.subr.bf16.mxu0 %v17751_v58  ;;  %2417 = vmatprep.subr.bf16.mxu1 %v17753_v14  ;;  %20461 = vst [vmem:[#allocation35_spill] sm:$0xff] %v17771_v12  ;;  %v17777_v58 = vld [vmem:[#allocation7 + $0xc] ss:$16 sps:$4 sm:$0xff]   ;;  %v17781_v14 = vld [vmem:[#allocation7] ss:$16 sps:$4 sm:$0xff]  }
 0x2cc   :  { %20462 = vst [vmem:[#allocation36_spill] sm:$0xff] %v17777_v58  ;;  %20463 = vst [vmem:[#allocation37_spill] sm:$0xff] %v17781_v14 }
 0x2ce   :  { %2377 = vmatpush1.bf16.msra.mxu0 %v17757_v23  ;;  %2418 = vmatpush1.bf16.msra.mxu1 %v17759_v26  ;;  %v17783_v23 = vld [vmem:[#allocation7 + $0x8] ss:$16 sps:$4 sm:$0xff]   ;;  %v1897_v26 = vpack.c.bf16 %v1871_v19, %v1871_v19  ;;  %v17799_v19 = vld [vmem:[#allocation7 + $0x44] ss:$16 sps:$4 sm:$0xff]  }
 0x2cf   :  { %2378 = vmatprep.subr.bf16.mxu0 %v17763_v27  ;;  %2419 = vmatprep.subr.bf16.mxu1 %v17765_v31  ;;  %20464 = vst [vmem:[#allocation38_spill] sm:$0xff] %v17783_v23  ;;  %v17787_v27 = vld [vmem:[#allocation7 + $0x24] ss:$16 sps:$4 sm:$0xff]   ;;  %v17789_v31 = vld [vmem:[#allocation7 + $0x2c] ss:$16 sps:$4 sm:$0xff]  }
 0x2d0   :  { %20465 = vst [vmem:[#allocation39_spill] sm:$0xff] %v17787_v27  ;;  %20466 = vst [vmem:[#allocation40_spill] sm:$0xff] %v17789_v31 }
 0x2d2   :  { %2379 = vmatpush1.bf16.msra.mxu0 %v17769_v24  ;;  %2420 = vmatpush1.bf16.msra.mxu1 %v17771_v12  ;;  %v17793_v12 = vld [vmem:[#allocation7 + $0x20] ss:$16 sps:$4 sm:$0xff]   ;;  %v17795_v24 = vld [vmem:[#allocation7 + $0x28] ss:$16 sps:$4 sm:$0xff]  }
 0x2d3   :  { %2489 = vmatprep.subr.bf16.mxu0 %v17775_v32  ;;  %2530 = vmatprep.subr.bf16.mxu1 %v17777_v58  ;;  %20467 = vst [vmem:[#allocation41_spill] sm:$0xff] %v17793_v12  ;;  %20468 = vst [vmem:[#allocation42_spill] sm:$0xff] %v17795_v24  ;;  %v17801_v58 = vld [vmem:[#allocation7 + $0x4c] ss:$16 sps:$4 sm:$0xff]  }
 0x2d4   :  { %20469 = vst [vmem:[#allocation43_spill] sm:$0xff] %v17801_v58 }
 0x2d5   :  { %2397 = vmatmul.mubr.bf16.vlgmr.msra.gmra.mrb[36].mxu0 %v1897_v26  ;;  %2438 = vmatmul.mubr.bf16.vlgmr.msra.gmra.mrb[36].mxu1 %v1897_v26  ;;  %v1878_v26 = vpack.c.bf16 %v1876_v21, %v1876_v21  ;;  %v17821_v21 = vld [vmem:[#allocation7 + $0x60] ss:$16 sps:$4 sm:$0xff]  }
 0x2d6   :  { %2490 = vmatpush1.bf16.msra.mxu0 %v17781_v14  ;;  %2531 = vmatpush1.bf16.msra.mxu1 %v17783_v23  ;;  %v17807_v23 = vld [vmem:[#allocation7 + $0x40] ss:$16 sps:$4 sm:$0xff]   ;;  %v17809_v14 = vld [vmem:[#allocation7 + $0x48] ss:$16 sps:$4 sm:$0xff]  }
 0x2d7   :  { %2491 = vmatprep.subr.bf16.mxu0 %v17787_v27  ;;  %2532 = vmatprep.subr.bf16.mxu1 %v17789_v31  ;;  %v17813_v31 = vld [vmem:[#allocation7 + $0x64] ss:$16 sps:$4 sm:$0xff]   ;;  %v17815_v27 = vld [vmem:[#allocation7 + $0x6c] ss:$16 sps:$4 sm:$0xff]  }
 0x2d8   :  { %2521 = vmatprep.mubr.bf16.mxu0 %v20445_v15  ;;  %2562 = vmatprep.mubr.bf16.mxu1 %v20445_v15 }
 0x2da   :  { %2492 = vmatpush1.bf16.msra.mxu0 %v17793_v12  ;;  %2533 = vmatpush1.bf16.msra.mxu1 %v17795_v24  ;;  %v17823_v24 = vld [vmem:[#allocation7 + $0x68] ss:$16 sps:$4 sm:$0xff]  }
 0x2db   :  { %2614 = vmatprep.subr.bf16.mxu0 %v17799_v19  ;;  %2655 = vmatprep.subr.bf16.mxu1 %v17801_v58  ;;  %v1877_v12 = vld [vmem:[#allocation4 + $0x28] sm:$0xff] }
 0x2dc   :  { %v1879_v58 = vpack.c.bf16 %v1877_v12, %v1877_v12 }
 0x2dd   :  { %14469 = vmatmul.mubr.msk.bf16.vlgmr.msra.gmra.mrb[40].mxu0 %vm726_vm0, %v1878_v26  ;;  %14470 = vmatmul.mubr.msk.bf16.vlgmr.msra.gmra.mrb[40].mxu1 %vm726_vm0, %v1878_v26 }
 0x2de   :  { %2615 = vmatpush1.bf16.msra.mxu0 %v17807_v23  ;;  %2656 = vmatpush1.bf16.msra.mxu1 %v17809_v14 }
 0x2df   :  { %2616 = vmatprep.subr.bf16.mxu0 %v17813_v31  ;;  %2657 = vmatprep.subr.bf16.mxu1 %v17815_v27 }
 0x2e0   :  { %2646 = vmatprep.mubr.bf16.mxu0 %v20445_v15  ;;  %2687 = vmatprep.mubr.bf16.mxu1 %v20445_v15 }
 0x2e2   :  { %2617 = vmatpush1.bf16.msra.mxu0 %v17821_v21  ;;  %2658 = vmatpush1.bf16.msra.mxu1 %v17823_v24 }
 0x2e3   :  { %3002 = vmatprep.subr.bf16.mxu0 %v17567_v61  ;;  %3043 = vmatprep.subr.bf16.mxu1 %v17569_v62  ;;  %v20470_v61 = vld [vmem:[#allocation14_spill] sm:$0xff]  ;;  %v20471_v62 = vld [vmem:[#allocation15_spill] sm:$0xff] }
 0x2e5   :  { %14479 = vmatmul.mubr.msk.bf16.vlgmr.msra.gmra.mrb[44].mxu0 %vm726_vm0, %v1879_v58  ;;  %14480 = vmatmul.mubr.msk.bf16.vlgmr.msra.gmra.mrb[44].mxu1 %vm726_vm0, %v1879_v58 }
 0x2e6   :  { %3003 = vmatpush1.bf16.msra.mxu0 %v17571_v63  ;;  %3044 = vmatpush1.bf16.msra.mxu1 %v17573_v36  ;;  %v20472_v63 = vld [vmem:[#allocation16_spill] sm:$0xff]  ;;  %v20473_v36 = vld [vmem:[#allocation17_spill] sm:$0xff] }
 0x2e7   :  { %3004 = vmatprep.subr.bf16.mxu0 %v17579_v38  ;;  %3045 = vmatprep.subr.bf16.mxu1 %v17581_v40  ;;  %v20474_v38 = vld [vmem:[#allocation18_spill] sm:$0xff]  ;;  %v20475_v40 = vld [vmem:[#allocation19_spill] sm:$0xff] }
 0x2e8   :  { %3034 = vmatprep.mubr.bf16.mxu0 %v20445_v15  ;;  %3075 = vmatprep.mubr.bf16.mxu1 %v20445_v15 }
 0x2ea   :  { %3005 = vmatpush1.bf16.msra.mxu0 %v17583_v42  ;;  %3046 = vmatpush1.bf16.msra.mxu1 %v17585_v43 }
 0x2eb   :  { %3006 = vmatprep.subr.bf16.mxu0 %v17591_v44  ;;  %3047 = vmatprep.subr.bf16.mxu1 %v17593_v45 }
 0x2ee   :  { %3007 = vmatpush1.bf16.msra.mxu0 %v17595_v46  ;;  %3048 = vmatpush1.bf16.msra.mxu1 %v17597_v47 }
 0x2ef   :  { %3008 = vmatprep.subr.bf16.mxu0 %v17603_v48  ;;  %3049 = vmatprep.subr.bf16.mxu1 %v17605_v49 }
 0x2f2   :  { %3009 = vmatpush1.bf16.msra.mxu0 %v17607_v50  ;;  %3050 = vmatpush1.bf16.msra.mxu1 %v17609_v52 }
 0x2f3   :  { %3010 = vmatprep.subr.bf16.mxu0 %v17615_v53  ;;  %3051 = vmatprep.subr.bf16.mxu1 %v17617_v39 }
 0x2f6   :  { %3011 = vmatpush1.bf16.msra.mxu0 %v17619_v54  ;;  %3052 = vmatpush1.bf16.msra.mxu1 %v17621_v55 }
 0x2f7   :  { %3012 = vmatprep.subr.bf16.mxu0 %v17627_v56  ;;  %3053 = vmatprep.subr.bf16.mxu1 %v17629_v1 }
 0x2fa   :  { %3013 = vmatpush1.bf16.msra.mxu0 %v17631_v3  ;;  %3054 = vmatpush1.bf16.msra.mxu1 %v17633_v4 }
 0x2fb   :  { %3014 = vmatprep.subr.bf16.mxu0 %v17639_v5  ;;  %3055 = vmatprep.subr.bf16.mxu1 %v17641_v6 }
 0x2fe   :  { %3015 = vmatpush1.bf16.msra.mxu0 %v17643_v7  ;;  %3056 = vmatpush1.bf16.msra.mxu1 %v17645_v8 }
 0x2ff   :  { %3016 = vmatprep.subr.bf16.mxu0 %v20470_v61  ;;  %3057 = vmatprep.subr.bf16.mxu1 %v20471_v62 }
 0x302   :  { %3017 = vmatpush1.bf16.msra.mxu0 %v20472_v63  ;;  %3058 = vmatpush1.bf16.msra.mxu1 %v20473_v36 }
 0x303   :  { %3244 = vmatprep.subr.bf16.mxu0 %v20474_v38  ;;  %3285 = vmatprep.subr.bf16.mxu1 %v20475_v40 }
 0x388   :  { %v2156_v42 = vpop.f32.mrb[32].mxu0  ;;  %v2197_v43 = vpop.f32.mrb[32].mxu1 }
 0x389   :  { %v2158_v44 = vpop.f32.mrb[33].mxu0  ;;  %v2199_v45 = vpop.f32.mrb[33].mxu1 }
 0x38a   :  { %v2160_v46 = vpop.f32.mrb[34].mxu0  ;;  %v2201_v47 = vpop.f32.mrb[34].mxu1 }
 0x38b   :  { %v2161_v48 = vpop.f32.mrb[35].mxu0  ;;  %v2202_v49 = vpop.f32.mrb[35].mxu1 }
 0x3a8   :  { %v2398_v50 = vpop.f32.mrb[36].mxu0  ;;  %v2439_v52 = vpop.f32.mrb[36].mxu1 }
 0x3a9   :  { %v2400_v53 = vpop.f32.mrb[37].mxu0  ;;  %v2441_v39 = vpop.f32.mrb[37].mxu1 }
 0x3aa   :  { %v2402_v54 = vpop.f32.mrb[38].mxu0  ;;  %v2443_v55 = vpop.f32.mrb[38].mxu1 }
 0x3ab   :  { %v2403_v56 = vpop.f32.mrb[39].mxu0  ;;  %v2444_v1 = vpop.f32.mrb[39].mxu1 }
 0x3b0   :  { %v2523_v3 = vpop.f32.mrb[40].mxu0  ;;  %v2564_v4 = vpop.f32.mrb[40].mxu1 }
 0x3b1   :  { %v2524_v5 = vadd.f32 %v2523_v3, %v2156_v42  ;;  %v2565_v6 = vadd.f32 %v2564_v4, %v2197_v43  ;;  %v2525_v7 = vpop.f32.mrb[41].mxu0  ;;  %v2566_v8 = vpop.f32.mrb[41].mxu1 }
 0x3b2   :  { %v2526_v12 = vadd.f32 %v2525_v7, %v2158_v44  ;;  %v2567_v58 = vadd.f32 %v2566_v8, %v2199_v45  ;;  %v2527_v26 = vpop.f32.mrb[42].mxu0  ;;  %v2568_v61 = vpop.f32.mrb[42].mxu1 }
 0x3b3   :  { %v2696_v62 = vadd.f32 %v2524_v5, %v17520_v22  ;;  %v2528_v63 = vpop.f32.mrb[43].mxu0  ;;  %v2569_v36 = vpop.f32.mrb[43].mxu1 }
 0x3b4   :  { %v2697_v38 = vadd.f32 %v2526_v12, %v17522_v25  ;;  %v2699_v44 = vadd.f32 %v2567_v58, %v17530_v35 }
 0x3b5   :  { %v14481_v40 = vmul.f32 -1.442695, %v2696_v62 }
 0x3b6   :  { %v14483_v46 = vmul.f32 -1.442695, %v2697_v38  ;;  %v14485_v12 = vmul.f32 -1.442695, %v2699_v44 }
 0x3b7   :  { %16691 = vpow2.f32 %v14481_v40 }
 0x3b8   :  { %16693 = vpow2.f32 %v14483_v46  ;;  %v2648_v47 = vpop.f32.mrb[44].mxu0  ;;  %v2689_v48 = vpop.f32.mrb[44].mxu1 }
 0x3b9   :  { %v2649_v42 = vadd.f32 %v2648_v47, %v2398_v50  ;;  %v2690_v43 = vadd.f32 %v2689_v48, %v2439_v52  ;;  %v2650_v49 = vpop.f32.mrb[45].mxu0  ;;  %v2691_v54 = vpop.f32.mrb[45].mxu1  ;;  %v2698_v50 = vadd.f32 %v2565_v6, %v17538_v51 }
 0x3ba   :  { %v2651_v45 = vadd.f32 %v2650_v49, %v2400_v53  ;;  %v2692_v55 = vadd.f32 %v2691_v54, %v2441_v39  ;;  %v2652_v56 = vpop.f32.mrb[46].mxu0  ;;  %v2693_v1 = vpop.f32.mrb[46].mxu1 }
 0x3bb   :  { %v2700_v3 = vadd.f32 %v2649_v42, %v17533_v37  ;;  %v2653_v4 = vpop.f32.mrb[47].mxu0  ;;  %v2694_v5 = vpop.f32.mrb[47].mxu1  ;;  %v2702_v63 = vadd.f32 %v2690_v43, %v17546_v9 }
 0x3bc   :  { %v2701_v7 = vadd.f32 %v2651_v45, %v17535_v41  ;;  %v2703_v53 = vadd.f32 %v2692_v55, %v17542_v2 }
 0x3bd   :  { %v14482_v8 = vmul.f32 -1.442695, %v2700_v3 }
 0x3be   :  { %v14484_v26 = vmul.f32 -1.442695, %v2701_v7  ;;  %v14486_v62 = vmul.f32 -1.442695, %v2703_v53 }
 0x3bf   :  { %16695 = vpow2.f32 %v14482_v8 }
 0x3c0   :  { %16697 = vpow2.f32 %v14484_v26 }
 0x3c1   :  { %v16692_v52 = vpop.eup %16691  ;;  %16699 = vpow2.f32 %v14485_v12 }
 0x3c2   :  { %v16694_v61 = vpop.eup %16693  ;;  %v2710_v58 = vadd.f32 1.0, %v16692_v52  ;;  %16701 = vtanh.f32 %v2698_v50 }
 0x3c3   :  { %v2722_v39 = vadd.f32 1.0, %v16694_v61  ;;  %v20490_v61 = vld [vmem:[#allocation34_spill] sm:$0xff] }
 0x3c4   :  { %16703 = vrcp.f32 %v2710_v58  ;;  %v20491_v58 = vld [vmem:[#allocation35_spill] sm:$0xff] }
 0x3c5   :  { %16705 = vrcp.f32 %v2722_v39  ;;  %v20492_v39 = vld [vmem:[#allocation36_spill] sm:$0xff] }
 0x3c6   :  { %16707 = vpow2.f32 %v14486_v62  ;;  %v20493_v62 = vld [vmem:[#allocation37_spill] sm:$0xff] }
 0x3c7   :  { %16709 = vtanh.f32 %v2702_v63  ;;  %v20494_v63 = vld [vmem:[#allocation38_spill] sm:$0xff] }
 0x3c9   :  { %v16696_v36 = vpop.eup %16695 }
 0x3ca   :  { %v16698_v38 = vpop.eup %16697  ;;  %v2711_v40 = vadd.f32 1.0, %v16696_v36  ;;  %v2756_v36 = vld [vmem:[#allocation4 + $0x30] sm:$0xff] }
 0x3cb   :  { %v2723_v6 = vadd.f32 1.0, %v16698_v38  ;;  %v16700_v46 = vpop.eup %16699  ;;  %v20495_v38 = vld [vmem:[#allocation39_spill] sm:$0xff] }
 0x3cc   :  { %16711 = vrcp.f32 %v2711_v40  ;;  %v16702_v47 = vpop.eup %16701  ;;  %v2736_v54 = vadd.f32 1.0, %v16700_v46  ;;  %v20496_v40 = vld [vmem:[#allocation40_spill] sm:$0xff]  ;;  %v20497_v46 = vld [vmem:[#allocation41_spill] sm:$0xff] }
 0x3cd   :  { %16713 = vrcp.f32 %v2723_v6  ;;  %v2758_v6 = vpack.c.bf16 %v2756_v36, %v2756_v36 }
 0x3ce   :  { %v16704_v48 = vpop.eup %16703  ;;  %16715 = vrcp.f32 %v2736_v54  ;;  %v17967_v54 = vld [vmem:[#allocation9 + $0x44] ss:$16 sps:$4 sm:$0xff]  }
 0x3cf   :  { %v16706_v42 = vpop.eup %16705  ;;  %v2744_v49 = vmul.f32 %v16704_v48, %v16702_v47  ;;  %v20499_v47 = vld [vmem:[#allocation43_spill] sm:$0xff]  ;;  %v2757_v48 = vld [vmem:[#allocation4 + $0x38] sm:$0xff] }
 0x3d0   :  { %v2742_v44 = vmul.f32 %v16706_v42, %v17678_v20  ;;  %v16708_v43 = vpop.eup %16707  ;;  %v17959_v42 = vld [vmem:[#allocation9 + $0x20] ss:$16 sps:$4 sm:$0xff]  }
 0x3d1   :  { %v16710_v55 = vpop.eup %16709  ;;  %v2737_v4 = vadd.f32 1.0, %v16708_v43  ;;  %v17971_v43 = vld [vmem:[#allocation9 + $0x40] ss:$16 sps:$4 sm:$0xff]  }
 0x3d2   :  { %v17878_v45 = vadd.f32 %v2744_v49, %v2742_v44  ;;  %v17961_v49 = vld [vmem:[#allocation9 + $0x28] ss:$16 sps:$4 sm:$0xff]   ;;  %v17969_v44 = vld [vmem:[#allocation9 + $0x4c] ss:$16 sps:$4 sm:$0xff]  }
 0x3d4   :  { %16717 = vtanh.f32 %v17878_v45 }
 0x3d5   :  { %16719 = vrcp.f32 %v2737_v4  ;;  %v17985_v4 = vld [vmem:[#allocation9 + $0x68] ss:$16 sps:$4 sm:$0xff]  }
 0x3d6   :  { %v16712_v56 = vpop.eup %16711 }
 0x3d7   :  { %v16714_v1 = vpop.eup %16713  ;;  %v2745_v3 = vmul.f32 %v16712_v56, %v16710_v55  ;;  %v17973_v55 = vld [vmem:[#allocation9 + $0x48] ss:$16 sps:$4 sm:$0xff]   ;;  %v17979_v56 = vld [vmem:[#allocation9 + $0x64] ss:$16 sps:$4 sm:$0xff]  }
 0x3d8   :  { %v2743_v5 = vmul.f32 %v16714_v1, %v17682_v28  ;;  %v16716_v8 = vpop.eup %16715  ;;  %v17981_v1 = vld [vmem:[#allocation9 + $0x6c] ss:$16 sps:$4 sm:$0xff]  }
 0x3da   :  { %v17882_v7 = vadd.f32 %v2745_v3, %v2743_v5  ;;  %v17983_v3 = vld [vmem:[#allocation9 + $0x60] ss:$16 sps:$4 sm:$0xff]   ;;  %v17991_v5 = vld [vmem:[#allocation9 + $0x84] ss:$16 sps:$4 sm:$0xff]  }
 0x3dc   :  { %16721 = vtanh.f32 %v17882_v7 }
 0x3de   :  { %v16718_v20 = vpop.eup %16717 }
 0x3df   :  { %v2750_v12 = vmul.f32 %v16718_v20, %v16716_v8  ;;  %v16720_v50 = vpop.eup %16719  ;;  %v17993_v8 = vld [vmem:[#allocation9 + $0x8c] ss:$16 sps:$4 sm:$0xff]   ;;  %v17995_v20 = vld [vmem:[#allocation9 + $0x80] ss:$16 sps:$4 sm:$0xff]  }
 0x3e1   :  { %2753 = vst [vmem:[#allocation10 + $0x20] sm:$0xff] %v2750_v12  ;;  %v2776_v26 = vpack.c.bf16 %v2750_v12, %v2750_v12  ;;  %v17997_v12 = vld [vmem:[#allocation9 + $0x88] ss:$16 sps:$4 sm:$0xff]  }
 0x3e3   :  { %3035 = vmatmul.mubr.bf16.vlgmr.msra.gmra.mrb[48].mxu0 %v2776_v26  ;;  %3076 = vmatmul.mubr.bf16.vlgmr.msra.gmra.mrb[48].mxu1 %v2776_v26  ;;  %v18003_v26 = vld [vmem:[#allocation9 + $0xa4] ss:$16 sps:$4 sm:$0xff]  }
 0x3e4   :  { %3245 = vmatpush1.bf16.msra.mxu0 %v17685_v29  ;;  %3286 = vmatpush1.bf16.msra.mxu1 %v17687_v30  ;;  %v20476_v29 = vld [vmem:[#allocation20_spill] sm:$0xff]  ;;  %v20477_v30 = vld [vmem:[#allocation21_spill] sm:$0xff] }
 0x3e5   :  { %3246 = vmatprep.subr.bf16.mxu0 %v17689_v34  ;;  %3287 = vmatprep.subr.bf16.mxu1 %v17691_v57  ;;  %v20478_v34 = vld [vmem:[#allocation22_spill] sm:$0xff]  ;;  %v20479_v57 = vld [vmem:[#allocation23_spill] sm:$0xff] }
 0x3e6   :  { %v16722_v28 = vpop.eup %16721  ;;  %3276 = vmatprep.mubr.bf16.mxu0 %v20445_v15  ;;  %3317 = vmatprep.mubr.bf16.mxu1 %v20445_v15 }
 0x3e7   :  { %v2751_v52 = vmul.f32 %v16722_v28, %v16720_v50  ;;  %v18005_v50 = vld [vmem:[#allocation9 + $0xac] ss:$16 sps:$4 sm:$0xff]   ;;  %v18007_v28 = vld [vmem:[#allocation9 + $0xa0] ss:$16 sps:$4 sm:$0xff]  }
 0x3e8   :  { %3247 = vmatpush1.bf16.msra.mxu0 %v17695_v33  ;;  %3288 = vmatpush1.bf16.msra.mxu1 %v17697_v16  ;;  %v20480_v33 = vld [vmem:[#allocation24_spill] sm:$0xff]  ;;  %v20481_v16 = vld [vmem:[#allocation25_spill] sm:$0xff] }
 0x3e9   :  { %3248 = vmatprep.subr.bf16.mxu0 %v17701_v0  ;;  %3289 = vmatprep.subr.bf16.mxu1 %v17703_v59  ;;  %2754 = vst [vmem:[#allocation10 + $0x28] sm:$0xff] %v2751_v52  ;;  %v20482_v0 = vld [vmem:[#allocation26_spill] sm:$0xff]  ;;  %v20483_v59 = vld [vmem:[#allocation27_spill] sm:$0xff]  ;;  %v2777_v53 = vpack.c.bf16 %v2751_v52, %v2751_v52 }
 0x3ea   :  { %v18009_v52 = vld [vmem:[#allocation9 + $0xa8] ss:$16 sps:$4 sm:$0xff]  }
 0x3ec   :  { %3249 = vmatpush1.bf16.msra.mxu0 %v17709_v18  ;;  %3290 = vmatpush1.bf16.msra.mxu1 %v17711_v60  ;;  %v20484_v18 = vld [vmem:[#allocation28_spill] sm:$0xff]  ;;  %v20485_v60 = vld [vmem:[#allocation29_spill] sm:$0xff] }
 0x3ed   :  { %3250 = vmatprep.subr.bf16.mxu0 %v17715_v11  ;;  %3291 = vmatprep.subr.bf16.mxu1 %v17717_v17  ;;  %v20486_v11 = vld [vmem:[#allocation30_spill] sm:$0xff]  ;;  %v20487_v17 = vld [vmem:[#allocation31_spill] sm:$0xff] }
 0x3f0   :  { %3251 = vmatpush1.bf16.msra.mxu0 %v17721_v13  ;;  %3292 = vmatpush1.bf16.msra.mxu1 %v17723_v10  ;;  %v20488_v13 = vld [vmem:[#allocation32_spill] sm:$0xff]  ;;  %v20489_v10 = vld [vmem:[#allocation33_spill] sm:$0xff] }
 0x3f1   :  { %3252 = vmatprep.subr.bf16.mxu0 %v20476_v29  ;;  %3293 = vmatprep.subr.bf16.mxu1 %v20477_v30  ;;  %v18015_v29 = vld [vmem:[#allocation9 + $0xc4] ss:$16 sps:$4 sm:$0xff]   ;;  %v18017_v30 = vld [vmem:[#allocation9 + $0xcc] ss:$16 sps:$4 sm:$0xff]  }
 0x3f4   :  { %3253 = vmatpush1.bf16.msra.mxu0 %v20478_v34  ;;  %3294 = vmatpush1.bf16.msra.mxu1 %v20479_v57  ;;  %v18019_v34 = vld [vmem:[#allocation9 + $0xc0] ss:$16 sps:$4 sm:$0xff]   ;;  %v18021_v57 = vld [vmem:[#allocation9 + $0xc8] ss:$16 sps:$4 sm:$0xff]  }
 0x3f5   :  { %3254 = vmatprep.subr.bf16.mxu0 %v20480_v33  ;;  %3295 = vmatprep.subr.bf16.mxu1 %v20481_v16  ;;  %20500 = vst [vmem:[#allocation14_spill] sm:$0xff] %v18021_v57  ;;  %v18025_v33 = vld [vmem:[#allocation9 + $0xe4] ss:$16 sps:$4 sm:$0xff]   ;;  %v18027_v16 = vld [vmem:[#allocation9 + $0xec] ss:$16 sps:$4 sm:$0xff]  }
 0x3f6   :  { %20501 = vst [vmem:[#allocation15_spill] sm:$0xff] %v18025_v33  ;;  %20502 = vst [vmem:[#allocation16_spill] sm:$0xff] %v18027_v16 }
 0x3f8   :  { %3255 = vmatpush1.bf16.msra.mxu0 %v20482_v0  ;;  %3296 = vmatpush1.bf16.msra.mxu1 %v20483_v59  ;;  %v18031_v0 = vld [vmem:[#allocation9 + $0xe0] ss:$16 sps:$4 sm:$0xff]   ;;  %v18033_v59 = vld [vmem:[#allocation9 + $0xe8] ss:$16 sps:$4 sm:$0xff]  }
 0x3f9   :  { %3256 = vmatprep.subr.bf16.mxu0 %v20484_v18  ;;  %3297 = vmatprep.subr.bf16.mxu1 %v20485_v60  ;;  %20503 = vst [vmem:[#allocation17_spill] sm:$0xff] %v18031_v0  ;;  %20504 = vst [vmem:[#allocation18_spill] sm:$0xff] %v18033_v59  ;;  %v18037_v18 = vld [vmem:[#allocation9 + $0x104] ss:$16 sps:$4 sm:$0xff]   ;;  %v18039_v60 = vld [vmem:[#allocation9 + $0x10c] ss:$16 sps:$4 sm:$0xff]  }
 0x3fa   :  { %20505 = vst [vmem:[#allocation19_spill] sm:$0xff] %v18037_v18  ;;  %20506 = vst [vmem:[#allocation20_spill] sm:$0xff] %v18039_v60 }
 0x3fc   :  { %3257 = vmatpush1.bf16.msra.mxu0 %v20486_v11  ;;  %3298 = vmatpush1.bf16.msra.mxu1 %v20487_v17 }
 0x3fd   :  { %3258 = vmatprep.subr.bf16.mxu0 %v20488_v13  ;;  %3299 = vmatprep.subr.bf16.mxu1 %v20489_v10 }
 0x400   :  { %3259 = vmatpush1.bf16.msra.mxu0 %v20490_v61  ;;  %3300 = vmatpush1.bf16.msra.mxu1 %v20491_v58 }
 0x401   :  { %3369 = vmatprep.subr.bf16.mxu0 %v17775_v32  ;;  %3410 = vmatprep.subr.bf16.mxu1 %v20492_v39  ;;  %v20498_v32 = vld [vmem:[#allocation42_spill] sm:$0xff] }
 0x403   :  { %3277 = vmatmul.mubr.bf16.vlgmr.msra.gmra.mrb[52].mxu0 %v2777_v53  ;;  %3318 = vmatmul.mubr.bf16.vlgmr.msra.gmra.mrb[52].mxu1 %v2777_v53 }
 0x404   :  { %3370 = vmatpush1.bf16.msra.mxu0 %v20493_v62  ;;  %3411 = vmatpush1.bf16.msra.mxu1 %v20494_v63 }
 0x405   :  { %3371 = vmatprep.subr.bf16.mxu0 %v20495_v38  ;;  %3412 = vmatprep.subr.bf16.mxu1 %v20496_v40 }
 0x406   :  { %3401 = vmatprep.mubr.bf16.mxu0 %v20445_v15  ;;  %3442 = vmatprep.mubr.bf16.mxu1 %v20445_v15 }
 0x408   :  { %3372 = vmatpush1.bf16.msra.mxu0 %v20497_v46  ;;  %3413 = vmatpush1.bf16.msra.mxu1 %v20498_v32 }
 0x409   :  { %3494 = vmatprep.subr.bf16.mxu0 %v17799_v19  ;;  %3535 = vmatprep.subr.bf16.mxu1 %v20499_v47  ;;  %v2759_v19 = vpack.c.bf16 %v2757_v48, %v2757_v48 }
 0x40b   :  { %14559 = vmatmul.mubr.msk.bf16.vlgmr.msra.gmra.mrb[56].mxu0 %vm726_vm0, %v2758_v6  ;;  %14560 = vmatmul.mubr.msk.bf16.vlgmr.msra.gmra.mrb[56].mxu1 %vm726_vm0, %v2758_v6 }
 0x40c   :  { %3495 = vmatpush1.bf16.msra.mxu0 %v17807_v23  ;;  %3536 = vmatpush1.bf16.msra.mxu1 %v17809_v14  ;;  %v17943_v23 = vld [vmem:[#allocation9 + $0x4] ss:$16 sps:$4 sm:$0xff]   ;;  %v17949_v14 = vld [vmem:[#allocation9 + $0x8] ss:$16 sps:$4 sm:$0xff]  }
 0x40d   :  { %3496 = vmatprep.subr.bf16.mxu0 %v17813_v31  ;;  %3537 = vmatprep.subr.bf16.mxu1 %v17815_v27  ;;  %v17945_v27 = vld [vmem:[#allocation9 + $0xc] ss:$16 sps:$4 sm:$0xff]   ;;  %v17947_v31 = vld [vmem:[#allocation9] ss:$16 sps:$4 sm:$0xff]  }
 0x40e   :  { %3526 = vmatprep.mubr.bf16.mxu0 %v20445_v15  ;;  %3567 = vmatprep.mubr.bf16.mxu1 %v20445_v15 }
 0x410   :  { %3497 = vmatpush1.bf16.msra.mxu0 %v17821_v21  ;;  %3538 = vmatpush1.bf16.msra.mxu1 %v17823_v24  ;;  %v17955_v24 = vld [vmem:[#allocation9 + $0x24] ss:$16 sps:$4 sm:$0xff]   ;;  %v17957_v21 = vld [vmem:[#allocation9 + $0x2c] ss:$16 sps:$4 sm:$0xff]  }
 0x411   :  { %3882 = vmatprep.subr.bf16.mxu0 %v17943_v23  ;;  %3923 = vmatprep.subr.bf16.mxu1 %v17945_v27 }
 0x413   :  { %14569 = vmatmul.mubr.msk.bf16.vlgmr.msra.gmra.mrb[60].mxu0 %vm726_vm0, %v2759_v19  ;;  %14570 = vmatmul.mubr.msk.bf16.vlgmr.msra.gmra.mrb[60].mxu1 %vm726_vm0, %v2759_v19 }
 0x414   :  { %3914 = vmatprep.mubr.bf16.mxu0 %v20445_v15  ;;  %3955 = vmatprep.mubr.bf16.mxu1 %v20445_v15 }
 0x415   :  { %3883 = vmatpush1.bf16.msra.mxu0 %v17947_v31  ;;  %3924 = vmatpush1.bf16.msra.mxu1 %v17949_v14 }
 0x416   :  { %3884 = vmatprep.subr.bf16.mxu0 %v17955_v24  ;;  %3925 = vmatprep.subr.bf16.mxu1 %v17957_v21 }
 0x419   :  { %3885 = vmatpush1.bf16.msra.mxu0 %v17959_v42  ;;  %3926 = vmatpush1.bf16.msra.mxu1 %v17961_v49 }
 0x41a   :  { %3886 = vmatprep.subr.bf16.mxu0 %v17967_v54  ;;  %3927 = vmatprep.subr.bf16.mxu1 %v17969_v44 }
 0x41d   :  { %3887 = vmatpush1.bf16.msra.mxu0 %v17971_v43  ;;  %3928 = vmatpush1.bf16.msra.mxu1 %v17973_v55 }
 0x41e   :  { %3888 = vmatprep.subr.bf16.mxu0 %v17979_v56  ;;  %3929 = vmatprep.subr.bf16.mxu1 %v17981_v1 }
 0x421   :  { %3889 = vmatpush1.bf16.msra.mxu0 %v17983_v3  ;;  %3930 = vmatpush1.bf16.msra.mxu1 %v17985_v4 }
 0x422   :  { %3890 = vmatprep.subr.bf16.mxu0 %v17991_v5  ;;  %3931 = vmatprep.subr.bf16.mxu1 %v17993_v8 }
 0x425   :  { %3891 = vmatpush1.bf16.msra.mxu0 %v17995_v20  ;;  %3932 = vmatpush1.bf16.msra.mxu1 %v17997_v12 }
 0x426   :  { %3892 = vmatprep.subr.bf16.mxu0 %v18003_v26  ;;  %3933 = vmatprep.subr.bf16.mxu1 %v18005_v50 }
 0x429   :  { %3893 = vmatpush1.bf16.msra.mxu0 %v18007_v28  ;;  %3934 = vmatpush1.bf16.msra.mxu1 %v18009_v52 }
 0x42a   :  { %3894 = vmatprep.subr.bf16.mxu0 %v18015_v29  ;;  %3935 = vmatprep.subr.bf16.mxu1 %v18017_v30 }
 0x42d   :  { %3895 = vmatpush1.bf16.msra.mxu0 %v18019_v34  ;;  %3936 = vmatpush1.bf16.msra.mxu1 %v18021_v57 }
 0x42e   :  { %3896 = vmatprep.subr.bf16.mxu0 %v18025_v33  ;;  %3937 = vmatprep.subr.bf16.mxu1 %v18027_v16 }
 0x431   :  { %3897 = vmatpush1.bf16.msra.mxu0 %v18031_v0  ;;  %3938 = vmatpush1.bf16.msra.mxu1 %v18033_v59 }
 0x432   :  { %4124 = vmatprep.subr.bf16.mxu0 %v18037_v18  ;;  %4165 = vmatprep.subr.bf16.mxu1 %v18039_v60 }
 0x4b6   :  { %v3036_v11 = vpop.f32.mrb[48].mxu0  ;;  %v3077_v17 = vpop.f32.mrb[48].mxu1 }
 0x4b7   :  { %v3038_v13 = vpop.f32.mrb[49].mxu0  ;;  %v3079_v10 = vpop.f32.mrb[49].mxu1 }
 0x4b8   :  { %v3040_v61 = vpop.f32.mrb[50].mxu0  ;;  %v3081_v58 = vpop.f32.mrb[50].mxu1 }
 0x4b9   :  { %v3041_v53 = vpop.f32.mrb[51].mxu0  ;;  %v3082_v39 = vpop.f32.mrb[51].mxu1 }
 0x4d6   :  { %v3278_v62 = vpop.f32.mrb[52].mxu0  ;;  %v3319_v63 = vpop.f32.mrb[52].mxu1 }
 0x4d7   :  { %v3280_v36 = vpop.f32.mrb[53].mxu0  ;;  %v3321_v38 = vpop.f32.mrb[53].mxu1 }
 0x4d8   :  { %v3282_v40 = vpop.f32.mrb[54].mxu0  ;;  %v3323_v6 = vpop.f32.mrb[54].mxu1 }
 0x4d9   :  { %v3283_v46 = vpop.f32.mrb[55].mxu0  ;;  %v3324_v32 = vpop.f32.mrb[55].mxu1 }
 0x4de   :  { %v3403_v47 = vpop.f32.mrb[56].mxu0  ;;  %v3444_v48 = vpop.f32.mrb[56].mxu1 }
 0x4df   :  { %v3404_v19 = vadd.f32 %v3403_v47, %v3036_v11  ;;  %v3445_v60 = vadd.f32 %v3444_v48, %v3077_v17  ;;  %v3405_v18 = vpop.f32.mrb[57].mxu0  ;;  %v3446_v59 = vpop.f32.mrb[57].mxu1 }
 0x4e0   :  { %v3406_v0 = vadd.f32 %v3405_v18, %v3038_v13  ;;  %v3447_v16 = vadd.f32 %v3446_v59, %v3079_v10  ;;  %v3407_v61 = vpop.f32.mrb[58].mxu0  ;;  %v3448_v58 = vpop.f32.mrb[58].mxu1 }
 0x4e1   :  { %v3576_v53 = vadd.f32 %v3404_v19, %v17520_v22  ;;  %v3408_v39 = vpop.f32.mrb[59].mxu0  ;;  %v3449_v33 = vpop.f32.mrb[59].mxu1 }
 0x4e2   :  { %v3577_v57 = vadd.f32 %v3406_v0, %v17522_v25  ;;  %v3579_v59 = vadd.f32 %v3447_v16, %v17530_v35 }
 0x4e3   :  { %v14571_v40 = vmul.f32 -1.442695, %v3576_v53 }
 0x4e4   :  { %v14573_v6 = vmul.f32 -1.442695, %v3577_v57  ;;  %v14575_v53 = vmul.f32 -1.442695, %v3579_v59 }
 0x4e5   :  { %16723 = vpow2.f32 %v14571_v40 }
 0x4e6   :  { %16725 = vpow2.f32 %v14573_v6  ;;  %v3528_v46 = vpop.f32.mrb[60].mxu0  ;;  %v3569_v32 = vpop.f32.mrb[60].mxu1 }
 0x4e7   :  { %v3529_v11 = vadd.f32 %v3528_v46, %v3278_v62  ;;  %v3570_v17 = vadd.f32 %v3569_v32, %v3319_v63  ;;  %v3530_v47 = vpop.f32.mrb[61].mxu0  ;;  %v3571_v48 = vpop.f32.mrb[61].mxu1  ;;  %v3578_v62 = vadd.f32 %v3445_v60, %v17538_v51 }
 0x4e8   :  { %v3531_v18 = vadd.f32 %v3530_v47, %v3280_v36  ;;  %v3572_v13 = vadd.f32 %v3571_v48, %v3321_v38  ;;  %v3532_v10 = vpop.f32.mrb[62].mxu0  ;;  %v3573_v19 = vpop.f32.mrb[62].mxu1 }
 0x4e9   :  { %v3580_v33 = vadd.f32 %v3529_v11, %v17533_v37  ;;  %v3533_v61 = vpop.f32.mrb[63].mxu0  ;;  %v3574_v0 = vpop.f32.mrb[63].mxu1  ;;  %v3582_v46 = vadd.f32 %v3570_v17, %v17546_v9 }
 0x4ea   :  { %v3581_v57 = vadd.f32 %v3531_v18, %v17535_v41  ;;  %v3583_v36 = vadd.f32 %v3572_v13, %v17542_v2 }
 0x4eb   :  { %v14572_v58 = vmul.f32 -1.442695, %v3580_v33 }
 0x4ec   :  { %v14574_v39 = vmul.f32 -1.442695, %v3581_v57  ;;  %v14576_v6 = vmul.f32 -1.442695, %v3583_v36  ;;  %v18061_v36 = vld [vmem:[#allocation9 + $0x100] ss:$16 sps:$4 sm:$0xff]  }
 0x4ed   :  { %16727 = vpow2.f32 %v14572_v58 }
 0x4ee   :  { %16729 = vpow2.f32 %v14574_v39 }
 0x4ef   :  { %v16724_v63 = vpop.eup %16723  ;;  %16731 = vpow2.f32 %v14575_v53 }
 0x4f0   :  { %v16726_v40 = vpop.eup %16725  ;;  %v3590_v16 = vadd.f32 1.0, %v16724_v63  ;;  %16733 = vtanh.f32 %v3578_v62 }
 0x4f1   :  { %v3602_v38 = vadd.f32 1.0, %v16726_v40 }
 0x4f2   :  { %16735 = vrcp.f32 %v3590_v16 }
 0x4f3   :  { %16737 = vrcp.f32 %v3602_v38  ;;  %v18063_v38 = vld [vmem:[#allocation9 + $0x108] ss:$16 sps:$4 sm:$0xff]  }
 0x4f4   :  { %16739 = vpow2.f32 %v14576_v6 }
 0x4f5   :  { %16741 = vtanh.f32 %v3582_v46  ;;  %v18065_v46 = vld [vmem:[#allocation9 + $0x124] ss:$16 sps:$4 sm:$0xff]  }
 0x4f7   :  { %v16728_v32 = vpop.eup %16727 }
 0x4f8   :  { %v16730_v11 = vpop.eup %16729  ;;  %v3591_v47 = vadd.f32 1.0, %v16728_v32  ;;  %v18067_v32 = vld [vmem:[#allocation9 + $0x12c] ss:$16 sps:$4 sm:$0xff]  }
 0x4f9   :  { %v3603_v60 = vadd.f32 1.0, %v16730_v11  ;;  %v16732_v48 = vpop.eup %16731  ;;  %v18073_v11 = vld [vmem:[#allocation9 + $0x128] ss:$16 sps:$4 sm:$0xff]  }
 0x4fa   :  { %16743 = vrcp.f32 %v3591_v47  ;;  %v16734_v59 = vpop.eup %16733  ;;  %v3616_v19 = vadd.f32 1.0, %v16732_v48  ;;  %v18079_v48 = vld [vmem:[#allocation9 + $0x14c] ss:$16 sps:$4 sm:$0xff]  }
 0x4fb   :  { %16745 = vrcp.f32 %v3603_v60  ;;  %v18077_v60 = vld [vmem:[#allocation9 + $0x144] ss:$16 sps:$4 sm:$0xff]  }
 0x4fc   :  { %v16736_v18 = vpop.eup %16735  ;;  %16747 = vrcp.f32 %v3616_v19  ;;  %v18091_v19 = vld [vmem:[#allocation9 + $0x164] ss:$16 sps:$4 sm:$0xff]  }
 0x4fd   :  { %v16738_v10 = vpop.eup %16737  ;;  %v3624_v13 = vmul.f32 %v16736_v18, %v16734_v59 }
 0x4fe   :  { %v3622_v33 = vmul.f32 %v16738_v10, %v17878_v45  ;;  %v16740_v17 = vpop.eup %16739  ;;  %v18085_v10 = vld [vmem:[#allocation9 + $0x140] ss:$16 sps:$4 sm:$0xff]  }
 0x4ff   :  { %v16742_v0 = vpop.eup %16741  ;;  %v3617_v39 = vadd.f32 1.0, %v16740_v17  ;;  %v18097_v17 = vld [vmem:[#allocation9 + $0x160] ss:$16 sps:$4 sm:$0xff]  }
 0x500   :  { %v18054_v61 = vadd.f32 %v3624_v13, %v3622_v33  ;;  %v18087_v13 = vld [vmem:[#allocation9 + $0x148] ss:$16 sps:$4 sm:$0xff]   ;;  %v18093_v33 = vld [vmem:[#allocation9 + $0x16c] ss:$16 sps:$4 sm:$0xff]  }
 0x502   :  { %16749 = vtanh.f32 %v18054_v61 }
 0x503   :  { %16751 = vrcp.f32 %v3617_v39  ;;  %v18111_v39 = vld [vmem:[#allocation9 + $0x188] ss:$16 sps:$4 sm:$0xff]  }
 0x504   :  { %v16744_v57 = vpop.eup %16743  ;;  %20509 = vst [vmem:[#allocation23_spill] sm:$0xff] %v18111_v39 }
 0x505   :  { %v16746_v58 = vpop.eup %16745  ;;  %v3625_v53 = vmul.f32 %v16744_v57, %v16742_v0  ;;  %v18099_v0 = vld [vmem:[#allocation9 + $0x168] ss:$16 sps:$4 sm:$0xff]   ;;  %v18103_v57 = vld [vmem:[#allocation9 + $0x184] ss:$16 sps:$4 sm:$0xff]  }
 0x506   :  { %v3623_v62 = vmul.f32 %v16746_v58, %v17882_v7  ;;  %v16748_v40 = vpop.eup %16747  ;;  %v18071_v7 = vld [vmem:[#allocation9 + $0x120] ss:$16 sps:$4 sm:$0xff]   ;;  %v18105_v58 = vld [vmem:[#allocation9 + $0x18c] ss:$16 sps:$4 sm:$0xff]  }
 0x507   :  { %20507 = vst [vmem:[#allocation21_spill] sm:$0xff] %v18105_v58 }
 0x508   :  { %v18058_v63 = vadd.f32 %v3625_v53, %v3623_v62  ;;  %v18109_v53 = vld [vmem:[#allocation9 + $0x180] ss:$16 sps:$4 sm:$0xff]   ;;  %v18115_v62 = vld [vmem:[#allocation9 + $0x1a4] ss:$16 sps:$4 sm:$0xff]  }
 0x509   :  { %20508 = vst [vmem:[#allocation22_spill] sm:$0xff] %v18109_v53  ;;  %20510 = vst [vmem:[#allocation24_spill] sm:$0xff] %v18115_v62 }
 0x50a   :  { %16753 = vtanh.f32 %v18058_v63 }
 0x50c   :  { %v16750_v45 = vpop.eup %16749 }
 0x50d   :  { %v3630_v16 = vmul.f32 %v16750_v45, %v16748_v40  ;;  %v16752_v47 = vpop.eup %16751  ;;  %v18117_v40 = vld [vmem:[#allocation9 + $0x1ac] ss:$16 sps:$4 sm:$0xff]   ;;  %v18121_v45 = vld [vmem:[#allocation9 + $0x1a0] ss:$16 sps:$4 sm:$0xff]  }
 0x50e   :  { %20511 = vst [vmem:[#allocation25_spill] sm:$0xff] %v18117_v40  ;;  %20512 = vst [vmem:[#allocation26_spill] sm:$0xff] %v18121_v45 }
 0x50f   :  { %3633 = vst [vmem:[#allocation10 + $0x30] sm:$0xff] %v3630_v16  ;;  %v3656_v6 = vpack.c.bf16 %v3630_v16, %v3630_v16  ;;  %v18123_v16 = vld [vmem:[#allocation9 + $0x1a8] ss:$16 sps:$4 sm:$0xff]  }
 0x510   :  { %20513 = vst [vmem:[#allocation27_spill] sm:$0xff] %v18123_v16 }
 0x511   :  { %3915 = vmatmul.mubr.bf16.vlgmr.msra.gmra.mrb[64].mxu0 %v3656_v6  ;;  %3956 = vmatmul.mubr.bf16.vlgmr.msra.gmra.mrb[64].mxu1 %v3656_v6  ;;  %v18127_v6 = vld [vmem:[#allocation9 + $0x1c4] ss:$16 sps:$4 sm:$0xff]  }
 0x512   :  { %4125 = vmatpush1.bf16.msra.mxu0 %v18061_v36  ;;  %4166 = vmatpush1.bf16.msra.mxu1 %v18063_v38  ;;  %20514 = vst [vmem:[#allocation28_spill] sm:$0xff] %v18127_v6 }
 0x513   :  { %4126 = vmatprep.subr.bf16.mxu0 %v18065_v46  ;;  %4167 = vmatprep.subr.bf16.mxu1 %v18067_v32 }
 0x514   :  { %v16754_v59 = vpop.eup %16753  ;;  %4156 = vmatprep.mubr.bf16.mxu0 %v20445_v15  ;;  %4197 = vmatprep.mubr.bf16.mxu1 %v20445_v15 }
 0x515   :  { %v3631_v18 = vmul.f32 %v16754_v59, %v16752_v47  ;;  %v18129_v47 = vld [vmem:[#allocation9 + $0x1cc] ss:$16 sps:$4 sm:$0xff]   ;;  %v18133_v59 = vld [vmem:[#allocation9 + $0x1c0] ss:$16 sps:$4 sm:$0xff]  }
 0x516   :  { %4127 = vmatpush1.bf16.msra.mxu0 %v18071_v7  ;;  %4168 = vmatpush1.bf16.msra.mxu1 %v18073_v11  ;;  %20515 = vst [vmem:[#allocation29_spill] sm:$0xff] %v18129_v47  ;;  %20516 = vst [vmem:[#allocation30_spill] sm:$0xff] %v18133_v59 }
 0x517   :  { %4128 = vmatprep.subr.bf16.mxu0 %v18077_v60  ;;  %4169 = vmatprep.subr.bf16.mxu1 %v18079_v48  ;;  %3634 = vst [vmem:[#allocation10 + $0x38] sm:$0xff] %v3631_v18 }
 0x51a   :  { %4129 = vmatpush1.bf16.msra.mxu0 %v18085_v10  ;;  %4170 = vmatpush1.bf16.msra.mxu1 %v18087_v13 }
 0x51b   :  { %4130 = vmatprep.subr.bf16.mxu0 %v18091_v19  ;;  %4171 = vmatprep.subr.bf16.mxu1 %v18093_v33 }
 0x51e   :  { %4131 = vmatpush1.bf16.msra.mxu0 %v18097_v17  ;;  %4172 = vmatpush1.bf16.msra.mxu1 %v18099_v0 }
 0x51f   :  { %4132 = vmatprep.subr.bf16.mxu0 %v18103_v57  ;;  %4173 = vmatprep.subr.bf16.mxu1 %v18105_v58  ;;  %v3636_v58 = vld [vmem:[#allocation4 + $0x40] sm:$0xff] }
 0x522   :  { %4133 = vmatpush1.bf16.msra.mxu0 %v18109_v53  ;;  %4174 = vmatpush1.bf16.msra.mxu1 %v18111_v39  ;;  %v18135_v53 = vld [vmem:[#allocation9 + $0x1c8] ss:$16 sps:$4 sm:$0xff]   ;;  %v18139_v39 = vld [vmem:[#allocation9 + $0x1e4] ss:$16 sps:$4 sm:$0xff]  }
 0x523   :  { %4134 = vmatprep.subr.bf16.mxu0 %v18115_v62  ;;  %4175 = vmatprep.subr.bf16.mxu1 %v18117_v40  ;;  %20517 = vst [vmem:[#allocation31_spill] sm:$0xff] %v18135_v53  ;;  %20518 = vst [vmem:[#allocation32_spill] sm:$0xff] %v18139_v39  ;;  %v18141_v62 = vld [vmem:[#allocation9 + $0x1ec] ss:$16 sps:$4 sm:$0xff]   ;;  %v18145_v40 = vld [vmem:[#allocation9 + $0x1e0] ss:$16 sps:$4 sm:$0xff]  }
 0x524   :  { %20519 = vst [vmem:[#allocation33_spill] sm:$0xff] %v18141_v62  ;;  %20520 = vst [vmem:[#allocation34_spill] sm:$0xff] %v18145_v40 }
 0x526   :  { %4135 = vmatpush1.bf16.msra.mxu0 %v18121_v45  ;;  %4176 = vmatpush1.bf16.msra.mxu1 %v18123_v16  ;;  %v18147_v45 = vld [vmem:[#allocation9 + $0x1e8] ss:$16 sps:$4 sm:$0xff]   ;;  %v18151_v16 = vld [vmem:[#allocation7 + $0x4] ss:$16 sps:$4 sm:$0xff]  }
 0x527   :  { %4136 = vmatprep.subr.bf16.mxu0 %v18127_v6  ;;  %4177 = vmatprep.subr.bf16.mxu1 %v18129_v47  ;;  %20521 = vst [vmem:[#allocation35_spill] sm:$0xff] %v18147_v45  ;;  %v18153_v6 = vld [vmem:[#allocation7 + $0xc] ss:$16 sps:$4 sm:$0xff]   ;;  %v18157_v47 = vld [vmem:[#allocation7] ss:$16 sps:$4 sm:$0xff]  }
 0x528   :  { %20522 = vst [vmem:[#allocation36_spill] sm:$0xff] %v18153_v6  ;;  %20523 = vst [vmem:[#allocation37_spill] sm:$0xff] %v18157_v47 }
 0x52a   :  { %4137 = vmatpush1.bf16.msra.mxu0 %v18133_v59  ;;  %4178 = vmatpush1.bf16.msra.mxu1 %v18135_v53  ;;  %v18159_v59 = vld [vmem:[#allocation7 + $0x8] ss:$16 sps:$4 sm:$0xff]   ;;  %v3657_v53 = vpack.c.bf16 %v3631_v18, %v3631_v18  ;;  %v18175_v18 = vld [vmem:[#allocation7 + $0x44] ss:$16 sps:$4 sm:$0xff]  }
 0x52b   :  { %4138 = vmatprep.subr.bf16.mxu0 %v18139_v39  ;;  %4179 = vmatprep.subr.bf16.mxu1 %v18141_v62  ;;  %20524 = vst [vmem:[#allocation38_spill] sm:$0xff] %v18159_v59  ;;  %v18163_v39 = vld [vmem:[#allocation7 + $0x24] ss:$16 sps:$4 sm:$0xff]   ;;  %v18165_v62 = vld [vmem:[#allocation7 + $0x2c] ss:$16 sps:$4 sm:$0xff]  }
 0x52c   :  { %20525 = vst [vmem:[#allocation39_spill] sm:$0xff] %v18163_v39  ;;  %20526 = vst [vmem:[#allocation40_spill] sm:$0xff] %v18165_v62 }
 0x52e   :  { %4139 = vmatpush1.bf16.msra.mxu0 %v18145_v40  ;;  %4180 = vmatpush1.bf16.msra.mxu1 %v18147_v45  ;;  %v18169_v45 = vld [vmem:[#allocation7 + $0x20] ss:$16 sps:$4 sm:$0xff]   ;;  %v18171_v40 = vld [vmem:[#allocation7 + $0x28] ss:$16 sps:$4 sm:$0xff]  }
 0x52f   :  { %4249 = vmatprep.subr.bf16.mxu0 %v18151_v16  ;;  %4290 = vmatprep.subr.bf16.mxu1 %v18153_v6  ;;  %20527 = vst [vmem:[#allocation41_spill] sm:$0xff] %v18169_v45  ;;  %20528 = vst [vmem:[#allocation42_spill] sm:$0xff] %v18171_v40  ;;  %v18177_v6 = vld [vmem:[#allocation7 + $0x4c] ss:$16 sps:$4 sm:$0xff]  }
 0x530   :  { %20529 = vst [vmem:[#allocation43_spill] sm:$0xff] %v18177_v6 }
 0x531   :  { %4157 = vmatmul.mubr.bf16.vlgmr.msra.gmra.mrb[68].mxu0 %v3657_v53  ;;  %4198 = vmatmul.mubr.bf16.vlgmr.msra.gmra.mrb[68].mxu1 %v3657_v53  ;;  %v3638_v53 = vpack.c.bf16 %v3636_v58, %v3636_v58  ;;  %v18197_v58 = vld [vmem:[#allocation7 + $0x60] ss:$16 sps:$4 sm:$0xff]  }
 0x532   :  { %4250 = vmatpush1.bf16.msra.mxu0 %v18157_v47  ;;  %4291 = vmatpush1.bf16.msra.mxu1 %v18159_v59  ;;  %v18183_v59 = vld [vmem:[#allocation7 + $0x40] ss:$16 sps:$4 sm:$0xff]   ;;  %v18185_v47 = vld [vmem:[#allocation7 + $0x48] ss:$16 sps:$4 sm:$0xff]  }
 0x533   :  { %4251 = vmatprep.subr.bf16.mxu0 %v18163_v39  ;;  %4292 = vmatprep.subr.bf16.mxu1 %v18165_v62  ;;  %v18189_v62 = vld [vmem:[#allocation7 + $0x64] ss:$16 sps:$4 sm:$0xff]   ;;  %v18191_v39 = vld [vmem:[#allocation7 + $0x6c] ss:$16 sps:$4 sm:$0xff]  }
 0x534   :  { %4281 = vmatprep.mubr.bf16.mxu0 %v20445_v15  ;;  %4322 = vmatprep.mubr.bf16.mxu1 %v20445_v15 }
 0x536   :  { %4252 = vmatpush1.bf16.msra.mxu0 %v18169_v45  ;;  %4293 = vmatpush1.bf16.msra.mxu1 %v18171_v40  ;;  %v18199_v40 = vld [vmem:[#allocation7 + $0x68] ss:$16 sps:$4 sm:$0xff]  }
 0x537   :  { %4374 = vmatprep.subr.bf16.mxu0 %v18175_v18  ;;  %4415 = vmatprep.subr.bf16.mxu1 %v18177_v6  ;;  %v3637_v45 = vld [vmem:[#allocation4 + $0x48] sm:$0xff] }
 0x538   :  { %v3639_v6 = vpack.c.bf16 %v3637_v45, %v3637_v45 }
 0x539   :  { %14649 = vmatmul.mubr.msk.bf16.vlgmr.msra.gmra.mrb[72].mxu0 %vm726_vm0, %v3638_v53  ;;  %14650 = vmatmul.mubr.msk.bf16.vlgmr.msra.gmra.mrb[72].mxu1 %vm726_vm0, %v3638_v53 }
 0x53a   :  { %4375 = vmatpush1.bf16.msra.mxu0 %v18183_v59  ;;  %4416 = vmatpush1.bf16.msra.mxu1 %v18185_v47 }
 0x53b   :  { %4376 = vmatprep.subr.bf16.mxu0 %v18189_v62  ;;  %4417 = vmatprep.subr.bf16.mxu1 %v18191_v39 }
 0x53c   :  { %4406 = vmatprep.mubr.bf16.mxu0 %v20445_v15  ;;  %4447 = vmatprep.mubr.bf16.mxu1 %v20445_v15 }
 0x53e   :  { %4377 = vmatpush1.bf16.msra.mxu0 %v18197_v58  ;;  %4418 = vmatpush1.bf16.msra.mxu1 %v18199_v40 }
 0x53f   :  { %4762 = vmatprep.subr.bf16.mxu0 %v17943_v23  ;;  %4803 = vmatprep.subr.bf16.mxu1 %v17945_v27  ;;  %v20530_v23 = vld [vmem:[#allocation14_spill] sm:$0xff]  ;;  %v20531_v27 = vld [vmem:[#allocation15_spill] sm:$0xff] }
 0x541   :  { %14659 = vmatmul.mubr.msk.bf16.vlgmr.msra.gmra.mrb[76].mxu0 %vm726_vm0, %v3639_v6  ;;  %14660 = vmatmul.mubr.msk.bf16.vlgmr.msra.gmra.mrb[76].mxu1 %vm726_vm0, %v3639_v6 }
 0x542   :  { %4763 = vmatpush1.bf16.msra.mxu0 %v17947_v31  ;;  %4804 = vmatpush1.bf16.msra.mxu1 %v17949_v14  ;;  %v20532_v31 = vld [vmem:[#allocation16_spill] sm:$0xff]  ;;  %v20533_v14 = vld [vmem:[#allocation17_spill] sm:$0xff] }
 0x543   :  { %4764 = vmatprep.subr.bf16.mxu0 %v17955_v24  ;;  %4805 = vmatprep.subr.bf16.mxu1 %v17957_v21  ;;  %v20534_v24 = vld [vmem:[#allocation18_spill] sm:$0xff]  ;;  %v20535_v21 = vld [vmem:[#allocation19_spill] sm:$0xff] }
 0x544   :  { %4794 = vmatprep.mubr.bf16.mxu0 %v20445_v15  ;;  %4835 = vmatprep.mubr.bf16.mxu1 %v20445_v15 }
 0x546   :  { %4765 = vmatpush1.bf16.msra.mxu0 %v17959_v42  ;;  %4806 = vmatpush1.bf16.msra.mxu1 %v17961_v49  ;;  %v20536_v42 = vld [vmem:[#allocation20_spill] sm:$0xff] }
 0x547   :  { %4766 = vmatprep.subr.bf16.mxu0 %v17967_v54  ;;  %4807 = vmatprep.subr.bf16.mxu1 %v17969_v44 }
 0x54a   :  { %4767 = vmatpush1.bf16.msra.mxu0 %v17971_v43  ;;  %4808 = vmatpush1.bf16.msra.mxu1 %v17973_v55 }
 0x54b   :  { %4768 = vmatprep.subr.bf16.mxu0 %v17979_v56  ;;  %4809 = vmatprep.subr.bf16.mxu1 %v17981_v1 }
 0x54e   :  { %4769 = vmatpush1.bf16.msra.mxu0 %v17983_v3  ;;  %4810 = vmatpush1.bf16.msra.mxu1 %v17985_v4 }
 0x54f   :  { %4770 = vmatprep.subr.bf16.mxu0 %v17991_v5  ;;  %4811 = vmatprep.subr.bf16.mxu1 %v17993_v8 }
 0x552   :  { %4771 = vmatpush1.bf16.msra.mxu0 %v17995_v20  ;;  %4812 = vmatpush1.bf16.msra.mxu1 %v17997_v12 }
 0x553   :  { %4772 = vmatprep.subr.bf16.mxu0 %v18003_v26  ;;  %4813 = vmatprep.subr.bf16.mxu1 %v18005_v50 }
 0x556   :  { %4773 = vmatpush1.bf16.msra.mxu0 %v18007_v28  ;;  %4814 = vmatpush1.bf16.msra.mxu1 %v18009_v52 }
 0x557   :  { %4774 = vmatprep.subr.bf16.mxu0 %v18015_v29  ;;  %4815 = vmatprep.subr.bf16.mxu1 %v18017_v30 }
 0x55a   :  { %4775 = vmatpush1.bf16.msra.mxu0 %v18019_v34  ;;  %4816 = vmatpush1.bf16.msra.mxu1 %v20530_v23 }
 0x55b   :  { %4776 = vmatprep.subr.bf16.mxu0 %v20531_v27  ;;  %4817 = vmatprep.subr.bf16.mxu1 %v20532_v31 }
 0x55e   :  { %4777 = vmatpush1.bf16.msra.mxu0 %v20533_v14  ;;  %4818 = vmatpush1.bf16.msra.mxu1 %v20534_v24 }
 0x55f   :  { %5004 = vmatprep.subr.bf16.mxu0 %v20535_v21  ;;  %5045 = vmatprep.subr.bf16.mxu1 %v20536_v42 }
 0x5e4   :  { %v3916_v49 = vpop.f32.mrb[64].mxu0  ;;  %v3957_v54 = vpop.f32.mrb[64].mxu1 }
 0x5e5   :  { %v3918_v44 = vpop.f32.mrb[65].mxu0  ;;  %v3959_v43 = vpop.f32.mrb[65].mxu1 }
 0x5e6   :  { %v3920_v55 = vpop.f32.mrb[66].mxu0  ;;  %v3961_v56 = vpop.f32.mrb[66].mxu1 }
 0x5e7   :  { %v3921_v1 = vpop.f32.mrb[67].mxu0  ;;  %v3962_v3 = vpop.f32.mrb[67].mxu1 }
 0x604   :  { %v4158_v4 = vpop.f32.mrb[68].mxu0  ;;  %v4199_v5 = vpop.f32.mrb[68].mxu1 }
 0x605   :  { %v4160_v8 = vpop.f32.mrb[69].mxu0  ;;  %v4201_v20 = vpop.f32.mrb[69].mxu1 }
 0x606   :  { %v4162_v12 = vpop.f32.mrb[70].mxu0  ;;  %v4203_v26 = vpop.f32.mrb[70].mxu1 }
 0x607   :  { %v4163_v50 = vpop.f32.mrb[71].mxu0  ;;  %v4204_v28 = vpop.f32.mrb[71].mxu1 }
 0x60c   :  { %v4283_v52 = vpop.f32.mrb[72].mxu0  ;;  %v4324_v29 = vpop.f32.mrb[72].mxu1 }
 0x60d   :  { %v4284_v30 = vadd.f32 %v4283_v52, %v3916_v49  ;;  %v4325_v34 = vadd.f32 %v4324_v29, %v3957_v54  ;;  %v4285_v45 = vpop.f32.mrb[73].mxu0  ;;  %v4326_v6 = vpop.f32.mrb[73].mxu1 }
 0x60e   :  { %v4286_v53 = vadd.f32 %v4285_v45, %v3918_v44  ;;  %v4327_v23 = vadd.f32 %v4326_v6, %v3959_v43  ;;  %v4287_v27 = vpop.f32.mrb[74].mxu0  ;;  %v4328_v31 = vpop.f32.mrb[74].mxu1 }
 0x60f   :  { %v4456_v14 = vadd.f32 %v4284_v30, %v17520_v22  ;;  %v4288_v24 = vpop.f32.mrb[75].mxu0  ;;  %v4329_v21 = vpop.f32.mrb[75].mxu1 }
 0x610   :  { %v4457_v42 = vadd.f32 %v4286_v53, %v17522_v25  ;;  %v4459_v44 = vadd.f32 %v4327_v23, %v17530_v35 }
 0x611   :  { %v14661_v55 = vmul.f32 -1.442695, %v4456_v14 }
 0x612   :  { %v14663_v56 = vmul.f32 -1.442695, %v4457_v42  ;;  %v14665_v27 = vmul.f32 -1.442695, %v4459_v44 }
 0x613   :  { %16755 = vpow2.f32 %v14661_v55 }
 0x614   :  { %16757 = vpow2.f32 %v14663_v56  ;;  %v4408_v1 = vpop.f32.mrb[76].mxu0  ;;  %v4449_v3 = vpop.f32.mrb[76].mxu1 }
 0x615   :  { %v4409_v49 = vadd.f32 %v4408_v1, %v4158_v4  ;;  %v4450_v54 = vadd.f32 %v4449_v3, %v4199_v5  ;;  %v4410_v12 = vpop.f32.mrb[77].mxu0  ;;  %v4451_v26 = vpop.f32.mrb[77].mxu1  ;;  %v4458_v4 = vadd.f32 %v4325_v34, %v17538_v51 }
 0x616   :  { %v4411_v43 = vadd.f32 %v4410_v12, %v4160_v8  ;;  %v4452_v50 = vadd.f32 %v4451_v26, %v4201_v20  ;;  %v4412_v28 = vpop.f32.mrb[78].mxu0  ;;  %v4453_v52 = vpop.f32.mrb[78].mxu1 }
 0x617   :  { %v4460_v29 = vadd.f32 %v4409_v49, %v17533_v37  ;;  %v4413_v30 = vpop.f32.mrb[79].mxu0  ;;  %v4454_v45 = vpop.f32.mrb[79].mxu1  ;;  %v4462_v21 = vadd.f32 %v4450_v54, %v17546_v9 }
 0x618   :  { %v4461_v6 = vadd.f32 %v4411_v43, %v17535_v41  ;;  %v4463_v8 = vadd.f32 %v4452_v50, %v17542_v2 }
 0x619   :  { %v14662_v53 = vmul.f32 -1.442695, %v4460_v29 }
 0x61a   :  { %v14664_v31 = vmul.f32 -1.442695, %v4461_v6  ;;  %v14666_v24 = vmul.f32 -1.442695, %v4463_v8  ;;  %v20552_v8 = vld [vmem:[#allocation36_spill] sm:$0xff] }
 0x61b   :  { %16759 = vpow2.f32 %v14662_v53 }
 0x61c   :  { %16761 = vpow2.f32 %v14664_v31 }
 0x61d   :  { %v16756_v5 = vpop.eup %16755  ;;  %16763 = vpow2.f32 %v14665_v27 }
 0x61e   :  { %v16758_v14 = vpop.eup %16757  ;;  %v4470_v23 = vadd.f32 1.0, %v16756_v5  ;;  %16765 = vtanh.f32 %v4458_v4 }
 0x61f   :  { %v4482_v20 = vadd.f32 1.0, %v16758_v14 }
 0x620   :  { %16767 = vrcp.f32 %v4470_v23 }
 0x621   :  { %16769 = vrcp.f32 %v4482_v20  ;;  %v20553_v20 = vld [vmem:[#allocation37_spill] sm:$0xff] }
 0x622   :  { %16771 = vpow2.f32 %v14666_v24  ;;  %v20554_v24 = vld [vmem:[#allocation38_spill] sm:$0xff] }
 0x623   :  { %16773 = vtanh.f32 %v4462_v21  ;;  %v4516_v21 = vld [vmem:[#allocation4 + $0x50] sm:$0xff] }
 0x625   :  { %v16760_v42 = vpop.eup %16759 }
 0x626   :  { %v16762_v55 = vpop.eup %16761  ;;  %v4471_v56 = vadd.f32 1.0, %v16760_v42  ;;  %v20555_v42 = vld [vmem:[#allocation39_spill] sm:$0xff] }
 0x627   :  { %v4483_v34 = vadd.f32 1.0, %v16762_v55  ;;  %v16764_v1 = vpop.eup %16763  ;;  %v20556_v55 = vld [vmem:[#allocation40_spill] sm:$0xff] }
 0x628   :  { %16775 = vrcp.f32 %v4471_v56  ;;  %v16766_v3 = vpop.eup %16765  ;;  %v4496_v44 = vadd.f32 1.0, %v16764_v1  ;;  %v4518_v56 = vpack.c.bf16 %v4516_v21, %v4516_v21  ;;  %v20559_v1 = vld [vmem:[#allocation43_spill] sm:$0xff] }
 0x629   :  { %16777 = vrcp.f32 %v4483_v34  ;;  %v20557_v34 = vld [vmem:[#allocation41_spill] sm:$0xff] }
 0x62a   :  { %v16768_v49 = vpop.eup %16767  ;;  %16779 = vrcp.f32 %v4496_v44  ;;  %v18345_v44 = vld [vmem:[#allocation9 + $0x4c] ss:$16 sps:$4 sm:$0xff]  }
 0x62b   :  { %v16770_v12 = vpop.eup %16769  ;;  %v4504_v26 = vmul.f32 %v16768_v49, %v16766_v3  ;;  %v4517_v3 = vld [vmem:[#allocation4 + $0x58] sm:$0xff]  ;;  %v18335_v49 = vld [vmem:[#allocation9 + $0x20] ss:$16 sps:$4 sm:$0xff]  }
 0x62c   :  { %v4502_v43 = vmul.f32 %v16770_v12, %v18054_v61  ;;  %v16772_v54 = vpop.eup %16771  ;;  %v18337_v12 = vld [vmem:[#allocation9 + $0x28] ss:$16 sps:$4 sm:$0xff]  }
 0x62d   :  { %v16774_v28 = vpop.eup %16773  ;;  %v4497_v45 = vadd.f32 1.0, %v16772_v54  ;;  %v18349_v54 = vld [vmem:[#allocation9 + $0x48] ss:$16 sps:$4 sm:$0xff]  }
 0x62e   :  { %v18254_v50 = vadd.f32 %v4504_v26, %v4502_v43  ;;  %v18343_v26 = vld [vmem:[#allocation9 + $0x44] ss:$16 sps:$4 sm:$0xff]   ;;  %v18347_v43 = vld [vmem:[#allocation9 + $0x40] ss:$16 sps:$4 sm:$0xff]  }
 0x630   :  { %16781 = vtanh.f32 %v18254_v50 }
 0x631   :  { %16783 = vrcp.f32 %v4497_v45  ;;  %v18367_v45 = vld [vmem:[#allocation9 + $0x84] ss:$16 sps:$4 sm:$0xff]  }
 0x632   :  { %v16776_v52 = vpop.eup %16775 }
 0x633   :  { %v16778_v29 = vpop.eup %16777  ;;  %v4505_v30 = vmul.f32 %v16776_v52, %v16774_v28  ;;  %v18355_v28 = vld [vmem:[#allocation9 + $0x64] ss:$16 sps:$4 sm:$0xff]   ;;  %v18357_v52 = vld [vmem:[#allocation9 + $0x6c] ss:$16 sps:$4 sm:$0xff]  }
 0x634   :  { %v4503_v6 = vmul.f32 %v16778_v29, %v18058_v63  ;;  %v16780_v27 = vpop.eup %16779  ;;  %v18359_v29 = vld [vmem:[#allocation9 + $0x60] ss:$16 sps:$4 sm:$0xff]  }
 0x636   :  { %v18258_v53 = vadd.f32 %v4505_v30, %v4503_v6  ;;  %v18361_v30 = vld [vmem:[#allocation9 + $0x68] ss:$16 sps:$4 sm:$0xff]   ;;  %v18369_v6 = vld [vmem:[#allocation9 + $0x8c] ss:$16 sps:$4 sm:$0xff]  }
 0x638   :  { %16785 = vtanh.f32 %v18258_v53 }
 0x63a   :  { %v16782_v61 = vpop.eup %16781 }
 0x63b   :  { %v4510_v31 = vmul.f32 %v16782_v61, %v16780_v27  ;;  %v16784_v5 = vpop.eup %16783  ;;  %v18371_v27 = vld [vmem:[#allocation9 + $0x80] ss:$16 sps:$4 sm:$0xff]   ;;  %v18373_v61 = vld [vmem:[#allocation9 + $0x88] ss:$16 sps:$4 sm:$0xff]  }
 0x63d   :  { %4513 = vst [vmem:[#allocation10 + $0x40] sm:$0xff] %v4510_v31  ;;  %v4536_v4 = vpack.c.bf16 %v4510_v31, %v4510_v31  ;;  %v18379_v31 = vld [vmem:[#allocation9 + $0xa4] ss:$16 sps:$4 sm:$0xff]  }
 0x63f   :  { %4795 = vmatmul.mubr.bf16.vlgmr.msra.gmra.mrb[80].mxu0 %v4536_v4  ;;  %4836 = vmatmul.mubr.bf16.vlgmr.msra.gmra.mrb[80].mxu1 %v4536_v4  ;;  %v18381_v4 = vld [vmem:[#allocation9 + $0xac] ss:$16 sps:$4 sm:$0xff]  }
 0x640   :  { %5005 = vmatpush1.bf16.msra.mxu0 %v18061_v36  ;;  %5046 = vmatpush1.bf16.msra.mxu1 %v18063_v38  ;;  %v20537_v36 = vld [vmem:[#allocation21_spill] sm:$0xff]  ;;  %v20538_v38 = vld [vmem:[#allocation22_spill] sm:$0xff] }
 0x641   :  { %5006 = vmatprep.subr.bf16.mxu0 %v18065_v46  ;;  %5047 = vmatprep.subr.bf16.mxu1 %v18067_v32  ;;  %v20539_v46 = vld [vmem:[#allocation23_spill] sm:$0xff]  ;;  %v20540_v32 = vld [vmem:[#allocation24_spill] sm:$0xff] }
 0x642   :  { %v16786_v63 = vpop.eup %16785  ;;  %5036 = vmatprep.mubr.bf16.mxu0 %v20445_v15  ;;  %5077 = vmatprep.mubr.bf16.mxu1 %v20445_v15 }
 0x643   :  { %v4511_v14 = vmul.f32 %v16786_v63, %v16784_v5  ;;  %v18383_v5 = vld [vmem:[#allocation9 + $0xa0] ss:$16 sps:$4 sm:$0xff]   ;;  %v18385_v63 = vld [vmem:[#allocation9 + $0xa8] ss:$16 sps:$4 sm:$0xff]  }
 0x644   :  { %5007 = vmatpush1.bf16.msra.mxu0 %v18071_v7  ;;  %5048 = vmatpush1.bf16.msra.mxu1 %v18073_v11  ;;  %v20541_v7 = vld [vmem:[#allocation25_spill] sm:$0xff]  ;;  %v20542_v11 = vld [vmem:[#allocation26_spill] sm:$0xff] }
 0x645   :  { %5008 = vmatprep.subr.bf16.mxu0 %v18077_v60  ;;  %5049 = vmatprep.subr.bf16.mxu1 %v18079_v48  ;;  %4514 = vst [vmem:[#allocation10 + $0x48] sm:$0xff] %v4511_v14  ;;  %v20543_v60 = vld [vmem:[#allocation27_spill] sm:$0xff]  ;;  %v20544_v48 = vld [vmem:[#allocation28_spill] sm:$0xff]  ;;  %v4537_v23 = vpack.c.bf16 %v4511_v14, %v4511_v14 }
 0x646   :  { %v18391_v14 = vld [vmem:[#allocation9 + $0xc4] ss:$16 sps:$4 sm:$0xff]  }
 0x648   :  { %5009 = vmatpush1.bf16.msra.mxu0 %v18085_v10  ;;  %5050 = vmatpush1.bf16.msra.mxu1 %v18087_v13  ;;  %v20545_v10 = vld [vmem:[#allocation29_spill] sm:$0xff]  ;;  %v20546_v13 = vld [vmem:[#allocation30_spill] sm:$0xff] }
 0x649   :  { %5010 = vmatprep.subr.bf16.mxu0 %v18091_v19  ;;  %5051 = vmatprep.subr.bf16.mxu1 %v18093_v33  ;;  %v20547_v19 = vld [vmem:[#allocation31_spill] sm:$0xff]  ;;  %v20548_v33 = vld [vmem:[#allocation32_spill] sm:$0xff] }
 0x64c   :  { %5011 = vmatpush1.bf16.msra.mxu0 %v18097_v17  ;;  %5052 = vmatpush1.bf16.msra.mxu1 %v18099_v0  ;;  %v20549_v17 = vld [vmem:[#allocation33_spill] sm:$0xff]  ;;  %v20550_v0 = vld [vmem:[#allocation34_spill] sm:$0xff] }
 0x64d   :  { %5012 = vmatprep.subr.bf16.mxu0 %v18103_v57  ;;  %5053 = vmatprep.subr.bf16.mxu1 %v20537_v36  ;;  %v20551_v57 = vld [vmem:[#allocation35_spill] sm:$0xff] }
 0x64e   :  { %v18393_v36 = vld [vmem:[#allocation9 + $0xcc] ss:$16 sps:$4 sm:$0xff]  }
 0x650   :  { %5013 = vmatpush1.bf16.msra.mxu0 %v20538_v38  ;;  %5054 = vmatpush1.bf16.msra.mxu1 %v20539_v46  ;;  %v18395_v38 = vld [vmem:[#allocation9 + $0xc0] ss:$16 sps:$4 sm:$0xff]   ;;  %v18397_v46 = vld [vmem:[#allocation9 + $0xc8] ss:$16 sps:$4 sm:$0xff]  }
 0x651   :  { %5014 = vmatprep.subr.bf16.mxu0 %v20540_v32  ;;  %5055 = vmatprep.subr.bf16.mxu1 %v20541_v7  ;;  %20560 = vst [vmem:[#allocation14_spill] sm:$0xff] %v18397_v46  ;;  %v18401_v32 = vld [vmem:[#allocation9 + $0xe4] ss:$16 sps:$4 sm:$0xff]   ;;  %v18403_v7 = vld [vmem:[#allocation9 + $0xec] ss:$16 sps:$4 sm:$0xff]  }
 0x652   :  { %20561 = vst [vmem:[#allocation15_spill] sm:$0xff] %v18401_v32  ;;  %20562 = vst [vmem:[#allocation16_spill] sm:$0xff] %v18403_v7 }
 0x654   :  { %5015 = vmatpush1.bf16.msra.mxu0 %v20542_v11  ;;  %5056 = vmatpush1.bf16.msra.mxu1 %v20543_v60  ;;  %v18407_v11 = vld [vmem:[#allocation9 + $0xe0] ss:$16 sps:$4 sm:$0xff]   ;;  %v18409_v60 = vld [vmem:[#allocation9 + $0xe8] ss:$16 sps:$4 sm:$0xff]  }
 0x655   :  { %5016 = vmatprep.subr.bf16.mxu0 %v20544_v48  ;;  %5057 = vmatprep.subr.bf16.mxu1 %v20545_v10  ;;  %20563 = vst [vmem:[#allocation17_spill] sm:$0xff] %v18407_v11  ;;  %20564 = vst [vmem:[#allocation18_spill] sm:$0xff] %v18409_v60  ;;  %v18413_v48 = vld [vmem:[#allocation9 + $0x104] ss:$16 sps:$4 sm:$0xff]   ;;  %v18415_v10 = vld [vmem:[#allocation9 + $0x10c] ss:$16 sps:$4 sm:$0xff]  }
 0x656   :  { %20565 = vst [vmem:[#allocation19_spill] sm:$0xff] %v18413_v48  ;;  %20566 = vst [vmem:[#allocation20_spill] sm:$0xff] %v18415_v10 }
 0x658   :  { %5017 = vmatpush1.bf16.msra.mxu0 %v20546_v13  ;;  %5058 = vmatpush1.bf16.msra.mxu1 %v20547_v19 }
 0x659   :  { %5018 = vmatprep.subr.bf16.mxu0 %v20548_v33  ;;  %5059 = vmatprep.subr.bf16.mxu1 %v20549_v17 }
 0x65c   :  { %5019 = vmatpush1.bf16.msra.mxu0 %v20550_v0  ;;  %5060 = vmatpush1.bf16.msra.mxu1 %v20551_v57 }
 0x65d   :  { %5129 = vmatprep.subr.bf16.mxu0 %v18151_v16  ;;  %5170 = vmatprep.subr.bf16.mxu1 %v20552_v8  ;;  %v20558_v16 = vld [vmem:[#allocation42_spill] sm:$0xff] }
 0x65f   :  { %5037 = vmatmul.mubr.bf16.vlgmr.msra.gmra.mrb[84].mxu0 %v4537_v23  ;;  %5078 = vmatmul.mubr.bf16.vlgmr.msra.gmra.mrb[84].mxu1 %v4537_v23 }
 0x660   :  { %5130 = vmatpush1.bf16.msra.mxu0 %v20553_v20  ;;  %5171 = vmatpush1.bf16.msra.mxu1 %v20554_v24 }
 0x661   :  { %5131 = vmatprep.subr.bf16.mxu0 %v20555_v42  ;;  %5172 = vmatprep.subr.bf16.mxu1 %v20556_v55 }
 0x662   :  { %5161 = vmatprep.mubr.bf16.mxu0 %v20445_v15  ;;  %5202 = vmatprep.mubr.bf16.mxu1 %v20445_v15 }
 0x664   :  { %5132 = vmatpush1.bf16.msra.mxu0 %v20557_v34  ;;  %5173 = vmatpush1.bf16.msra.mxu1 %v20558_v16 }
 0x665   :  { %5254 = vmatprep.subr.bf16.mxu0 %v18175_v18  ;;  %5295 = vmatprep.subr.bf16.mxu1 %v20559_v1  ;;  %v4519_v18 = vpack.c.bf16 %v4517_v3, %v4517_v3 }
 0x667   :  { %14739 = vmatmul.mubr.msk.bf16.vlgmr.msra.gmra.mrb[88].mxu0 %vm726_vm0, %v4518_v56  ;;  %14740 = vmatmul.mubr.msk.bf16.vlgmr.msra.gmra.mrb[88].mxu1 %vm726_vm0, %v4518_v56 }
 0x668   :  { %5255 = vmatpush1.bf16.msra.mxu0 %v18183_v59  ;;  %5296 = vmatpush1.bf16.msra.mxu1 %v18185_v47  ;;  %v18323_v47 = vld [vmem:[#allocation9] ss:$16 sps:$4 sm:$0xff]   ;;  %v18325_v59 = vld [vmem:[#allocation9 + $0x8] ss:$16 sps:$4 sm:$0xff]  }
 0x669   :  { %5256 = vmatprep.subr.bf16.mxu0 %v18189_v62  ;;  %5297 = vmatprep.subr.bf16.mxu1 %v18191_v39  ;;  %v18319_v62 = vld [vmem:[#allocation9 + $0x4] ss:$16 sps:$4 sm:$0xff]   ;;  %v18321_v39 = vld [vmem:[#allocation9 + $0xc] ss:$16 sps:$4 sm:$0xff]  }
 0x66a   :  { %5286 = vmatprep.mubr.bf16.mxu0 %v20445_v15  ;;  %5327 = vmatprep.mubr.bf16.mxu1 %v20445_v15 }
 0x66c   :  { %5257 = vmatpush1.bf16.msra.mxu0 %v18197_v58  ;;  %5298 = vmatpush1.bf16.msra.mxu1 %v18199_v40  ;;  %v18331_v40 = vld [vmem:[#allocation9 + $0x24] ss:$16 sps:$4 sm:$0xff]   ;;  %v18333_v58 = vld [vmem:[#allocation9 + $0x2c] ss:$16 sps:$4 sm:$0xff]  }
 0x66d   :  { %5642 = vmatprep.subr.bf16.mxu0 %v18319_v62  ;;  %5683 = vmatprep.subr.bf16.mxu1 %v18321_v39 }
 0x66f   :  { %14749 = vmatmul.mubr.msk.bf16.vlgmr.msra.gmra.mrb[92].mxu0 %vm726_vm0, %v4519_v18  ;;  %14750 = vmatmul.mubr.msk.bf16.vlgmr.msra.gmra.mrb[92].mxu1 %vm726_vm0, %v4519_v18 }
 0x670   :  { %5674 = vmatprep.mubr.bf16.mxu0 %v20445_v15  ;;  %5715 = vmatprep.mubr.bf16.mxu1 %v20445_v15 }
 0x671   :  { %5643 = vmatpush1.bf16.msra.mxu0 %v18323_v47  ;;  %5684 = vmatpush1.bf16.msra.mxu1 %v18325_v59 }
 0x672   :  { %5644 = vmatprep.subr.bf16.mxu0 %v18331_v40  ;;  %5685 = vmatprep.subr.bf16.mxu1 %v18333_v58 }
 0x675   :  { %5645 = vmatpush1.bf16.msra.mxu0 %v18335_v49  ;;  %5686 = vmatpush1.bf16.msra.mxu1 %v18337_v12 }
 0x676   :  { %5646 = vmatprep.subr.bf16.mxu0 %v18343_v26  ;;  %5687 = vmatprep.subr.bf16.mxu1 %v18345_v44 }
 0x679   :  { %5647 = vmatpush1.bf16.msra.mxu0 %v18347_v43  ;;  %5688 = vmatpush1.bf16.msra.mxu1 %v18349_v54 }
 0x67a   :  { %5648 = vmatprep.subr.bf16.mxu0 %v18355_v28  ;;  %5689 = vmatprep.subr.bf16.mxu1 %v18357_v52 }
 0x67d   :  { %5649 = vmatpush1.bf16.msra.mxu0 %v18359_v29  ;;  %5690 = vmatpush1.bf16.msra.mxu1 %v18361_v30 }
 0x67e   :  { %5650 = vmatprep.subr.bf16.mxu0 %v18367_v45  ;;  %5691 = vmatprep.subr.bf16.mxu1 %v18369_v6 }
 0x681   :  { %5651 = vmatpush1.bf16.msra.mxu0 %v18371_v27  ;;  %5692 = vmatpush1.bf16.msra.mxu1 %v18373_v61 }
 0x682   :  { %5652 = vmatprep.subr.bf16.mxu0 %v18379_v31  ;;  %5693 = vmatprep.subr.bf16.mxu1 %v18381_v4 }
 0x685   :  { %5653 = vmatpush1.bf16.msra.mxu0 %v18383_v5  ;;  %5694 = vmatpush1.bf16.msra.mxu1 %v18385_v63 }
 0x686   :  { %5654 = vmatprep.subr.bf16.mxu0 %v18391_v14  ;;  %5695 = vmatprep.subr.bf16.mxu1 %v18393_v36 }
 0x689   :  { %5655 = vmatpush1.bf16.msra.mxu0 %v18395_v38  ;;  %5696 = vmatpush1.bf16.msra.mxu1 %v18397_v46 }
 0x68a   :  { %5656 = vmatprep.subr.bf16.mxu0 %v18401_v32  ;;  %5697 = vmatprep.subr.bf16.mxu1 %v18403_v7 }
 0x68d   :  { %5657 = vmatpush1.bf16.msra.mxu0 %v18407_v11  ;;  %5698 = vmatpush1.bf16.msra.mxu1 %v18409_v60 }
 0x68e   :  { %5884 = vmatprep.subr.bf16.mxu0 %v18413_v48  ;;  %5925 = vmatprep.subr.bf16.mxu1 %v18415_v10 }
 0x712   :  { %v4796_v13 = vpop.f32.mrb[80].mxu0  ;;  %v4837_v19 = vpop.f32.mrb[80].mxu1 }
 0x713   :  { %v4798_v33 = vpop.f32.mrb[81].mxu0  ;;  %v4839_v17 = vpop.f32.mrb[81].mxu1 }
 0x714   :  { %v4800_v0 = vpop.f32.mrb[82].mxu0  ;;  %v4841_v57 = vpop.f32.mrb[82].mxu1 }
 0x715   :  { %v4801_v23 = vpop.f32.mrb[83].mxu0  ;;  %v4842_v8 = vpop.f32.mrb[83].mxu1 }
 0x732   :  { %v5038_v20 = vpop.f32.mrb[84].mxu0  ;;  %v5079_v24 = vpop.f32.mrb[84].mxu1 }
 0x733   :  { %v5040_v21 = vpop.f32.mrb[85].mxu0  ;;  %v5081_v42 = vpop.f32.mrb[85].mxu1 }
 0x734   :  { %v5042_v55 = vpop.f32.mrb[86].mxu0  ;;  %v5083_v56 = vpop.f32.mrb[86].mxu1 }
 0x735   :  { %v5043_v34 = vpop.f32.mrb[87].mxu0  ;;  %v5084_v16 = vpop.f32.mrb[87].mxu1 }
 0x73a   :  { %v5163_v1 = vpop.f32.mrb[88].mxu0  ;;  %v5204_v3 = vpop.f32.mrb[88].mxu1 }
 0x73b   :  { %v5164_v18 = vadd.f32 %v5163_v1, %v4796_v13  ;;  %v5205_v10 = vadd.f32 %v5204_v3, %v4837_v19  ;;  %v5165_v48 = vpop.f32.mrb[89].mxu0  ;;  %v5206_v60 = vpop.f32.mrb[89].mxu1 }
 0x73c   :  { %v5166_v11 = vadd.f32 %v5165_v48, %v4798_v33  ;;  %v5207_v7 = vadd.f32 %v5206_v60, %v4839_v17  ;;  %v5167_v0 = vpop.f32.mrb[90].mxu0  ;;  %v5208_v57 = vpop.f32.mrb[90].mxu1 }
 0x73d   :  { %v5336_v23 = vadd.f32 %v5164_v18, %v17520_v22  ;;  %v5168_v8 = vpop.f32.mrb[91].mxu0  ;;  %v5209_v32 = vpop.f32.mrb[91].mxu1 }
 0x73e   :  { %v5337_v46 = vadd.f32 %v5166_v11, %v17522_v25  ;;  %v5339_v60 = vadd.f32 %v5207_v7, %v17530_v35 }
 0x73f   :  { %v14751_v55 = vmul.f32 -1.442695, %v5336_v23 }
 0x740   :  { %v14753_v56 = vmul.f32 -1.442695, %v5337_v46  ;;  %v14755_v23 = vmul.f32 -1.442695, %v5339_v60 }
 0x741   :  { %16787 = vpow2.f32 %v14751_v55 }
 0x742   :  { %16789 = vpow2.f32 %v14753_v56  ;;  %v5288_v34 = vpop.f32.mrb[92].mxu0  ;;  %v5329_v16 = vpop.f32.mrb[92].mxu1 }
 0x743   :  { %v5289_v13 = vadd.f32 %v5288_v34, %v5038_v20  ;;  %v5330_v19 = vadd.f32 %v5329_v16, %v5079_v24  ;;  %v5290_v1 = vpop.f32.mrb[93].mxu0  ;;  %v5331_v3 = vpop.f32.mrb[93].mxu1  ;;  %v5338_v20 = vadd.f32 %v5205_v10, %v17538_v51 }
 0x744   :  { %v5291_v48 = vadd.f32 %v5290_v1, %v5040_v21  ;;  %v5332_v33 = vadd.f32 %v5331_v3, %v5081_v42  ;;  %v5292_v17 = vpop.f32.mrb[94].mxu0  ;;  %v5333_v18 = vpop.f32.mrb[94].mxu1 }
 0x745   :  { %v5340_v32 = vadd.f32 %v5289_v13, %v17533_v37  ;;  %v5293_v0 = vpop.f32.mrb[95].mxu0  ;;  %v5334_v11 = vpop.f32.mrb[95].mxu1  ;;  %v5342_v34 = vadd.f32 %v5330_v19, %v17546_v9 }
 0x746   :  { %v5341_v46 = vadd.f32 %v5291_v48, %v17535_v41  ;;  %v5343_v21 = vadd.f32 %v5332_v33, %v17542_v2 }
 0x747   :  { %v14752_v57 = vmul.f32 -1.442695, %v5340_v32 }
 0x748   :  { %v14754_v8 = vmul.f32 -1.442695, %v5341_v46  ;;  %v14756_v56 = vmul.f32 -1.442695, %v5343_v21  ;;  %v18437_v21 = vld [vmem:[#allocation9 + $0x100] ss:$16 sps:$4 sm:$0xff]  }
 0x749   :  { %16791 = vpow2.f32 %v14752_v57 }
 0x74a   :  { %16793 = vpow2.f32 %v14754_v8 }
 0x74b   :  { %v16788_v24 = vpop.eup %16787  ;;  %16795 = vpow2.f32 %v14755_v23 }
 0x74c   :  { %v16790_v55 = vpop.eup %16789  ;;  %v5350_v7 = vadd.f32 1.0, %v16788_v24  ;;  %16797 = vtanh.f32 %v5338_v20 }
 0x74d   :  { %v5362_v42 = vadd.f32 1.0, %v16790_v55 }
 0x74e   :  { %16799 = vrcp.f32 %v5350_v7 }
 0x74f   :  { %16801 = vrcp.f32 %v5362_v42  ;;  %v18439_v42 = vld [vmem:[#allocation9 + $0x108] ss:$16 sps:$4 sm:$0xff]  }
 0x750   :  { %16803 = vpow2.f32 %v14756_v56 }
 0x751   :  { %16805 = vtanh.f32 %v5342_v34  ;;  %v18441_v34 = vld [vmem:[#allocation9 + $0x124] ss:$16 sps:$4 sm:$0xff]  }
 0x753   :  { %v16792_v16 = vpop.eup %16791 }
 0x754   :  { %v16794_v13 = vpop.eup %16793  ;;  %v5351_v1 = vadd.f32 1.0, %v16792_v16  ;;  %v18443_v16 = vld [vmem:[#allocation9 + $0x12c] ss:$16 sps:$4 sm:$0xff]  }
 0x755   :  { %v5363_v10 = vadd.f32 1.0, %v16794_v13  ;;  %v16796_v3 = vpop.eup %16795  ;;  %v18449_v13 = vld [vmem:[#allocation9 + $0x128] ss:$16 sps:$4 sm:$0xff]  }
 0x756   :  { %16807 = vrcp.f32 %v5351_v1  ;;  %v16798_v60 = vpop.eup %16797  ;;  %v5376_v18 = vadd.f32 1.0, %v16796_v3  ;;  %v18455_v3 = vld [vmem:[#allocation9 + $0x14c] ss:$16 sps:$4 sm:$0xff]  }
 0x757   :  { %16809 = vrcp.f32 %v5363_v10  ;;  %v18453_v10 = vld [vmem:[#allocation9 + $0x144] ss:$16 sps:$4 sm:$0xff]  }
 0x758   :  { %v16800_v48 = vpop.eup %16799  ;;  %16811 = vrcp.f32 %v5376_v18  ;;  %v18467_v18 = vld [vmem:[#allocation9 + $0x164] ss:$16 sps:$4 sm:$0xff]  }
 0x759   :  { %v16802_v17 = vpop.eup %16801  ;;  %v5384_v33 = vmul.f32 %v16800_v48, %v16798_v60 }
 0x75a   :  { %v5382_v32 = vmul.f32 %v16802_v17, %v18254_v50  ;;  %v16804_v19 = vpop.eup %16803  ;;  %v18461_v17 = vld [vmem:[#allocation9 + $0x140] ss:$16 sps:$4 sm:$0xff]  }
 0x75b   :  { %v16806_v11 = vpop.eup %16805  ;;  %v5377_v8 = vadd.f32 1.0, %v16804_v19  ;;  %v18473_v19 = vld [vmem:[#allocation9 + $0x160] ss:$16 sps:$4 sm:$0xff]  }
 0x75c   :  { %v18430_v0 = vadd.f32 %v5384_v33, %v5382_v32  ;;  %v18463_v33 = vld [vmem:[#allocation9 + $0x148] ss:$16 sps:$4 sm:$0xff]   ;;  %v18469_v32 = vld [vmem:[#allocation9 + $0x16c] ss:$16 sps:$4 sm:$0xff]  }
 0x75e   :  { %16813 = vtanh.f32 %v18430_v0 }
 0x75f   :  { %16815 = vrcp.f32 %v5377_v8  ;;  %v18487_v8 = vld [vmem:[#allocation9 + $0x188] ss:$16 sps:$4 sm:$0xff]  }
 0x760   :  { %v16808_v46 = vpop.eup %16807  ;;  %20569 = vst [vmem:[#allocation23_spill] sm:$0xff] %v18487_v8 }
 0x761   :  { %v16810_v57 = vpop.eup %16809  ;;  %v5385_v23 = vmul.f32 %v16808_v46, %v16806_v11  ;;  %v18475_v11 = vld [vmem:[#allocation9 + $0x168] ss:$16 sps:$4 sm:$0xff]   ;;  %v18479_v46 = vld [vmem:[#allocation9 + $0x184] ss:$16 sps:$4 sm:$0xff]  }
 0x762   :  { %v5383_v20 = vmul.f32 %v16810_v57, %v18258_v53  ;;  %v16812_v55 = vpop.eup %16811  ;;  %v18447_v53 = vld [vmem:[#allocation9 + $0x120] ss:$16 sps:$4 sm:$0xff]   ;;  %v18481_v57 = vld [vmem:[#allocation9 + $0x18c] ss:$16 sps:$4 sm:$0xff]  }
 0x763   :  { %20567 = vst [vmem:[#allocation21_spill] sm:$0xff] %v18481_v57 }
 0x764   :  { %v18434_v24 = vadd.f32 %v5385_v23, %v5383_v20  ;;  %v18485_v23 = vld [vmem:[#allocation9 + $0x180] ss:$16 sps:$4 sm:$0xff]   ;;  %v18491_v20 = vld [vmem:[#allocation9 + $0x1a4] ss:$16 sps:$4 sm:$0xff]  }
 0x765   :  { %20568 = vst [vmem:[#allocation22_spill] sm:$0xff] %v18485_v23  ;;  %20570 = vst [vmem:[#allocation24_spill] sm:$0xff] %v18491_v20 }
 0x766   :  { %16817 = vtanh.f32 %v18434_v24 }
 0x768   :  { %v16814_v50 = vpop.eup %16813 }
 0x769   :  { %v5390_v7 = vmul.f32 %v16814_v50, %v16812_v55  ;;  %v16816_v1 = vpop.eup %16815  ;;  %v18493_v55 = vld [vmem:[#allocation9 + $0x1ac] ss:$16 sps:$4 sm:$0xff]   ;;  %v18497_v50 = vld [vmem:[#allocation9 + $0x1a0] ss:$16 sps:$4 sm:$0xff]  }
 0x76a   :  { %20571 = vst [vmem:[#allocation25_spill] sm:$0xff] %v18493_v55  ;;  %20572 = vst [vmem:[#allocation26_spill] sm:$0xff] %v18497_v50 }
 0x76b   :  { %5393 = vst [vmem:[#allocation10 + $0x50] sm:$0xff] %v5390_v7  ;;  %v5416_v56 = vpack.c.bf16 %v5390_v7, %v5390_v7  ;;  %v18499_v7 = vld [vmem:[#allocation9 + $0x1a8] ss:$16 sps:$4 sm:$0xff]  }
 0x76c   :  { %20573 = vst [vmem:[#allocation27_spill] sm:$0xff] %v18499_v7 }
 0x76d   :  { %5675 = vmatmul.mubr.bf16.vlgmr.msra.gmra.mrb[96].mxu0 %v5416_v56  ;;  %5716 = vmatmul.mubr.bf16.vlgmr.msra.gmra.mrb[96].mxu1 %v5416_v56  ;;  %v18503_v56 = vld [vmem:[#allocation9 + $0x1c4] ss:$16 sps:$4 sm:$0xff]  }
 0x76e   :  { %5885 = vmatpush1.bf16.msra.mxu0 %v18437_v21  ;;  %5926 = vmatpush1.bf16.msra.mxu1 %v18439_v42  ;;  %20574 = vst [vmem:[#allocation28_spill] sm:$0xff] %v18503_v56 }
 0x76f   :  { %5886 = vmatprep.subr.bf16.mxu0 %v18441_v34  ;;  %5927 = vmatprep.subr.bf16.mxu1 %v18443_v16 }
 0x770   :  { %v16818_v60 = vpop.eup %16817  ;;  %5916 = vmatprep.mubr.bf16.mxu0 %v20445_v15  ;;  %5957 = vmatprep.mubr.bf16.mxu1 %v20445_v15 }
 0x771   :  { %v5391_v48 = vmul.f32 %v16818_v60, %v16816_v1  ;;  %v18505_v1 = vld [vmem:[#allocation9 + $0x1cc] ss:$16 sps:$4 sm:$0xff]   ;;  %v18509_v60 = vld [vmem:[#allocation9 + $0x1c0] ss:$16 sps:$4 sm:$0xff]  }
 0x772   :  { %5887 = vmatpush1.bf16.msra.mxu0 %v18447_v53  ;;  %5928 = vmatpush1.bf16.msra.mxu1 %v18449_v13  ;;  %20575 = vst [vmem:[#allocation29_spill] sm:$0xff] %v18505_v1  ;;  %20576 = vst [vmem:[#allocation30_spill] sm:$0xff] %v18509_v60 }
 0x773   :  { %5888 = vmatprep.subr.bf16.mxu0 %v18453_v10  ;;  %5929 = vmatprep.subr.bf16.mxu1 %v18455_v3  ;;  %5394 = vst [vmem:[#allocation10 + $0x58] sm:$0xff] %v5391_v48 }
 0x776   :  { %5889 = vmatpush1.bf16.msra.mxu0 %v18461_v17  ;;  %5930 = vmatpush1.bf16.msra.mxu1 %v18463_v33 }
 0x777   :  { %5890 = vmatprep.subr.bf16.mxu0 %v18467_v18  ;;  %5931 = vmatprep.subr.bf16.mxu1 %v18469_v32 }
 0x77a   :  { %5891 = vmatpush1.bf16.msra.mxu0 %v18473_v19  ;;  %5932 = vmatpush1.bf16.msra.mxu1 %v18475_v11 }
 0x77b   :  { %5892 = vmatprep.subr.bf16.mxu0 %v18479_v46  ;;  %5933 = vmatprep.subr.bf16.mxu1 %v18481_v57  ;;  %v5396_v57 = vld [vmem:[#allocation4 + $0x60] sm:$0xff] }
 0x77e   :  { %5893 = vmatpush1.bf16.msra.mxu0 %v18485_v23  ;;  %5934 = vmatpush1.bf16.msra.mxu1 %v18487_v8  ;;  %v18511_v23 = vld [vmem:[#allocation9 + $0x1c8] ss:$16 sps:$4 sm:$0xff]   ;;  %v18515_v8 = vld [vmem:[#allocation9 + $0x1e4] ss:$16 sps:$4 sm:$0xff]  }
 0x77f   :  { %5894 = vmatprep.subr.bf16.mxu0 %v18491_v20  ;;  %5935 = vmatprep.subr.bf16.mxu1 %v18493_v55  ;;  %20577 = vst [vmem:[#allocation31_spill] sm:$0xff] %v18511_v23  ;;  %20578 = vst [vmem:[#allocation32_spill] sm:$0xff] %v18515_v8  ;;  %v18517_v20 = vld [vmem:[#allocation9 + $0x1ec] ss:$16 sps:$4 sm:$0xff]   ;;  %v18521_v55 = vld [vmem:[#allocation9 + $0x1e0] ss:$16 sps:$4 sm:$0xff]  }
 0x780   :  { %20579 = vst [vmem:[#allocation33_spill] sm:$0xff] %v18517_v20  ;;  %20580 = vst [vmem:[#allocation34_spill] sm:$0xff] %v18521_v55 }
 0x782   :  { %5895 = vmatpush1.bf16.msra.mxu0 %v18497_v50  ;;  %5936 = vmatpush1.bf16.msra.mxu1 %v18499_v7  ;;  %v18523_v50 = vld [vmem:[#allocation9 + $0x1e8] ss:$16 sps:$4 sm:$0xff]   ;;  %v18527_v7 = vld [vmem:[#allocation7 + $0x4] ss:$16 sps:$4 sm:$0xff]  }
 0x783   :  { %5896 = vmatprep.subr.bf16.mxu0 %v18503_v56  ;;  %5937 = vmatprep.subr.bf16.mxu1 %v18505_v1  ;;  %20581 = vst [vmem:[#allocation35_spill] sm:$0xff] %v18523_v50  ;;  %v18529_v56 = vld [vmem:[#allocation7 + $0xc] ss:$16 sps:$4 sm:$0xff]   ;;  %v18533_v1 = vld [vmem:[#allocation7] ss:$16 sps:$4 sm:$0xff]  }
 0x784   :  { %20582 = vst [vmem:[#allocation36_spill] sm:$0xff] %v18529_v56  ;;  %20583 = vst [vmem:[#allocation37_spill] sm:$0xff] %v18533_v1 }
 0x786   :  { %5897 = vmatpush1.bf16.msra.mxu0 %v18509_v60  ;;  %5938 = vmatpush1.bf16.msra.mxu1 %v18511_v23  ;;  %v18535_v60 = vld [vmem:[#allocation7 + $0x8] ss:$16 sps:$4 sm:$0xff]   ;;  %v5417_v23 = vpack.c.bf16 %v5391_v48, %v5391_v48  ;;  %v18551_v48 = vld [vmem:[#allocation7 + $0x44] ss:$16 sps:$4 sm:$0xff]  }
 0x787   :  { %5898 = vmatprep.subr.bf16.mxu0 %v18515_v8  ;;  %5939 = vmatprep.subr.bf16.mxu1 %v18517_v20  ;;  %20584 = vst [vmem:[#allocation38_spill] sm:$0xff] %v18535_v60  ;;  %v18539_v8 = vld [vmem:[#allocation7 + $0x24] ss:$16 sps:$4 sm:$0xff]   ;;  %v18541_v20 = vld [vmem:[#allocation7 + $0x2c] ss:$16 sps:$4 sm:$0xff]  }
 0x788   :  { %20585 = vst [vmem:[#allocation39_spill] sm:$0xff] %v18539_v8  ;;  %20586 = vst [vmem:[#allocation40_spill] sm:$0xff] %v18541_v20 }
 0x78a   :  { %5899 = vmatpush1.bf16.msra.mxu0 %v18521_v55  ;;  %5940 = vmatpush1.bf16.msra.mxu1 %v18523_v50  ;;  %v18545_v50 = vld [vmem:[#allocation7 + $0x20] ss:$16 sps:$4 sm:$0xff]   ;;  %v18547_v55 = vld [vmem:[#allocation7 + $0x28] ss:$16 sps:$4 sm:$0xff]  }
 0x78b   :  { %6009 = vmatprep.subr.bf16.mxu0 %v18527_v7  ;;  %6050 = vmatprep.subr.bf16.mxu1 %v18529_v56  ;;  %20587 = vst [vmem:[#allocation41_spill] sm:$0xff] %v18545_v50  ;;  %20588 = vst [vmem:[#allocation42_spill] sm:$0xff] %v18547_v55  ;;  %v18553_v56 = vld [vmem:[#allocation7 + $0x4c] ss:$16 sps:$4 sm:$0xff]  }
 0x78c   :  { %20589 = vst [vmem:[#allocation43_spill] sm:$0xff] %v18553_v56 }
 0x78d   :  { %5917 = vmatmul.mubr.bf16.vlgmr.msra.gmra.mrb[100].mxu0 %v5417_v23  ;;  %5958 = vmatmul.mubr.bf16.vlgmr.msra.gmra.mrb[100].mxu1 %v5417_v23  ;;  %v5398_v23 = vpack.c.bf16 %v5396_v57, %v5396_v57  ;;  %v18573_v57 = vld [vmem:[#allocation7 + $0x60] ss:$16 sps:$4 sm:$0xff]  }
 0x78e   :  { %6010 = vmatpush1.bf16.msra.mxu0 %v18533_v1  ;;  %6051 = vmatpush1.bf16.msra.mxu1 %v18535_v60  ;;  %v18559_v60 = vld [vmem:[#allocation7 + $0x40] ss:$16 sps:$4 sm:$0xff]   ;;  %v18561_v1 = vld [vmem:[#allocation7 + $0x48] ss:$16 sps:$4 sm:$0xff]  }
 0x78f   :  { %6011 = vmatprep.subr.bf16.mxu0 %v18539_v8  ;;  %6052 = vmatprep.subr.bf16.mxu1 %v18541_v20  ;;  %v18565_v20 = vld [vmem:[#allocation7 + $0x64] ss:$16 sps:$4 sm:$0xff]   ;;  %v18567_v8 = vld [vmem:[#allocation7 + $0x6c] ss:$16 sps:$4 sm:$0xff]  }
 0x790   :  { %6041 = vmatprep.mubr.bf16.mxu0 %v20445_v15  ;;  %6082 = vmatprep.mubr.bf16.mxu1 %v20445_v15 }
 0x792   :  { %6012 = vmatpush1.bf16.msra.mxu0 %v18545_v50  ;;  %6053 = vmatpush1.bf16.msra.mxu1 %v18547_v55  ;;  %v18575_v55 = vld [vmem:[#allocation7 + $0x68] ss:$16 sps:$4 sm:$0xff]  }
 0x793   :  { %6134 = vmatprep.subr.bf16.mxu0 %v18551_v48  ;;  %6175 = vmatprep.subr.bf16.mxu1 %v18553_v56  ;;  %v5397_v50 = vld [vmem:[#allocation4 + $0x68] sm:$0xff] }
 0x794   :  { %v5399_v56 = vpack.c.bf16 %v5397_v50, %v5397_v50 }
 0x795   :  { %14829 = vmatmul.mubr.msk.bf16.vlgmr.msra.gmra.mrb[104].mxu0 %vm726_vm0, %v5398_v23  ;;  %14830 = vmatmul.mubr.msk.bf16.vlgmr.msra.gmra.mrb[104].mxu1 %vm726_vm0, %v5398_v23 }
 0x796   :  { %6135 = vmatpush1.bf16.msra.mxu0 %v18559_v60  ;;  %6176 = vmatpush1.bf16.msra.mxu1 %v18561_v1 }
 0x797   :  { %6136 = vmatprep.subr.bf16.mxu0 %v18565_v20  ;;  %6177 = vmatprep.subr.bf16.mxu1 %v18567_v8 }
 0x798   :  { %6166 = vmatprep.mubr.bf16.mxu0 %v20445_v15  ;;  %6207 = vmatprep.mubr.bf16.mxu1 %v20445_v15 }
 0x79a   :  { %6137 = vmatpush1.bf16.msra.mxu0 %v18573_v57  ;;  %6178 = vmatpush1.bf16.msra.mxu1 %v18575_v55 }
 0x79b   :  { %6522 = vmatprep.subr.bf16.mxu0 %v18319_v62  ;;  %6563 = vmatprep.subr.bf16.mxu1 %v18321_v39  ;;  %v20590_v62 = vld [vmem:[#allocation14_spill] sm:$0xff]  ;;  %v20591_v39 = vld [vmem:[#allocation15_spill] sm:$0xff] }
 0x79d   :  { %14839 = vmatmul.mubr.msk.bf16.vlgmr.msra.gmra.mrb[108].mxu0 %vm726_vm0, %v5399_v56  ;;  %14840 = vmatmul.mubr.msk.bf16.vlgmr.msra.gmra.mrb[108].mxu1 %vm726_vm0, %v5399_v56 }
 0x79e   :  { %6523 = vmatpush1.bf16.msra.mxu0 %v18323_v47  ;;  %6564 = vmatpush1.bf16.msra.mxu1 %v18325_v59  ;;  %v20592_v47 = vld [vmem:[#allocation16_spill] sm:$0xff]  ;;  %v20593_v59 = vld [vmem:[#allocation17_spill] sm:$0xff] }
 0x79f   :  { %6524 = vmatprep.subr.bf16.mxu0 %v18331_v40  ;;  %6565 = vmatprep.subr.bf16.mxu1 %v18333_v58  ;;  %v20594_v40 = vld [vmem:[#allocation18_spill] sm:$0xff]  ;;  %v20595_v58 = vld [vmem:[#allocation19_spill] sm:$0xff] }
 0x7a0   :  { %6554 = vmatprep.mubr.bf16.mxu0 %v20445_v15  ;;  %6595 = vmatprep.mubr.bf16.mxu1 %v20445_v15 }
 0x7a2   :  { %6525 = vmatpush1.bf16.msra.mxu0 %v18335_v49  ;;  %6566 = vmatpush1.bf16.msra.mxu1 %v18337_v12  ;;  %v20596_v49 = vld [vmem:[#allocation20_spill] sm:$0xff] }
 0x7a3   :  { %6526 = vmatprep.subr.bf16.mxu0 %v18343_v26  ;;  %6567 = vmatprep.subr.bf16.mxu1 %v18345_v44 }
 0x7a6   :  { %6527 = vmatpush1.bf16.msra.mxu0 %v18347_v43  ;;  %6568 = vmatpush1.bf16.msra.mxu1 %v18349_v54 }
 0x7a7   :  { %6528 = vmatprep.subr.bf16.mxu0 %v18355_v28  ;;  %6569 = vmatprep.subr.bf16.mxu1 %v18357_v52 }
 0x7aa   :  { %6529 = vmatpush1.bf16.msra.mxu0 %v18359_v29  ;;  %6570 = vmatpush1.bf16.msra.mxu1 %v18361_v30 }
 0x7ab   :  { %6530 = vmatprep.subr.bf16.mxu0 %v18367_v45  ;;  %6571 = vmatprep.subr.bf16.mxu1 %v18369_v6 }
 0x7ae   :  { %6531 = vmatpush1.bf16.msra.mxu0 %v18371_v27  ;;  %6572 = vmatpush1.bf16.msra.mxu1 %v18373_v61 }
 0x7af   :  { %6532 = vmatprep.subr.bf16.mxu0 %v18379_v31  ;;  %6573 = vmatprep.subr.bf16.mxu1 %v18381_v4 }
 0x7b2   :  { %6533 = vmatpush1.bf16.msra.mxu0 %v18383_v5  ;;  %6574 = vmatpush1.bf16.msra.mxu1 %v18385_v63 }
 0x7b3   :  { %6534 = vmatprep.subr.bf16.mxu0 %v18391_v14  ;;  %6575 = vmatprep.subr.bf16.mxu1 %v18393_v36 }
 0x7b6   :  { %6535 = vmatpush1.bf16.msra.mxu0 %v18395_v38  ;;  %6576 = vmatpush1.bf16.msra.mxu1 %v20590_v62 }
 0x7b7   :  { %6536 = vmatprep.subr.bf16.mxu0 %v20591_v39  ;;  %6577 = vmatprep.subr.bf16.mxu1 %v20592_v47 }
 0x7ba   :  { %6537 = vmatpush1.bf16.msra.mxu0 %v20593_v59  ;;  %6578 = vmatpush1.bf16.msra.mxu1 %v20594_v40 }
 0x7bb   :  { %6764 = vmatprep.subr.bf16.mxu0 %v20595_v58  ;;  %6805 = vmatprep.subr.bf16.mxu1 %v20596_v49 }
 0x840   :  { %v5676_v12 = vpop.f32.mrb[96].mxu0  ;;  %v5717_v26 = vpop.f32.mrb[96].mxu1 }
 0x841   :  { %v5678_v44 = vpop.f32.mrb[97].mxu0  ;;  %v5719_v43 = vpop.f32.mrb[97].mxu1 }
 0x842   :  { %v5680_v54 = vpop.f32.mrb[98].mxu0  ;;  %v5721_v28 = vpop.f32.mrb[98].mxu1 }
 0x843   :  { %v5681_v52 = vpop.f32.mrb[99].mxu0  ;;  %v5722_v29 = vpop.f32.mrb[99].mxu1 }
 0x860   :  { %v5918_v30 = vpop.f32.mrb[100].mxu0  ;;  %v5959_v45 = vpop.f32.mrb[100].mxu1 }
 0x861   :  { %v5920_v6 = vpop.f32.mrb[101].mxu0  ;;  %v5961_v27 = vpop.f32.mrb[101].mxu1 }
 0x862   :  { %v5922_v61 = vpop.f32.mrb[102].mxu0  ;;  %v5963_v31 = vpop.f32.mrb[102].mxu1 }
 0x863   :  { %v5923_v4 = vpop.f32.mrb[103].mxu0  ;;  %v5964_v5 = vpop.f32.mrb[103].mxu1 }
 0x868   :  { %v6043_v63 = vpop.f32.mrb[104].mxu0  ;;  %v6084_v14 = vpop.f32.mrb[104].mxu1 }
 0x869   :  { %v6044_v36 = vadd.f32 %v6043_v63, %v5676_v12  ;;  %v6085_v38 = vadd.f32 %v6084_v14, %v5717_v26  ;;  %v6045_v50 = vpop.f32.mrb[105].mxu0  ;;  %v6086_v56 = vpop.f32.mrb[105].mxu1 }
 0x86a   :  { %v6046_v23 = vadd.f32 %v6045_v50, %v5678_v44  ;;  %v6087_v62 = vadd.f32 %v6086_v56, %v5719_v43  ;;  %v6047_v39 = vpop.f32.mrb[106].mxu0  ;;  %v6088_v47 = vpop.f32.mrb[106].mxu1 }
 0x86b   :  { %v6216_v59 = vadd.f32 %v6044_v36, %v17520_v22  ;;  %v6048_v40 = vpop.f32.mrb[107].mxu0  ;;  %v6089_v58 = vpop.f32.mrb[107].mxu1 }
 0x86c   :  { %v6217_v49 = vadd.f32 %v6046_v23, %v17522_v25  ;;  %v6219_v44 = vadd.f32 %v6087_v62, %v17530_v35 }
 0x86d   :  { %v14841_v54 = vmul.f32 -1.442695, %v6216_v59 }
 0x86e   :  { %v14843_v28 = vmul.f32 -1.442695, %v6217_v49  ;;  %v14845_v39 = vmul.f32 -1.442695, %v6219_v44 }
 0x86f   :  { %16819 = vpow2.f32 %v14841_v54 }
 0x870   :  { %16821 = vpow2.f32 %v14843_v28  ;;  %v6168_v52 = vpop.f32.mrb[108].mxu0  ;;  %v6209_v29 = vpop.f32.mrb[108].mxu1 }
 0x871   :  { %v6169_v12 = vadd.f32 %v6168_v52, %v5918_v30  ;;  %v6210_v26 = vadd.f32 %v6209_v29, %v5959_v45  ;;  %v6170_v61 = vpop.f32.mrb[109].mxu0  ;;  %v6211_v31 = vpop.f32.mrb[109].mxu1  ;;  %v6218_v30 = vadd.f32 %v6085_v38, %v17538_v51 }
 0x872   :  { %v6171_v43 = vadd.f32 %v6170_v61, %v5920_v6  ;;  %v6212_v4 = vadd.f32 %v6211_v31, %v5961_v27  ;;  %v6172_v5 = vpop.f32.mrb[110].mxu0  ;;  %v6213_v63 = vpop.f32.mrb[110].mxu1 }
 0x873   :  { %v6220_v14 = vadd.f32 %v6169_v12, %v17533_v37  ;;  %v6173_v36 = vpop.f32.mrb[111].mxu0  ;;  %v6214_v50 = vpop.f32.mrb[111].mxu1  ;;  %v6222_v58 = vadd.f32 %v6210_v26, %v17546_v9 }
 0x874   :  { %v6221_v56 = vadd.f32 %v6171_v43, %v17535_v41  ;;  %v6223_v6 = vadd.f32 %v6212_v4, %v17542_v2 }
 0x875   :  { %v14842_v23 = vmul.f32 -1.442695, %v6220_v14 }
 0x876   :  { %v14844_v47 = vmul.f32 -1.442695, %v6221_v56  ;;  %v14846_v40 = vmul.f32 -1.442695, %v6223_v6  ;;  %v20612_v6 = vld [vmem:[#allocation36_spill] sm:$0xff] }
 0x877   :  { %16823 = vpow2.f32 %v14842_v23 }
 0x878   :  { %16825 = vpow2.f32 %v14844_v47 }
 0x879   :  { %v16820_v45 = vpop.eup %16819  ;;  %16827 = vpow2.f32 %v14845_v39 }
 0x87a   :  { %v16822_v59 = vpop.eup %16821  ;;  %v6230_v62 = vadd.f32 1.0, %v16820_v45  ;;  %16829 = vtanh.f32 %v6218_v30 }
 0x87b   :  { %v6242_v27 = vadd.f32 1.0, %v16822_v59 }
 0x87c   :  { %16831 = vrcp.f32 %v6230_v62 }
 0x87d   :  { %16833 = vrcp.f32 %v6242_v27  ;;  %v20613_v27 = vld [vmem:[#allocation37_spill] sm:$0xff] }
 0x87e   :  { %16835 = vpow2.f32 %v14846_v40  ;;  %v20614_v40 = vld [vmem:[#allocation38_spill] sm:$0xff] }
 0x87f   :  { %16837 = vtanh.f32 %v6222_v58  ;;  %v6276_v58 = vld [vmem:[#allocation4 + $0x70] sm:$0xff] }
 0x881   :  { %v16824_v49 = vpop.eup %16823 }
 0x882   :  { %v16826_v54 = vpop.eup %16825  ;;  %v6231_v28 = vadd.f32 1.0, %v16824_v49  ;;  %v20615_v49 = vld [vmem:[#allocation39_spill] sm:$0xff] }
 0x883   :  { %v6243_v38 = vadd.f32 1.0, %v16826_v54  ;;  %v16828_v52 = vpop.eup %16827  ;;  %v20616_v54 = vld [vmem:[#allocation40_spill] sm:$0xff] }
 0x884   :  { %16839 = vrcp.f32 %v6231_v28  ;;  %v16830_v29 = vpop.eup %16829  ;;  %v6256_v44 = vadd.f32 1.0, %v16828_v52  ;;  %v6278_v28 = vpack.c.bf16 %v6276_v58, %v6276_v58  ;;  %v20619_v52 = vld [vmem:[#allocation43_spill] sm:$0xff] }
 0x885   :  { %16841 = vrcp.f32 %v6243_v38  ;;  %v20617_v38 = vld [vmem:[#allocation41_spill] sm:$0xff] }
 0x886   :  { %v16832_v12 = vpop.eup %16831  ;;  %16843 = vrcp.f32 %v6256_v44  ;;  %v18721_v44 = vld [vmem:[#allocation9 + $0x4c] ss:$16 sps:$4 sm:$0xff]  }
 0x887   :  { %v16834_v61 = vpop.eup %16833  ;;  %v6264_v31 = vmul.f32 %v16832_v12, %v16830_v29  ;;  %v6277_v29 = vld [vmem:[#allocation4 + $0x78] sm:$0xff]  ;;  %v18711_v12 = vld [vmem:[#allocation9 + $0x20] ss:$16 sps:$4 sm:$0xff]  }
 0x888   :  { %v6262_v43 = vmul.f32 %v16834_v61, %v18430_v0  ;;  %v16836_v26 = vpop.eup %16835  ;;  %v18713_v61 = vld [vmem:[#allocation9 + $0x28] ss:$16 sps:$4 sm:$0xff]  }
 0x889   :  { %v16838_v5 = vpop.eup %16837  ;;  %v6257_v50 = vadd.f32 1.0, %v16836_v26  ;;  %v18725_v26 = vld [vmem:[#allocation9 + $0x48] ss:$16 sps:$4 sm:$0xff]  }
 0x88a   :  { %v18630_v4 = vadd.f32 %v6264_v31, %v6262_v43  ;;  %v18719_v31 = vld [vmem:[#allocation9 + $0x44] ss:$16 sps:$4 sm:$0xff]   ;;  %v18723_v43 = vld [vmem:[#allocation9 + $0x40] ss:$16 sps:$4 sm:$0xff]  }
 0x88c   :  { %16845 = vtanh.f32 %v18630_v4 }
 0x88d   :  { %16847 = vrcp.f32 %v6257_v50  ;;  %v18743_v50 = vld [vmem:[#allocation9 + $0x84] ss:$16 sps:$4 sm:$0xff]  }
 0x88e   :  { %v16840_v63 = vpop.eup %16839 }
 0x88f   :  { %v16842_v14 = vpop.eup %16841  ;;  %v6265_v36 = vmul.f32 %v16840_v63, %v16838_v5  ;;  %v18731_v5 = vld [vmem:[#allocation9 + $0x64] ss:$16 sps:$4 sm:$0xff]   ;;  %v18733_v63 = vld [vmem:[#allocation9 + $0x6c] ss:$16 sps:$4 sm:$0xff]  }
 0x890   :  { %v6263_v56 = vmul.f32 %v16842_v14, %v18434_v24  ;;  %v16844_v39 = vpop.eup %16843  ;;  %v18735_v14 = vld [vmem:[#allocation9 + $0x60] ss:$16 sps:$4 sm:$0xff]  }
 0x892   :  { %v18634_v23 = vadd.f32 %v6265_v36, %v6263_v56  ;;  %v18737_v36 = vld [vmem:[#allocation9 + $0x68] ss:$16 sps:$4 sm:$0xff]   ;;  %v18745_v56 = vld [vmem:[#allocation9 + $0x8c] ss:$16 sps:$4 sm:$0xff]  }
 0x894   :  { %16849 = vtanh.f32 %v18634_v23 }
 0x896   :  { %v16846_v0 = vpop.eup %16845 }
 0x897   :  { %v6270_v47 = vmul.f32 %v16846_v0, %v16844_v39  ;;  %v16848_v45 = vpop.eup %16847  ;;  %v18747_v39 = vld [vmem:[#allocation9 + $0x80] ss:$16 sps:$4 sm:$0xff]   ;;  %v18749_v0 = vld [vmem:[#allocation9 + $0x88] ss:$16 sps:$4 sm:$0xff]  }
 0x899   :  { %6273 = vst [vmem:[#allocation10 + $0x60] sm:$0xff] %v6270_v47  ;;  %v6296_v30 = vpack.c.bf16 %v6270_v47, %v6270_v47  ;;  %v18755_v47 = vld [vmem:[#allocation9 + $0xa4] ss:$16 sps:$4 sm:$0xff]  }
 0x89b   :  { %6555 = vmatmul.mubr.bf16.vlgmr.msra.gmra.mrb[112].mxu0 %v6296_v30  ;;  %6596 = vmatmul.mubr.bf16.vlgmr.msra.gmra.mrb[112].mxu1 %v6296_v30  ;;  %v18757_v30 = vld [vmem:[#allocation9 + $0xac] ss:$16 sps:$4 sm:$0xff]  }
 0x89c   :  { %6765 = vmatpush1.bf16.msra.mxu0 %v18437_v21  ;;  %6806 = vmatpush1.bf16.msra.mxu1 %v18439_v42  ;;  %v20597_v21 = vld [vmem:[#allocation21_spill] sm:$0xff]  ;;  %v20598_v42 = vld [vmem:[#allocation22_spill] sm:$0xff] }
 0x89d   :  { %6766 = vmatprep.subr.bf16.mxu0 %v18441_v34  ;;  %6807 = vmatprep.subr.bf16.mxu1 %v18443_v16  ;;  %v20599_v34 = vld [vmem:[#allocation23_spill] sm:$0xff]  ;;  %v20600_v16 = vld [vmem:[#allocation24_spill] sm:$0xff] }
 0x89e   :  { %v16850_v24 = vpop.eup %16849  ;;  %6796 = vmatprep.mubr.bf16.mxu0 %v20445_v15  ;;  %6837 = vmatprep.mubr.bf16.mxu1 %v20445_v15 }
 0x89f   :  { %v6271_v59 = vmul.f32 %v16850_v24, %v16848_v45  ;;  %v18759_v45 = vld [vmem:[#allocation9 + $0xa0] ss:$16 sps:$4 sm:$0xff]   ;;  %v18761_v24 = vld [vmem:[#allocation9 + $0xa8] ss:$16 sps:$4 sm:$0xff]  }
 0x8a0   :  { %6767 = vmatpush1.bf16.msra.mxu0 %v18447_v53  ;;  %6808 = vmatpush1.bf16.msra.mxu1 %v18449_v13  ;;  %v20601_v53 = vld [vmem:[#allocation25_spill] sm:$0xff]  ;;  %v20602_v13 = vld [vmem:[#allocation26_spill] sm:$0xff] }
 0x8a1   :  { %6768 = vmatprep.subr.bf16.mxu0 %v18453_v10  ;;  %6809 = vmatprep.subr.bf16.mxu1 %v18455_v3  ;;  %6274 = vst [vmem:[#allocation10 + $0x68] sm:$0xff] %v6271_v59  ;;  %v20603_v10 = vld [vmem:[#allocation27_spill] sm:$0xff]  ;;  %v20604_v3 = vld [vmem:[#allocation28_spill] sm:$0xff]  ;;  %v6297_v62 = vpack.c.bf16 %v6271_v59, %v6271_v59 }
 0x8a2   :  { %v18767_v59 = vld [vmem:[#allocation9 + $0xc4] ss:$16 sps:$4 sm:$0xff]  }
 0x8a4   :  { %6769 = vmatpush1.bf16.msra.mxu0 %v18461_v17  ;;  %6810 = vmatpush1.bf16.msra.mxu1 %v18463_v33  ;;  %v20605_v17 = vld [vmem:[#allocation29_spill] sm:$0xff]  ;;  %v20606_v33 = vld [vmem:[#allocation30_spill] sm:$0xff] }
 0x8a5   :  { %6770 = vmatprep.subr.bf16.mxu0 %v18467_v18  ;;  %6811 = vmatprep.subr.bf16.mxu1 %v18469_v32  ;;  %v20607_v18 = vld [vmem:[#allocation31_spill] sm:$0xff]  ;;  %v20608_v32 = vld [vmem:[#allocation32_spill] sm:$0xff] }
 0x8a8   :  { %6771 = vmatpush1.bf16.msra.mxu0 %v18473_v19  ;;  %6812 = vmatpush1.bf16.msra.mxu1 %v18475_v11  ;;  %v20609_v19 = vld [vmem:[#allocation33_spill] sm:$0xff]  ;;  %v20610_v11 = vld [vmem:[#allocation34_spill] sm:$0xff] }
 0x8a9   :  { %6772 = vmatprep.subr.bf16.mxu0 %v18479_v46  ;;  %6813 = vmatprep.subr.bf16.mxu1 %v20597_v21  ;;  %v20611_v46 = vld [vmem:[#allocation35_spill] sm:$0xff] }
 0x8aa   :  { %v18769_v21 = vld [vmem:[#allocation9 + $0xcc] ss:$16 sps:$4 sm:$0xff]  }
 0x8ac   :  { %6773 = vmatpush1.bf16.msra.mxu0 %v20598_v42  ;;  %6814 = vmatpush1.bf16.msra.mxu1 %v20599_v34  ;;  %v18771_v42 = vld [vmem:[#allocation9 + $0xc0] ss:$16 sps:$4 sm:$0xff]   ;;  %v18773_v34 = vld [vmem:[#allocation9 + $0xc8] ss:$16 sps:$4 sm:$0xff]  }
 0x8ad   :  { %6774 = vmatprep.subr.bf16.mxu0 %v20600_v16  ;;  %6815 = vmatprep.subr.bf16.mxu1 %v20601_v53  ;;  %20620 = vst [vmem:[#allocation14_spill] sm:$0xff] %v18773_v34  ;;  %v18777_v16 = vld [vmem:[#allocation9 + $0xe4] ss:$16 sps:$4 sm:$0xff]   ;;  %v18779_v53 = vld [vmem:[#allocation9 + $0xec] ss:$16 sps:$4 sm:$0xff]  }
 0x8ae   :  { %20621 = vst [vmem:[#allocation15_spill] sm:$0xff] %v18777_v16  ;;  %20622 = vst [vmem:[#allocation16_spill] sm:$0xff] %v18779_v53 }
 0x8b0   :  { %6775 = vmatpush1.bf16.msra.mxu0 %v20602_v13  ;;  %6816 = vmatpush1.bf16.msra.mxu1 %v20603_v10  ;;  %v18783_v13 = vld [vmem:[#allocation9 + $0xe0] ss:$16 sps:$4 sm:$0xff]   ;;  %v18785_v10 = vld [vmem:[#allocation9 + $0xe8] ss:$16 sps:$4 sm:$0xff]  }
 0x8b1   :  { %6776 = vmatprep.subr.bf16.mxu0 %v20604_v3  ;;  %6817 = vmatprep.subr.bf16.mxu1 %v20605_v17  ;;  %20623 = vst [vmem:[#allocation17_spill] sm:$0xff] %v18783_v13  ;;  %20624 = vst [vmem:[#allocation18_spill] sm:$0xff] %v18785_v10  ;;  %v18789_v3 = vld [vmem:[#allocation9 + $0x104] ss:$16 sps:$4 sm:$0xff]   ;;  %v18791_v17 = vld [vmem:[#allocation9 + $0x10c] ss:$16 sps:$4 sm:$0xff]  }
 0x8b2   :  { %20625 = vst [vmem:[#allocation19_spill] sm:$0xff] %v18789_v3  ;;  %20626 = vst [vmem:[#allocation20_spill] sm:$0xff] %v18791_v17 }
 0x8b4   :  { %6777 = vmatpush1.bf16.msra.mxu0 %v20606_v33  ;;  %6818 = vmatpush1.bf16.msra.mxu1 %v20607_v18 }
 0x8b5   :  { %6778 = vmatprep.subr.bf16.mxu0 %v20608_v32  ;;  %6819 = vmatprep.subr.bf16.mxu1 %v20609_v19 }
 0x8b8   :  { %6779 = vmatpush1.bf16.msra.mxu0 %v20610_v11  ;;  %6820 = vmatpush1.bf16.msra.mxu1 %v20611_v46 }
 0x8b9   :  { %6889 = vmatprep.subr.bf16.mxu0 %v18527_v7  ;;  %6930 = vmatprep.subr.bf16.mxu1 %v20612_v6  ;;  %v20618_v7 = vld [vmem:[#allocation42_spill] sm:$0xff] }
 0x8bb   :  { %6797 = vmatmul.mubr.bf16.vlgmr.msra.gmra.mrb[116].mxu0 %v6297_v62  ;;  %6838 = vmatmul.mubr.bf16.vlgmr.msra.gmra.mrb[116].mxu1 %v6297_v62 }
 0x8bc   :  { %6890 = vmatpush1.bf16.msra.mxu0 %v20613_v27  ;;  %6931 = vmatpush1.bf16.msra.mxu1 %v20614_v40 }
 0x8bd   :  { %6891 = vmatprep.subr.bf16.mxu0 %v20615_v49  ;;  %6932 = vmatprep.subr.bf16.mxu1 %v20616_v54 }
 0x8be   :  { %6921 = vmatprep.mubr.bf16.mxu0 %v20445_v15  ;;  %6962 = vmatprep.mubr.bf16.mxu1 %v20445_v15 }
 0x8c0   :  { %6892 = vmatpush1.bf16.msra.mxu0 %v20617_v38  ;;  %6933 = vmatpush1.bf16.msra.mxu1 %v20618_v7 }
 0x8c1   :  { %7014 = vmatprep.subr.bf16.mxu0 %v18551_v48  ;;  %7055 = vmatprep.subr.bf16.mxu1 %v20619_v52  ;;  %v6279_v48 = vpack.c.bf16 %v6277_v29, %v6277_v29 }
 0x8c3   :  { %14919 = vmatmul.mubr.msk.bf16.vlgmr.msra.gmra.mrb[120].mxu0 %vm726_vm0, %v6278_v28  ;;  %14920 = vmatmul.mubr.msk.bf16.vlgmr.msra.gmra.mrb[120].mxu1 %vm726_vm0, %v6278_v28 }
 0x8c4   :  { %7015 = vmatpush1.bf16.msra.mxu0 %v18559_v60  ;;  %7056 = vmatpush1.bf16.msra.mxu1 %v18561_v1  ;;  %v18699_v1 = vld [vmem:[#allocation9] ss:$16 sps:$4 sm:$0xff]   ;;  %v18701_v60 = vld [vmem:[#allocation9 + $0x8] ss:$16 sps:$4 sm:$0xff]  }
 0x8c5   :  { %7016 = vmatprep.subr.bf16.mxu0 %v18565_v20  ;;  %7057 = vmatprep.subr.bf16.mxu1 %v18567_v8  ;;  %v18695_v20 = vld [vmem:[#allocation9 + $0x4] ss:$16 sps:$4 sm:$0xff]   ;;  %v18697_v8 = vld [vmem:[#allocation9 + $0xc] ss:$16 sps:$4 sm:$0xff]  }
 0x8c6   :  { %7046 = vmatprep.mubr.bf16.mxu0 %v20445_v15  ;;  %7087 = vmatprep.mubr.bf16.mxu1 %v20445_v15 }
 0x8c8   :  { %7017 = vmatpush1.bf16.msra.mxu0 %v18573_v57  ;;  %7058 = vmatpush1.bf16.msra.mxu1 %v18575_v55  ;;  %v18707_v55 = vld [vmem:[#allocation9 + $0x24] ss:$16 sps:$4 sm:$0xff]   ;;  %v18709_v57 = vld [vmem:[#allocation9 + $0x2c] ss:$16 sps:$4 sm:$0xff]  }
 0x8c9   :  { %7402 = vmatprep.subr.bf16.mxu0 %v18695_v20  ;;  %7443 = vmatprep.subr.bf16.mxu1 %v18697_v8 }
 0x8cb   :  { %14929 = vmatmul.mubr.msk.bf16.vlgmr.msra.gmra.mrb[124].mxu0 %vm726_vm0, %v6279_v48  ;;  %14930 = vmatmul.mubr.msk.bf16.vlgmr.msra.gmra.mrb[124].mxu1 %vm726_vm0, %v6279_v48 }
 0x8cc   :  { %7434 = vmatprep.mubr.bf16.mxu0 %v20445_v15  ;;  %7475 = vmatprep.mubr.bf16.mxu1 %v20445_v15 }
 0x8cd   :  { %7403 = vmatpush1.bf16.msra.mxu0 %v18699_v1  ;;  %7444 = vmatpush1.bf16.msra.mxu1 %v18701_v60 }
 0x8ce   :  { %7404 = vmatprep.subr.bf16.mxu0 %v18707_v55  ;;  %7445 = vmatprep.subr.bf16.mxu1 %v18709_v57 }
 0x8d1   :  { %7405 = vmatpush1.bf16.msra.mxu0 %v18711_v12  ;;  %7446 = vmatpush1.bf16.msra.mxu1 %v18713_v61 }
 0x8d2   :  { %7406 = vmatprep.subr.bf16.mxu0 %v18719_v31  ;;  %7447 = vmatprep.subr.bf16.mxu1 %v18721_v44 }
 0x8d5   :  { %7407 = vmatpush1.bf16.msra.mxu0 %v18723_v43  ;;  %7448 = vmatpush1.bf16.msra.mxu1 %v18725_v26 }
 0x8d6   :  { %7408 = vmatprep.subr.bf16.mxu0 %v18731_v5  ;;  %7449 = vmatprep.subr.bf16.mxu1 %v18733_v63 }
 0x8d9   :  { %7409 = vmatpush1.bf16.msra.mxu0 %v18735_v14  ;;  %7450 = vmatpush1.bf16.msra.mxu1 %v18737_v36 }
 0x8da   :  { %7410 = vmatprep.subr.bf16.mxu0 %v18743_v50  ;;  %7451 = vmatprep.subr.bf16.mxu1 %v18745_v56 }
 0x8dd   :  { %7411 = vmatpush1.bf16.msra.mxu0 %v18747_v39  ;;  %7452 = vmatpush1.bf16.msra.mxu1 %v18749_v0 }
 0x8de   :  { %7412 = vmatprep.subr.bf16.mxu0 %v18755_v47  ;;  %7453 = vmatprep.subr.bf16.mxu1 %v18757_v30 }
 0x8e1   :  { %7413 = vmatpush1.bf16.msra.mxu0 %v18759_v45  ;;  %7454 = vmatpush1.bf16.msra.mxu1 %v18761_v24 }
 0x8e2   :  { %7414 = vmatprep.subr.bf16.mxu0 %v18767_v59  ;;  %7455 = vmatprep.subr.bf16.mxu1 %v18769_v21 }
 0x8e5   :  { %7415 = vmatpush1.bf16.msra.mxu0 %v18771_v42  ;;  %7456 = vmatpush1.bf16.msra.mxu1 %v18773_v34 }
 0x8e6   :  { %7416 = vmatprep.subr.bf16.mxu0 %v18777_v16  ;;  %7457 = vmatprep.subr.bf16.mxu1 %v18779_v53 }
 0x8e9   :  { %7417 = vmatpush1.bf16.msra.mxu0 %v18783_v13  ;;  %7458 = vmatpush1.bf16.msra.mxu1 %v18785_v10 }
 0x8ea   :  { %7644 = vmatprep.subr.bf16.mxu0 %v18789_v3  ;;  %7685 = vmatprep.subr.bf16.mxu1 %v18791_v17 }
 0x96e   :  { %v6556_v33 = vpop.f32.mrb[112].mxu0  ;;  %v6597_v18 = vpop.f32.mrb[112].mxu1 }
 0x96f   :  { %v6558_v32 = vpop.f32.mrb[113].mxu0  ;;  %v6599_v19 = vpop.f32.mrb[113].mxu1 }
 0x970   :  { %v6560_v11 = vpop.f32.mrb[114].mxu0  ;;  %v6601_v46 = vpop.f32.mrb[114].mxu1 }
 0x971   :  { %v6561_v62 = vpop.f32.mrb[115].mxu0  ;;  %v6602_v6 = vpop.f32.mrb[115].mxu1 }
 0x98e   :  { %v6798_v27 = vpop.f32.mrb[116].mxu0  ;;  %v6839_v40 = vpop.f32.mrb[116].mxu1 }
 0x98f   :  { %v6800_v58 = vpop.f32.mrb[117].mxu0  ;;  %v6841_v49 = vpop.f32.mrb[117].mxu1 }
 0x990   :  { %v6802_v54 = vpop.f32.mrb[118].mxu0  ;;  %v6843_v28 = vpop.f32.mrb[118].mxu1 }
 0x991   :  { %v6803_v38 = vpop.f32.mrb[119].mxu0  ;;  %v6844_v7 = vpop.f32.mrb[119].mxu1 }
 0x996   :  { %v6923_v52 = vpop.f32.mrb[120].mxu0  ;;  %v6964_v29 = vpop.f32.mrb[120].mxu1 }
 0x997   :  { %v6924_v48 = vadd.f32 %v6923_v52, %v6556_v33  ;;  %v6965_v17 = vadd.f32 %v6964_v29, %v6597_v18  ;;  %v6925_v3 = vpop.f32.mrb[121].mxu0  ;;  %v6966_v10 = vpop.f32.mrb[121].mxu1 }
 0x998   :  { %v6926_v13 = vadd.f32 %v6925_v3, %v6558_v32  ;;  %v6967_v53 = vadd.f32 %v6966_v10, %v6599_v19  ;;  %v6927_v11 = vpop.f32.mrb[122].mxu0  ;;  %v6968_v46 = vpop.f32.mrb[122].mxu1 }
 0x999   :  { %v7096_v62 = vadd.f32 %v6924_v48, %v17520_v22  ;;  %v6928_v6 = vpop.f32.mrb[123].mxu0  ;;  %v6969_v16 = vpop.f32.mrb[123].mxu1 }
 0x99a   :  { %v7097_v34 = vadd.f32 %v6926_v13, %v17522_v25  ;;  %v7099_v10 = vadd.f32 %v6967_v53, %v17530_v35 }
 0x99b   :  { %v14931_v54 = vmul.f32 -1.442695, %v7096_v62 }
 0x99c   :  { %v14933_v28 = vmul.f32 -1.442695, %v7097_v34  ;;  %v14935_v62 = vmul.f32 -1.442695, %v7099_v10 }
 0x99d   :  { %16851 = vpow2.f32 %v14931_v54 }
 0x99e   :  { %16853 = vpow2.f32 %v14933_v28  ;;  %v7048_v38 = vpop.f32.mrb[124].mxu0  ;;  %v7089_v7 = vpop.f32.mrb[124].mxu1 }
 0x99f   :  { %v7049_v33 = vadd.f32 %v7048_v38, %v6798_v27  ;;  %v7090_v18 = vadd.f32 %v7089_v7, %v6839_v40  ;;  %v7050_v52 = vpop.f32.mrb[125].mxu0  ;;  %v7091_v29 = vpop.f32.mrb[125].mxu1  ;;  %v7098_v27 = vadd.f32 %v6965_v17, %v17538_v51 }
 0x9a0   :  { %v7051_v3 = vadd.f32 %v7050_v52, %v6800_v58  ;;  %v7092_v32 = vadd.f32 %v7091_v29, %v6841_v49  ;;  %v7052_v19 = vpop.f32.mrb[126].mxu0  ;;  %v7093_v48 = vpop.f32.mrb[126].mxu1 }
 0x9a1   :  { %v7100_v16 = vadd.f32 %v7049_v33, %v17533_v37  ;;  %v7053_v11 = vpop.f32.mrb[127].mxu0  ;;  %v7094_v13 = vpop.f32.mrb[127].mxu1  ;;  %v7102_v38 = vadd.f32 %v7090_v18, %v17546_v9 }
 0x9a2   :  { %v7101_v34 = vadd.f32 %v7051_v3, %v17535_v41  ;;  %v7103_v58 = vadd.f32 %v7092_v32, %v17542_v2 }
 0x9a3   :  { %v14932_v46 = vmul.f32 -1.442695, %v7100_v16 }
 0x9a4   :  { %v14934_v6 = vmul.f32 -1.442695, %v7101_v34  ;;  %v14936_v28 = vmul.f32 -1.442695, %v7103_v58  ;;  %v18813_v58 = vld [vmem:[#allocation9 + $0x100] ss:$16 sps:$4 sm:$0xff]  }
 0x9a5   :  { %16855 = vpow2.f32 %v14932_v46 }
 0x9a6   :  { %16857 = vpow2.f32 %v14934_v6 }
 0x9a7   :  { %v16852_v40 = vpop.eup %16851  ;;  %16859 = vpow2.f32 %v14935_v62 }
 0x9a8   :  { %v16854_v54 = vpop.eup %16853  ;;  %v7110_v53 = vadd.f32 1.0, %v16852_v40  ;;  %16861 = vtanh.f32 %v7098_v27 }
 0x9a9   :  { %v7122_v49 = vadd.f32 1.0, %v16854_v54 }
 0x9aa   :  { %16863 = vrcp.f32 %v7110_v53 }
 0x9ab   :  { %16865 = vrcp.f32 %v7122_v49  ;;  %v18815_v49 = vld [vmem:[#allocation9 + $0x108] ss:$16 sps:$4 sm:$0xff]  }
 0x9ac   :  { %16867 = vpow2.f32 %v14936_v28 }
 0x9ad   :  { %16869 = vtanh.f32 %v7102_v38  ;;  %v18817_v38 = vld [vmem:[#allocation9 + $0x124] ss:$16 sps:$4 sm:$0xff]  }
 0x9af   :  { %v16856_v7 = vpop.eup %16855 }
 0x9b0   :  { %v16858_v33 = vpop.eup %16857  ;;  %v7111_v52 = vadd.f32 1.0, %v16856_v7  ;;  %v18819_v7 = vld [vmem:[#allocation9 + $0x12c] ss:$16 sps:$4 sm:$0xff]  }
 0x9b1   :  { %v7123_v17 = vadd.f32 1.0, %v16858_v33  ;;  %v16860_v29 = vpop.eup %16859  ;;  %v18825_v33 = vld [vmem:[#allocation9 + $0x128] ss:$16 sps:$4 sm:$0xff]  }
 0x9b2   :  { %16871 = vrcp.f32 %v7111_v52  ;;  %v16862_v10 = vpop.eup %16861  ;;  %v7136_v48 = vadd.f32 1.0, %v16860_v29  ;;  %v18831_v29 = vld [vmem:[#allocation9 + $0x14c] ss:$16 sps:$4 sm:$0xff]  }
 0x9b3   :  { %16873 = vrcp.f32 %v7123_v17  ;;  %v18829_v17 = vld [vmem:[#allocation9 + $0x144] ss:$16 sps:$4 sm:$0xff]  }
 0x9b4   :  { %v16864_v3 = vpop.eup %16863  ;;  %16875 = vrcp.f32 %v7136_v48  ;;  %v18843_v48 = vld [vmem:[#allocation9 + $0x164] ss:$16 sps:$4 sm:$0xff]  }
 0x9b5   :  { %v16866_v19 = vpop.eup %16865  ;;  %v7144_v32 = vmul.f32 %v16864_v3, %v16862_v10 }
 0x9b6   :  { %v7142_v16 = vmul.f32 %v16866_v19, %v18630_v4  ;;  %v16868_v18 = vpop.eup %16867  ;;  %v18837_v19 = vld [vmem:[#allocation9 + $0x140] ss:$16 sps:$4 sm:$0xff]  }
 0x9b7   :  { %v16870_v13 = vpop.eup %16869  ;;  %v7137_v6 = vadd.f32 1.0, %v16868_v18  ;;  %v18849_v18 = vld [vmem:[#allocation9 + $0x160] ss:$16 sps:$4 sm:$0xff]  }
 0x9b8   :  { %v18806_v11 = vadd.f32 %v7144_v32, %v7142_v16  ;;  %v18839_v32 = vld [vmem:[#allocation9 + $0x148] ss:$16 sps:$4 sm:$0xff]   ;;  %v18845_v16 = vld [vmem:[#allocation9 + $0x16c] ss:$16 sps:$4 sm:$0xff]  }
 0x9ba   :  { %16877 = vtanh.f32 %v18806_v11 }
 0x9bb   :  { %16879 = vrcp.f32 %v7137_v6  ;;  %v18863_v6 = vld [vmem:[#allocation9 + $0x188] ss:$16 sps:$4 sm:$0xff]  }
 0x9bc   :  { %v16872_v34 = vpop.eup %16871  ;;  %20629 = vst [vmem:[#allocation23_spill] sm:$0xff] %v18863_v6 }
 0x9bd   :  { %v16874_v46 = vpop.eup %16873  ;;  %v7145_v62 = vmul.f32 %v16872_v34, %v16870_v13  ;;  %v18851_v13 = vld [vmem:[#allocation9 + $0x168] ss:$16 sps:$4 sm:$0xff]   ;;  %v18855_v34 = vld [vmem:[#allocation9 + $0x184] ss:$16 sps:$4 sm:$0xff]  }
 0x9be   :  { %v7143_v27 = vmul.f32 %v16874_v46, %v18634_v23  ;;  %v16876_v54 = vpop.eup %16875  ;;  %v18823_v23 = vld [vmem:[#allocation9 + $0x120] ss:$16 sps:$4 sm:$0xff]   ;;  %v18857_v46 = vld [vmem:[#allocation9 + $0x18c] ss:$16 sps:$4 sm:$0xff]  }
 0x9bf   :  { %20627 = vst [vmem:[#allocation21_spill] sm:$0xff] %v18857_v46 }
 0x9c0   :  { %v18810_v40 = vadd.f32 %v7145_v62, %v7143_v27  ;;  %v18861_v62 = vld [vmem:[#allocation9 + $0x180] ss:$16 sps:$4 sm:$0xff]   ;;  %v18867_v27 = vld [vmem:[#allocation9 + $0x1a4] ss:$16 sps:$4 sm:$0xff]  }
 0x9c1   :  { %20628 = vst [vmem:[#allocation22_spill] sm:$0xff] %v18861_v62  ;;  %20630 = vst [vmem:[#allocation24_spill] sm:$0xff] %v18867_v27 }
 0x9c2   :  { %16881 = vtanh.f32 %v18810_v40 }
 0x9c4   :  { %v16878_v4 = vpop.eup %16877 }
 0x9c5   :  { %v7150_v53 = vmul.f32 %v16878_v4, %v16876_v54  ;;  %v16880_v52 = vpop.eup %16879  ;;  %v18869_v54 = vld [vmem:[#allocation9 + $0x1ac] ss:$16 sps:$4 sm:$0xff]   ;;  %v18873_v4 = vld [vmem:[#allocation9 + $0x1a0] ss:$16 sps:$4 sm:$0xff]  }
 0x9c6   :  { %20631 = vst [vmem:[#allocation25_spill] sm:$0xff] %v18869_v54  ;;  %20632 = vst [vmem:[#allocation26_spill] sm:$0xff] %v18873_v4 }
 0x9c7   :  { %7153 = vst [vmem:[#allocation10 + $0x70] sm:$0xff] %v7150_v53  ;;  %v7176_v28 = vpack.c.bf16 %v7150_v53, %v7150_v53  ;;  %v18875_v53 = vld [vmem:[#allocation9 + $0x1a8] ss:$16 sps:$4 sm:$0xff]  }
 0x9c8   :  { %20633 = vst [vmem:[#allocation27_spill] sm:$0xff] %v18875_v53 }
 0x9c9   :  { %7435 = vmatmul.mubr.bf16.vlgmr.msra.gmra.mrb[128].mxu0 %v7176_v28  ;;  %7476 = vmatmul.mubr.bf16.vlgmr.msra.gmra.mrb[128].mxu1 %v7176_v28  ;;  %v18879_v28 = vld [vmem:[#allocation9 + $0x1c4] ss:$16 sps:$4 sm:$0xff]  }
 0x9ca   :  { %7645 = vmatpush1.bf16.msra.mxu0 %v18813_v58  ;;  %7686 = vmatpush1.bf16.msra.mxu1 %v18815_v49  ;;  %20634 = vst [vmem:[#allocation28_spill] sm:$0xff] %v18879_v28 }
 0x9cb   :  { %7646 = vmatprep.subr.bf16.mxu0 %v18817_v38  ;;  %7687 = vmatprep.subr.bf16.mxu1 %v18819_v7 }
 0x9cc   :  { %v16882_v10 = vpop.eup %16881  ;;  %7676 = vmatprep.mubr.bf16.mxu0 %v20445_v15  ;;  %7717 = vmatprep.mubr.bf16.mxu1 %v20445_v15 }
 0x9cd   :  { %v7151_v3 = vmul.f32 %v16882_v10, %v16880_v52  ;;  %v18881_v52 = vld [vmem:[#allocation9 + $0x1cc] ss:$16 sps:$4 sm:$0xff]   ;;  %v18885_v10 = vld [vmem:[#allocation9 + $0x1c0] ss:$16 sps:$4 sm:$0xff]  }
 0x9ce   :  { %7647 = vmatpush1.bf16.msra.mxu0 %v18823_v23  ;;  %7688 = vmatpush1.bf16.msra.mxu1 %v18825_v33  ;;  %20635 = vst [vmem:[#allocation29_spill] sm:$0xff] %v18881_v52  ;;  %20636 = vst [vmem:[#allocation30_spill] sm:$0xff] %v18885_v10 }
 0x9cf   :  { %7648 = vmatprep.subr.bf16.mxu0 %v18829_v17  ;;  %7689 = vmatprep.subr.bf16.mxu1 %v18831_v29  ;;  %7154 = vst [vmem:[#allocation10 + $0x78] sm:$0xff] %v7151_v3 }
 0x9d2   :  { %7649 = vmatpush1.bf16.msra.mxu0 %v18837_v19  ;;  %7690 = vmatpush1.bf16.msra.mxu1 %v18839_v32 }
 0x9d3   :  { %7650 = vmatprep.subr.bf16.mxu0 %v18843_v48  ;;  %7691 = vmatprep.subr.bf16.mxu1 %v18845_v16 }
 0x9d6   :  { %7651 = vmatpush1.bf16.msra.mxu0 %v18849_v18  ;;  %7692 = vmatpush1.bf16.msra.mxu1 %v18851_v13 }
 0x9d7   :  { %7652 = vmatprep.subr.bf16.mxu0 %v18855_v34  ;;  %7693 = vmatprep.subr.bf16.mxu1 %v18857_v46  ;;  %v7156_v46 = vld [vmem:[#allocation4 + $0x80] sm:$0xff] }
 0x9da   :  { %7653 = vmatpush1.bf16.msra.mxu0 %v18861_v62  ;;  %7694 = vmatpush1.bf16.msra.mxu1 %v18863_v6  ;;  %v18887_v62 = vld [vmem:[#allocation9 + $0x1c8] ss:$16 sps:$4 sm:$0xff]   ;;  %v18891_v6 = vld [vmem:[#allocation9 + $0x1e4] ss:$16 sps:$4 sm:$0xff]  }
 0x9db   :  { %7654 = vmatprep.subr.bf16.mxu0 %v18867_v27  ;;  %7695 = vmatprep.subr.bf16.mxu1 %v18869_v54  ;;  %20637 = vst [vmem:[#allocation31_spill] sm:$0xff] %v18887_v62  ;;  %20638 = vst [vmem:[#allocation32_spill] sm:$0xff] %v18891_v6  ;;  %v18893_v27 = vld [vmem:[#allocation9 + $0x1ec] ss:$16 sps:$4 sm:$0xff]   ;;  %v18897_v54 = vld [vmem:[#allocation9 + $0x1e0] ss:$16 sps:$4 sm:$0xff]  }
 0x9dc   :  { %20639 = vst [vmem:[#allocation33_spill] sm:$0xff] %v18893_v27  ;;  %20640 = vst [vmem:[#allocation34_spill] sm:$0xff] %v18897_v54 }
 0x9de   :  { %7655 = vmatpush1.bf16.msra.mxu0 %v18873_v4  ;;  %7696 = vmatpush1.bf16.msra.mxu1 %v18875_v53  ;;  %v18899_v4 = vld [vmem:[#allocation9 + $0x1e8] ss:$16 sps:$4 sm:$0xff]   ;;  %v18903_v53 = vld [vmem:[#allocation7 + $0x4] ss:$16 sps:$4 sm:$0xff]  }
 0x9df   :  { %7656 = vmatprep.subr.bf16.mxu0 %v18879_v28  ;;  %7697 = vmatprep.subr.bf16.mxu1 %v18881_v52  ;;  %20641 = vst [vmem:[#allocation35_spill] sm:$0xff] %v18899_v4  ;;  %v18905_v28 = vld [vmem:[#allocation7 + $0xc] ss:$16 sps:$4 sm:$0xff]   ;;  %v18909_v52 = vld [vmem:[#allocation7] ss:$16 sps:$4 sm:$0xff]  }
 0x9e0   :  { %20642 = vst [vmem:[#allocation36_spill] sm:$0xff] %v18905_v28  ;;  %20643 = vst [vmem:[#allocation37_spill] sm:$0xff] %v18909_v52 }
 0x9e2   :  { %7657 = vmatpush1.bf16.msra.mxu0 %v18885_v10  ;;  %7698 = vmatpush1.bf16.msra.mxu1 %v18887_v62  ;;  %v18911_v10 = vld [vmem:[#allocation7 + $0x8] ss:$16 sps:$4 sm:$0xff]   ;;  %v7177_v62 = vpack.c.bf16 %v7151_v3, %v7151_v3  ;;  %v18927_v3 = vld [vmem:[#allocation7 + $0x44] ss:$16 sps:$4 sm:$0xff]  }
 0x9e3   :  { %7658 = vmatprep.subr.bf16.mxu0 %v18891_v6  ;;  %7699 = vmatprep.subr.bf16.mxu1 %v18893_v27  ;;  %20644 = vst [vmem:[#allocation38_spill] sm:$0xff] %v18911_v10  ;;  %v18915_v6 = vld [vmem:[#allocation7 + $0x24] ss:$16 sps:$4 sm:$0xff]   ;;  %v18917_v27 = vld [vmem:[#allocation7 + $0x2c] ss:$16 sps:$4 sm:$0xff]  }
 0x9e4   :  { %20645 = vst [vmem:[#allocation39_spill] sm:$0xff] %v18915_v6  ;;  %20646 = vst [vmem:[#allocation40_spill] sm:$0xff] %v18917_v27 }
 0x9e6   :  { %7659 = vmatpush1.bf16.msra.mxu0 %v18897_v54  ;;  %7700 = vmatpush1.bf16.msra.mxu1 %v18899_v4  ;;  %v18921_v4 = vld [vmem:[#allocation7 + $0x20] ss:$16 sps:$4 sm:$0xff]   ;;  %v18923_v54 = vld [vmem:[#allocation7 + $0x28] ss:$16 sps:$4 sm:$0xff]  }
 0x9e7   :  { %7769 = vmatprep.subr.bf16.mxu0 %v18903_v53  ;;  %7810 = vmatprep.subr.bf16.mxu1 %v18905_v28  ;;  %20647 = vst [vmem:[#allocation41_spill] sm:$0xff] %v18921_v4  ;;  %20648 = vst [vmem:[#allocation42_spill] sm:$0xff] %v18923_v54  ;;  %v18929_v28 = vld [vmem:[#allocation7 + $0x4c] ss:$16 sps:$4 sm:$0xff]  }
 0x9e8   :  { %20649 = vst [vmem:[#allocation43_spill] sm:$0xff] %v18929_v28 }
 0x9e9   :  { %7677 = vmatmul.mubr.bf16.vlgmr.msra.gmra.mrb[132].mxu0 %v7177_v62  ;;  %7718 = vmatmul.mubr.bf16.vlgmr.msra.gmra.mrb[132].mxu1 %v7177_v62  ;;  %v7158_v62 = vpack.c.bf16 %v7156_v46, %v7156_v46  ;;  %v18949_v46 = vld [vmem:[#allocation7 + $0x60] ss:$16 sps:$4 sm:$0xff]  }
 0x9ea   :  { %7770 = vmatpush1.bf16.msra.mxu0 %v18909_v52  ;;  %7811 = vmatpush1.bf16.msra.mxu1 %v18911_v10  ;;  %v18935_v10 = vld [vmem:[#allocation7 + $0x40] ss:$16 sps:$4 sm:$0xff]   ;;  %v18937_v52 = vld [vmem:[#allocation7 + $0x48] ss:$16 sps:$4 sm:$0xff]  }
 0x9eb   :  { %7771 = vmatprep.subr.bf16.mxu0 %v18915_v6  ;;  %7812 = vmatprep.subr.bf16.mxu1 %v18917_v27  ;;  %v18941_v27 = vld [vmem:[#allocation7 + $0x64] ss:$16 sps:$4 sm:$0xff]   ;;  %v18943_v6 = vld [vmem:[#allocation7 + $0x6c] ss:$16 sps:$4 sm:$0xff]  }
 0x9ec   :  { %7801 = vmatprep.mubr.bf16.mxu0 %v20445_v15  ;;  %7842 = vmatprep.mubr.bf16.mxu1 %v20445_v15 }
 0x9ee   :  { %7772 = vmatpush1.bf16.msra.mxu0 %v18921_v4  ;;  %7813 = vmatpush1.bf16.msra.mxu1 %v18923_v54  ;;  %v18951_v54 = vld [vmem:[#allocation7 + $0x68] ss:$16 sps:$4 sm:$0xff]  }
 0x9ef   :  { %7894 = vmatprep.subr.bf16.mxu0 %v18927_v3  ;;  %7935 = vmatprep.subr.bf16.mxu1 %v18929_v28  ;;  %v7157_v4 = vld [vmem:[#allocation4 + $0x88] sm:$0xff] }
 0x9f0   :  { %v7159_v28 = vpack.c.bf16 %v7157_v4, %v7157_v4 }
 0x9f1   :  { %15009 = vmatmul.mubr.msk.bf16.vlgmr.msra.gmra.mrb[136].mxu0 %vm726_vm0, %v7158_v62  ;;  %15010 = vmatmul.mubr.msk.bf16.vlgmr.msra.gmra.mrb[136].mxu1 %vm726_vm0, %v7158_v62 }
 0x9f2   :  { %7895 = vmatpush1.bf16.msra.mxu0 %v18935_v10  ;;  %7936 = vmatpush1.bf16.msra.mxu1 %v18937_v52 }
 0x9f3   :  { %7896 = vmatprep.subr.bf16.mxu0 %v18941_v27  ;;  %7937 = vmatprep.subr.bf16.mxu1 %v18943_v6 }
 0x9f4   :  { %7926 = vmatprep.mubr.bf16.mxu0 %v20445_v15  ;;  %7967 = vmatprep.mubr.bf16.mxu1 %v20445_v15 }
 0x9f6   :  { %7897 = vmatpush1.bf16.msra.mxu0 %v18949_v46  ;;  %7938 = vmatpush1.bf16.msra.mxu1 %v18951_v54 }
 0x9f7   :  { %8282 = vmatprep.subr.bf16.mxu0 %v18695_v20  ;;  %8323 = vmatprep.subr.bf16.mxu1 %v18697_v8  ;;  %v20650_v20 = vld [vmem:[#allocation14_spill] sm:$0xff]  ;;  %v20651_v8 = vld [vmem:[#allocation15_spill] sm:$0xff] }
 0x9f9   :  { %15019 = vmatmul.mubr.msk.bf16.vlgmr.msra.gmra.mrb[140].mxu0 %vm726_vm0, %v7159_v28  ;;  %15020 = vmatmul.mubr.msk.bf16.vlgmr.msra.gmra.mrb[140].mxu1 %vm726_vm0, %v7159_v28 }
 0x9fa   :  { %8283 = vmatpush1.bf16.msra.mxu0 %v18699_v1  ;;  %8324 = vmatpush1.bf16.msra.mxu1 %v18701_v60  ;;  %v20652_v1 = vld [vmem:[#allocation16_spill] sm:$0xff]  ;;  %v20653_v60 = vld [vmem:[#allocation17_spill] sm:$0xff] }
 0x9fb   :  { %8284 = vmatprep.subr.bf16.mxu0 %v18707_v55  ;;  %8325 = vmatprep.subr.bf16.mxu1 %v18709_v57  ;;  %v20654_v55 = vld [vmem:[#allocation18_spill] sm:$0xff]  ;;  %v20655_v57 = vld [vmem:[#allocation19_spill] sm:$0xff] }
 0x9fc   :  { %8314 = vmatprep.mubr.bf16.mxu0 %v20445_v15  ;;  %8355 = vmatprep.mubr.bf16.mxu1 %v20445_v15 }
 0x9fe   :  { %8285 = vmatpush1.bf16.msra.mxu0 %v18711_v12  ;;  %8326 = vmatpush1.bf16.msra.mxu1 %v18713_v61  ;;  %v20656_v12 = vld [vmem:[#allocation20_spill] sm:$0xff] }
 0x9ff   :  { %8286 = vmatprep.subr.bf16.mxu0 %v18719_v31  ;;  %8327 = vmatprep.subr.bf16.mxu1 %v18721_v44 }
 0xa02   :  { %8287 = vmatpush1.bf16.msra.mxu0 %v18723_v43  ;;  %8328 = vmatpush1.bf16.msra.mxu1 %v18725_v26 }
 0xa03   :  { %8288 = vmatprep.subr.bf16.mxu0 %v18731_v5  ;;  %8329 = vmatprep.subr.bf16.mxu1 %v18733_v63 }
 0xa06   :  { %8289 = vmatpush1.bf16.msra.mxu0 %v18735_v14  ;;  %8330 = vmatpush1.bf16.msra.mxu1 %v18737_v36 }
 0xa07   :  { %8290 = vmatprep.subr.bf16.mxu0 %v18743_v50  ;;  %8331 = vmatprep.subr.bf16.mxu1 %v18745_v56 }
 0xa0a   :  { %8291 = vmatpush1.bf16.msra.mxu0 %v18747_v39  ;;  %8332 = vmatpush1.bf16.msra.mxu1 %v18749_v0 }
 0xa0b   :  { %8292 = vmatprep.subr.bf16.mxu0 %v18755_v47  ;;  %8333 = vmatprep.subr.bf16.mxu1 %v18757_v30 }
 0xa0e   :  { %8293 = vmatpush1.bf16.msra.mxu0 %v18759_v45  ;;  %8334 = vmatpush1.bf16.msra.mxu1 %v18761_v24 }
 0xa0f   :  { %8294 = vmatprep.subr.bf16.mxu0 %v18767_v59  ;;  %8335 = vmatprep.subr.bf16.mxu1 %v18769_v21 }
 0xa12   :  { %8295 = vmatpush1.bf16.msra.mxu0 %v18771_v42  ;;  %8336 = vmatpush1.bf16.msra.mxu1 %v20650_v20 }
 0xa13   :  { %8296 = vmatprep.subr.bf16.mxu0 %v20651_v8  ;;  %8337 = vmatprep.subr.bf16.mxu1 %v20652_v1 }
 0xa16   :  { %8297 = vmatpush1.bf16.msra.mxu0 %v20653_v60  ;;  %8338 = vmatpush1.bf16.msra.mxu1 %v20654_v55 }
 0xa17   :  { %8524 = vmatprep.subr.bf16.mxu0 %v20655_v57  ;;  %8565 = vmatprep.subr.bf16.mxu1 %v20656_v12 }
 0xa9c   :  { %v7436_v61 = vpop.f32.mrb[128].mxu0  ;;  %v7477_v31 = vpop.f32.mrb[128].mxu1 }
 0xa9d   :  { %v7438_v44 = vpop.f32.mrb[129].mxu0  ;;  %v7479_v43 = vpop.f32.mrb[129].mxu1 }
 0xa9e   :  { %v7440_v26 = vpop.f32.mrb[130].mxu0  ;;  %v7481_v5 = vpop.f32.mrb[130].mxu1 }
 0xa9f   :  { %v7441_v63 = vpop.f32.mrb[131].mxu0  ;;  %v7482_v14 = vpop.f32.mrb[131].mxu1 }
 0xabc   :  { %v7678_v36 = vpop.f32.mrb[132].mxu0  ;;  %v7719_v50 = vpop.f32.mrb[132].mxu1 }
 0xabd   :  { %v7680_v56 = vpop.f32.mrb[133].mxu0  ;;  %v7721_v39 = vpop.f32.mrb[133].mxu1 }
 0xabe   :  { %v7682_v0 = vpop.f32.mrb[134].mxu0  ;;  %v7723_v47 = vpop.f32.mrb[134].mxu1 }
 0xabf   :  { %v7683_v30 = vpop.f32.mrb[135].mxu0  ;;  %v7724_v45 = vpop.f32.mrb[135].mxu1 }
 0xac4   :  { %v7803_v24 = vpop.f32.mrb[136].mxu0  ;;  %v7844_v59 = vpop.f32.mrb[136].mxu1 }
 0xac5   :  { %v7804_v21 = vadd.f32 %v7803_v24, %v7436_v61  ;;  %v7845_v42 = vadd.f32 %v7844_v59, %v7477_v31  ;;  %v7805_v4 = vpop.f32.mrb[137].mxu0  ;;  %v7846_v28 = vpop.f32.mrb[137].mxu1 }
 0xac6   :  { %v7806_v62 = vadd.f32 %v7805_v4, %v7438_v44  ;;  %v7847_v20 = vadd.f32 %v7846_v28, %v7479_v43  ;;  %v7807_v8 = vpop.f32.mrb[138].mxu0  ;;  %v7848_v1 = vpop.f32.mrb[138].mxu1 }
 0xac7   :  { %v7976_v60 = vadd.f32 %v7804_v21, %v17520_v22  ;;  %v7808_v55 = vpop.f32.mrb[139].mxu0  ;;  %v7849_v57 = vpop.f32.mrb[139].mxu1 }
 0xac8   :  { %v7977_v12 = vadd.f32 %v7806_v62, %v17522_v25  ;;  %v7979_v44 = vadd.f32 %v7847_v20, %v17530_v35 }
 0xac9   :  { %v15021_v26 = vmul.f32 -1.442695, %v7976_v60 }
 0xaca   :  { %v15023_v5 = vmul.f32 -1.442695, %v7977_v12  ;;  %v15025_v8 = vmul.f32 -1.442695, %v7979_v44 }
 0xacb   :  { %16883 = vpow2.f32 %v15021_v26 }
 0xacc   :  { %16885 = vpow2.f32 %v15023_v5  ;;  %v7928_v63 = vpop.f32.mrb[140].mxu0  ;;  %v7969_v14 = vpop.f32.mrb[140].mxu1 }
 0xacd   :  { %v7929_v61 = vadd.f32 %v7928_v63, %v7678_v36  ;;  %v7970_v31 = vadd.f32 %v7969_v14, %v7719_v50  ;;  %v7930_v0 = vpop.f32.mrb[141].mxu0  ;;  %v7971_v47 = vpop.f32.mrb[141].mxu1  ;;  %v7978_v36 = vadd.f32 %v7845_v42, %v17538_v51 }
 0xace   :  { %v7931_v43 = vadd.f32 %v7930_v0, %v7680_v56  ;;  %v7972_v30 = vadd.f32 %v7971_v47, %v7721_v39  ;;  %v7932_v45 = vpop.f32.mrb[142].mxu0  ;;  %v7973_v24 = vpop.f32.mrb[142].mxu1 }
 0xacf   :  { %v7980_v59 = vadd.f32 %v7929_v61, %v17533_v37  ;;  %v7933_v21 = vpop.f32.mrb[143].mxu0  ;;  %v7974_v4 = vpop.f32.mrb[143].mxu1  ;;  %v7982_v57 = vadd.f32 %v7970_v31, %v17546_v9 }
 0xad0   :  { %v7981_v28 = vadd.f32 %v7931_v43, %v17535_v41  ;;  %v7983_v56 = vadd.f32 %v7972_v30, %v17542_v2 }
 0xad1   :  { %v15022_v62 = vmul.f32 -1.442695, %v7980_v59 }
 0xad2   :  { %v15024_v1 = vmul.f32 -1.442695, %v7981_v28  ;;  %v15026_v55 = vmul.f32 -1.442695, %v7983_v56  ;;  %v20672_v56 = vld [vmem:[#allocation36_spill] sm:$0xff] }
 0xad3   :  { %16887 = vpow2.f32 %v15022_v62 }
 0xad4   :  { %16889 = vpow2.f32 %v15024_v1 }
 0xad5   :  { %v16884_v50 = vpop.eup %16883  ;;  %16891 = vpow2.f32 %v15025_v8 }
 0xad6   :  { %v16886_v60 = vpop.eup %16885  ;;  %v7990_v20 = vadd.f32 1.0, %v16884_v50  ;;  %16893 = vtanh.f32 %v7978_v36 }
 0xad7   :  { %v8002_v39 = vadd.f32 1.0, %v16886_v60 }
 0xad8   :  { %16895 = vrcp.f32 %v7990_v20 }
 0xad9   :  { %16897 = vrcp.f32 %v8002_v39  ;;  %v20673_v39 = vld [vmem:[#allocation37_spill] sm:$0xff] }
 0xada   :  { %16899 = vpow2.f32 %v15026_v55  ;;  %v20674_v55 = vld [vmem:[#allocation38_spill] sm:$0xff] }
 0xadb   :  { %16901 = vtanh.f32 %v7982_v57  ;;  %v8036_v57 = vld [vmem:[#allocation4 + $0x90] sm:$0xff] }
 0xadd   :  { %v16888_v12 = vpop.eup %16887 }
 0xade   :  { %v16890_v26 = vpop.eup %16889  ;;  %v7991_v5 = vadd.f32 1.0, %v16888_v12  ;;  %v20675_v12 = vld [vmem:[#allocation39_spill] sm:$0xff] }
 0xadf   :  { %v8003_v42 = vadd.f32 1.0, %v16890_v26  ;;  %v16892_v63 = vpop.eup %16891  ;;  %v20676_v26 = vld [vmem:[#allocation40_spill] sm:$0xff] }
 0xae0   :  { %16903 = vrcp.f32 %v7991_v5  ;;  %v16894_v14 = vpop.eup %16893  ;;  %v8016_v44 = vadd.f32 1.0, %v16892_v63  ;;  %v8038_v5 = vpack.c.bf16 %v8036_v57, %v8036_v57  ;;  %v20679_v63 = vld [vmem:[#allocation43_spill] sm:$0xff] }
 0xae1   :  { %16905 = vrcp.f32 %v8003_v42  ;;  %v20677_v42 = vld [vmem:[#allocation41_spill] sm:$0xff] }
 0xae2   :  { %v16896_v61 = vpop.eup %16895  ;;  %16907 = vrcp.f32 %v8016_v44  ;;  %v19097_v44 = vld [vmem:[#allocation9 + $0x4c] ss:$16 sps:$4 sm:$0xff]  }
 0xae3   :  { %v16898_v0 = vpop.eup %16897  ;;  %v8024_v47 = vmul.f32 %v16896_v61, %v16894_v14  ;;  %v8037_v14 = vld [vmem:[#allocation4 + $0x98] sm:$0xff]  ;;  %v19087_v61 = vld [vmem:[#allocation9 + $0x20] ss:$16 sps:$4 sm:$0xff]  }
 0xae4   :  { %v8022_v43 = vmul.f32 %v16898_v0, %v18806_v11  ;;  %v16900_v31 = vpop.eup %16899  ;;  %v19089_v0 = vld [vmem:[#allocation9 + $0x28] ss:$16 sps:$4 sm:$0xff]  }
 0xae5   :  { %v16902_v45 = vpop.eup %16901  ;;  %v8017_v4 = vadd.f32 1.0, %v16900_v31  ;;  %v19101_v31 = vld [vmem:[#allocation9 + $0x48] ss:$16 sps:$4 sm:$0xff]  }
 0xae6   :  { %v19006_v30 = vadd.f32 %v8024_v47, %v8022_v43  ;;  %v19095_v47 = vld [vmem:[#allocation9 + $0x44] ss:$16 sps:$4 sm:$0xff]   ;;  %v19099_v43 = vld [vmem:[#allocation9 + $0x40] ss:$16 sps:$4 sm:$0xff]  }
 0xae8   :  { %16909 = vtanh.f32 %v19006_v30 }
 0xae9   :  { %16911 = vrcp.f32 %v8017_v4  ;;  %v19119_v4 = vld [vmem:[#allocation9 + $0x84] ss:$16 sps:$4 sm:$0xff]  }
 0xaea   :  { %v16904_v24 = vpop.eup %16903 }
 0xaeb   :  { %v16906_v59 = vpop.eup %16905  ;;  %v8025_v21 = vmul.f32 %v16904_v24, %v16902_v45  ;;  %v19107_v45 = vld [vmem:[#allocation9 + $0x64] ss:$16 sps:$4 sm:$0xff]   ;;  %v19109_v24 = vld [vmem:[#allocation9 + $0x6c] ss:$16 sps:$4 sm:$0xff]  }
 0xaec   :  { %v8023_v28 = vmul.f32 %v16906_v59, %v18810_v40  ;;  %v16908_v8 = vpop.eup %16907  ;;  %v19111_v59 = vld [vmem:[#allocation9 + $0x60] ss:$16 sps:$4 sm:$0xff]  }
 0xaee   :  { %v19010_v62 = vadd.f32 %v8025_v21, %v8023_v28  ;;  %v19113_v21 = vld [vmem:[#allocation9 + $0x68] ss:$16 sps:$4 sm:$0xff]   ;;  %v19121_v28 = vld [vmem:[#allocation9 + $0x8c] ss:$16 sps:$4 sm:$0xff]  }
 0xaf0   :  { %16913 = vtanh.f32 %v19010_v62 }
 0xaf2   :  { %v16910_v11 = vpop.eup %16909 }
 0xaf3   :  { %v8030_v1 = vmul.f32 %v16910_v11, %v16908_v8  ;;  %v16912_v50 = vpop.eup %16911  ;;  %v19123_v8 = vld [vmem:[#allocation9 + $0x80] ss:$16 sps:$4 sm:$0xff]   ;;  %v19125_v11 = vld [vmem:[#allocation9 + $0x88] ss:$16 sps:$4 sm:$0xff]  }
 0xaf5   :  { %8033 = vst [vmem:[#allocation10 + $0x80] sm:$0xff] %v8030_v1  ;;  %v8056_v36 = vpack.c.bf16 %v8030_v1, %v8030_v1  ;;  %v19131_v1 = vld [vmem:[#allocation9 + $0xa4] ss:$16 sps:$4 sm:$0xff]  }
 0xaf7   :  { %8315 = vmatmul.mubr.bf16.vlgmr.msra.gmra.mrb[144].mxu0 %v8056_v36  ;;  %8356 = vmatmul.mubr.bf16.vlgmr.msra.gmra.mrb[144].mxu1 %v8056_v36  ;;  %v19133_v36 = vld [vmem:[#allocation9 + $0xac] ss:$16 sps:$4 sm:$0xff]  }
 0xaf8   :  { %8525 = vmatpush1.bf16.msra.mxu0 %v18813_v58  ;;  %8566 = vmatpush1.bf16.msra.mxu1 %v18815_v49  ;;  %v20657_v58 = vld [vmem:[#allocation21_spill] sm:$0xff]  ;;  %v20658_v49 = vld [vmem:[#allocation22_spill] sm:$0xff] }
 0xaf9   :  { %8526 = vmatprep.subr.bf16.mxu0 %v18817_v38  ;;  %8567 = vmatprep.subr.bf16.mxu1 %v18819_v7  ;;  %v20659_v38 = vld [vmem:[#allocation23_spill] sm:$0xff]  ;;  %v20660_v7 = vld [vmem:[#allocation24_spill] sm:$0xff] }
 0xafa   :  { %v16914_v40 = vpop.eup %16913  ;;  %8556 = vmatprep.mubr.bf16.mxu0 %v20445_v15  ;;  %8597 = vmatprep.mubr.bf16.mxu1 %v20445_v15 }
 0xafb   :  { %v8031_v60 = vmul.f32 %v16914_v40, %v16912_v50  ;;  %v19135_v50 = vld [vmem:[#allocation9 + $0xa0] ss:$16 sps:$4 sm:$0xff]   ;;  %v19137_v40 = vld [vmem:[#allocation9 + $0xa8] ss:$16 sps:$4 sm:$0xff]  }
 0xafc   :  { %8527 = vmatpush1.bf16.msra.mxu0 %v18823_v23  ;;  %8568 = vmatpush1.bf16.msra.mxu1 %v18825_v33  ;;  %v20661_v23 = vld [vmem:[#allocation25_spill] sm:$0xff]  ;;  %v20662_v33 = vld [vmem:[#allocation26_spill] sm:$0xff] }
 0xafd   :  { %8528 = vmatprep.subr.bf16.mxu0 %v18829_v17  ;;  %8569 = vmatprep.subr.bf16.mxu1 %v18831_v29  ;;  %8034 = vst [vmem:[#allocation10 + $0x88] sm:$0xff] %v8031_v60  ;;  %v20663_v17 = vld [vmem:[#allocation27_spill] sm:$0xff]  ;;  %v20664_v29 = vld [vmem:[#allocation28_spill] sm:$0xff]  ;;  %v8057_v20 = vpack.c.bf16 %v8031_v60, %v8031_v60 }
 0xafe   :  { %v19143_v60 = vld [vmem:[#allocation9 + $0xc4] ss:$16 sps:$4 sm:$0xff]  }
 0xb00   :  { %8529 = vmatpush1.bf16.msra.mxu0 %v18837_v19  ;;  %8570 = vmatpush1.bf16.msra.mxu1 %v18839_v32  ;;  %v20665_v19 = vld [vmem:[#allocation29_spill] sm:$0xff]  ;;  %v20666_v32 = vld [vmem:[#allocation30_spill] sm:$0xff] }
 0xb01   :  { %8530 = vmatprep.subr.bf16.mxu0 %v18843_v48  ;;  %8571 = vmatprep.subr.bf16.mxu1 %v18845_v16  ;;  %v20667_v48 = vld [vmem:[#allocation31_spill] sm:$0xff]  ;;  %v20668_v16 = vld [vmem:[#allocation32_spill] sm:$0xff] }
 0xb04   :  { %8531 = vmatpush1.bf16.msra.mxu0 %v18849_v18  ;;  %8572 = vmatpush1.bf16.msra.mxu1 %v18851_v13  ;;  %v20669_v18 = vld [vmem:[#allocation33_spill] sm:$0xff]  ;;  %v20670_v13 = vld [vmem:[#allocation34_spill] sm:$0xff] }
 0xb05   :  { %8532 = vmatprep.subr.bf16.mxu0 %v18855_v34  ;;  %8573 = vmatprep.subr.bf16.mxu1 %v20657_v58  ;;  %v20671_v34 = vld [vmem:[#allocation35_spill] sm:$0xff] }
 0xb06   :  { %v19145_v58 = vld [vmem:[#allocation9 + $0xcc] ss:$16 sps:$4 sm:$0xff]  }
 0xb08   :  { %8533 = vmatpush1.bf16.msra.mxu0 %v20658_v49  ;;  %8574 = vmatpush1.bf16.msra.mxu1 %v20659_v38  ;;  %v19147_v49 = vld [vmem:[#allocation9 + $0xc0] ss:$16 sps:$4 sm:$0xff]   ;;  %v19149_v38 = vld [vmem:[#allocation9 + $0xc8] ss:$16 sps:$4 sm:$0xff]  }
 0xb09   :  { %8534 = vmatprep.subr.bf16.mxu0 %v20660_v7  ;;  %8575 = vmatprep.subr.bf16.mxu1 %v20661_v23  ;;  %20680 = vst [vmem:[#allocation14_spill] sm:$0xff] %v19149_v38  ;;  %v19153_v7 = vld [vmem:[#allocation9 + $0xe4] ss:$16 sps:$4 sm:$0xff]   ;;  %v19155_v23 = vld [vmem:[#allocation9 + $0xec] ss:$16 sps:$4 sm:$0xff]  }
 0xb0a   :  { %20681 = vst [vmem:[#allocation15_spill] sm:$0xff] %v19153_v7  ;;  %20682 = vst [vmem:[#allocation16_spill] sm:$0xff] %v19155_v23 }
 0xb0c   :  { %8535 = vmatpush1.bf16.msra.mxu0 %v20662_v33  ;;  %8576 = vmatpush1.bf16.msra.mxu1 %v20663_v17  ;;  %v19159_v33 = vld [vmem:[#allocation9 + $0xe0] ss:$16 sps:$4 sm:$0xff]   ;;  %v19161_v17 = vld [vmem:[#allocation9 + $0xe8] ss:$16 sps:$4 sm:$0xff]  }
 0xb0d   :  { %8536 = vmatprep.subr.bf16.mxu0 %v20664_v29  ;;  %8577 = vmatprep.subr.bf16.mxu1 %v20665_v19  ;;  %20683 = vst [vmem:[#allocation17_spill] sm:$0xff] %v19159_v33  ;;  %20684 = vst [vmem:[#allocation18_spill] sm:$0xff] %v19161_v17  ;;  %v19165_v29 = vld [vmem:[#allocation9 + $0x104] ss:$16 sps:$4 sm:$0xff]   ;;  %v19167_v19 = vld [vmem:[#allocation9 + $0x10c] ss:$16 sps:$4 sm:$0xff]  }
 0xb0e   :  { %20685 = vst [vmem:[#allocation19_spill] sm:$0xff] %v19165_v29  ;;  %20686 = vst [vmem:[#allocation20_spill] sm:$0xff] %v19167_v19 }
 0xb10   :  { %8537 = vmatpush1.bf16.msra.mxu0 %v20666_v32  ;;  %8578 = vmatpush1.bf16.msra.mxu1 %v20667_v48 }
 0xb11   :  { %8538 = vmatprep.subr.bf16.mxu0 %v20668_v16  ;;  %8579 = vmatprep.subr.bf16.mxu1 %v20669_v18 }
 0xb14   :  { %8539 = vmatpush1.bf16.msra.mxu0 %v20670_v13  ;;  %8580 = vmatpush1.bf16.msra.mxu1 %v20671_v34 }
 0xb15   :  { %8649 = vmatprep.subr.bf16.mxu0 %v18903_v53  ;;  %8690 = vmatprep.subr.bf16.mxu1 %v20672_v56  ;;  %v20678_v53 = vld [vmem:[#allocation42_spill] sm:$0xff] }
 0xb17   :  { %8557 = vmatmul.mubr.bf16.vlgmr.msra.gmra.mrb[148].mxu0 %v8057_v20  ;;  %8598 = vmatmul.mubr.bf16.vlgmr.msra.gmra.mrb[148].mxu1 %v8057_v20 }
 0xb18   :  { %8650 = vmatpush1.bf16.msra.mxu0 %v20673_v39  ;;  %8691 = vmatpush1.bf16.msra.mxu1 %v20674_v55 }
 0xb19   :  { %8651 = vmatprep.subr.bf16.mxu0 %v20675_v12  ;;  %8692 = vmatprep.subr.bf16.mxu1 %v20676_v26 }
 0xb1a   :  { %8681 = vmatprep.mubr.bf16.mxu0 %v20445_v15  ;;  %8722 = vmatprep.mubr.bf16.mxu1 %v20445_v15 }
 0xb1c   :  { %8652 = vmatpush1.bf16.msra.mxu0 %v20677_v42  ;;  %8693 = vmatpush1.bf16.msra.mxu1 %v20678_v53 }
 0xb1d   :  { %8774 = vmatprep.subr.bf16.mxu0 %v18927_v3  ;;  %8815 = vmatprep.subr.bf16.mxu1 %v20679_v63  ;;  %v8039_v3 = vpack.c.bf16 %v8037_v14, %v8037_v14 }
 0xb1f   :  { %15099 = vmatmul.mubr.msk.bf16.vlgmr.msra.gmra.mrb[152].mxu0 %vm726_vm0, %v8038_v5  ;;  %15100 = vmatmul.mubr.msk.bf16.vlgmr.msra.gmra.mrb[152].mxu1 %vm726_vm0, %v8038_v5 }
 0xb20   :  { %8775 = vmatpush1.bf16.msra.mxu0 %v18935_v10  ;;  %8816 = vmatpush1.bf16.msra.mxu1 %v18937_v52  ;;  %v19075_v52 = vld [vmem:[#allocation9] ss:$16 sps:$4 sm:$0xff]   ;;  %v19077_v10 = vld [vmem:[#allocation9 + $0x8] ss:$16 sps:$4 sm:$0xff]  }
 0xb21   :  { %8776 = vmatprep.subr.bf16.mxu0 %v18941_v27  ;;  %8817 = vmatprep.subr.bf16.mxu1 %v18943_v6  ;;  %v19071_v27 = vld [vmem:[#allocation9 + $0x4] ss:$16 sps:$4 sm:$0xff]   ;;  %v19073_v6 = vld [vmem:[#allocation9 + $0xc] ss:$16 sps:$4 sm:$0xff]  }
 0xb22   :  { %8806 = vmatprep.mubr.bf16.mxu0 %v20445_v15  ;;  %8847 = vmatprep.mubr.bf16.mxu1 %v20445_v15 }
 0xb24   :  { %8777 = vmatpush1.bf16.msra.mxu0 %v18949_v46  ;;  %8818 = vmatpush1.bf16.msra.mxu1 %v18951_v54  ;;  %v19083_v54 = vld [vmem:[#allocation9 + $0x24] ss:$16 sps:$4 sm:$0xff]   ;;  %v19085_v46 = vld [vmem:[#allocation9 + $0x2c] ss:$16 sps:$4 sm:$0xff]  }
 0xb25   :  { %9162 = vmatprep.subr.bf16.mxu0 %v19071_v27  ;;  %9203 = vmatprep.subr.bf16.mxu1 %v19073_v6 }
 0xb27   :  { %15109 = vmatmul.mubr.msk.bf16.vlgmr.msra.gmra.mrb[156].mxu0 %vm726_vm0, %v8039_v3  ;;  %15110 = vmatmul.mubr.msk.bf16.vlgmr.msra.gmra.mrb[156].mxu1 %vm726_vm0, %v8039_v3 }
 0xb28   :  { %9194 = vmatprep.mubr.bf16.mxu0 %v20445_v15  ;;  %9235 = vmatprep.mubr.bf16.mxu1 %v20445_v15 }
 0xb29   :  { %9163 = vmatpush1.bf16.msra.mxu0 %v19075_v52  ;;  %9204 = vmatpush1.bf16.msra.mxu1 %v19077_v10 }
 0xb2a   :  { %9164 = vmatprep.subr.bf16.mxu0 %v19083_v54  ;;  %9205 = vmatprep.subr.bf16.mxu1 %v19085_v46 }
 0xb2d   :  { %9165 = vmatpush1.bf16.msra.mxu0 %v19087_v61  ;;  %9206 = vmatpush1.bf16.msra.mxu1 %v19089_v0 }
 0xb2e   :  { %9166 = vmatprep.subr.bf16.mxu0 %v19095_v47  ;;  %9207 = vmatprep.subr.bf16.mxu1 %v19097_v44 }
 0xb31   :  { %9167 = vmatpush1.bf16.msra.mxu0 %v19099_v43  ;;  %9208 = vmatpush1.bf16.msra.mxu1 %v19101_v31 }
 0xb32   :  { %9168 = vmatprep.subr.bf16.mxu0 %v19107_v45  ;;  %9209 = vmatprep.subr.bf16.mxu1 %v19109_v24 }
 0xb35   :  { %9169 = vmatpush1.bf16.msra.mxu0 %v19111_v59  ;;  %9210 = vmatpush1.bf16.msra.mxu1 %v19113_v21 }
 0xb36   :  { %9170 = vmatprep.subr.bf16.mxu0 %v19119_v4  ;;  %9211 = vmatprep.subr.bf16.mxu1 %v19121_v28 }
 0xb39   :  { %9171 = vmatpush1.bf16.msra.mxu0 %v19123_v8  ;;  %9212 = vmatpush1.bf16.msra.mxu1 %v19125_v11 }
 0xb3a   :  { %9172 = vmatprep.subr.bf16.mxu0 %v19131_v1  ;;  %9213 = vmatprep.subr.bf16.mxu1 %v19133_v36 }
 0xb3d   :  { %9173 = vmatpush1.bf16.msra.mxu0 %v19135_v50  ;;  %9214 = vmatpush1.bf16.msra.mxu1 %v19137_v40 }
 0xb3e   :  { %9174 = vmatprep.subr.bf16.mxu0 %v19143_v60  ;;  %9215 = vmatprep.subr.bf16.mxu1 %v19145_v58 }
 0xb41   :  { %9175 = vmatpush1.bf16.msra.mxu0 %v19147_v49  ;;  %9216 = vmatpush1.bf16.msra.mxu1 %v19149_v38 }
 0xb42   :  { %9176 = vmatprep.subr.bf16.mxu0 %v19153_v7  ;;  %9217 = vmatprep.subr.bf16.mxu1 %v19155_v23 }
 0xb45   :  { %9177 = vmatpush1.bf16.msra.mxu0 %v19159_v33  ;;  %9218 = vmatpush1.bf16.msra.mxu1 %v19161_v17 }
 0xb46   :  { %9404 = vmatprep.subr.bf16.mxu0 %v19165_v29  ;;  %9445 = vmatprep.subr.bf16.mxu1 %v19167_v19 }
 0xbca   :  { %v8316_v32 = vpop.f32.mrb[144].mxu0  ;;  %v8357_v48 = vpop.f32.mrb[144].mxu1 }
 0xbcb   :  { %v8318_v16 = vpop.f32.mrb[145].mxu0  ;;  %v8359_v18 = vpop.f32.mrb[145].mxu1 }
 0xbcc   :  { %v8320_v13 = vpop.f32.mrb[146].mxu0  ;;  %v8361_v34 = vpop.f32.mrb[146].mxu1 }
 0xbcd   :  { %v8321_v20 = vpop.f32.mrb[147].mxu0  ;;  %v8362_v56 = vpop.f32.mrb[147].mxu1 }
 0xbea   :  { %v8558_v39 = vpop.f32.mrb[148].mxu0  ;;  %v8599_v55 = vpop.f32.mrb[148].mxu1 }
 0xbeb   :  { %v8560_v57 = vpop.f32.mrb[149].mxu0  ;;  %v8601_v12 = vpop.f32.mrb[149].mxu1 }
 0xbec   :  { %v8562_v26 = vpop.f32.mrb[150].mxu0  ;;  %v8603_v5 = vpop.f32.mrb[150].mxu1 }
 0xbed   :  { %v8563_v42 = vpop.f32.mrb[151].mxu0  ;;  %v8604_v53 = vpop.f32.mrb[151].mxu1 }
 0xbf2   :  { %v8683_v63 = vpop.f32.mrb[152].mxu0  ;;  %v8724_v14 = vpop.f32.mrb[152].mxu1 }
 0xbf3   :  { %v8684_v3 = vadd.f32 %v8683_v63, %v8316_v32  ;;  %v8725_v19 = vadd.f32 %v8724_v14, %v8357_v48  ;;  %v8685_v29 = vpop.f32.mrb[153].mxu0  ;;  %v8726_v17 = vpop.f32.mrb[153].mxu1 }
 0xbf4   :  { %v8686_v33 = vadd.f32 %v8685_v29, %v8318_v16  ;;  %v8727_v23 = vadd.f32 %v8726_v17, %v8359_v18  ;;  %v8687_v13 = vpop.f32.mrb[154].mxu0  ;;  %v8728_v34 = vpop.f32.mrb[154].mxu1 }
 0xbf5   :  { %v8856_v20 = vadd.f32 %v8684_v3, %v17520_v22  ;;  %v8688_v56 = vpop.f32.mrb[155].mxu0  ;;  %v8729_v7 = vpop.f32.mrb[155].mxu1 }
 0xbf6   :  { %v8857_v38 = vadd.f32 %v8686_v33, %v17522_v25  ;;  %v8859_v17 = vadd.f32 %v8727_v23, %v17530_v35 }
 0xbf7   :  { %v15111_v26 = vmul.f32 -1.442695, %v8856_v20 }
 0xbf8   :  { %v15113_v5 = vmul.f32 -1.442695, %v8857_v38  ;;  %v15115_v20 = vmul.f32 -1.442695, %v8859_v17 }
 0xbf9   :  { %16915 = vpow2.f32 %v15111_v26 }
 0xbfa   :  { %16917 = vpow2.f32 %v15113_v5  ;;  %v8808_v42 = vpop.f32.mrb[156].mxu0  ;;  %v8849_v53 = vpop.f32.mrb[156].mxu1 }
 0xbfb   :  { %v8809_v32 = vadd.f32 %v8808_v42, %v8558_v39  ;;  %v8850_v48 = vadd.f32 %v8849_v53, %v8599_v55  ;;  %v8810_v63 = vpop.f32.mrb[157].mxu0  ;;  %v8851_v14 = vpop.f32.mrb[157].mxu1  ;;  %v8858_v39 = vadd.f32 %v8725_v19, %v17538_v51 }
 0xbfc   :  { %v8811_v29 = vadd.f32 %v8810_v63, %v8560_v57  ;;  %v8852_v16 = vadd.f32 %v8851_v14, %v8601_v12  ;;  %v8812_v18 = vpop.f32.mrb[158].mxu0  ;;  %v8853_v3 = vpop.f32.mrb[158].mxu1 }
 0xbfd   :  { %v8860_v7 = vadd.f32 %v8809_v32, %v17533_v37  ;;  %v8813_v13 = vpop.f32.mrb[159].mxu0  ;;  %v8854_v33 = vpop.f32.mrb[159].mxu1  ;;  %v8862_v42 = vadd.f32 %v8850_v48, %v17546_v9 }
 0xbfe   :  { %v8861_v38 = vadd.f32 %v8811_v29, %v17535_v41  ;;  %v8863_v57 = vadd.f32 %v8852_v16, %v17542_v2 }
 0xbff   :  { %v15112_v34 = vmul.f32 -1.442695, %v8860_v7 }
 0xc00   :  { %v15114_v56 = vmul.f32 -1.442695, %v8861_v38  ;;  %v15116_v5 = vmul.f32 -1.442695, %v8863_v57  ;;  %v19189_v57 = vld [vmem:[#allocation9 + $0x100] ss:$16 sps:$4 sm:$0xff]  }
 0xc01   :  { %16919 = vpow2.f32 %v15112_v34 }
 0xc02   :  { %16921 = vpow2.f32 %v15114_v56 }
 0xc03   :  { %v16916_v55 = vpop.eup %16915  ;;  %16923 = vpow2.f32 %v15115_v20 }
 0xc04   :  { %v16918_v26 = vpop.eup %16917  ;;  %v8870_v23 = vadd.f32 1.0, %v16916_v55  ;;  %16925 = vtanh.f32 %v8858_v39 }
 0xc05   :  { %v8882_v12 = vadd.f32 1.0, %v16918_v26 }
 0xc06   :  { %16927 = vrcp.f32 %v8870_v23 }
 0xc07   :  { %16929 = vrcp.f32 %v8882_v12  ;;  %v19191_v12 = vld [vmem:[#allocation9 + $0x108] ss:$16 sps:$4 sm:$0xff]  }
 0xc08   :  { %16931 = vpow2.f32 %v15116_v5 }
 0xc09   :  { %16933 = vtanh.f32 %v8862_v42  ;;  %v19193_v42 = vld [vmem:[#allocation9 + $0x124] ss:$16 sps:$4 sm:$0xff]  }
 0xc0b   :  { %v16920_v53 = vpop.eup %16919 }
 0xc0c   :  { %v16922_v32 = vpop.eup %16921  ;;  %v8871_v63 = vadd.f32 1.0, %v16920_v53  ;;  %v19195_v53 = vld [vmem:[#allocation9 + $0x12c] ss:$16 sps:$4 sm:$0xff]  }
 0xc0d   :  { %v8883_v19 = vadd.f32 1.0, %v16922_v32  ;;  %v16924_v14 = vpop.eup %16923  ;;  %v19201_v32 = vld [vmem:[#allocation9 + $0x128] ss:$16 sps:$4 sm:$0xff]  }
 0xc0e   :  { %16935 = vrcp.f32 %v8871_v63  ;;  %v16926_v17 = vpop.eup %16925  ;;  %v8896_v3 = vadd.f32 1.0, %v16924_v14  ;;  %v19207_v14 = vld [vmem:[#allocation9 + $0x14c] ss:$16 sps:$4 sm:$0xff]  }
 0xc0f   :  { %16937 = vrcp.f32 %v8883_v19  ;;  %v19205_v19 = vld [vmem:[#allocation9 + $0x144] ss:$16 sps:$4 sm:$0xff]  }
 0xc10   :  { %v16928_v29 = vpop.eup %16927  ;;  %16939 = vrcp.f32 %v8896_v3  ;;  %v19219_v3 = vld [vmem:[#allocation9 + $0x164] ss:$16 sps:$4 sm:$0xff]  }
 0xc11   :  { %v16930_v18 = vpop.eup %16929  ;;  %v8904_v16 = vmul.f32 %v16928_v29, %v16926_v17 }
 0xc12   :  { %v8902_v7 = vmul.f32 %v16930_v18, %v19006_v30  ;;  %v16932_v48 = vpop.eup %16931  ;;  %v19213_v18 = vld [vmem:[#allocation9 + $0x140] ss:$16 sps:$4 sm:$0xff]  }
 0xc13   :  { %v16934_v33 = vpop.eup %16933  ;;  %v8897_v56 = vadd.f32 1.0, %v16932_v48  ;;  %v19225_v48 = vld [vmem:[#allocation9 + $0x160] ss:$16 sps:$4 sm:$0xff]  }
 0xc14   :  { %v19182_v13 = vadd.f32 %v8904_v16, %v8902_v7  ;;  %v19215_v16 = vld [vmem:[#allocation9 + $0x148] ss:$16 sps:$4 sm:$0xff]   ;;  %v19221_v7 = vld [vmem:[#allocation9 + $0x16c] ss:$16 sps:$4 sm:$0xff]  }
 0xc16   :  { %16941 = vtanh.f32 %v19182_v13 }
 0xc17   :  { %16943 = vrcp.f32 %v8897_v56  ;;  %v19239_v56 = vld [vmem:[#allocation9 + $0x188] ss:$16 sps:$4 sm:$0xff]  }
 0xc18   :  { %v16936_v38 = vpop.eup %16935  ;;  %20689 = vst [vmem:[#allocation23_spill] sm:$0xff] %v19239_v56 }
 0xc19   :  { %v16938_v34 = vpop.eup %16937  ;;  %v8905_v20 = vmul.f32 %v16936_v38, %v16934_v33  ;;  %v19227_v33 = vld [vmem:[#allocation9 + $0x168] ss:$16 sps:$4 sm:$0xff]   ;;  %v19231_v38 = vld [vmem:[#allocation9 + $0x184] ss:$16 sps:$4 sm:$0xff]  }
 0xc1a   :  { %v8903_v39 = vmul.f32 %v16938_v34, %v19010_v62  ;;  %v16940_v26 = vpop.eup %16939  ;;  %v19199_v62 = vld [vmem:[#allocation9 + $0x120] ss:$16 sps:$4 sm:$0xff]   ;;  %v19233_v34 = vld [vmem:[#allocation9 + $0x18c] ss:$16 sps:$4 sm:$0xff]  }
 0xc1b   :  { %20687 = vst [vmem:[#allocation21_spill] sm:$0xff] %v19233_v34 }
 0xc1c   :  { %v19186_v55 = vadd.f32 %v8905_v20, %v8903_v39  ;;  %v19237_v20 = vld [vmem:[#allocation9 + $0x180] ss:$16 sps:$4 sm:$0xff]   ;;  %v19243_v39 = vld [vmem:[#allocation9 + $0x1a4] ss:$16 sps:$4 sm:$0xff]  }
 0xc1d   :  { %20688 = vst [vmem:[#allocation22_spill] sm:$0xff] %v19237_v20  ;;  %20690 = vst [vmem:[#allocation24_spill] sm:$0xff] %v19243_v39 }
 0xc1e   :  { %16945 = vtanh.f32 %v19186_v55 }
 0xc20   :  { %v16942_v30 = vpop.eup %16941 }
 0xc21   :  { %v8910_v23 = vmul.f32 %v16942_v30, %v16940_v26  ;;  %v16944_v63 = vpop.eup %16943  ;;  %v19245_v26 = vld [vmem:[#allocation9 + $0x1ac] ss:$16 sps:$4 sm:$0xff]   ;;  %v19249_v30 = vld [vmem:[#allocation9 + $0x1a0] ss:$16 sps:$4 sm:$0xff]  }
 0xc22   :  { %20691 = vst [vmem:[#allocation25_spill] sm:$0xff] %v19245_v26  ;;  %20692 = vst [vmem:[#allocation26_spill] sm:$0xff] %v19249_v30 }
 0xc23   :  { %8913 = vst [vmem:[#allocation10 + $0x90] sm:$0xff] %v8910_v23  ;;  %v8936_v5 = vpack.c.bf16 %v8910_v23, %v8910_v23  ;;  %v19251_v23 = vld [vmem:[#allocation9 + $0x1a8] ss:$16 sps:$4 sm:$0xff]  }
 0xc24   :  { %20693 = vst [vmem:[#allocation27_spill] sm:$0xff] %v19251_v23 }
 0xc25   :  { %9195 = vmatmul.mubr.bf16.vlgmr.msra.gmra.mrb[160].mxu0 %v8936_v5  ;;  %9236 = vmatmul.mubr.bf16.vlgmr.msra.gmra.mrb[160].mxu1 %v8936_v5  ;;  %v19255_v5 = vld [vmem:[#allocation9 + $0x1c4] ss:$16 sps:$4 sm:$0xff]  }
 0xc26   :  { %9405 = vmatpush1.bf16.msra.mxu0 %v19189_v57  ;;  %9446 = vmatpush1.bf16.msra.mxu1 %v19191_v12  ;;  %20694 = vst [vmem:[#allocation28_spill] sm:$0xff] %v19255_v5 }
 0xc27   :  { %9406 = vmatprep.subr.bf16.mxu0 %v19193_v42  ;;  %9447 = vmatprep.subr.bf16.mxu1 %v19195_v53 }
 0xc28   :  { %v16946_v17 = vpop.eup %16945  ;;  %9436 = vmatprep.mubr.bf16.mxu0 %v20445_v15  ;;  %9477 = vmatprep.mubr.bf16.mxu1 %v20445_v15 }
 0xc29   :  { %v8911_v29 = vmul.f32 %v16946_v17, %v16944_v63  ;;  %v19257_v63 = vld [vmem:[#allocation9 + $0x1cc] ss:$16 sps:$4 sm:$0xff]   ;;  %v19261_v17 = vld [vmem:[#allocation9 + $0x1c0] ss:$16 sps:$4 sm:$0xff]  }
 0xc2a   :  { %9407 = vmatpush1.bf16.msra.mxu0 %v19199_v62  ;;  %9448 = vmatpush1.bf16.msra.mxu1 %v19201_v32  ;;  %20695 = vst [vmem:[#allocation29_spill] sm:$0xff] %v19257_v63  ;;  %20696 = vst [vmem:[#allocation30_spill] sm:$0xff] %v19261_v17 }
 0xc2b   :  { %9408 = vmatprep.subr.bf16.mxu0 %v19205_v19  ;;  %9449 = vmatprep.subr.bf16.mxu1 %v19207_v14  ;;  %8914 = vst [vmem:[#allocation10 + $0x98] sm:$0xff] %v8911_v29 }
 0xc2e   :  { %9409 = vmatpush1.bf16.msra.mxu0 %v19213_v18  ;;  %9450 = vmatpush1.bf16.msra.mxu1 %v19215_v16 }
 0xc2f   :  { %9410 = vmatprep.subr.bf16.mxu0 %v19219_v3  ;;  %9451 = vmatprep.subr.bf16.mxu1 %v19221_v7 }
 0xc32   :  { %9411 = vmatpush1.bf16.msra.mxu0 %v19225_v48  ;;  %9452 = vmatpush1.bf16.msra.mxu1 %v19227_v33 }
 0xc33   :  { %9412 = vmatprep.subr.bf16.mxu0 %v19231_v38  ;;  %9453 = vmatprep.subr.bf16.mxu1 %v19233_v34  ;;  %v8916_v34 = vld [vmem:[#allocation4 + $0xa0] sm:$0xff] }
 0xc36   :  { %9413 = vmatpush1.bf16.msra.mxu0 %v19237_v20  ;;  %9454 = vmatpush1.bf16.msra.mxu1 %v19239_v56  ;;  %v19263_v20 = vld [vmem:[#allocation9 + $0x1c8] ss:$16 sps:$4 sm:$0xff]   ;;  %v19267_v56 = vld [vmem:[#allocation9 + $0x1e4] ss:$16 sps:$4 sm:$0xff]  }
 0xc37   :  { %9414 = vmatprep.subr.bf16.mxu0 %v19243_v39  ;;  %9455 = vmatprep.subr.bf16.mxu1 %v19245_v26  ;;  %20697 = vst [vmem:[#allocation31_spill] sm:$0xff] %v19263_v20  ;;  %20698 = vst [vmem:[#allocation32_spill] sm:$0xff] %v19267_v56  ;;  %v19269_v39 = vld [vmem:[#allocation9 + $0x1ec] ss:$16 sps:$4 sm:$0xff]   ;;  %v19273_v26 = vld [vmem:[#allocation9 + $0x1e0] ss:$16 sps:$4 sm:$0xff]  }
 0xc38   :  { %20699 = vst [vmem:[#allocation33_spill] sm:$0xff] %v19269_v39  ;;  %20700 = vst [vmem:[#allocation34_spill] sm:$0xff] %v19273_v26 }
 0xc3a   :  { %9415 = vmatpush1.bf16.msra.mxu0 %v19249_v30  ;;  %9456 = vmatpush1.bf16.msra.mxu1 %v19251_v23  ;;  %v19275_v30 = vld [vmem:[#allocation9 + $0x1e8] ss:$16 sps:$4 sm:$0xff]   ;;  %v19279_v23 = vld [vmem:[#allocation7 + $0x4] ss:$16 sps:$4 sm:$0xff]  }
 0xc3b   :  { %9416 = vmatprep.subr.bf16.mxu0 %v19255_v5  ;;  %9457 = vmatprep.subr.bf16.mxu1 %v19257_v63  ;;  %20701 = vst [vmem:[#allocation35_spill] sm:$0xff] %v19275_v30  ;;  %v19281_v5 = vld [vmem:[#allocation7 + $0xc] ss:$16 sps:$4 sm:$0xff]   ;;  %v19285_v63 = vld [vmem:[#allocation7] ss:$16 sps:$4 sm:$0xff]  }
 0xc3c   :  { %20702 = vst [vmem:[#allocation36_spill] sm:$0xff] %v19281_v5  ;;  %20703 = vst [vmem:[#allocation37_spill] sm:$0xff] %v19285_v63 }
 0xc3e   :  { %9417 = vmatpush1.bf16.msra.mxu0 %v19261_v17  ;;  %9458 = vmatpush1.bf16.msra.mxu1 %v19263_v20  ;;  %v19287_v17 = vld [vmem:[#allocation7 + $0x8] ss:$16 sps:$4 sm:$0xff]   ;;  %v8937_v20 = vpack.c.bf16 %v8911_v29, %v8911_v29  ;;  %v19303_v29 = vld [vmem:[#allocation7 + $0x44] ss:$16 sps:$4 sm:$0xff]  }
 0xc3f   :  { %9418 = vmatprep.subr.bf16.mxu0 %v19267_v56  ;;  %9459 = vmatprep.subr.bf16.mxu1 %v19269_v39  ;;  %20704 = vst [vmem:[#allocation38_spill] sm:$0xff] %v19287_v17  ;;  %v19291_v56 = vld [vmem:[#allocation7 + $0x24] ss:$16 sps:$4 sm:$0xff]   ;;  %v19293_v39 = vld [vmem:[#allocation7 + $0x2c] ss:$16 sps:$4 sm:$0xff]  }
 0xc40   :  { %20705 = vst [vmem:[#allocation39_spill] sm:$0xff] %v19291_v56  ;;  %20706 = vst [vmem:[#allocation40_spill] sm:$0xff] %v19293_v39 }
 0xc42   :  { %9419 = vmatpush1.bf16.msra.mxu0 %v19273_v26  ;;  %9460 = vmatpush1.bf16.msra.mxu1 %v19275_v30  ;;  %v19297_v30 = vld [vmem:[#allocation7 + $0x20] ss:$16 sps:$4 sm:$0xff]   ;;  %v19299_v26 = vld [vmem:[#allocation7 + $0x28] ss:$16 sps:$4 sm:$0xff]  }
 0xc43   :  { %9529 = vmatprep.subr.bf16.mxu0 %v19279_v23  ;;  %9570 = vmatprep.subr.bf16.mxu1 %v19281_v5  ;;  %20707 = vst [vmem:[#allocation41_spill] sm:$0xff] %v19297_v30  ;;  %20708 = vst [vmem:[#allocation42_spill] sm:$0xff] %v19299_v26  ;;  %v19305_v5 = vld [vmem:[#allocation7 + $0x4c] ss:$16 sps:$4 sm:$0xff]  }
 0xc44   :  { %20709 = vst [vmem:[#allocation43_spill] sm:$0xff] %v19305_v5 }
 0xc45   :  { %9437 = vmatmul.mubr.bf16.vlgmr.msra.gmra.mrb[164].mxu0 %v8937_v20  ;;  %9478 = vmatmul.mubr.bf16.vlgmr.msra.gmra.mrb[164].mxu1 %v8937_v20  ;;  %v8918_v20 = vpack.c.bf16 %v8916_v34, %v8916_v34  ;;  %v19325_v34 = vld [vmem:[#allocation7 + $0x60] ss:$16 sps:$4 sm:$0xff]  }
 0xc46   :  { %9530 = vmatpush1.bf16.msra.mxu0 %v19285_v63  ;;  %9571 = vmatpush1.bf16.msra.mxu1 %v19287_v17  ;;  %v19311_v17 = vld [vmem:[#allocation7 + $0x40] ss:$16 sps:$4 sm:$0xff]   ;;  %v19313_v63 = vld [vmem:[#allocation7 + $0x48] ss:$16 sps:$4 sm:$0xff]  }
 0xc47   :  { %9531 = vmatprep.subr.bf16.mxu0 %v19291_v56  ;;  %9572 = vmatprep.subr.bf16.mxu1 %v19293_v39  ;;  %v19317_v39 = vld [vmem:[#allocation7 + $0x64] ss:$16 sps:$4 sm:$0xff]   ;;  %v19319_v56 = vld [vmem:[#allocation7 + $0x6c] ss:$16 sps:$4 sm:$0xff]  }
 0xc48   :  { %9561 = vmatprep.mubr.bf16.mxu0 %v20445_v15  ;;  %9602 = vmatprep.mubr.bf16.mxu1 %v20445_v15 }
 0xc4a   :  { %9532 = vmatpush1.bf16.msra.mxu0 %v19297_v30  ;;  %9573 = vmatpush1.bf16.msra.mxu1 %v19299_v26  ;;  %v19327_v26 = vld [vmem:[#allocation7 + $0x68] ss:$16 sps:$4 sm:$0xff]  }
 0xc4b   :  { %9654 = vmatprep.subr.bf16.mxu0 %v19303_v29  ;;  %9695 = vmatprep.subr.bf16.mxu1 %v19305_v5  ;;  %v8917_v30 = vld [vmem:[#allocation4 + $0xa8] sm:$0xff] }
 0xc4c   :  { %v8919_v5 = vpack.c.bf16 %v8917_v30, %v8917_v30 }
 0xc4d   :  { %15189 = vmatmul.mubr.msk.bf16.vlgmr.msra.gmra.mrb[168].mxu0 %vm726_vm0, %v8918_v20  ;;  %15190 = vmatmul.mubr.msk.bf16.vlgmr.msra.gmra.mrb[168].mxu1 %vm726_vm0, %v8918_v20 }
 0xc4e   :  { %9655 = vmatpush1.bf16.msra.mxu0 %v19311_v17  ;;  %9696 = vmatpush1.bf16.msra.mxu1 %v19313_v63 }
 0xc4f   :  { %9656 = vmatprep.subr.bf16.mxu0 %v19317_v39  ;;  %9697 = vmatprep.subr.bf16.mxu1 %v19319_v56 }
 0xc50   :  { %9686 = vmatprep.mubr.bf16.mxu0 %v20445_v15  ;;  %9727 = vmatprep.mubr.bf16.mxu1 %v20445_v15 }
 0xc52   :  { %9657 = vmatpush1.bf16.msra.mxu0 %v19325_v34  ;;  %9698 = vmatpush1.bf16.msra.mxu1 %v19327_v26 }
 0xc53   :  { %10042 = vmatprep.subr.bf16.mxu0 %v19071_v27  ;;  %10083 = vmatprep.subr.bf16.mxu1 %v19073_v6  ;;  %v20710_v27 = vld [vmem:[#allocation14_spill] sm:$0xff]  ;;  %v20711_v6 = vld [vmem:[#allocation15_spill] sm:$0xff] }
 0xc55   :  { %15199 = vmatmul.mubr.msk.bf16.vlgmr.msra.gmra.mrb[172].mxu0 %vm726_vm0, %v8919_v5  ;;  %15200 = vmatmul.mubr.msk.bf16.vlgmr.msra.gmra.mrb[172].mxu1 %vm726_vm0, %v8919_v5 }
 0xc56   :  { %10043 = vmatpush1.bf16.msra.mxu0 %v19075_v52  ;;  %10084 = vmatpush1.bf16.msra.mxu1 %v19077_v10  ;;  %v20712_v52 = vld [vmem:[#allocation16_spill] sm:$0xff]  ;;  %v20713_v10 = vld [vmem:[#allocation17_spill] sm:$0xff] }
 0xc57   :  { %10044 = vmatprep.subr.bf16.mxu0 %v19083_v54  ;;  %10085 = vmatprep.subr.bf16.mxu1 %v19085_v46  ;;  %v20714_v54 = vld [vmem:[#allocation18_spill] sm:$0xff]  ;;  %v20715_v46 = vld [vmem:[#allocation19_spill] sm:$0xff] }
 0xc58   :  { %10074 = vmatprep.mubr.bf16.mxu0 %v20445_v15  ;;  %10115 = vmatprep.mubr.bf16.mxu1 %v20445_v15 }
 0xc5a   :  { %10045 = vmatpush1.bf16.msra.mxu0 %v19087_v61  ;;  %10086 = vmatpush1.bf16.msra.mxu1 %v19089_v0  ;;  %v20716_v61 = vld [vmem:[#allocation20_spill] sm:$0xff] }
 0xc5b   :  { %10046 = vmatprep.subr.bf16.mxu0 %v19095_v47  ;;  %10087 = vmatprep.subr.bf16.mxu1 %v19097_v44 }
 0xc5e   :  { %10047 = vmatpush1.bf16.msra.mxu0 %v19099_v43  ;;  %10088 = vmatpush1.bf16.msra.mxu1 %v19101_v31 }
 0xc5f   :  { %10048 = vmatprep.subr.bf16.mxu0 %v19107_v45  ;;  %10089 = vmatprep.subr.bf16.mxu1 %v19109_v24 }
 0xc62   :  { %10049 = vmatpush1.bf16.msra.mxu0 %v19111_v59  ;;  %10090 = vmatpush1.bf16.msra.mxu1 %v19113_v21 }
 0xc63   :  { %10050 = vmatprep.subr.bf16.mxu0 %v19119_v4  ;;  %10091 = vmatprep.subr.bf16.mxu1 %v19121_v28 }
 0xc66   :  { %10051 = vmatpush1.bf16.msra.mxu0 %v19123_v8  ;;  %10092 = vmatpush1.bf16.msra.mxu1 %v19125_v11 }
 0xc67   :  { %10052 = vmatprep.subr.bf16.mxu0 %v19131_v1  ;;  %10093 = vmatprep.subr.bf16.mxu1 %v19133_v36 }
 0xc6a   :  { %10053 = vmatpush1.bf16.msra.mxu0 %v19135_v50  ;;  %10094 = vmatpush1.bf16.msra.mxu1 %v19137_v40 }
 0xc6b   :  { %10054 = vmatprep.subr.bf16.mxu0 %v19143_v60  ;;  %10095 = vmatprep.subr.bf16.mxu1 %v19145_v58 }
 0xc6e   :  { %10055 = vmatpush1.bf16.msra.mxu0 %v19147_v49  ;;  %10096 = vmatpush1.bf16.msra.mxu1 %v20710_v27 }
 0xc6f   :  { %10056 = vmatprep.subr.bf16.mxu0 %v20711_v6  ;;  %10097 = vmatprep.subr.bf16.mxu1 %v20712_v52 }
 0xc72   :  { %10057 = vmatpush1.bf16.msra.mxu0 %v20713_v10  ;;  %10098 = vmatpush1.bf16.msra.mxu1 %v20714_v54 }
 0xc73   :  { %10284 = vmatprep.subr.bf16.mxu0 %v20715_v46  ;;  %10325 = vmatprep.subr.bf16.mxu1 %v20716_v61 }
 0xcf8   :  { %v9196_v0 = vpop.f32.mrb[160].mxu0  ;;  %v9237_v47 = vpop.f32.mrb[160].mxu1 }
 0xcf9   :  { %v9198_v44 = vpop.f32.mrb[161].mxu0  ;;  %v9239_v43 = vpop.f32.mrb[161].mxu1 }
 0xcfa   :  { %v9200_v31 = vpop.f32.mrb[162].mxu0  ;;  %v9241_v45 = vpop.f32.mrb[162].mxu1 }
 0xcfb   :  { %v9201_v24 = vpop.f32.mrb[163].mxu0  ;;  %v9242_v59 = vpop.f32.mrb[163].mxu1 }
 0xd18   :  { %v9438_v21 = vpop.f32.mrb[164].mxu0  ;;  %v9479_v4 = vpop.f32.mrb[164].mxu1 }
 0xd19   :  { %v9440_v28 = vpop.f32.mrb[165].mxu0  ;;  %v9481_v8 = vpop.f32.mrb[165].mxu1 }
 0xd1a   :  { %v9442_v11 = vpop.f32.mrb[166].mxu0  ;;  %v9483_v1 = vpop.f32.mrb[166].mxu1 }
 0xd1b   :  { %v9443_v36 = vpop.f32.mrb[167].mxu0  ;;  %v9484_v50 = vpop.f32.mrb[167].mxu1 }
 0xd20   :  { %v9563_v40 = vpop.f32.mrb[168].mxu0  ;;  %v9604_v60 = vpop.f32.mrb[168].mxu1 }
 0xd21   :  { %v9564_v58 = vadd.f32 %v9563_v40, %v9196_v0  ;;  %v9605_v49 = vadd.f32 %v9604_v60, %v9237_v47  ;;  %v9565_v30 = vpop.f32.mrb[169].mxu0  ;;  %v9606_v5 = vpop.f32.mrb[169].mxu1 }
 0xd22   :  { %v9566_v20 = vadd.f32 %v9565_v30, %v9198_v44  ;;  %v9607_v27 = vadd.f32 %v9606_v5, %v9239_v43  ;;  %v9567_v6 = vpop.f32.mrb[170].mxu0  ;;  %v9608_v52 = vpop.f32.mrb[170].mxu1 }
 0xd23   :  { %v9736_v10 = vadd.f32 %v9564_v58, %v17520_v22  ;;  %v9568_v54 = vpop.f32.mrb[171].mxu0  ;;  %v9609_v46 = vpop.f32.mrb[171].mxu1 }
 0xd24   :  { %v9737_v61 = vadd.f32 %v9566_v20, %v17522_v25  ;;  %v9739_v44 = vadd.f32 %v9607_v27, %v17530_v35 }
 0xd25   :  { %v15201_v31 = vmul.f32 -1.442695, %v9736_v10 }
 0xd26   :  { %v15203_v45 = vmul.f32 -1.442695, %v9737_v61  ;;  %v15205_v6 = vmul.f32 -1.442695, %v9739_v44 }
 0xd27   :  { %16947 = vpow2.f32 %v15201_v31 }
 0xd28   :  { %16949 = vpow2.f32 %v15203_v45  ;;  %v9688_v24 = vpop.f32.mrb[172].mxu0  ;;  %v9729_v59 = vpop.f32.mrb[172].mxu1 }
 0xd29   :  { %v9689_v0 = vadd.f32 %v9688_v24, %v9438_v21  ;;  %v9730_v47 = vadd.f32 %v9729_v59, %v9479_v4  ;;  %v9690_v11 = vpop.f32.mrb[173].mxu0  ;;  %v9731_v1 = vpop.f32.mrb[173].mxu1  ;;  %v9738_v21 = vadd.f32 %v9605_v49, %v17538_v51 }
 0xd2a   :  { %v9691_v43 = vadd.f32 %v9690_v11, %v9440_v28  ;;  %v9732_v36 = vadd.f32 %v9731_v1, %v9481_v8  ;;  %v9692_v50 = vpop.f32.mrb[174].mxu0  ;;  %v9733_v40 = vpop.f32.mrb[174].mxu1 }
 0xd2b   :  { %v9740_v60 = vadd.f32 %v9689_v0, %v17533_v37  ;;  %v9693_v58 = vpop.f32.mrb[175].mxu0  ;;  %v9734_v30 = vpop.f32.mrb[175].mxu1  ;;  %v9742_v46 = vadd.f32 %v9730_v47, %v17546_v9 }
 0xd2c   :  { %v9741_v5 = vadd.f32 %v9691_v43, %v17535_v41  ;;  %v9743_v28 = vadd.f32 %v9732_v36, %v17542_v2 }
 0xd2d   :  { %v15202_v20 = vmul.f32 -1.442695, %v9740_v60 }
 0xd2e   :  { %v15204_v52 = vmul.f32 -1.442695, %v9741_v5  ;;  %v15206_v54 = vmul.f32 -1.442695, %v9743_v28  ;;  %v20732_v28 = vld [vmem:[#allocation36_spill] sm:$0xff] }
 0xd2f   :  { %16951 = vpow2.f32 %v15202_v20 }
 0xd30   :  { %16953 = vpow2.f32 %v15204_v52 }
 0xd31   :  { %v16948_v4 = vpop.eup %16947  ;;  %16955 = vpow2.f32 %v15205_v6 }
 0xd32   :  { %v16950_v10 = vpop.eup %16949  ;;  %v9750_v27 = vadd.f32 1.0, %v16948_v4  ;;  %16957 = vtanh.f32 %v9738_v21 }
 0xd33   :  { %v9762_v8 = vadd.f32 1.0, %v16950_v10 }
 0xd34   :  { %16959 = vrcp.f32 %v9750_v27 }
 0xd35   :  { %16961 = vrcp.f32 %v9762_v8  ;;  %v20733_v8 = vld [vmem:[#allocation37_spill] sm:$0xff] }
 0xd36   :  { %16963 = vpow2.f32 %v15206_v54  ;;  %v20734_v54 = vld [vmem:[#allocation38_spill] sm:$0xff] }
 0xd37   :  { %16965 = vtanh.f32 %v9742_v46  ;;  %v9796_v46 = vld [vmem:[#allocation4 + $0xb0] sm:$0xff] }
 0xd39   :  { %v16952_v61 = vpop.eup %16951 }
 0xd3a   :  { %v16954_v31 = vpop.eup %16953  ;;  %v9751_v45 = vadd.f32 1.0, %v16952_v61  ;;  %v20735_v61 = vld [vmem:[#allocation39_spill] sm:$0xff] }
 0xd3b   :  { %v9763_v49 = vadd.f32 1.0, %v16954_v31  ;;  %v16956_v24 = vpop.eup %16955  ;;  %v20736_v31 = vld [vmem:[#allocation40_spill] sm:$0xff] }
 0xd3c   :  { %16967 = vrcp.f32 %v9751_v45  ;;  %v16958_v59 = vpop.eup %16957  ;;  %v9776_v44 = vadd.f32 1.0, %v16956_v24  ;;  %v9798_v45 = vpack.c.bf16 %v9796_v46, %v9796_v46  ;;  %v20739_v24 = vld [vmem:[#allocation43_spill] sm:$0xff] }
 0xd3d   :  { %16969 = vrcp.f32 %v9763_v49  ;;  %v20737_v49 = vld [vmem:[#allocation41_spill] sm:$0xff] }
 0xd3e   :  { %v16960_v0 = vpop.eup %16959  ;;  %16971 = vrcp.f32 %v9776_v44  ;;  %v19473_v44 = vld [vmem:[#allocation9 + $0x4c] ss:$16 sps:$4 sm:$0xff]  }
 0xd3f   :  { %v16962_v11 = vpop.eup %16961  ;;  %v9784_v1 = vmul.f32 %v16960_v0, %v16958_v59  ;;  %v9797_v59 = vld [vmem:[#allocation4 + $0xb8] sm:$0xff]  ;;  %v19463_v0 = vld [vmem:[#allocation9 + $0x20] ss:$16 sps:$4 sm:$0xff]  }
 0xd40   :  { %v9782_v43 = vmul.f32 %v16962_v11, %v19182_v13  ;;  %v16964_v47 = vpop.eup %16963  ;;  %v19465_v11 = vld [vmem:[#allocation9 + $0x28] ss:$16 sps:$4 sm:$0xff]  }
 0xd41   :  { %v16966_v50 = vpop.eup %16965  ;;  %v9777_v30 = vadd.f32 1.0, %v16964_v47  ;;  %v19477_v47 = vld [vmem:[#allocation9 + $0x48] ss:$16 sps:$4 sm:$0xff]  }
 0xd42   :  { %v19382_v36 = vadd.f32 %v9784_v1, %v9782_v43  ;;  %v19471_v1 = vld [vmem:[#allocation9 + $0x44] ss:$16 sps:$4 sm:$0xff]   ;;  %v19475_v43 = vld [vmem:[#allocation9 + $0x40] ss:$16 sps:$4 sm:$0xff]  }
 0xd44   :  { %16973 = vtanh.f32 %v19382_v36 }
 0xd45   :  { %16975 = vrcp.f32 %v9777_v30  ;;  %v19495_v30 = vld [vmem:[#allocation9 + $0x84] ss:$16 sps:$4 sm:$0xff]  }
 0xd46   :  { %v16968_v40 = vpop.eup %16967 }
 0xd47   :  { %v16970_v60 = vpop.eup %16969  ;;  %v9785_v58 = vmul.f32 %v16968_v40, %v16966_v50  ;;  %v19483_v50 = vld [vmem:[#allocation9 + $0x64] ss:$16 sps:$4 sm:$0xff]   ;;  %v19485_v40 = vld [vmem:[#allocation9 + $0x6c] ss:$16 sps:$4 sm:$0xff]  }
 0xd48   :  { %v9783_v5 = vmul.f32 %v16970_v60, %v19186_v55  ;;  %v16972_v6 = vpop.eup %16971  ;;  %v19487_v60 = vld [vmem:[#allocation9 + $0x60] ss:$16 sps:$4 sm:$0xff]  }
 0xd4a   :  { %v19386_v20 = vadd.f32 %v9785_v58, %v9783_v5  ;;  %v19489_v58 = vld [vmem:[#allocation9 + $0x68] ss:$16 sps:$4 sm:$0xff]   ;;  %v19497_v5 = vld [vmem:[#allocation9 + $0x8c] ss:$16 sps:$4 sm:$0xff]  }
 0xd4c   :  { %16977 = vtanh.f32 %v19386_v20 }
 0xd4e   :  { %v16974_v13 = vpop.eup %16973 }
 0xd4f   :  { %v9790_v52 = vmul.f32 %v16974_v13, %v16972_v6  ;;  %v16976_v4 = vpop.eup %16975  ;;  %v19499_v6 = vld [vmem:[#allocation9 + $0x80] ss:$16 sps:$4 sm:$0xff]   ;;  %v19501_v13 = vld [vmem:[#allocation9 + $0x88] ss:$16 sps:$4 sm:$0xff]  }
 0xd51   :  { %9793 = vst [vmem:[#allocation10 + $0xa0] sm:$0xff] %v9790_v52  ;;  %v9816_v21 = vpack.c.bf16 %v9790_v52, %v9790_v52  ;;  %v19507_v52 = vld [vmem:[#allocation9 + $0xa4] ss:$16 sps:$4 sm:$0xff]  }
 0xd53   :  { %10075 = vmatmul.mubr.bf16.vlgmr.msra.gmra.mrb[176].mxu0 %v9816_v21  ;;  %10116 = vmatmul.mubr.bf16.vlgmr.msra.gmra.mrb[176].mxu1 %v9816_v21  ;;  %v19509_v21 = vld [vmem:[#allocation9 + $0xac] ss:$16 sps:$4 sm:$0xff]  }
 0xd54   :  { %10285 = vmatpush1.bf16.msra.mxu0 %v19189_v57  ;;  %10326 = vmatpush1.bf16.msra.mxu1 %v19191_v12  ;;  %v20717_v57 = vld [vmem:[#allocation21_spill] sm:$0xff]  ;;  %v20718_v12 = vld [vmem:[#allocation22_spill] sm:$0xff] }
 0xd55   :  { %10286 = vmatprep.subr.bf16.mxu0 %v19193_v42  ;;  %10327 = vmatprep.subr.bf16.mxu1 %v19195_v53  ;;  %v20719_v42 = vld [vmem:[#allocation23_spill] sm:$0xff]  ;;  %v20720_v53 = vld [vmem:[#allocation24_spill] sm:$0xff] }
 0xd56   :  { %v16978_v55 = vpop.eup %16977  ;;  %10316 = vmatprep.mubr.bf16.mxu0 %v20445_v15  ;;  %10357 = vmatprep.mubr.bf16.mxu1 %v20445_v15 }
 0xd57   :  { %v9791_v10 = vmul.f32 %v16978_v55, %v16976_v4  ;;  %v19511_v4 = vld [vmem:[#allocation9 + $0xa0] ss:$16 sps:$4 sm:$0xff]   ;;  %v19513_v55 = vld [vmem:[#allocation9 + $0xa8] ss:$16 sps:$4 sm:$0xff]  }
 0xd58   :  { %10287 = vmatpush1.bf16.msra.mxu0 %v19199_v62  ;;  %10328 = vmatpush1.bf16.msra.mxu1 %v19201_v32  ;;  %v20721_v62 = vld [vmem:[#allocation25_spill] sm:$0xff]  ;;  %v20722_v32 = vld [vmem:[#allocation26_spill] sm:$0xff] }
 0xd59   :  { %10288 = vmatprep.subr.bf16.mxu0 %v19205_v19  ;;  %10329 = vmatprep.subr.bf16.mxu1 %v19207_v14  ;;  %9794 = vst [vmem:[#allocation10 + $0xa8] sm:$0xff] %v9791_v10  ;;  %v20723_v19 = vld [vmem:[#allocation27_spill] sm:$0xff]  ;;  %v20724_v14 = vld [vmem:[#allocation28_spill] sm:$0xff]  ;;  %v9817_v27 = vpack.c.bf16 %v9791_v10, %v9791_v10 }
 0xd5a   :  { %v19519_v10 = vld [vmem:[#allocation9 + $0xc4] ss:$16 sps:$4 sm:$0xff]  }
 0xd5c   :  { %10289 = vmatpush1.bf16.msra.mxu0 %v19213_v18  ;;  %10330 = vmatpush1.bf16.msra.mxu1 %v19215_v16  ;;  %v20725_v18 = vld [vmem:[#allocation29_spill] sm:$0xff]  ;;  %v20726_v16 = vld [vmem:[#allocation30_spill] sm:$0xff] }
 0xd5d   :  { %10290 = vmatprep.subr.bf16.mxu0 %v19219_v3  ;;  %10331 = vmatprep.subr.bf16.mxu1 %v19221_v7  ;;  %v20727_v3 = vld [vmem:[#allocation31_spill] sm:$0xff]  ;;  %v20728_v7 = vld [vmem:[#allocation32_spill] sm:$0xff] }
 0xd60   :  { %10291 = vmatpush1.bf16.msra.mxu0 %v19225_v48  ;;  %10332 = vmatpush1.bf16.msra.mxu1 %v19227_v33  ;;  %v20729_v48 = vld [vmem:[#allocation33_spill] sm:$0xff]  ;;  %v20730_v33 = vld [vmem:[#allocation34_spill] sm:$0xff] }
 0xd61   :  { %10292 = vmatprep.subr.bf16.mxu0 %v19231_v38  ;;  %10333 = vmatprep.subr.bf16.mxu1 %v20717_v57  ;;  %v20731_v38 = vld [vmem:[#allocation35_spill] sm:$0xff] }
 0xd62   :  { %v19521_v57 = vld [vmem:[#allocation9 + $0xcc] ss:$16 sps:$4 sm:$0xff]  }
 0xd64   :  { %10293 = vmatpush1.bf16.msra.mxu0 %v20718_v12  ;;  %10334 = vmatpush1.bf16.msra.mxu1 %v20719_v42  ;;  %v19523_v12 = vld [vmem:[#allocation9 + $0xc0] ss:$16 sps:$4 sm:$0xff]   ;;  %v19525_v42 = vld [vmem:[#allocation9 + $0xc8] ss:$16 sps:$4 sm:$0xff]  }
 0xd65   :  { %10294 = vmatprep.subr.bf16.mxu0 %v20720_v53  ;;  %10335 = vmatprep.subr.bf16.mxu1 %v20721_v62  ;;  %20740 = vst [vmem:[#allocation14_spill] sm:$0xff] %v19525_v42  ;;  %v19529_v53 = vld [vmem:[#allocation9 + $0xe4] ss:$16 sps:$4 sm:$0xff]   ;;  %v19531_v62 = vld [vmem:[#allocation9 + $0xec] ss:$16 sps:$4 sm:$0xff]  }
 0xd66   :  { %20741 = vst [vmem:[#allocation15_spill] sm:$0xff] %v19529_v53  ;;  %20742 = vst [vmem:[#allocation16_spill] sm:$0xff] %v19531_v62 }
 0xd68   :  { %10295 = vmatpush1.bf16.msra.mxu0 %v20722_v32  ;;  %10336 = vmatpush1.bf16.msra.mxu1 %v20723_v19  ;;  %v19535_v32 = vld [vmem:[#allocation9 + $0xe0] ss:$16 sps:$4 sm:$0xff]   ;;  %v19537_v19 = vld [vmem:[#allocation9 + $0xe8] ss:$16 sps:$4 sm:$0xff]  }
 0xd69   :  { %10296 = vmatprep.subr.bf16.mxu0 %v20724_v14  ;;  %10337 = vmatprep.subr.bf16.mxu1 %v20725_v18  ;;  %20743 = vst [vmem:[#allocation17_spill] sm:$0xff] %v19535_v32  ;;  %20744 = vst [vmem:[#allocation18_spill] sm:$0xff] %v19537_v19  ;;  %v19541_v14 = vld [vmem:[#allocation9 + $0x104] ss:$16 sps:$4 sm:$0xff]   ;;  %v19543_v18 = vld [vmem:[#allocation9 + $0x10c] ss:$16 sps:$4 sm:$0xff]  }
 0xd6a   :  { %20745 = vst [vmem:[#allocation19_spill] sm:$0xff] %v19541_v14  ;;  %20746 = vst [vmem:[#allocation20_spill] sm:$0xff] %v19543_v18 }
 0xd6c   :  { %10297 = vmatpush1.bf16.msra.mxu0 %v20726_v16  ;;  %10338 = vmatpush1.bf16.msra.mxu1 %v20727_v3 }
 0xd6d   :  { %10298 = vmatprep.subr.bf16.mxu0 %v20728_v7  ;;  %10339 = vmatprep.subr.bf16.mxu1 %v20729_v48 }
 0xd70   :  { %10299 = vmatpush1.bf16.msra.mxu0 %v20730_v33  ;;  %10340 = vmatpush1.bf16.msra.mxu1 %v20731_v38 }
 0xd71   :  { %10409 = vmatprep.subr.bf16.mxu0 %v19279_v23  ;;  %10450 = vmatprep.subr.bf16.mxu1 %v20732_v28  ;;  %v20738_v23 = vld [vmem:[#allocation42_spill] sm:$0xff] }
 0xd73   :  { %10317 = vmatmul.mubr.bf16.vlgmr.msra.gmra.mrb[180].mxu0 %v9817_v27  ;;  %10358 = vmatmul.mubr.bf16.vlgmr.msra.gmra.mrb[180].mxu1 %v9817_v27 }
 0xd74   :  { %10410 = vmatpush1.bf16.msra.mxu0 %v20733_v8  ;;  %10451 = vmatpush1.bf16.msra.mxu1 %v20734_v54 }
 0xd75   :  { %10411 = vmatprep.subr.bf16.mxu0 %v20735_v61  ;;  %10452 = vmatprep.subr.bf16.mxu1 %v20736_v31 }
 0xd76   :  { %10441 = vmatprep.mubr.bf16.mxu0 %v20445_v15  ;;  %10482 = vmatprep.mubr.bf16.mxu1 %v20445_v15 }
 0xd78   :  { %10412 = vmatpush1.bf16.msra.mxu0 %v20737_v49  ;;  %10453 = vmatpush1.bf16.msra.mxu1 %v20738_v23 }
 0xd79   :  { %10534 = vmatprep.subr.bf16.mxu0 %v19303_v29  ;;  %10575 = vmatprep.subr.bf16.mxu1 %v20739_v24  ;;  %v9799_v29 = vpack.c.bf16 %v9797_v59, %v9797_v59 }
 0xd7b   :  { %15279 = vmatmul.mubr.msk.bf16.vlgmr.msra.gmra.mrb[184].mxu0 %vm726_vm0, %v9798_v45  ;;  %15280 = vmatmul.mubr.msk.bf16.vlgmr.msra.gmra.mrb[184].mxu1 %vm726_vm0, %v9798_v45 }
 0xd7c   :  { %10535 = vmatpush1.bf16.msra.mxu0 %v19311_v17  ;;  %10576 = vmatpush1.bf16.msra.mxu1 %v19313_v63  ;;  %v19451_v63 = vld [vmem:[#allocation9] ss:$16 sps:$4 sm:$0xff]   ;;  %v19453_v17 = vld [vmem:[#allocation9 + $0x8] ss:$16 sps:$4 sm:$0xff]  }
 0xd7d   :  { %10536 = vmatprep.subr.bf16.mxu0 %v19317_v39  ;;  %10577 = vmatprep.subr.bf16.mxu1 %v19319_v56  ;;  %v19447_v39 = vld [vmem:[#allocation9 + $0x4] ss:$16 sps:$4 sm:$0xff]   ;;  %v19449_v56 = vld [vmem:[#allocation9 + $0xc] ss:$16 sps:$4 sm:$0xff]  }
 0xd7e   :  { %10566 = vmatprep.mubr.bf16.mxu0 %v20445_v15  ;;  %10607 = vmatprep.mubr.bf16.mxu1 %v20445_v15 }
 0xd80   :  { %10537 = vmatpush1.bf16.msra.mxu0 %v19325_v34  ;;  %10578 = vmatpush1.bf16.msra.mxu1 %v19327_v26  ;;  %v19459_v26 = vld [vmem:[#allocation9 + $0x24] ss:$16 sps:$4 sm:$0xff]   ;;  %v19461_v34 = vld [vmem:[#allocation9 + $0x2c] ss:$16 sps:$4 sm:$0xff]  }
 0xd81   :  { %10922 = vmatprep.subr.bf16.mxu0 %v19447_v39  ;;  %10963 = vmatprep.subr.bf16.mxu1 %v19449_v56 }
 0xd83   :  { %15289 = vmatmul.mubr.msk.bf16.vlgmr.msra.gmra.mrb[188].mxu0 %vm726_vm0, %v9799_v29  ;;  %15290 = vmatmul.mubr.msk.bf16.vlgmr.msra.gmra.mrb[188].mxu1 %vm726_vm0, %v9799_v29 }
 0xd84   :  { %10954 = vmatprep.mubr.bf16.mxu0 %v20445_v15  ;;  %10995 = vmatprep.mubr.bf16.mxu1 %v20445_v15 }
 0xd85   :  { %10923 = vmatpush1.bf16.msra.mxu0 %v19451_v63  ;;  %10964 = vmatpush1.bf16.msra.mxu1 %v19453_v17 }
 0xd86   :  { %10924 = vmatprep.subr.bf16.mxu0 %v19459_v26  ;;  %10965 = vmatprep.subr.bf16.mxu1 %v19461_v34 }
 0xd89   :  { %10925 = vmatpush1.bf16.msra.mxu0 %v19463_v0  ;;  %10966 = vmatpush1.bf16.msra.mxu1 %v19465_v11 }
 0xd8a   :  { %10926 = vmatprep.subr.bf16.mxu0 %v19471_v1  ;;  %10967 = vmatprep.subr.bf16.mxu1 %v19473_v44 }
 0xd8d   :  { %10927 = vmatpush1.bf16.msra.mxu0 %v19475_v43  ;;  %10968 = vmatpush1.bf16.msra.mxu1 %v19477_v47 }
 0xd8e   :  { %10928 = vmatprep.subr.bf16.mxu0 %v19483_v50  ;;  %10969 = vmatprep.subr.bf16.mxu1 %v19485_v40 }
 0xd91   :  { %10929 = vmatpush1.bf16.msra.mxu0 %v19487_v60  ;;  %10970 = vmatpush1.bf16.msra.mxu1 %v19489_v58 }
 0xd92   :  { %10930 = vmatprep.subr.bf16.mxu0 %v19495_v30  ;;  %10971 = vmatprep.subr.bf16.mxu1 %v19497_v5 }
 0xd95   :  { %10931 = vmatpush1.bf16.msra.mxu0 %v19499_v6  ;;  %10972 = vmatpush1.bf16.msra.mxu1 %v19501_v13 }
 0xd96   :  { %10932 = vmatprep.subr.bf16.mxu0 %v19507_v52  ;;  %10973 = vmatprep.subr.bf16.mxu1 %v19509_v21 }
 0xd99   :  { %10933 = vmatpush1.bf16.msra.mxu0 %v19511_v4  ;;  %10974 = vmatpush1.bf16.msra.mxu1 %v19513_v55 }
 0xd9a   :  { %10934 = vmatprep.subr.bf16.mxu0 %v19519_v10  ;;  %10975 = vmatprep.subr.bf16.mxu1 %v19521_v57 }
 0xd9d   :  { %10935 = vmatpush1.bf16.msra.mxu0 %v19523_v12  ;;  %10976 = vmatpush1.bf16.msra.mxu1 %v19525_v42 }
 0xd9e   :  { %10936 = vmatprep.subr.bf16.mxu0 %v19529_v53  ;;  %10977 = vmatprep.subr.bf16.mxu1 %v19531_v62 }
 0xda1   :  { %10937 = vmatpush1.bf16.msra.mxu0 %v19535_v32  ;;  %10978 = vmatpush1.bf16.msra.mxu1 %v19537_v19 }
 0xda2   :  { %11164 = vmatprep.subr.bf16.mxu0 %v19541_v14  ;;  %11205 = vmatprep.subr.bf16.mxu1 %v19543_v18 }
 0xe26   :  { %v10076_v16 = vpop.f32.mrb[176].mxu0  ;;  %v10117_v3 = vpop.f32.mrb[176].mxu1 }
 0xe27   :  { %v10078_v7 = vpop.f32.mrb[177].mxu0  ;;  %v10119_v48 = vpop.f32.mrb[177].mxu1 }
 0xe28   :  { %v10080_v33 = vpop.f32.mrb[178].mxu0  ;;  %v10121_v38 = vpop.f32.mrb[178].mxu1 }
 0xe29   :  { %v10081_v27 = vpop.f32.mrb[179].mxu0  ;;  %v10122_v28 = vpop.f32.mrb[179].mxu1 }
 0xe46   :  { %v10318_v8 = vpop.f32.mrb[180].mxu0  ;;  %v10359_v54 = vpop.f32.mrb[180].mxu1 }
 0xe47   :  { %v10320_v46 = vpop.f32.mrb[181].mxu0  ;;  %v10361_v61 = vpop.f32.mrb[181].mxu1 }
 0xe48   :  { %v10322_v31 = vpop.f32.mrb[182].mxu0  ;;  %v10363_v45 = vpop.f32.mrb[182].mxu1 }
 0xe49   :  { %v10323_v49 = vpop.f32.mrb[183].mxu0  ;;  %v10364_v23 = vpop.f32.mrb[183].mxu1 }
 0xe4e   :  { %v10443_v24 = vpop.f32.mrb[184].mxu0  ;;  %v10484_v59 = vpop.f32.mrb[184].mxu1 }
 0xe4f   :  { %v10444_v29 = vadd.f32 %v10443_v24, %v10076_v16  ;;  %v10485_v18 = vadd.f32 %v10484_v59, %v10117_v3  ;;  %v10445_v14 = vpop.f32.mrb[185].mxu0  ;;  %v10486_v19 = vpop.f32.mrb[185].mxu1 }
 0xe50   :  { %v10446_v32 = vadd.f32 %v10445_v14, %v10078_v7  ;;  %v10487_v62 = vadd.f32 %v10486_v19, %v10119_v48  ;;  %v10447_v33 = vpop.f32.mrb[186].mxu0  ;;  %v10488_v38 = vpop.f32.mrb[186].mxu1 }
 0xe51   :  { %v10616_v27 = vadd.f32 %v10444_v29, %v17520_v22  ;;  %v10448_v28 = vpop.f32.mrb[187].mxu0  ;;  %v10489_v53 = vpop.f32.mrb[187].mxu1 }
 0xe52   :  { %v10617_v42 = vadd.f32 %v10446_v32, %v17522_v25  ;;  %v10619_v19 = vadd.f32 %v10487_v62, %v17530_v35 }
 0xe53   :  { %v15291_v31 = vmul.f32 -1.442695, %v10616_v27 }
 0xe54   :  { %v15293_v45 = vmul.f32 -1.442695, %v10617_v42  ;;  %v15295_v27 = vmul.f32 -1.442695, %v10619_v19 }
 0xe55   :  { %16979 = vpow2.f32 %v15291_v31 }
 0xe56   :  { %16981 = vpow2.f32 %v15293_v45  ;;  %v10568_v49 = vpop.f32.mrb[188].mxu0  ;;  %v10609_v23 = vpop.f32.mrb[188].mxu1 }
 0xe57   :  { %v10569_v16 = vadd.f32 %v10568_v49, %v10318_v8  ;;  %v10610_v3 = vadd.f32 %v10609_v23, %v10359_v54  ;;  %v10570_v24 = vpop.f32.mrb[189].mxu0  ;;  %v10611_v59 = vpop.f32.mrb[189].mxu1  ;;  %v10618_v8 = vadd.f32 %v10485_v18, %v17538_v51 }
 0xe58   :  { %v10571_v14 = vadd.f32 %v10570_v24, %v10320_v46  ;;  %v10612_v7 = vadd.f32 %v10611_v59, %v10361_v61  ;;  %v10572_v48 = vpop.f32.mrb[190].mxu0  ;;  %v10613_v29 = vpop.f32.mrb[190].mxu1 }
 0xe59   :  { %v10620_v53 = vadd.f32 %v10569_v16, %v17533_v37  ;;  %v10573_v33 = vpop.f32.mrb[191].mxu0  ;;  %v10614_v32 = vpop.f32.mrb[191].mxu1  ;;  %v10622_v49 = vadd.f32 %v10610_v3, %v17546_v9 }
 0xe5a   :  { %v10621_v42 = vadd.f32 %v10571_v14, %v17535_v41  ;;  %v10623_v46 = vadd.f32 %v10612_v7, %v17542_v2 }
 0xe5b   :  { %v15292_v38 = vmul.f32 -1.442695, %v10620_v53 }
 0xe5c   :  { %v15294_v28 = vmul.f32 -1.442695, %v10621_v42  ;;  %v15296_v45 = vmul.f32 -1.442695, %v10623_v46  ;;  %v19565_v46 = vld [vmem:[#allocation9 + $0x100] ss:$16 sps:$4 sm:$0xff]  }
 0xe5d   :  { %16983 = vpow2.f32 %v15292_v38 }
 0xe5e   :  { %16985 = vpow2.f32 %v15294_v28 }
 0xe5f   :  { %v16980_v54 = vpop.eup %16979  ;;  %16987 = vpow2.f32 %v15295_v27 }
 0xe60   :  { %v16982_v31 = vpop.eup %16981  ;;  %v10630_v62 = vadd.f32 1.0, %v16980_v54  ;;  %16989 = vtanh.f32 %v10618_v8 }
 0xe61   :  { %v10642_v61 = vadd.f32 1.0, %v16982_v31 }
 0xe62   :  { %16991 = vrcp.f32 %v10630_v62 }
 0xe63   :  { %16993 = vrcp.f32 %v10642_v61  ;;  %v19567_v61 = vld [vmem:[#allocation9 + $0x108] ss:$16 sps:$4 sm:$0xff]  }
 0xe64   :  { %16995 = vpow2.f32 %v15296_v45 }
 0xe65   :  { %16997 = vtanh.f32 %v10622_v49  ;;  %v19569_v49 = vld [vmem:[#allocation9 + $0x124] ss:$16 sps:$4 sm:$0xff]  }
 0xe67   :  { %v16984_v23 = vpop.eup %16983 }
 0xe68   :  { %v16986_v16 = vpop.eup %16985  ;;  %v10631_v24 = vadd.f32 1.0, %v16984_v23  ;;  %v19571_v23 = vld [vmem:[#allocation9 + $0x12c] ss:$16 sps:$4 sm:$0xff]  }
 0xe69   :  { %v10643_v18 = vadd.f32 1.0, %v16986_v16  ;;  %v16988_v59 = vpop.eup %16987  ;;  %v19577_v16 = vld [vmem:[#allocation9 + $0x128] ss:$16 sps:$4 sm:$0xff]  }
 0xe6a   :  { %16999 = vrcp.f32 %v10631_v24  ;;  %v16990_v19 = vpop.eup %16989  ;;  %v10656_v29 = vadd.f32 1.0, %v16988_v59  ;;  %v19583_v59 = vld [vmem:[#allocation9 + $0x14c] ss:$16 sps:$4 sm:$0xff]  }
 0xe6b   :  { %17001 = vrcp.f32 %v10643_v18  ;;  %v19581_v18 = vld [vmem:[#allocation9 + $0x144] ss:$16 sps:$4 sm:$0xff]  }
 0xe6c   :  { %v16992_v14 = vpop.eup %16991  ;;  %17003 = vrcp.f32 %v10656_v29  ;;  %v19595_v29 = vld [vmem:[#allocation9 + $0x164] ss:$16 sps:$4 sm:$0xff]  }
 0xe6d   :  { %v16994_v48 = vpop.eup %16993  ;;  %v10664_v7 = vmul.f32 %v16992_v14, %v16990_v19 }
 0xe6e   :  { %v10662_v53 = vmul.f32 %v16994_v48, %v19382_v36  ;;  %v16996_v3 = vpop.eup %16995  ;;  %v19589_v48 = vld [vmem:[#allocation9 + $0x140] ss:$16 sps:$4 sm:$0xff]  }
 0xe6f   :  { %v16998_v32 = vpop.eup %16997  ;;  %v10657_v28 = vadd.f32 1.0, %v16996_v3  ;;  %v19601_v3 = vld [vmem:[#allocation9 + $0x160] ss:$16 sps:$4 sm:$0xff]  }
 0xe70   :  { %v19558_v33 = vadd.f32 %v10664_v7, %v10662_v53  ;;  %v19591_v7 = vld [vmem:[#allocation9 + $0x148] ss:$16 sps:$4 sm:$0xff]   ;;  %v19597_v53 = vld [vmem:[#allocation9 + $0x16c] ss:$16 sps:$4 sm:$0xff]  }
 0xe72   :  { %17005 = vtanh.f32 %v19558_v33 }
 0xe73   :  { %17007 = vrcp.f32 %v10657_v28  ;;  %v19615_v28 = vld [vmem:[#allocation9 + $0x188] ss:$16 sps:$4 sm:$0xff]  }
 0xe74   :  { %v17000_v42 = vpop.eup %16999  ;;  %20749 = vst [vmem:[#allocation23_spill] sm:$0xff] %v19615_v28 }
 0xe75   :  { %v17002_v38 = vpop.eup %17001  ;;  %v10665_v27 = vmul.f32 %v17000_v42, %v16998_v32  ;;  %v19603_v32 = vld [vmem:[#allocation9 + $0x168] ss:$16 sps:$4 sm:$0xff]   ;;  %v19607_v42 = vld [vmem:[#allocation9 + $0x184] ss:$16 sps:$4 sm:$0xff]  }
 0xe76   :  { %v10663_v8 = vmul.f32 %v17002_v38, %v19386_v20  ;;  %v17004_v31 = vpop.eup %17003  ;;  %v19575_v20 = vld [vmem:[#allocation9 + $0x120] ss:$16 sps:$4 sm:$0xff]   ;;  %v19609_v38 = vld [vmem:[#allocation9 + $0x18c] ss:$16 sps:$4 sm:$0xff]  }
 0xe77   :  { %20747 = vst [vmem:[#allocation21_spill] sm:$0xff] %v19609_v38 }
 0xe78   :  { %v19562_v54 = vadd.f32 %v10665_v27, %v10663_v8  ;;  %v19613_v27 = vld [vmem:[#allocation9 + $0x180] ss:$16 sps:$4 sm:$0xff]   ;;  %v19619_v8 = vld [vmem:[#allocation9 + $0x1a4] ss:$16 sps:$4 sm:$0xff]  }
 0xe79   :  { %20748 = vst [vmem:[#allocation22_spill] sm:$0xff] %v19613_v27  ;;  %20750 = vst [vmem:[#allocation24_spill] sm:$0xff] %v19619_v8 }
 0xe7a   :  { %17009 = vtanh.f32 %v19562_v54 }
 0xe7c   :  { %v17006_v36 = vpop.eup %17005 }
 0xe7d   :  { %v10670_v62 = vmul.f32 %v17006_v36, %v17004_v31  ;;  %v17008_v24 = vpop.eup %17007  ;;  %v19621_v31 = vld [vmem:[#allocation9 + $0x1ac] ss:$16 sps:$4 sm:$0xff]   ;;  %v19625_v36 = vld [vmem:[#allocation9 + $0x1a0] ss:$16 sps:$4 sm:$0xff]  }
 0xe7e   :  { %20751 = vst [vmem:[#allocation25_spill] sm:$0xff] %v19621_v31  ;;  %20752 = vst [vmem:[#allocation26_spill] sm:$0xff] %v19625_v36 }
 0xe7f   :  { %10673 = vst [vmem:[#allocation10 + $0xb0] sm:$0xff] %v10670_v62  ;;  %v10696_v45 = vpack.c.bf16 %v10670_v62, %v10670_v62  ;;  %v19627_v62 = vld [vmem:[#allocation9 + $0x1a8] ss:$16 sps:$4 sm:$0xff]  }
 0xe80   :  { %20753 = vst [vmem:[#allocation27_spill] sm:$0xff] %v19627_v62 }
 0xe81   :  { %10955 = vmatmul.mubr.bf16.vlgmr.msra.gmra.mrb[192].mxu0 %v10696_v45  ;;  %10996 = vmatmul.mubr.bf16.vlgmr.msra.gmra.mrb[192].mxu1 %v10696_v45  ;;  %v19631_v45 = vld [vmem:[#allocation9 + $0x1c4] ss:$16 sps:$4 sm:$0xff]  }
 0xe82   :  { %11165 = vmatpush1.bf16.msra.mxu0 %v19565_v46  ;;  %11206 = vmatpush1.bf16.msra.mxu1 %v19567_v61  ;;  %20754 = vst [vmem:[#allocation28_spill] sm:$0xff] %v19631_v45 }
 0xe83   :  { %11166 = vmatprep.subr.bf16.mxu0 %v19569_v49  ;;  %11207 = vmatprep.subr.bf16.mxu1 %v19571_v23 }
 0xe84   :  { %v17010_v19 = vpop.eup %17009  ;;  %11196 = vmatprep.mubr.bf16.mxu0 %v20445_v15  ;;  %11237 = vmatprep.mubr.bf16.mxu1 %v20445_v15 }
 0xe85   :  { %v10671_v14 = vmul.f32 %v17010_v19, %v17008_v24  ;;  %v19633_v24 = vld [vmem:[#allocation9 + $0x1cc] ss:$16 sps:$4 sm:$0xff]   ;;  %v19637_v19 = vld [vmem:[#allocation9 + $0x1c0] ss:$16 sps:$4 sm:$0xff]  }
 0xe86   :  { %11167 = vmatpush1.bf16.msra.mxu0 %v19575_v20  ;;  %11208 = vmatpush1.bf16.msra.mxu1 %v19577_v16  ;;  %20755 = vst [vmem:[#allocation29_spill] sm:$0xff] %v19633_v24  ;;  %20756 = vst [vmem:[#allocation30_spill] sm:$0xff] %v19637_v19 }
 0xe87   :  { %11168 = vmatprep.subr.bf16.mxu0 %v19581_v18  ;;  %11209 = vmatprep.subr.bf16.mxu1 %v19583_v59  ;;  %10674 = vst [vmem:[#allocation10 + $0xb8] sm:$0xff] %v10671_v14 }
 0xe8a   :  { %11169 = vmatpush1.bf16.msra.mxu0 %v19589_v48  ;;  %11210 = vmatpush1.bf16.msra.mxu1 %v19591_v7 }
 0xe8b   :  { %11170 = vmatprep.subr.bf16.mxu0 %v19595_v29  ;;  %11211 = vmatprep.subr.bf16.mxu1 %v19597_v53 }
 0xe8e   :  { %11171 = vmatpush1.bf16.msra.mxu0 %v19601_v3  ;;  %11212 = vmatpush1.bf16.msra.mxu1 %v19603_v32 }
 0xe8f   :  { %11172 = vmatprep.subr.bf16.mxu0 %v19607_v42  ;;  %11213 = vmatprep.subr.bf16.mxu1 %v19609_v38  ;;  %v10676_v38 = vld [vmem:[#allocation4 + $0xc0] sm:$0xff] }
 0xe92   :  { %11173 = vmatpush1.bf16.msra.mxu0 %v19613_v27  ;;  %11214 = vmatpush1.bf16.msra.mxu1 %v19615_v28  ;;  %v19639_v27 = vld [vmem:[#allocation9 + $0x1c8] ss:$16 sps:$4 sm:$0xff]   ;;  %v19643_v28 = vld [vmem:[#allocation9 + $0x1e4] ss:$16 sps:$4 sm:$0xff]  }
 0xe93   :  { %11174 = vmatprep.subr.bf16.mxu0 %v19619_v8  ;;  %11215 = vmatprep.subr.bf16.mxu1 %v19621_v31  ;;  %20757 = vst [vmem:[#allocation31_spill] sm:$0xff] %v19639_v27  ;;  %20758 = vst [vmem:[#allocation32_spill] sm:$0xff] %v19643_v28  ;;  %v19645_v8 = vld [vmem:[#allocation9 + $0x1ec] ss:$16 sps:$4 sm:$0xff]   ;;  %v19649_v31 = vld [vmem:[#allocation9 + $0x1e0] ss:$16 sps:$4 sm:$0xff]  }
 0xe94   :  { %20759 = vst [vmem:[#allocation33_spill] sm:$0xff] %v19645_v8  ;;  %20760 = vst [vmem:[#allocation34_spill] sm:$0xff] %v19649_v31 }
 0xe96   :  { %11175 = vmatpush1.bf16.msra.mxu0 %v19625_v36  ;;  %11216 = vmatpush1.bf16.msra.mxu1 %v19627_v62  ;;  %v19651_v36 = vld [vmem:[#allocation9 + $0x1e8] ss:$16 sps:$4 sm:$0xff]   ;;  %v19655_v62 = vld [vmem:[#allocation7 + $0x4] ss:$16 sps:$4 sm:$0xff]  }
 0xe97   :  { %11176 = vmatprep.subr.bf16.mxu0 %v19631_v45  ;;  %11217 = vmatprep.subr.bf16.mxu1 %v19633_v24  ;;  %20761 = vst [vmem:[#allocation35_spill] sm:$0xff] %v19651_v36  ;;  %v19657_v45 = vld [vmem:[#allocation7 + $0xc] ss:$16 sps:$4 sm:$0xff]   ;;  %v19661_v24 = vld [vmem:[#allocation7] ss:$16 sps:$4 sm:$0xff]  }
 0xe98   :  { %20762 = vst [vmem:[#allocation36_spill] sm:$0xff] %v19657_v45  ;;  %20763 = vst [vmem:[#allocation37_spill] sm:$0xff] %v19661_v24 }
 0xe9a   :  { %11177 = vmatpush1.bf16.msra.mxu0 %v19637_v19  ;;  %11218 = vmatpush1.bf16.msra.mxu1 %v19639_v27  ;;  %v19663_v19 = vld [vmem:[#allocation7 + $0x8] ss:$16 sps:$4 sm:$0xff]   ;;  %v10697_v27 = vpack.c.bf16 %v10671_v14, %v10671_v14  ;;  %v19679_v14 = vld [vmem:[#allocation7 + $0x44] ss:$16 sps:$4 sm:$0xff]  }
 0xe9b   :  { %11178 = vmatprep.subr.bf16.mxu0 %v19643_v28  ;;  %11219 = vmatprep.subr.bf16.mxu1 %v19645_v8  ;;  %20764 = vst [vmem:[#allocation38_spill] sm:$0xff] %v19663_v19  ;;  %v19667_v28 = vld [vmem:[#allocation7 + $0x24] ss:$16 sps:$4 sm:$0xff]   ;;  %v19669_v8 = vld [vmem:[#allocation7 + $0x2c] ss:$16 sps:$4 sm:$0xff]  }
 0xe9c   :  { %20765 = vst [vmem:[#allocation39_spill] sm:$0xff] %v19667_v28  ;;  %20766 = vst [vmem:[#allocation40_spill] sm:$0xff] %v19669_v8 }
 0xe9e   :  { %11179 = vmatpush1.bf16.msra.mxu0 %v19649_v31  ;;  %11220 = vmatpush1.bf16.msra.mxu1 %v19651_v36  ;;  %v19673_v36 = vld [vmem:[#allocation7 + $0x20] ss:$16 sps:$4 sm:$0xff]   ;;  %v19675_v31 = vld [vmem:[#allocation7 + $0x28] ss:$16 sps:$4 sm:$0xff]  }
 0xe9f   :  { %11289 = vmatprep.subr.bf16.mxu0 %v19655_v62  ;;  %11330 = vmatprep.subr.bf16.mxu1 %v19657_v45  ;;  %20767 = vst [vmem:[#allocation41_spill] sm:$0xff] %v19673_v36  ;;  %20768 = vst [vmem:[#allocation42_spill] sm:$0xff] %v19675_v31  ;;  %v19681_v45 = vld [vmem:[#allocation7 + $0x4c] ss:$16 sps:$4 sm:$0xff]  }
 0xea0   :  { %20769 = vst [vmem:[#allocation43_spill] sm:$0xff] %v19681_v45 }
 0xea1   :  { %11197 = vmatmul.mubr.bf16.vlgmr.msra.gmra.mrb[196].mxu0 %v10697_v27  ;;  %11238 = vmatmul.mubr.bf16.vlgmr.msra.gmra.mrb[196].mxu1 %v10697_v27  ;;  %v10678_v27 = vpack.c.bf16 %v10676_v38, %v10676_v38  ;;  %v19701_v38 = vld [vmem:[#allocation7 + $0x60] ss:$16 sps:$4 sm:$0xff]  }
 0xea2   :  { %11290 = vmatpush1.bf16.msra.mxu0 %v19661_v24  ;;  %11331 = vmatpush1.bf16.msra.mxu1 %v19663_v19  ;;  %v19687_v19 = vld [vmem:[#allocation7 + $0x40] ss:$16 sps:$4 sm:$0xff]   ;;  %v19689_v24 = vld [vmem:[#allocation7 + $0x48] ss:$16 sps:$4 sm:$0xff]  }
 0xea3   :  { %11291 = vmatprep.subr.bf16.mxu0 %v19667_v28  ;;  %11332 = vmatprep.subr.bf16.mxu1 %v19669_v8  ;;  %v19693_v8 = vld [vmem:[#allocation7 + $0x64] ss:$16 sps:$4 sm:$0xff]   ;;  %v19695_v28 = vld [vmem:[#allocation7 + $0x6c] ss:$16 sps:$4 sm:$0xff]  }
 0xea4   :  { %11321 = vmatprep.mubr.bf16.mxu0 %v20445_v15  ;;  %11362 = vmatprep.mubr.bf16.mxu1 %v20445_v15 }
 0xea6   :  { %11292 = vmatpush1.bf16.msra.mxu0 %v19673_v36  ;;  %11333 = vmatpush1.bf16.msra.mxu1 %v19675_v31  ;;  %v19703_v31 = vld [vmem:[#allocation7 + $0x68] ss:$16 sps:$4 sm:$0xff]  }
 0xea7   :  { %11414 = vmatprep.subr.bf16.mxu0 %v19679_v14  ;;  %11455 = vmatprep.subr.bf16.mxu1 %v19681_v45  ;;  %v10677_v36 = vld [vmem:[#allocation4 + $0xc8] sm:$0xff] }
 0xea8   :  { %v10679_v45 = vpack.c.bf16 %v10677_v36, %v10677_v36 }
 0xea9   :  { %15369 = vmatmul.mubr.msk.bf16.vlgmr.msra.gmra.mrb[200].mxu0 %vm726_vm0, %v10678_v27  ;;  %15370 = vmatmul.mubr.msk.bf16.vlgmr.msra.gmra.mrb[200].mxu1 %vm726_vm0, %v10678_v27 }
 0xeaa   :  { %11415 = vmatpush1.bf16.msra.mxu0 %v19687_v19  ;;  %11456 = vmatpush1.bf16.msra.mxu1 %v19689_v24 }
 0xeab   :  { %11416 = vmatprep.subr.bf16.mxu0 %v19693_v8  ;;  %11457 = vmatprep.subr.bf16.mxu1 %v19695_v28 }
 0xeac   :  { %11446 = vmatprep.mubr.bf16.mxu0 %v20445_v15  ;;  %11487 = vmatprep.mubr.bf16.mxu1 %v20445_v15 }
 0xeae   :  { %11417 = vmatpush1.bf16.msra.mxu0 %v19701_v38  ;;  %11458 = vmatpush1.bf16.msra.mxu1 %v19703_v31 }
 0xeaf   :  { %11802 = vmatprep.subr.bf16.mxu0 %v19447_v39  ;;  %11843 = vmatprep.subr.bf16.mxu1 %v19449_v56  ;;  %v20770_v39 = vld [vmem:[#allocation14_spill] sm:$0xff]  ;;  %v20771_v56 = vld [vmem:[#allocation15_spill] sm:$0xff] }
 0xeb1   :  { %15379 = vmatmul.mubr.msk.bf16.vlgmr.msra.gmra.mrb[204].mxu0 %vm726_vm0, %v10679_v45  ;;  %15380 = vmatmul.mubr.msk.bf16.vlgmr.msra.gmra.mrb[204].mxu1 %vm726_vm0, %v10679_v45 }
 0xeb2   :  { %11803 = vmatpush1.bf16.msra.mxu0 %v19451_v63  ;;  %11844 = vmatpush1.bf16.msra.mxu1 %v19453_v17  ;;  %v20772_v63 = vld [vmem:[#allocation16_spill] sm:$0xff]  ;;  %v20773_v17 = vld [vmem:[#allocation17_spill] sm:$0xff] }
 0xeb3   :  { %11804 = vmatprep.subr.bf16.mxu0 %v19459_v26  ;;  %11845 = vmatprep.subr.bf16.mxu1 %v19461_v34  ;;  %v20774_v26 = vld [vmem:[#allocation18_spill] sm:$0xff]  ;;  %v20775_v34 = vld [vmem:[#allocation19_spill] sm:$0xff] }
 0xeb4   :  { %11834 = vmatprep.mubr.bf16.mxu0 %v20445_v15  ;;  %11875 = vmatprep.mubr.bf16.mxu1 %v20445_v15 }
 0xeb6   :  { %11805 = vmatpush1.bf16.msra.mxu0 %v19463_v0  ;;  %11846 = vmatpush1.bf16.msra.mxu1 %v19465_v11  ;;  %v20776_v0 = vld [vmem:[#allocation20_spill] sm:$0xff] }
 0xeb7   :  { %11806 = vmatprep.subr.bf16.mxu0 %v19471_v1  ;;  %11847 = vmatprep.subr.bf16.mxu1 %v19473_v44 }
 0xeba   :  { %11807 = vmatpush1.bf16.msra.mxu0 %v19475_v43  ;;  %11848 = vmatpush1.bf16.msra.mxu1 %v19477_v47 }
 0xebb   :  { %11808 = vmatprep.subr.bf16.mxu0 %v19483_v50  ;;  %11849 = vmatprep.subr.bf16.mxu1 %v19485_v40 }
 0xebe   :  { %11809 = vmatpush1.bf16.msra.mxu0 %v19487_v60  ;;  %11850 = vmatpush1.bf16.msra.mxu1 %v19489_v58 }
 0xebf   :  { %11810 = vmatprep.subr.bf16.mxu0 %v19495_v30  ;;  %11851 = vmatprep.subr.bf16.mxu1 %v19497_v5 }
 0xec2   :  { %11811 = vmatpush1.bf16.msra.mxu0 %v19499_v6  ;;  %11852 = vmatpush1.bf16.msra.mxu1 %v19501_v13 }
 0xec3   :  { %11812 = vmatprep.subr.bf16.mxu0 %v19507_v52  ;;  %11853 = vmatprep.subr.bf16.mxu1 %v19509_v21 }
 0xec6   :  { %11813 = vmatpush1.bf16.msra.mxu0 %v19511_v4  ;;  %11854 = vmatpush1.bf16.msra.mxu1 %v19513_v55 }
 0xec7   :  { %11814 = vmatprep.subr.bf16.mxu0 %v19519_v10  ;;  %11855 = vmatprep.subr.bf16.mxu1 %v19521_v57 }
 0xeca   :  { %11815 = vmatpush1.bf16.msra.mxu0 %v19523_v12  ;;  %11856 = vmatpush1.bf16.msra.mxu1 %v20770_v39 }
 0xecb   :  { %11816 = vmatprep.subr.bf16.mxu0 %v20771_v56  ;;  %11857 = vmatprep.subr.bf16.mxu1 %v20772_v63 }
 0xece   :  { %11817 = vmatpush1.bf16.msra.mxu0 %v20773_v17  ;;  %11858 = vmatpush1.bf16.msra.mxu1 %v20774_v26 }
 0xecf   :  { %12044 = vmatprep.subr.bf16.mxu0 %v20775_v34  ;;  %12085 = vmatprep.subr.bf16.mxu1 %v20776_v0 }
 0xf54   :  { %v10956_v11 = vpop.f32.mrb[192].mxu0  ;;  %v10997_v1 = vpop.f32.mrb[192].mxu1 }
 0xf55   :  { %v10958_v44 = vpop.f32.mrb[193].mxu0  ;;  %v10999_v43 = vpop.f32.mrb[193].mxu1 }
 0xf56   :  { %v10960_v47 = vpop.f32.mrb[194].mxu0  ;;  %v11001_v50 = vpop.f32.mrb[194].mxu1 }
 0xf57   :  { %v10961_v40 = vpop.f32.mrb[195].mxu0  ;;  %v11002_v60 = vpop.f32.mrb[195].mxu1 }
 0xf74   :  { %v11198_v58 = vpop.f32.mrb[196].mxu0  ;;  %v11239_v30 = vpop.f32.mrb[196].mxu1 }
 0xf75   :  { %v11200_v5 = vpop.f32.mrb[197].mxu0  ;;  %v11241_v6 = vpop.f32.mrb[197].mxu1 }
 0xf76   :  { %v11202_v13 = vpop.f32.mrb[198].mxu0  ;;  %v11243_v52 = vpop.f32.mrb[198].mxu1 }
 0xf77   :  { %v11203_v21 = vpop.f32.mrb[199].mxu0  ;;  %v11244_v4 = vpop.f32.mrb[199].mxu1 }
 0xf7c   :  { %v11323_v55 = vpop.f32.mrb[200].mxu0  ;;  %v11364_v10 = vpop.f32.mrb[200].mxu1 }
 0xf7d   :  { %v11324_v57 = vadd.f32 %v11323_v55, %v10956_v11  ;;  %v11365_v12 = vadd.f32 %v11364_v10, %v10997_v1  ;;  %v11325_v36 = vpop.f32.mrb[201].mxu0  ;;  %v11366_v45 = vpop.f32.mrb[201].mxu1 }
 0xf7e   :  { %v11326_v27 = vadd.f32 %v11325_v36, %v10958_v44  ;;  %v11367_v39 = vadd.f32 %v11366_v45, %v10999_v43  ;;  %v11327_v56 = vpop.f32.mrb[202].mxu0  ;;  %v11368_v63 = vpop.f32.mrb[202].mxu1 }
 0xf7f   :  { %v11496_v17 = vadd.f32 %v11324_v57, %v17520_v22  ;;  %v11328_v26 = vpop.f32.mrb[203].mxu0  ;;  %v11369_v34 = vpop.f32.mrb[203].mxu1 }
 0xf80   :  { %v11497_v0 = vadd.f32 %v11326_v27, %v17522_v25  ;;  %v11499_v44 = vadd.f32 %v11367_v39, %v17530_v35 }
 0xf81   :  { %v15381_v47 = vmul.f32 -1.442695, %v11496_v17 }
 0xf82   :  { %v15383_v50 = vmul.f32 -1.442695, %v11497_v0  ;;  %v15385_v56 = vmul.f32 -1.442695, %v11499_v44 }
 0xf83   :  { %17011 = vpow2.f32 %v15381_v47 }
 0xf84   :  { %17013 = vpow2.f32 %v15383_v50  ;;  %v11448_v40 = vpop.f32.mrb[204].mxu0  ;;  %v11489_v60 = vpop.f32.mrb[204].mxu1 }
 0xf85   :  { %v11449_v11 = vadd.f32 %v11448_v40, %v11198_v58  ;;  %v11490_v1 = vadd.f32 %v11489_v60, %v11239_v30  ;;  %v11450_v13 = vpop.f32.mrb[205].mxu0  ;;  %v11491_v52 = vpop.f32.mrb[205].mxu1  ;;  %v11498_v58 = vadd.f32 %v11365_v12, %v17538_v51 }
 0xf86   :  { %v11451_v43 = vadd.f32 %v11450_v13, %v11200_v5  ;;  %v11492_v21 = vadd.f32 %v11491_v52, %v11241_v6  ;;  %v11452_v4 = vpop.f32.mrb[206].mxu0  ;;  %v11493_v55 = vpop.f32.mrb[206].mxu1 }
 0xf87   :  { %v11500_v10 = vadd.f32 %v11449_v11, %v17533_v37  ;;  %v11453_v57 = vpop.f32.mrb[207].mxu0  ;;  %v11494_v36 = vpop.f32.mrb[207].mxu1  ;;  %v11502_v34 = vadd.f32 %v11490_v1, %v17546_v9 }
 0xf88   :  { %v11501_v45 = vadd.f32 %v11451_v43, %v17535_v41  ;;  %v11503_v5 = vadd.f32 %v11492_v21, %v17542_v2 }
 0xf89   :  { %v15382_v27 = vmul.f32 -1.442695, %v11500_v10 }
 0xf8a   :  { %v15384_v63 = vmul.f32 -1.442695, %v11501_v45  ;;  %v15386_v26 = vmul.f32 -1.442695, %v11503_v5  ;;  %v20792_v5 = vld [vmem:[#allocation36_spill] sm:$0xff] }
 0xf8b   :  { %17015 = vpow2.f32 %v15382_v27 }
 0xf8c   :  { %17017 = vpow2.f32 %v15384_v63 }
 0xf8d   :  { %v17012_v30 = vpop.eup %17011  ;;  %17019 = vpow2.f32 %v15385_v56 }
 0xf8e   :  { %v17014_v17 = vpop.eup %17013  ;;  %v11510_v39 = vadd.f32 1.0, %v17012_v30  ;;  %17021 = vtanh.f32 %v11498_v58 }
 0xf8f   :  { %v11522_v6 = vadd.f32 1.0, %v17014_v17 }
 0xf90   :  { %17023 = vrcp.f32 %v11510_v39 }
 0xf91   :  { %17025 = vrcp.f32 %v11522_v6  ;;  %v20793_v6 = vld [vmem:[#allocation37_spill] sm:$0xff] }
 0xf92   :  { %17027 = vpow2.f32 %v15386_v26  ;;  %v20794_v26 = vld [vmem:[#allocation38_spill] sm:$0xff] }
 0xf93   :  { %17029 = vtanh.f32 %v11502_v34  ;;  %v11556_v34 = vld [vmem:[#allocation4 + $0xd0] sm:$0xff] }
 0xf95   :  { %v17016_v0 = vpop.eup %17015 }
 0xf96   :  { %v17018_v47 = vpop.eup %17017  ;;  %v11511_v50 = vadd.f32 1.0, %v17016_v0  ;;  %v20795_v0 = vld [vmem:[#allocation39_spill] sm:$0xff] }
 0xf97   :  { %v11523_v12 = vadd.f32 1.0, %v17018_v47  ;;  %v17020_v40 = vpop.eup %17019  ;;  %v20796_v47 = vld [vmem:[#allocation40_spill] sm:$0xff] }
 0xf98   :  { %17031 = vrcp.f32 %v11511_v50  ;;  %v17022_v60 = vpop.eup %17021  ;;  %v11536_v44 = vadd.f32 1.0, %v17020_v40  ;;  %v11558_v50 = vpack.c.bf16 %v11556_v34, %v11556_v34  ;;  %v20799_v40 = vld [vmem:[#allocation43_spill] sm:$0xff] }
 0xf99   :  { %17033 = vrcp.f32 %v11523_v12  ;;  %v20797_v12 = vld [vmem:[#allocation41_spill] sm:$0xff] }
 0xf9a   :  { %v17024_v11 = vpop.eup %17023  ;;  %17035 = vrcp.f32 %v11536_v44  ;;  %v19849_v44 = vld [vmem:[#allocation9 + $0x4c] ss:$16 sps:$4 sm:$0xff]  }
 0xf9b   :  { %v17026_v13 = vpop.eup %17025  ;;  %v11544_v52 = vmul.f32 %v17024_v11, %v17022_v60  ;;  %v11557_v60 = vld [vmem:[#allocation4 + $0xd8] sm:$0xff]  ;;  %v19839_v11 = vld [vmem:[#allocation9 + $0x20] ss:$16 sps:$4 sm:$0xff]  }
 0xf9c   :  { %v11542_v43 = vmul.f32 %v17026_v13, %v19558_v33  ;;  %v17028_v1 = vpop.eup %17027  ;;  %v19841_v13 = vld [vmem:[#allocation9 + $0x28] ss:$16 sps:$4 sm:$0xff]  }
 0xf9d   :  { %v17030_v4 = vpop.eup %17029  ;;  %v11537_v36 = vadd.f32 1.0, %v17028_v1  ;;  %v19853_v1 = vld [vmem:[#allocation9 + $0x48] ss:$16 sps:$4 sm:$0xff]  }
 0xf9e   :  { %v19758_v21 = vadd.f32 %v11544_v52, %v11542_v43  ;;  %v19847_v52 = vld [vmem:[#allocation9 + $0x44] ss:$16 sps:$4 sm:$0xff]   ;;  %v19851_v43 = vld [vmem:[#allocation9 + $0x40] ss:$16 sps:$4 sm:$0xff]  }
 0xfa0   :  { %17037 = vtanh.f32 %v19758_v21 }
 0xfa1   :  { %17039 = vrcp.f32 %v11537_v36  ;;  %v19871_v36 = vld [vmem:[#allocation9 + $0x84] ss:$16 sps:$4 sm:$0xff]  }
 0xfa2   :  { %v17032_v55 = vpop.eup %17031 }
 0xfa3   :  { %v17034_v10 = vpop.eup %17033  ;;  %v11545_v57 = vmul.f32 %v17032_v55, %v17030_v4  ;;  %v19859_v4 = vld [vmem:[#allocation9 + $0x64] ss:$16 sps:$4 sm:$0xff]   ;;  %v19861_v55 = vld [vmem:[#allocation9 + $0x6c] ss:$16 sps:$4 sm:$0xff]  }
 0xfa4   :  { %v11543_v45 = vmul.f32 %v17034_v10, %v19562_v54  ;;  %v17036_v56 = vpop.eup %17035  ;;  %v19863_v10 = vld [vmem:[#allocation9 + $0x60] ss:$16 sps:$4 sm:$0xff]  }
 0xfa6   :  { %v19762_v27 = vadd.f32 %v11545_v57, %v11543_v45  ;;  %v19865_v57 = vld [vmem:[#allocation9 + $0x68] ss:$16 sps:$4 sm:$0xff]   ;;  %v19873_v45 = vld [vmem:[#allocation9 + $0x8c] ss:$16 sps:$4 sm:$0xff]  }
 0xfa8   :  { %17041 = vtanh.f32 %v19762_v27 }
 0xfaa   :  { %v17038_v33 = vpop.eup %17037 }
 0xfab   :  { %v11550_v63 = vmul.f32 %v17038_v33, %v17036_v56  ;;  %v17040_v30 = vpop.eup %17039  ;;  %v19875_v56 = vld [vmem:[#allocation9 + $0x80] ss:$16 sps:$4 sm:$0xff]   ;;  %v19877_v33 = vld [vmem:[#allocation9 + $0x88] ss:$16 sps:$4 sm:$0xff]  }
 0xfad   :  { %11553 = vst [vmem:[#allocation10 + $0xc0] sm:$0xff] %v11550_v63  ;;  %v11576_v58 = vpack.c.bf16 %v11550_v63, %v11550_v63  ;;  %v19883_v63 = vld [vmem:[#allocation9 + $0xa4] ss:$16 sps:$4 sm:$0xff]  }
 0xfaf   :  { %11835 = vmatmul.mubr.bf16.vlgmr.msra.gmra.mrb[208].mxu0 %v11576_v58  ;;  %11876 = vmatmul.mubr.bf16.vlgmr.msra.gmra.mrb[208].mxu1 %v11576_v58  ;;  %v19885_v58 = vld [vmem:[#allocation9 + $0xac] ss:$16 sps:$4 sm:$0xff]  }
 0xfb0   :  { %12045 = vmatpush1.bf16.msra.mxu0 %v19565_v46  ;;  %12086 = vmatpush1.bf16.msra.mxu1 %v19567_v61  ;;  %v20777_v46 = vld [vmem:[#allocation21_spill] sm:$0xff]  ;;  %v20778_v61 = vld [vmem:[#allocation22_spill] sm:$0xff] }
 0xfb1   :  { %12046 = vmatprep.subr.bf16.mxu0 %v19569_v49  ;;  %12087 = vmatprep.subr.bf16.mxu1 %v19571_v23  ;;  %v20779_v49 = vld [vmem:[#allocation23_spill] sm:$0xff]  ;;  %v20780_v23 = vld [vmem:[#allocation24_spill] sm:$0xff] }
 0xfb2   :  { %v17042_v54 = vpop.eup %17041  ;;  %12076 = vmatprep.mubr.bf16.mxu0 %v20445_v15  ;;  %12117 = vmatprep.mubr.bf16.mxu1 %v20445_v15 }
 0xfb3   :  { %v11551_v17 = vmul.f32 %v17042_v54, %v17040_v30  ;;  %v19887_v30 = vld [vmem:[#allocation9 + $0xa0] ss:$16 sps:$4 sm:$0xff]   ;;  %v19889_v54 = vld [vmem:[#allocation9 + $0xa8] ss:$16 sps:$4 sm:$0xff]  }
 0xfb4   :  { %12047 = vmatpush1.bf16.msra.mxu0 %v19575_v20  ;;  %12088 = vmatpush1.bf16.msra.mxu1 %v19577_v16  ;;  %v20781_v20 = vld [vmem:[#allocation25_spill] sm:$0xff]  ;;  %v20782_v16 = vld [vmem:[#allocation26_spill] sm:$0xff] }
 0xfb5   :  { %12048 = vmatprep.subr.bf16.mxu0 %v19581_v18  ;;  %12089 = vmatprep.subr.bf16.mxu1 %v19583_v59  ;;  %11554 = vst [vmem:[#allocation10 + $0xc8] sm:$0xff] %v11551_v17  ;;  %v20783_v18 = vld [vmem:[#allocation27_spill] sm:$0xff]  ;;  %v20784_v59 = vld [vmem:[#allocation28_spill] sm:$0xff]  ;;  %v11577_v39 = vpack.c.bf16 %v11551_v17, %v11551_v17 }
 0xfb6   :  { %v19895_v17 = vld [vmem:[#allocation9 + $0xc4] ss:$16 sps:$4 sm:$0xff]  }
 0xfb8   :  { %12049 = vmatpush1.bf16.msra.mxu0 %v19589_v48  ;;  %12090 = vmatpush1.bf16.msra.mxu1 %v19591_v7  ;;  %v20785_v48 = vld [vmem:[#allocation29_spill] sm:$0xff]  ;;  %v20786_v7 = vld [vmem:[#allocation30_spill] sm:$0xff] }
 0xfb9   :  { %12050 = vmatprep.subr.bf16.mxu0 %v19595_v29  ;;  %12091 = vmatprep.subr.bf16.mxu1 %v19597_v53  ;;  %v20787_v29 = vld [vmem:[#allocation31_spill] sm:$0xff]  ;;  %v20788_v53 = vld [vmem:[#allocation32_spill] sm:$0xff] }
 0xfbc   :  { %12051 = vmatpush1.bf16.msra.mxu0 %v19601_v3  ;;  %12092 = vmatpush1.bf16.msra.mxu1 %v19603_v32  ;;  %v20789_v3 = vld [vmem:[#allocation33_spill] sm:$0xff]  ;;  %v20790_v32 = vld [vmem:[#allocation34_spill] sm:$0xff] }
 0xfbd   :  { %12052 = vmatprep.subr.bf16.mxu0 %v19607_v42  ;;  %12093 = vmatprep.subr.bf16.mxu1 %v20777_v46  ;;  %v20791_v42 = vld [vmem:[#allocation35_spill] sm:$0xff] }
 0xfbe   :  { %v19897_v46 = vld [vmem:[#allocation9 + $0xcc] ss:$16 sps:$4 sm:$0xff]  }
 0xfc0   :  { %12053 = vmatpush1.bf16.msra.mxu0 %v20778_v61  ;;  %12094 = vmatpush1.bf16.msra.mxu1 %v20779_v49  ;;  %v19899_v61 = vld [vmem:[#allocation9 + $0xc0] ss:$16 sps:$4 sm:$0xff]   ;;  %v19901_v49 = vld [vmem:[#allocation9 + $0xc8] ss:$16 sps:$4 sm:$0xff]  }
 0xfc1   :  { %12054 = vmatprep.subr.bf16.mxu0 %v20780_v23  ;;  %12095 = vmatprep.subr.bf16.mxu1 %v20781_v20  ;;  %20800 = vst [vmem:[#allocation14_spill] sm:$0xff] %v19901_v49  ;;  %v19905_v23 = vld [vmem:[#allocation9 + $0xe4] ss:$16 sps:$4 sm:$0xff]   ;;  %v19907_v20 = vld [vmem:[#allocation9 + $0xec] ss:$16 sps:$4 sm:$0xff]  }
 0xfc2   :  { %20801 = vst [vmem:[#allocation15_spill] sm:$0xff] %v19905_v23  ;;  %20802 = vst [vmem:[#allocation16_spill] sm:$0xff] %v19907_v20 }
 0xfc4   :  { %12055 = vmatpush1.bf16.msra.mxu0 %v20782_v16  ;;  %12096 = vmatpush1.bf16.msra.mxu1 %v20783_v18  ;;  %v19911_v16 = vld [vmem:[#allocation9 + $0xe0] ss:$16 sps:$4 sm:$0xff]   ;;  %v19913_v18 = vld [vmem:[#allocation9 + $0xe8] ss:$16 sps:$4 sm:$0xff]  }
 0xfc5   :  { %12056 = vmatprep.subr.bf16.mxu0 %v20784_v59  ;;  %12097 = vmatprep.subr.bf16.mxu1 %v20785_v48  ;;  %20803 = vst [vmem:[#allocation17_spill] sm:$0xff] %v19911_v16  ;;  %20804 = vst [vmem:[#allocation18_spill] sm:$0xff] %v19913_v18  ;;  %v19917_v59 = vld [vmem:[#allocation9 + $0x104] ss:$16 sps:$4 sm:$0xff]   ;;  %v19919_v48 = vld [vmem:[#allocation9 + $0x10c] ss:$16 sps:$4 sm:$0xff]  }
 0xfc6   :  { %20805 = vst [vmem:[#allocation19_spill] sm:$0xff] %v19917_v59  ;;  %20806 = vst [vmem:[#allocation20_spill] sm:$0xff] %v19919_v48 }
 0xfc8   :  { %12057 = vmatpush1.bf16.msra.mxu0 %v20786_v7  ;;  %12098 = vmatpush1.bf16.msra.mxu1 %v20787_v29 }
 0xfc9   :  { %12058 = vmatprep.subr.bf16.mxu0 %v20788_v53  ;;  %12099 = vmatprep.subr.bf16.mxu1 %v20789_v3 }
 0xfcc   :  { %12059 = vmatpush1.bf16.msra.mxu0 %v20790_v32  ;;  %12100 = vmatpush1.bf16.msra.mxu1 %v20791_v42 }
 0xfcd   :  { %12169 = vmatprep.subr.bf16.mxu0 %v19655_v62  ;;  %12210 = vmatprep.subr.bf16.mxu1 %v20792_v5  ;;  %v20798_v62 = vld [vmem:[#allocation42_spill] sm:$0xff] }
 0xfcf   :  { %12077 = vmatmul.mubr.bf16.vlgmr.msra.gmra.mrb[212].mxu0 %v11577_v39  ;;  %12118 = vmatmul.mubr.bf16.vlgmr.msra.gmra.mrb[212].mxu1 %v11577_v39 }
 0xfd0   :  { %12170 = vmatpush1.bf16.msra.mxu0 %v20793_v6  ;;  %12211 = vmatpush1.bf16.msra.mxu1 %v20794_v26 }
 0xfd1   :  { %12171 = vmatprep.subr.bf16.mxu0 %v20795_v0  ;;  %12212 = vmatprep.subr.bf16.mxu1 %v20796_v47 }
 0xfd2   :  { %12201 = vmatprep.mubr.bf16.mxu0 %v20445_v15  ;;  %12242 = vmatprep.mubr.bf16.mxu1 %v20445_v15 }
 0xfd4   :  { %12172 = vmatpush1.bf16.msra.mxu0 %v20797_v12  ;;  %12213 = vmatpush1.bf16.msra.mxu1 %v20798_v62 }
 0xfd5   :  { %12294 = vmatprep.subr.bf16.mxu0 %v19679_v14  ;;  %12335 = vmatprep.subr.bf16.mxu1 %v20799_v40  ;;  %v11559_v14 = vpack.c.bf16 %v11557_v60, %v11557_v60 }
 0xfd7   :  { %15459 = vmatmul.mubr.msk.bf16.vlgmr.msra.gmra.mrb[216].mxu0 %vm726_vm0, %v11558_v50  ;;  %15460 = vmatmul.mubr.msk.bf16.vlgmr.msra.gmra.mrb[216].mxu1 %vm726_vm0, %v11558_v50 }
 0xfd8   :  { %12295 = vmatpush1.bf16.msra.mxu0 %v19687_v19  ;;  %12336 = vmatpush1.bf16.msra.mxu1 %v19689_v24  ;;  %v19827_v24 = vld [vmem:[#allocation9] ss:$16 sps:$4 sm:$0xff]   ;;  %v19829_v19 = vld [vmem:[#allocation9 + $0x8] ss:$16 sps:$4 sm:$0xff]  }
 0xfd9   :  { %12296 = vmatprep.subr.bf16.mxu0 %v19693_v8  ;;  %12337 = vmatprep.subr.bf16.mxu1 %v19695_v28  ;;  %v19823_v8 = vld [vmem:[#allocation9 + $0x4] ss:$16 sps:$4 sm:$0xff]   ;;  %v19825_v28 = vld [vmem:[#allocation9 + $0xc] ss:$16 sps:$4 sm:$0xff]  }
 0xfda   :  { %12326 = vmatprep.mubr.bf16.mxu0 %v20445_v15  ;;  %12367 = vmatprep.mubr.bf16.mxu1 %v20445_v15 }
 0xfdc   :  { %12297 = vmatpush1.bf16.msra.mxu0 %v19701_v38  ;;  %12338 = vmatpush1.bf16.msra.mxu1 %v19703_v31  ;;  %v19835_v31 = vld [vmem:[#allocation9 + $0x24] ss:$16 sps:$4 sm:$0xff]   ;;  %v19837_v38 = vld [vmem:[#allocation9 + $0x2c] ss:$16 sps:$4 sm:$0xff]  }
 0xfdd   :  { %12682 = vmatprep.subr.bf16.mxu0 %v19823_v8  ;;  %12723 = vmatprep.subr.bf16.mxu1 %v19825_v28 }
 0xfdf   :  { %15469 = vmatmul.mubr.msk.bf16.vlgmr.msra.gmra.mrb[220].mxu0 %vm726_vm0, %v11559_v14  ;;  %15470 = vmatmul.mubr.msk.bf16.vlgmr.msra.gmra.mrb[220].mxu1 %vm726_vm0, %v11559_v14 }
 0xfe0   :  { %12714 = vmatprep.mubr.bf16.mxu0 %v20445_v15  ;;  %12755 = vmatprep.mubr.bf16.mxu1 %v20445_v15 }
 0xfe1   :  { %12683 = vmatpush1.bf16.msra.mxu0 %v19827_v24  ;;  %12724 = vmatpush1.bf16.msra.mxu1 %v19829_v19 }
 0xfe2   :  { %12684 = vmatprep.subr.bf16.mxu0 %v19835_v31  ;;  %12725 = vmatprep.subr.bf16.mxu1 %v19837_v38 }
 0xfe5   :  { %12685 = vmatpush1.bf16.msra.mxu0 %v19839_v11  ;;  %12726 = vmatpush1.bf16.msra.mxu1 %v19841_v13 }
 0xfe6   :  { %12686 = vmatprep.subr.bf16.mxu0 %v19847_v52  ;;  %12727 = vmatprep.subr.bf16.mxu1 %v19849_v44 }
 0xfe9   :  { %12687 = vmatpush1.bf16.msra.mxu0 %v19851_v43  ;;  %12728 = vmatpush1.bf16.msra.mxu1 %v19853_v1 }
 0xfea   :  { %12688 = vmatprep.subr.bf16.mxu0 %v19859_v4  ;;  %12729 = vmatprep.subr.bf16.mxu1 %v19861_v55 }
 0xfed   :  { %12689 = vmatpush1.bf16.msra.mxu0 %v19863_v10  ;;  %12730 = vmatpush1.bf16.msra.mxu1 %v19865_v57 }
 0xfee   :  { %12690 = vmatprep.subr.bf16.mxu0 %v19871_v36  ;;  %12731 = vmatprep.subr.bf16.mxu1 %v19873_v45 }
 0xff1   :  { %12691 = vmatpush1.bf16.msra.mxu0 %v19875_v56  ;;  %12732 = vmatpush1.bf16.msra.mxu1 %v19877_v33 }
 0xff2   :  { %12692 = vmatprep.subr.bf16.mxu0 %v19883_v63  ;;  %12733 = vmatprep.subr.bf16.mxu1 %v19885_v58 }
 0xff5   :  { %12693 = vmatpush1.bf16.msra.mxu0 %v19887_v30  ;;  %12734 = vmatpush1.bf16.msra.mxu1 %v19889_v54 }
 0xff6   :  { %12694 = vmatprep.subr.bf16.mxu0 %v19895_v17  ;;  %12735 = vmatprep.subr.bf16.mxu1 %v19897_v46 }
 0xff9   :  { %12695 = vmatpush1.bf16.msra.mxu0 %v19899_v61  ;;  %12736 = vmatpush1.bf16.msra.mxu1 %v19901_v49 }
 0xffa   :  { %12696 = vmatprep.subr.bf16.mxu0 %v19905_v23  ;;  %12737 = vmatprep.subr.bf16.mxu1 %v19907_v20 }
 0xffd   :  { %12697 = vmatpush1.bf16.msra.mxu0 %v19911_v16  ;;  %12738 = vmatpush1.bf16.msra.mxu1 %v19913_v18 }
 0xffe   :  { %12924 = vmatprep.subr.bf16.mxu0 %v19917_v59  ;;  %12965 = vmatprep.subr.bf16.mxu1 %v19919_v48 }
0x1082   :  { %v11836_v7 = vpop.f32.mrb[208].mxu0  ;;  %v11877_v29 = vpop.f32.mrb[208].mxu1 }
0x1083   :  { %v11838_v53 = vpop.f32.mrb[209].mxu0  ;;  %v11879_v3 = vpop.f32.mrb[209].mxu1 }
0x1084   :  { %v11840_v32 = vpop.f32.mrb[210].mxu0  ;;  %v11881_v42 = vpop.f32.mrb[210].mxu1 }
0x1085   :  { %v11841_v39 = vpop.f32.mrb[211].mxu0  ;;  %v11882_v5 = vpop.f32.mrb[211].mxu1 }
0x10a2   :  { %v12078_v6 = vpop.f32.mrb[212].mxu0  ;;  %v12119_v26 = vpop.f32.mrb[212].mxu1 }
0x10a3   :  { %v12080_v34 = vpop.f32.mrb[213].mxu0  ;;  %v12121_v0 = vpop.f32.mrb[213].mxu1 }
0x10a4   :  { %v12082_v47 = vpop.f32.mrb[214].mxu0  ;;  %v12123_v50 = vpop.f32.mrb[214].mxu1 }
0x10a5   :  { %v12083_v12 = vpop.f32.mrb[215].mxu0  ;;  %v12124_v62 = vpop.f32.mrb[215].mxu1 }
0x10aa   :  { %v12203_v40 = vpop.f32.mrb[216].mxu0  ;;  %v12244_v60 = vpop.f32.mrb[216].mxu1 }
0x10ab   :  { %v12204_v14 = vadd.f32 %v12203_v40, %v11836_v7  ;;  %v12245_v48 = vadd.f32 %v12244_v60, %v11877_v29  ;;  %v12205_v59 = vpop.f32.mrb[217].mxu0  ;;  %v12246_v18 = vpop.f32.mrb[217].mxu1 }
0x10ac   :  { %v12206_v16 = vadd.f32 %v12205_v59, %v11838_v53  ;;  %v12247_v20 = vadd.f32 %v12246_v18, %v11879_v3  ;;  %v12207_v32 = vpop.f32.mrb[218].mxu0  ;;  %v12248_v42 = vpop.f32.mrb[218].mxu1 }
0x10ad   :  { %v12376_v39 = vadd.f32 %v12204_v14, %v17520_v22  ;;  %v12208_v5 = vpop.f32.mrb[219].mxu0  ;;  %v12249_v23 = vpop.f32.mrb[219].mxu1 }
0x10ae   :  { %v12377_v49 = vadd.f32 %v12206_v16, %v17522_v25  ;;  %v12379_v18 = vadd.f32 %v12247_v20, %v17530_v35 }
0x10af   :  { %v15471_v47 = vmul.f32 -1.442695, %v12376_v39 }
0x10b0   :  { %v15473_v50 = vmul.f32 -1.442695, %v12377_v49  ;;  %v15475_v39 = vmul.f32 -1.442695, %v12379_v18 }
0x10b1   :  { %17043 = vpow2.f32 %v15471_v47 }
0x10b2   :  { %17045 = vpow2.f32 %v15473_v50  ;;  %v12328_v12 = vpop.f32.mrb[220].mxu0  ;;  %v12369_v62 = vpop.f32.mrb[220].mxu1 }
0x10b3   :  { %v12329_v7 = vadd.f32 %v12328_v12, %v12078_v6  ;;  %v12370_v29 = vadd.f32 %v12369_v62, %v12119_v26  ;;  %v12330_v40 = vpop.f32.mrb[221].mxu0  ;;  %v12371_v60 = vpop.f32.mrb[221].mxu1  ;;  %v12378_v6 = vadd.f32 %v12245_v48, %v17538_v51 }
0x10b4   :  { %v12331_v59 = vadd.f32 %v12330_v40, %v12080_v34  ;;  %v12372_v53 = vadd.f32 %v12371_v60, %v12121_v0  ;;  %v12332_v3 = vpop.f32.mrb[222].mxu0  ;;  %v12373_v14 = vpop.f32.mrb[222].mxu1 }
0x10b5   :  { %v12380_v23 = vadd.f32 %v12329_v7, %v17533_v37  ;;  %v12333_v32 = vpop.f32.mrb[223].mxu0  ;;  %v12374_v16 = vpop.f32.mrb[223].mxu1  ;;  %v12382_v12 = vadd.f32 %v12370_v29, %v17546_v9 }
0x10b6   :  { %v12381_v49 = vadd.f32 %v12331_v59, %v17535_v41  ;;  %v12383_v34 = vadd.f32 %v12372_v53, %v17542_v2 }
0x10b7   :  { %v15472_v42 = vmul.f32 -1.442695, %v12380_v23 }
0x10b8   :  { %v15474_v5 = vmul.f32 -1.442695, %v12381_v49  ;;  %v15476_v50 = vmul.f32 -1.442695, %v12383_v34  ;;  %v19941_v34 = vld [vmem:[#allocation9 + $0x100] ss:$16 sps:$4 sm:$0xff]  }
0x10b9   :  { %17047 = vpow2.f32 %v15472_v42 }
0x10ba   :  { %17049 = vpow2.f32 %v15474_v5 }
0x10bb   :  { %v17044_v26 = vpop.eup %17043  ;;  %17051 = vpow2.f32 %v15475_v39 }
0x10bc   :  { %v17046_v47 = vpop.eup %17045  ;;  %v12390_v20 = vadd.f32 1.0, %v17044_v26  ;;  %17053 = vtanh.f32 %v12378_v6 }
0x10bd   :  { %v12402_v0 = vadd.f32 1.0, %v17046_v47 }
0x10be   :  { %17055 = vrcp.f32 %v12390_v20 }
0x10bf   :  { %17057 = vrcp.f32 %v12402_v0  ;;  %v19943_v0 = vld [vmem:[#allocation9 + $0x108] ss:$16 sps:$4 sm:$0xff]  }
0x10c0   :  { %17059 = vpow2.f32 %v15476_v50 }
0x10c1   :  { %17061 = vtanh.f32 %v12382_v12  ;;  %v19945_v12 = vld [vmem:[#allocation9 + $0x124] ss:$16 sps:$4 sm:$0xff]  }
0x10c3   :  { %v17048_v62 = vpop.eup %17047 }
0x10c4   :  { %v17050_v7 = vpop.eup %17049  ;;  %v12391_v40 = vadd.f32 1.0, %v17048_v62  ;;  %v19947_v62 = vld [vmem:[#allocation9 + $0x12c] ss:$16 sps:$4 sm:$0xff]  }
0x10c5   :  { %v12403_v48 = vadd.f32 1.0, %v17050_v7  ;;  %v17052_v60 = vpop.eup %17051  ;;  %v19953_v7 = vld [vmem:[#allocation9 + $0x128] ss:$16 sps:$4 sm:$0xff]  }
0x10c6   :  { %17063 = vrcp.f32 %v12391_v40  ;;  %v17054_v18 = vpop.eup %17053  ;;  %v12416_v14 = vadd.f32 1.0, %v17052_v60  ;;  %v19959_v60 = vld [vmem:[#allocation9 + $0x14c] ss:$16 sps:$4 sm:$0xff]  }
0x10c7   :  { %17065 = vrcp.f32 %v12403_v48  ;;  %v19957_v48 = vld [vmem:[#allocation9 + $0x144] ss:$16 sps:$4 sm:$0xff]  }
0x10c8   :  { %v17056_v59 = vpop.eup %17055  ;;  %17067 = vrcp.f32 %v12416_v14  ;;  %v19971_v14 = vld [vmem:[#allocation9 + $0x164] ss:$16 sps:$4 sm:$0xff]  }
0x10c9   :  { %v17058_v3 = vpop.eup %17057  ;;  %v12424_v53 = vmul.f32 %v17056_v59, %v17054_v18 }
0x10ca   :  { %v12422_v23 = vmul.f32 %v17058_v3, %v19758_v21  ;;  %v17060_v29 = vpop.eup %17059  ;;  %v19965_v3 = vld [vmem:[#allocation9 + $0x140] ss:$16 sps:$4 sm:$0xff]  }
0x10cb   :  { %v17062_v16 = vpop.eup %17061  ;;  %v12417_v5 = vadd.f32 1.0, %v17060_v29  ;;  %v19977_v29 = vld [vmem:[#allocation9 + $0x160] ss:$16 sps:$4 sm:$0xff]  }
0x10cc   :  { %v19934_v32 = vadd.f32 %v12424_v53, %v12422_v23  ;;  %v19967_v53 = vld [vmem:[#allocation9 + $0x148] ss:$16 sps:$4 sm:$0xff]   ;;  %v19973_v23 = vld [vmem:[#allocation9 + $0x16c] ss:$16 sps:$4 sm:$0xff]  }
0x10ce   :  { %17069 = vtanh.f32 %v19934_v32 }
0x10cf   :  { %17071 = vrcp.f32 %v12417_v5  ;;  %v19991_v5 = vld [vmem:[#allocation9 + $0x188] ss:$16 sps:$4 sm:$0xff]  }
0x10d0   :  { %v17064_v49 = vpop.eup %17063  ;;  %20809 = vst [vmem:[#allocation23_spill] sm:$0xff] %v19991_v5 }
0x10d1   :  { %v17066_v42 = vpop.eup %17065  ;;  %v12425_v39 = vmul.f32 %v17064_v49, %v17062_v16  ;;  %v19979_v16 = vld [vmem:[#allocation9 + $0x168] ss:$16 sps:$4 sm:$0xff]   ;;  %v19983_v49 = vld [vmem:[#allocation9 + $0x184] ss:$16 sps:$4 sm:$0xff]  }
0x10d2   :  { %v12423_v6 = vmul.f32 %v17066_v42, %v19762_v27  ;;  %v17068_v47 = vpop.eup %17067  ;;  %v19951_v27 = vld [vmem:[#allocation9 + $0x120] ss:$16 sps:$4 sm:$0xff]   ;;  %v19985_v42 = vld [vmem:[#allocation9 + $0x18c] ss:$16 sps:$4 sm:$0xff]  }
0x10d3   :  { %20807 = vst [vmem:[#allocation21_spill] sm:$0xff] %v19985_v42 }
0x10d4   :  { %v19938_v26 = vadd.f32 %v12425_v39, %v12423_v6  ;;  %v19989_v39 = vld [vmem:[#allocation9 + $0x180] ss:$16 sps:$4 sm:$0xff]   ;;  %v19995_v6 = vld [vmem:[#allocation9 + $0x1a4] ss:$16 sps:$4 sm:$0xff]  }
0x10d5   :  { %20808 = vst [vmem:[#allocation22_spill] sm:$0xff] %v19989_v39  ;;  %20810 = vst [vmem:[#allocation24_spill] sm:$0xff] %v19995_v6 }
0x10d6   :  { %17073 = vtanh.f32 %v19938_v26 }
0x10d8   :  { %v17070_v21 = vpop.eup %17069 }
0x10d9   :  { %v12430_v20 = vmul.f32 %v17070_v21, %v17068_v47  ;;  %v17072_v40 = vpop.eup %17071  ;;  %v19997_v47 = vld [vmem:[#allocation9 + $0x1ac] ss:$16 sps:$4 sm:$0xff]   ;;  %v20001_v21 = vld [vmem:[#allocation9 + $0x1a0] ss:$16 sps:$4 sm:$0xff]  }
0x10da   :  { %20811 = vst [vmem:[#allocation25_spill] sm:$0xff] %v19997_v47  ;;  %20812 = vst [vmem:[#allocation26_spill] sm:$0xff] %v20001_v21 }
0x10db   :  { %12433 = vst [vmem:[#allocation10 + $0xd0] sm:$0xff] %v12430_v20  ;;  %v12456_v50 = vpack.c.bf16 %v12430_v20, %v12430_v20  ;;  %v20003_v20 = vld [vmem:[#allocation9 + $0x1a8] ss:$16 sps:$4 sm:$0xff]  }
0x10dc   :  { %20813 = vst [vmem:[#allocation27_spill] sm:$0xff] %v20003_v20 }
0x10dd   :  { %12715 = vmatmul.mubr.bf16.vlgmr.msra.gmra.mrb[224].mxu0 %v12456_v50  ;;  %12756 = vmatmul.mubr.bf16.vlgmr.msra.gmra.mrb[224].mxu1 %v12456_v50  ;;  %v20007_v50 = vld [vmem:[#allocation9 + $0x1c4] ss:$16 sps:$4 sm:$0xff]  }
0x10de   :  { %12925 = vmatpush1.bf16.msra.mxu0 %v19941_v34  ;;  %12966 = vmatpush1.bf16.msra.mxu1 %v19943_v0  ;;  %20814 = vst [vmem:[#allocation28_spill] sm:$0xff] %v20007_v50 }
0x10df   :  { %12926 = vmatprep.subr.bf16.mxu0 %v19945_v12  ;;  %12967 = vmatprep.subr.bf16.mxu1 %v19947_v62 }
0x10e0   :  { %v17074_v18 = vpop.eup %17073  ;;  %12956 = vmatprep.mubr.bf16.mxu0 %v20445_v15  ;;  %12997 = vmatprep.mubr.bf16.mxu1 %v20445_v15 }
0x10e1   :  { %v12431_v59 = vmul.f32 %v17074_v18, %v17072_v40  ;;  %v20009_v40 = vld [vmem:[#allocation9 + $0x1cc] ss:$16 sps:$4 sm:$0xff]   ;;  %v20013_v18 = vld [vmem:[#allocation9 + $0x1c0] ss:$16 sps:$4 sm:$0xff]  }
0x10e2   :  { %12927 = vmatpush1.bf16.msra.mxu0 %v19951_v27  ;;  %12968 = vmatpush1.bf16.msra.mxu1 %v19953_v7  ;;  %20815 = vst [vmem:[#allocation29_spill] sm:$0xff] %v20009_v40  ;;  %20816 = vst [vmem:[#allocation30_spill] sm:$0xff] %v20013_v18 }
0x10e3   :  { %12928 = vmatprep.subr.bf16.mxu0 %v19957_v48  ;;  %12969 = vmatprep.subr.bf16.mxu1 %v19959_v60  ;;  %12434 = vst [vmem:[#allocation10 + $0xd8] sm:$0xff] %v12431_v59 }
0x10e6   :  { %12929 = vmatpush1.bf16.msra.mxu0 %v19965_v3  ;;  %12970 = vmatpush1.bf16.msra.mxu1 %v19967_v53 }
0x10e7   :  { %12930 = vmatprep.subr.bf16.mxu0 %v19971_v14  ;;  %12971 = vmatprep.subr.bf16.mxu1 %v19973_v23 }
0x10ea   :  { %12931 = vmatpush1.bf16.msra.mxu0 %v19977_v29  ;;  %12972 = vmatpush1.bf16.msra.mxu1 %v19979_v16 }
0x10eb   :  { %12932 = vmatprep.subr.bf16.mxu0 %v19983_v49  ;;  %12973 = vmatprep.subr.bf16.mxu1 %v19985_v42  ;;  %v12436_v42 = vld [vmem:[#allocation4 + $0xe0] sm:$0xff] }
0x10ee   :  { %12933 = vmatpush1.bf16.msra.mxu0 %v19989_v39  ;;  %12974 = vmatpush1.bf16.msra.mxu1 %v19991_v5  ;;  %v20015_v39 = vld [vmem:[#allocation9 + $0x1c8] ss:$16 sps:$4 sm:$0xff]   ;;  %v20019_v5 = vld [vmem:[#allocation9 + $0x1e4] ss:$16 sps:$4 sm:$0xff]  }
0x10ef   :  { %12934 = vmatprep.subr.bf16.mxu0 %v19995_v6  ;;  %12975 = vmatprep.subr.bf16.mxu1 %v19997_v47  ;;  %20817 = vst [vmem:[#allocation31_spill] sm:$0xff] %v20015_v39  ;;  %20818 = vst [vmem:[#allocation32_spill] sm:$0xff] %v20019_v5  ;;  %v20021_v6 = vld [vmem:[#allocation9 + $0x1ec] ss:$16 sps:$4 sm:$0xff]   ;;  %v20025_v47 = vld [vmem:[#allocation9 + $0x1e0] ss:$16 sps:$4 sm:$0xff]  }
0x10f0   :  { %20819 = vst [vmem:[#allocation33_spill] sm:$0xff] %v20021_v6  ;;  %20820 = vst [vmem:[#allocation34_spill] sm:$0xff] %v20025_v47 }
0x10f2   :  { %12935 = vmatpush1.bf16.msra.mxu0 %v20001_v21  ;;  %12976 = vmatpush1.bf16.msra.mxu1 %v20003_v20  ;;  %v20027_v21 = vld [vmem:[#allocation9 + $0x1e8] ss:$16 sps:$4 sm:$0xff]   ;;  %v20031_v20 = vld [vmem:[#allocation7 + $0x4] ss:$16 sps:$4 sm:$0xff]  }
0x10f3   :  { %12936 = vmatprep.subr.bf16.mxu0 %v20007_v50  ;;  %12977 = vmatprep.subr.bf16.mxu1 %v20009_v40  ;;  %20821 = vst [vmem:[#allocation35_spill] sm:$0xff] %v20027_v21  ;;  %v20033_v50 = vld [vmem:[#allocation7 + $0xc] ss:$16 sps:$4 sm:$0xff]   ;;  %v20037_v40 = vld [vmem:[#allocation7] ss:$16 sps:$4 sm:$0xff]  }
0x10f4   :  { %20822 = vst [vmem:[#allocation36_spill] sm:$0xff] %v20033_v50  ;;  %20823 = vst [vmem:[#allocation37_spill] sm:$0xff] %v20037_v40 }
0x10f6   :  { %12937 = vmatpush1.bf16.msra.mxu0 %v20013_v18  ;;  %12978 = vmatpush1.bf16.msra.mxu1 %v20015_v39  ;;  %v20039_v18 = vld [vmem:[#allocation7 + $0x8] ss:$16 sps:$4 sm:$0xff]   ;;  %v12457_v39 = vpack.c.bf16 %v12431_v59, %v12431_v59  ;;  %v20055_v59 = vld [vmem:[#allocation7 + $0x44] ss:$16 sps:$4 sm:$0xff]  }
0x10f7   :  { %12938 = vmatprep.subr.bf16.mxu0 %v20019_v5  ;;  %12979 = vmatprep.subr.bf16.mxu1 %v20021_v6  ;;  %20824 = vst [vmem:[#allocation38_spill] sm:$0xff] %v20039_v18  ;;  %v20043_v5 = vld [vmem:[#allocation7 + $0x24] ss:$16 sps:$4 sm:$0xff]   ;;  %v20045_v6 = vld [vmem:[#allocation7 + $0x2c] ss:$16 sps:$4 sm:$0xff]  }
0x10f8   :  { %20825 = vst [vmem:[#allocation39_spill] sm:$0xff] %v20043_v5  ;;  %20826 = vst [vmem:[#allocation40_spill] sm:$0xff] %v20045_v6 }
0x10fa   :  { %12939 = vmatpush1.bf16.msra.mxu0 %v20025_v47  ;;  %12980 = vmatpush1.bf16.msra.mxu1 %v20027_v21  ;;  %v20049_v21 = vld [vmem:[#allocation7 + $0x20] ss:$16 sps:$4 sm:$0xff]   ;;  %v20051_v47 = vld [vmem:[#allocation7 + $0x28] ss:$16 sps:$4 sm:$0xff]  }
0x10fb   :  { %13049 = vmatprep.subr.bf16.mxu0 %v20031_v20  ;;  %13090 = vmatprep.subr.bf16.mxu1 %v20033_v50  ;;  %20827 = vst [vmem:[#allocation41_spill] sm:$0xff] %v20049_v21  ;;  %20828 = vst [vmem:[#allocation42_spill] sm:$0xff] %v20051_v47  ;;  %v20057_v50 = vld [vmem:[#allocation7 + $0x4c] ss:$16 sps:$4 sm:$0xff]  }
0x10fc   :  { %20829 = vst [vmem:[#allocation43_spill] sm:$0xff] %v20057_v50 }
0x10fd   :  { %12957 = vmatmul.mubr.bf16.vlgmr.msra.gmra.mrb[228].mxu0 %v12457_v39  ;;  %12998 = vmatmul.mubr.bf16.vlgmr.msra.gmra.mrb[228].mxu1 %v12457_v39  ;;  %v12438_v39 = vpack.c.bf16 %v12436_v42, %v12436_v42  ;;  %v20077_v42 = vld [vmem:[#allocation7 + $0x60] ss:$16 sps:$4 sm:$0xff]  }
0x10fe   :  { %13050 = vmatpush1.bf16.msra.mxu0 %v20037_v40  ;;  %13091 = vmatpush1.bf16.msra.mxu1 %v20039_v18  ;;  %v20063_v18 = vld [vmem:[#allocation7 + $0x40] ss:$16 sps:$4 sm:$0xff]   ;;  %v20065_v40 = vld [vmem:[#allocation7 + $0x48] ss:$16 sps:$4 sm:$0xff]  }
0x10ff   :  { %13051 = vmatprep.subr.bf16.mxu0 %v20043_v5  ;;  %13092 = vmatprep.subr.bf16.mxu1 %v20045_v6  ;;  %v20069_v6 = vld [vmem:[#allocation7 + $0x64] ss:$16 sps:$4 sm:$0xff]   ;;  %v20071_v5 = vld [vmem:[#allocation7 + $0x6c] ss:$16 sps:$4 sm:$0xff]  }
0x1100   :  { %13081 = vmatprep.mubr.bf16.mxu0 %v20445_v15  ;;  %13122 = vmatprep.mubr.bf16.mxu1 %v20445_v15 }
0x1102   :  { %13052 = vmatpush1.bf16.msra.mxu0 %v20049_v21  ;;  %13093 = vmatpush1.bf16.msra.mxu1 %v20051_v47  ;;  %v20079_v47 = vld [vmem:[#allocation7 + $0x68] ss:$16 sps:$4 sm:$0xff]  }
0x1103   :  { %13174 = vmatprep.subr.bf16.mxu0 %v20055_v59  ;;  %13215 = vmatprep.subr.bf16.mxu1 %v20057_v50  ;;  %v12437_v21 = vld [vmem:[#allocation4 + $0xe8] sm:$0xff] }
0x1104   :  { %v12439_v50 = vpack.c.bf16 %v12437_v21, %v12437_v21 }
0x1105   :  { %15549 = vmatmul.mubr.msk.bf16.vlgmr.msra.gmra.mrb[232].mxu0 %vm726_vm0, %v12438_v39  ;;  %15550 = vmatmul.mubr.msk.bf16.vlgmr.msra.gmra.mrb[232].mxu1 %vm726_vm0, %v12438_v39 }
0x1106   :  { %13175 = vmatpush1.bf16.msra.mxu0 %v20063_v18  ;;  %13216 = vmatpush1.bf16.msra.mxu1 %v20065_v40 }
0x1107   :  { %13176 = vmatprep.subr.bf16.mxu0 %v20069_v6  ;;  %13217 = vmatprep.subr.bf16.mxu1 %v20071_v5 }
0x1108   :  { %13206 = vmatprep.mubr.bf16.mxu0 %v20445_v15  ;;  %13247 = vmatprep.mubr.bf16.mxu1 %v20445_v15 }
0x110a   :  { %13177 = vmatpush1.bf16.msra.mxu0 %v20077_v42  ;;  %13218 = vmatpush1.bf16.msra.mxu1 %v20079_v47 }
0x110b   :  { %13562 = vmatprep.subr.bf16.mxu0 %v19823_v8  ;;  %13603 = vmatprep.subr.bf16.mxu1 %v19825_v28  ;;  %v20830_v8 = vld [vmem:[#allocation14_spill] sm:$0xff]  ;;  %v20831_v28 = vld [vmem:[#allocation15_spill] sm:$0xff] }
0x110d   :  { %15559 = vmatmul.mubr.msk.bf16.vlgmr.msra.gmra.mrb[236].mxu0 %vm726_vm0, %v12439_v50  ;;  %15560 = vmatmul.mubr.msk.bf16.vlgmr.msra.gmra.mrb[236].mxu1 %vm726_vm0, %v12439_v50 }
0x110e   :  { %13563 = vmatpush1.bf16.msra.mxu0 %v19827_v24  ;;  %13604 = vmatpush1.bf16.msra.mxu1 %v19829_v19  ;;  %v20832_v24 = vld [vmem:[#allocation16_spill] sm:$0xff]  ;;  %v20833_v19 = vld [vmem:[#allocation17_spill] sm:$0xff] }
0x110f   :  { %13564 = vmatprep.subr.bf16.mxu0 %v19835_v31  ;;  %13605 = vmatprep.subr.bf16.mxu1 %v19837_v38  ;;  %v20834_v31 = vld [vmem:[#allocation18_spill] sm:$0xff]  ;;  %v20835_v38 = vld [vmem:[#allocation19_spill] sm:$0xff] }
0x1110   :  { %13594 = vmatprep.mubr.bf16.mxu0 %v20445_v15  ;;  %13635 = vmatprep.mubr.bf16.mxu1 %v20445_v15 }
0x1112   :  { %13565 = vmatpush1.bf16.msra.mxu0 %v19839_v11  ;;  %13606 = vmatpush1.bf16.msra.mxu1 %v19841_v13  ;;  %v20836_v11 = vld [vmem:[#allocation20_spill] sm:$0xff] }
0x1113   :  { %13566 = vmatprep.subr.bf16.mxu0 %v19847_v52  ;;  %13607 = vmatprep.subr.bf16.mxu1 %v19849_v44 }
0x1116   :  { %13567 = vmatpush1.bf16.msra.mxu0 %v19851_v43  ;;  %13608 = vmatpush1.bf16.msra.mxu1 %v19853_v1 }
0x1117   :  { %13568 = vmatprep.subr.bf16.mxu0 %v19859_v4  ;;  %13609 = vmatprep.subr.bf16.mxu1 %v19861_v55 }
0x111a   :  { %13569 = vmatpush1.bf16.msra.mxu0 %v19863_v10  ;;  %13610 = vmatpush1.bf16.msra.mxu1 %v19865_v57 }
0x111b   :  { %13570 = vmatprep.subr.bf16.mxu0 %v19871_v36  ;;  %13611 = vmatprep.subr.bf16.mxu1 %v19873_v45 }
0x111e   :  { %13571 = vmatpush1.bf16.msra.mxu0 %v19875_v56  ;;  %13612 = vmatpush1.bf16.msra.mxu1 %v19877_v33 }
0x111f   :  { %13572 = vmatprep.subr.bf16.mxu0 %v19883_v63  ;;  %13613 = vmatprep.subr.bf16.mxu1 %v19885_v58 }
0x1122   :  { %13573 = vmatpush1.bf16.msra.mxu0 %v19887_v30  ;;  %13614 = vmatpush1.bf16.msra.mxu1 %v19889_v54 }
0x1123   :  { %13574 = vmatprep.subr.bf16.mxu0 %v19895_v17  ;;  %13615 = vmatprep.subr.bf16.mxu1 %v19897_v46 }
0x1126   :  { %13575 = vmatpush1.bf16.msra.mxu0 %v19899_v61  ;;  %13616 = vmatpush1.bf16.msra.mxu1 %v20830_v8 }
0x1127   :  { %13576 = vmatprep.subr.bf16.mxu0 %v20831_v28  ;;  %13617 = vmatprep.subr.bf16.mxu1 %v20832_v24 }
0x112a   :  { %13577 = vmatpush1.bf16.msra.mxu0 %v20833_v19  ;;  %13618 = vmatpush1.bf16.msra.mxu1 %v20834_v31 }
0x112b   :  { %13804 = vmatprep.subr.bf16.mxu0 %v20835_v38  ;;  %13845 = vmatprep.subr.bf16.mxu1 %v20836_v11 }
0x11b0   :  { %v12716_v13 = vpop.f32.mrb[224].mxu0  ;;  %v12757_v52 = vpop.f32.mrb[224].mxu1 }
0x11b1   :  { %v12718_v44 = vpop.f32.mrb[225].mxu0  ;;  %v12759_v43 = vpop.f32.mrb[225].mxu1 }
0x11b2   :  { %v12720_v1 = vpop.f32.mrb[226].mxu0  ;;  %v12761_v4 = vpop.f32.mrb[226].mxu1 }
0x11b3   :  { %v12721_v55 = vpop.f32.mrb[227].mxu0  ;;  %v12762_v10 = vpop.f32.mrb[227].mxu1 }
0x11d0   :  { %v12958_v57 = vpop.f32.mrb[228].mxu0  ;;  %v12999_v36 = vpop.f32.mrb[228].mxu1 }
0x11d1   :  { %v12960_v45 = vpop.f32.mrb[229].mxu0  ;;  %v13001_v56 = vpop.f32.mrb[229].mxu1 }
0x11d2   :  { %v12962_v33 = vpop.f32.mrb[230].mxu0  ;;  %v13003_v63 = vpop.f32.mrb[230].mxu1 }
0x11d3   :  { %v12963_v58 = vpop.f32.mrb[231].mxu0  ;;  %v13004_v30 = vpop.f32.mrb[231].mxu1 }
0x11d8   :  { %v13083_v54 = vpop.f32.mrb[232].mxu0  ;;  %v13124_v17 = vpop.f32.mrb[232].mxu1 }
0x11d9   :  { %v13084_v46 = vadd.f32 %v13083_v54, %v12716_v13  ;;  %v13125_v61 = vadd.f32 %v13124_v17, %v12757_v52  ;;  %v13085_v21 = vpop.f32.mrb[233].mxu0  ;;  %v13126_v50 = vpop.f32.mrb[233].mxu1 }
0x11da   :  { %v13086_v39 = vadd.f32 %v13085_v21, %v12718_v44  ;;  %v13127_v8 = vadd.f32 %v13126_v50, %v12759_v43  ;;  %v13087_v28 = vpop.f32.mrb[234].mxu0  ;;  %v13128_v24 = vpop.f32.mrb[234].mxu1 }
0x11db   :  { %v13256_v19 = vadd.f32 %v13084_v46, %v17520_v22  ;;  %v13088_v31 = vpop.f32.mrb[235].mxu0  ;;  %v13129_v38 = vpop.f32.mrb[235].mxu1 }
0x11dc   :  { %v13257_v11 = vadd.f32 %v13086_v39, %v17522_v25  ;;  %v13259_v44 = vadd.f32 %v13127_v8, %v17530_v35 }
0x11dd   :  { %v15561_v1 = vmul.f32 -1.442695, %v13256_v19 }
0x11de   :  { %v15563_v4 = vmul.f32 -1.442695, %v13257_v11  ;;  %v15565_v28 = vmul.f32 -1.442695, %v13259_v44 }
0x11df   :  { %17075 = vpow2.f32 %v15561_v1 }
0x11e0   :  { %17077 = vpow2.f32 %v15563_v4  ;;  %v13208_v55 = vpop.f32.mrb[236].mxu0  ;;  %v13249_v10 = vpop.f32.mrb[236].mxu1 }
0x11e1   :  { %v13209_v13 = vadd.f32 %v13208_v55, %v12958_v57  ;;  %v13250_v52 = vadd.f32 %v13249_v10, %v12999_v36  ;;  %v13210_v33 = vpop.f32.mrb[237].mxu0  ;;  %v13251_v63 = vpop.f32.mrb[237].mxu1  ;;  %v13258_v57 = vadd.f32 %v13125_v61, %v17538_v51 }
0x11e2   :  { %v13211_v43 = vadd.f32 %v13210_v33, %v12960_v45  ;;  %v13252_v58 = vadd.f32 %v13251_v63, %v13001_v56  ;;  %v13212_v30 = vpop.f32.mrb[238].mxu0  ;;  %v13253_v54 = vpop.f32.mrb[238].mxu1 }
0x11e3   :  { %v13260_v17 = vadd.f32 %v13209_v13, %v17533_v37  ;;  %v13213_v46 = vpop.f32.mrb[239].mxu0  ;;  %v13254_v21 = vpop.f32.mrb[239].mxu1  ;;  %v13262_v38 = vadd.f32 %v13250_v52, %v17546_v9 }
0x11e4   :  { %v13261_v50 = vadd.f32 %v13211_v43, %v17535_v41  ;;  %v13263_v45 = vadd.f32 %v13252_v58, %v17542_v2 }
0x11e5   :  { %v15562_v39 = vmul.f32 -1.442695, %v13260_v17 }
0x11e6   :  { %v15564_v24 = vmul.f32 -1.442695, %v13261_v50  ;;  %v15566_v31 = vmul.f32 -1.442695, %v13263_v45  ;;  %v20852_v45 = vld [vmem:[#allocation36_spill] sm:$0xff] }
0x11e7   :  { %17079 = vpow2.f32 %v15562_v39 }
0x11e8   :  { %17081 = vpow2.f32 %v15564_v24 }
0x11e9   :  { %v17076_v36 = vpop.eup %17075  ;;  %17083 = vpow2.f32 %v15565_v28 }
0x11ea   :  { %v17078_v19 = vpop.eup %17077  ;;  %v13270_v8 = vadd.f32 1.0, %v17076_v36  ;;  %17085 = vtanh.f32 %v13258_v57 }
0x11eb   :  { %v13282_v56 = vadd.f32 1.0, %v17078_v19 }
0x11ec   :  { %17087 = vrcp.f32 %v13270_v8 }
0x11ed   :  { %17089 = vrcp.f32 %v13282_v56  ;;  %v20853_v56 = vld [vmem:[#allocation37_spill] sm:$0xff] }
0x11ee   :  { %17091 = vpow2.f32 %v15566_v31  ;;  %v20854_v31 = vld [vmem:[#allocation38_spill] sm:$0xff] }
0x11ef   :  { %17093 = vtanh.f32 %v13262_v38  ;;  %v13316_v38 = vld [vmem:[#allocation4 + $0xf0] sm:$0xff] }
0x11f1   :  { %v17080_v11 = vpop.eup %17079 }
0x11f2   :  { %v17082_v1 = vpop.eup %17081  ;;  %v13271_v4 = vadd.f32 1.0, %v17080_v11  ;;  %v20855_v11 = vld [vmem:[#allocation39_spill] sm:$0xff] }
0x11f3   :  { %v13283_v61 = vadd.f32 1.0, %v17082_v1  ;;  %v17084_v55 = vpop.eup %17083  ;;  %v20856_v1 = vld [vmem:[#allocation40_spill] sm:$0xff] }
0x11f4   :  { %17095 = vrcp.f32 %v13271_v4  ;;  %v17086_v10 = vpop.eup %17085  ;;  %v13296_v44 = vadd.f32 1.0, %v17084_v55  ;;  %v13318_v4 = vpack.c.bf16 %v13316_v38, %v13316_v38  ;;  %v20859_v55 = vld [vmem:[#allocation43_spill] sm:$0xff] }
0x11f5   :  { %17097 = vrcp.f32 %v13283_v61  ;;  %v20857_v61 = vld [vmem:[#allocation41_spill] sm:$0xff] }
0x11f6   :  { %v17088_v13 = vpop.eup %17087  ;;  %17099 = vrcp.f32 %v13296_v44 }
0x11f7   :  { %v17090_v33 = vpop.eup %17089  ;;  %v13304_v63 = vmul.f32 %v17088_v13, %v17086_v10  ;;  %v13317_v10 = vld [vmem:[#allocation4 + $0xf8] sm:$0xff] }
0x11f8   :  { %v13302_v43 = vmul.f32 %v17090_v33, %v19934_v32  ;;  %v17092_v52 = vpop.eup %17091 }
0x11f9   :  { %v17094_v30 = vpop.eup %17093  ;;  %v13297_v21 = vadd.f32 1.0, %v17092_v52 }
0x11fa   :  { %v20134_v58 = vadd.f32 %v13304_v63, %v13302_v43 }
0x11fc   :  { %17101 = vtanh.f32 %v20134_v58 }
0x11fd   :  { %17103 = vrcp.f32 %v13297_v21 }
0x11fe   :  { %v17096_v54 = vpop.eup %17095 }
0x11ff   :  { %v17098_v17 = vpop.eup %17097  ;;  %v13305_v46 = vmul.f32 %v17096_v54, %v17094_v30 }
0x1200   :  { %v13303_v50 = vmul.f32 %v17098_v17, %v19938_v26  ;;  %v17100_v28 = vpop.eup %17099 }
0x1202   :  { %v20138_v39 = vadd.f32 %v13305_v46, %v13303_v50 }
0x1204   :  { %17105 = vtanh.f32 %v20138_v39 }
0x1206   :  { %v17102_v32 = vpop.eup %17101 }
0x1207   :  { %v13310_v24 = vmul.f32 %v17102_v32, %v17100_v28  ;;  %v17104_v36 = vpop.eup %17103 }
0x1209   :  { %13313 = vst [vmem:[#allocation10 + $0xe0] sm:$0xff] %v13310_v24  ;;  %v13336_v57 = vpack.c.bf16 %v13310_v24, %v13310_v24 }
0x120b   :  { %13595 = vmatmul.mubr.bf16.vlgmr.msra.gmra.mrb[240].mxu0 %v13336_v57  ;;  %13636 = vmatmul.mubr.bf16.vlgmr.msra.gmra.mrb[240].mxu1 %v13336_v57 }
0x120c   :  { %13805 = vmatpush1.bf16.msra.mxu0 %v19941_v34  ;;  %13846 = vmatpush1.bf16.msra.mxu1 %v19943_v0  ;;  %v20837_v34 = vld [vmem:[#allocation21_spill] sm:$0xff]  ;;  %v20838_v0 = vld [vmem:[#allocation22_spill] sm:$0xff] }
0x120d   :  { %13806 = vmatprep.subr.bf16.mxu0 %v19945_v12  ;;  %13847 = vmatprep.subr.bf16.mxu1 %v19947_v62  ;;  %v20839_v12 = vld [vmem:[#allocation23_spill] sm:$0xff]  ;;  %v20840_v62 = vld [vmem:[#allocation24_spill] sm:$0xff] }
0x120e   :  { %v17106_v26 = vpop.eup %17105  ;;  %13836 = vmatprep.mubr.bf16.mxu0 %v20445_v15  ;;  %13877 = vmatprep.mubr.bf16.mxu1 %v20445_v15 }
0x120f   :  { %v13311_v19 = vmul.f32 %v17106_v26, %v17104_v36 }
0x1210   :  { %13807 = vmatpush1.bf16.msra.mxu0 %v19951_v27  ;;  %13848 = vmatpush1.bf16.msra.mxu1 %v19953_v7  ;;  %v20841_v27 = vld [vmem:[#allocation25_spill] sm:$0xff]  ;;  %v20842_v7 = vld [vmem:[#allocation26_spill] sm:$0xff] }
0x1211   :  { %13808 = vmatprep.subr.bf16.mxu0 %v19957_v48  ;;  %13849 = vmatprep.subr.bf16.mxu1 %v19959_v60  ;;  %13314 = vst [vmem:[#allocation10 + $0xe8] sm:$0xff] %v13311_v19  ;;  %v20843_v48 = vld [vmem:[#allocation27_spill] sm:$0xff]  ;;  %v20844_v60 = vld [vmem:[#allocation28_spill] sm:$0xff]  ;;  %v13337_v8 = vpack.c.bf16 %v13311_v19, %v13311_v19 }
0x1214   :  { %13809 = vmatpush1.bf16.msra.mxu0 %v19965_v3  ;;  %13850 = vmatpush1.bf16.msra.mxu1 %v19967_v53  ;;  %v20845_v3 = vld [vmem:[#allocation29_spill] sm:$0xff]  ;;  %v20846_v53 = vld [vmem:[#allocation30_spill] sm:$0xff] }
0x1215   :  { %13810 = vmatprep.subr.bf16.mxu0 %v19971_v14  ;;  %13851 = vmatprep.subr.bf16.mxu1 %v19973_v23  ;;  %v20847_v14 = vld [vmem:[#allocation31_spill] sm:$0xff]  ;;  %v20848_v23 = vld [vmem:[#allocation32_spill] sm:$0xff] }
0x1218   :  { %13811 = vmatpush1.bf16.msra.mxu0 %v19977_v29  ;;  %13852 = vmatpush1.bf16.msra.mxu1 %v19979_v16  ;;  %v20849_v29 = vld [vmem:[#allocation33_spill] sm:$0xff]  ;;  %v20850_v16 = vld [vmem:[#allocation34_spill] sm:$0xff] }
0x1219   :  { %13812 = vmatprep.subr.bf16.mxu0 %v19983_v49  ;;  %13853 = vmatprep.subr.bf16.mxu1 %v20837_v34  ;;  %v20851_v49 = vld [vmem:[#allocation35_spill] sm:$0xff] }
0x121c   :  { %13813 = vmatpush1.bf16.msra.mxu0 %v20838_v0  ;;  %13854 = vmatpush1.bf16.msra.mxu1 %v20839_v12 }
0x121d   :  { %13814 = vmatprep.subr.bf16.mxu0 %v20840_v62  ;;  %13855 = vmatprep.subr.bf16.mxu1 %v20841_v27 }
0x1220   :  { %13815 = vmatpush1.bf16.msra.mxu0 %v20842_v7  ;;  %13856 = vmatpush1.bf16.msra.mxu1 %v20843_v48 }
0x1221   :  { %13816 = vmatprep.subr.bf16.mxu0 %v20844_v60  ;;  %13857 = vmatprep.subr.bf16.mxu1 %v20845_v3 }
0x1224   :  { %13817 = vmatpush1.bf16.msra.mxu0 %v20846_v53  ;;  %13858 = vmatpush1.bf16.msra.mxu1 %v20847_v14 }
0x1225   :  { %13818 = vmatprep.subr.bf16.mxu0 %v20848_v23  ;;  %13859 = vmatprep.subr.bf16.mxu1 %v20849_v29 }
0x1228   :  { %13819 = vmatpush1.bf16.msra.mxu0 %v20850_v16  ;;  %13860 = vmatpush1.bf16.msra.mxu1 %v20851_v49 }
0x1229   :  { %13929 = vmatprep.subr.bf16.mxu0 %v20031_v20  ;;  %13970 = vmatprep.subr.bf16.mxu1 %v20852_v45  ;;  %v20858_v20 = vld [vmem:[#allocation42_spill] sm:$0xff] }
0x122b   :  { %13837 = vmatmul.mubr.bf16.vlgmr.msra.gmra.mrb[244].mxu0 %v13337_v8  ;;  %13878 = vmatmul.mubr.bf16.vlgmr.msra.gmra.mrb[244].mxu1 %v13337_v8 }
0x122c   :  { %13930 = vmatpush1.bf16.msra.mxu0 %v20853_v56  ;;  %13971 = vmatpush1.bf16.msra.mxu1 %v20854_v31 }
0x122d   :  { %13931 = vmatprep.subr.bf16.mxu0 %v20855_v11  ;;  %13972 = vmatprep.subr.bf16.mxu1 %v20856_v1 }
0x122e   :  { %13961 = vmatprep.mubr.bf16.mxu0 %v20445_v15  ;;  %14002 = vmatprep.mubr.bf16.mxu1 %v20445_v15 }
0x1230   :  { %13932 = vmatpush1.bf16.msra.mxu0 %v20857_v61  ;;  %13973 = vmatpush1.bf16.msra.mxu1 %v20858_v20 }
0x1231   :  { %14054 = vmatprep.subr.bf16.mxu0 %v20055_v59  ;;  %14095 = vmatprep.subr.bf16.mxu1 %v20859_v55  ;;  %v13319_v59 = vpack.c.bf16 %v13317_v10, %v13317_v10 }
0x1233   :  { %15639 = vmatmul.mubr.msk.bf16.vlgmr.msra.gmra.mrb[248].mxu0 %vm726_vm0, %v13318_v4  ;;  %15640 = vmatmul.mubr.msk.bf16.vlgmr.msra.gmra.mrb[248].mxu1 %vm726_vm0, %v13318_v4 }
0x1234   :  { %14055 = vmatpush1.bf16.msra.mxu0 %v20063_v18  ;;  %14096 = vmatpush1.bf16.msra.mxu1 %v20065_v40 }
0x1235   :  { %14056 = vmatprep.subr.bf16.mxu0 %v20069_v6  ;;  %14097 = vmatprep.subr.bf16.mxu1 %v20071_v5 }
0x1236   :  { %14086 = vmatprep.mubr.bf16.mxu0 %v20445_v15  ;;  %14127 = vmatprep.mubr.bf16.mxu1 %v20445_v15 }
0x1238   :  { %14057 = vmatpush1.bf16.msra.mxu0 %v20077_v42  ;;  %14098 = vmatpush1.bf16.msra.mxu1 %v20079_v47 }
0x123b   :  { %15649 = vmatmul.mubr.msk.bf16.vlgmr.msra.gmra.mrb[252].mxu0 %vm726_vm0, %v13319_v59  ;;  %15650 = vmatmul.mubr.msk.bf16.vlgmr.msra.gmra.mrb[252].mxu1 %vm726_vm0, %v13319_v59 }
0x12de   :  { %v13596_v18 = vpop.f32.mrb[240].mxu0  ;;  %v13637_v40 = vpop.f32.mrb[240].mxu1 }
0x12df   :  { %v13598_v13 = vpop.f32.mrb[241].mxu0  ;;  %v13639_v33 = vpop.f32.mrb[241].mxu1 }
0x12e0   :  { %v13600_v6 = vpop.f32.mrb[242].mxu0  ;;  %v13641_v63 = vpop.f32.mrb[242].mxu1 }
0x12e1   :  { %v13601_v5 = vpop.f32.mrb[243].mxu0  ;;  %v13642_v44 = vpop.f32.mrb[243].mxu1 }
0x12fe   :  { %v13838_v43 = vpop.f32.mrb[244].mxu0  ;;  %v13879_v52 = vpop.f32.mrb[244].mxu1 }
0x12ff   :  { %v13840_v15 = vpop.f32.mrb[245].mxu0  ;;  %v13881_v30 = vpop.f32.mrb[245].mxu1 }
0x1300   :  { %v13842_v54 = vpop.f32.mrb[246].mxu0  ;;  %v13883_v42 = vpop.f32.mrb[246].mxu1 }
0x1301   :  { %v13843_v17 = vpop.f32.mrb[247].mxu0  ;;  %v13884_v47 = vpop.f32.mrb[247].mxu1 }
0x1306   :  { %v13963_v46 = vpop.f32.mrb[248].mxu0  ;;  %v14004_v21 = vpop.f32.mrb[248].mxu1 }
0x1307   :  { %v13964_v50 = vadd.f32 %v13963_v46, %v13596_v18  ;;  %v14005_v28 = vadd.f32 %v14004_v21, %v13637_v40  ;;  %v13965_v32 = vpop.f32.mrb[249].mxu0  ;;  %v14006_v24 = vpop.f32.mrb[249].mxu1 }
0x1308   :  { %v13966_v57 = vadd.f32 %v13965_v32, %v13598_v13  ;;  %v14007_v36 = vadd.f32 %v14006_v24, %v13639_v33  ;;  %v13967_v26 = vpop.f32.mrb[250].mxu0  ;;  %v14008_v19 = vpop.f32.mrb[250].mxu1 }
0x1309   :  { %v14136_v34 = vadd.f32 %v13964_v50, %v17520_v22  ;;  %v13968_v0 = vpop.f32.mrb[251].mxu0  ;;  %v14009_v12 = vpop.f32.mrb[251].mxu1  ;;  %v14138_v4 = vadd.f32 %v14005_v28, %v17538_v51 }
0x130a   :  { %v14137_v62 = vadd.f32 %v13966_v57, %v17522_v25  ;;  %v14139_v29 = vadd.f32 %v14007_v36, %v17530_v35 }
0x130b   :  { %v15651_v27 = vmul.f32 -1.442695, %v14136_v34 }
0x130c   :  { %v15653_v7 = vmul.f32 -1.442695, %v14137_v62  ;;  %v15655_v11 = vmul.f32 -1.442695, %v14139_v29 }
0x130d   :  { %17107 = vpow2.f32 %v15651_v27 }
0x130e   :  { %17109 = vpow2.f32 %v15653_v7  ;;  %v14088_v48 = vpop.f32.mrb[252].mxu0  ;;  %v14129_v60 = vpop.f32.mrb[252].mxu1 }
0x130f   :  { %v14089_v3 = vadd.f32 %v14088_v48, %v13838_v43  ;;  %v14130_v53 = vadd.f32 %v14129_v60, %v13879_v52  ;;  %v14090_v14 = vpop.f32.mrb[253].mxu0  ;;  %v14131_v23 = vpop.f32.mrb[253].mxu1 }
0x1310   :  { %v14091_v16 = vadd.f32 %v14090_v14, %v13840_v15  ;;  %v14132_v49 = vadd.f32 %v14131_v23, %v13881_v30  ;;  %v14092_v8 = vpop.f32.mrb[254].mxu0  ;;  %v14133_v22 = vpop.f32.mrb[254].mxu1 }
0x1311   :  { %v14140_v45 = vadd.f32 %v14089_v3, %v17533_v37  ;;  %v14093_v56 = vpop.f32.mrb[255].mxu0  ;;  %v14134_v25 = vpop.f32.mrb[255].mxu1 }
0x1312   :  { %v14141_v31 = vadd.f32 %v14091_v16, %v17535_v41  ;;  %v14143_v55 = vadd.f32 %v14132_v49, %v17542_v2  ;;  %v14142_v41 = vadd.f32 %v14130_v53, %v17546_v9 }
0x1313   :  { %v15652_v38 = vmul.f32 -1.442695, %v14140_v45 }
0x1314   :  { %v15654_v1 = vmul.f32 -1.442695, %v14141_v31  ;;  %v15656_v37 = vmul.f32 -1.442695, %v14143_v55 }
0x1315   :  { %17111 = vpow2.f32 %v15652_v38 }
0x1316   :  { %17113 = vpow2.f32 %v15654_v1 }
0x1317   :  { %v17108_v61 = vpop.eup %17107  ;;  %17115 = vpow2.f32 %v15655_v11 }
0x1318   :  { %v17110_v20 = vpop.eup %17109  ;;  %v14150_v35 = vadd.f32 1.0, %v17108_v61  ;;  %17117 = vtanh.f32 %v14138_v4 }
0x1319   :  { %v14162_v10 = vadd.f32 1.0, %v17110_v20 }
0x131a   :  { %17119 = vrcp.f32 %v14150_v35 }
0x131b   :  { %17121 = vrcp.f32 %v14162_v10 }
0x131c   :  { %17123 = vpow2.f32 %v15656_v37 }
0x131d   :  { %17125 = vtanh.f32 %v14142_v41 }
0x131f   :  { %v17112_v59 = vpop.eup %17111 }
0x1320   :  { %v17114_v18 = vpop.eup %17113  ;;  %v14151_v40 = vadd.f32 1.0, %v17112_v59 }
0x1321   :  { %v14163_v51 = vadd.f32 1.0, %v17114_v18  ;;  %v17116_v13 = vpop.eup %17115 }
0x1322   :  { %17127 = vrcp.f32 %v14151_v40  ;;  %v17118_v33 = vpop.eup %17117  ;;  %v14176_v5 = vadd.f32 1.0, %v17116_v13 }
0x1323   :  { %17129 = vrcp.f32 %v14163_v51 }
0x1324   :  { %v17120_v6 = vpop.eup %17119  ;;  %17131 = vrcp.f32 %v14176_v5 }
0x1325   :  { %v17122_v63 = vpop.eup %17121  ;;  %v14184_v2 = vmul.f32 %v17120_v6, %v17118_v33 }
0x1326   :  { %v14182_v44 = vmul.f32 %v17122_v63, %v20134_v58  ;;  %v17124_v52 = vpop.eup %17123 }
0x1327   :  { %v17126_v9 = vpop.eup %17125  ;;  %v14177_v42 = vadd.f32 1.0, %v17124_v52 }
0x1328   :  { %v14186_v43 = vadd.f32 %v14184_v2, %v14182_v44 }
0x132a   :  { %17133 = vtanh.f32 %v14186_v43 }
0x132b   :  { %17135 = vrcp.f32 %v14177_v42 }
0x132c   :  { %v17128_v15 = vpop.eup %17127 }
0x132d   :  { %v17130_v30 = vpop.eup %17129  ;;  %v14185_v54 = vmul.f32 %v17128_v15, %v17126_v9 }
0x132e   :  { %v14183_v17 = vmul.f32 %v17130_v30, %v20138_v39  ;;  %v17132_v46 = vpop.eup %17131 }
0x1330   :  { %v14187_v47 = vadd.f32 %v14185_v54, %v14183_v17 }
0x1332   :  { %17137 = vtanh.f32 %v14187_v47 }
0x1334   :  { %v17134_v21 = vpop.eup %17133 }
0x1335   :  { %v14190_v50 = vmul.f32 %v17134_v21, %v17132_v46  ;;  %v17136_v58 = vpop.eup %17135 }
0x1337   :  { %14193 = vst [vmem:[#allocation10 + $0xf0] sm:$0xff] %v14190_v50 }
0x133c   :  { %v17138_v28 = vpop.eup %17137 }
0x133d   :  { %v14191_v32 = vmul.f32 %v17138_v28, %v17136_v58 }
0x133f   :  { %14194 = vst [vmem:[#allocation10 + $0xf8] sm:$0xff] %v14191_v32 }
0x1340   :  { %17262 = shalt.err (!%p17259_p0)
}
0x1341   :  { %s17263_s8 = scalar_lea.hbm %s20226_s4, 4096 }
0x1342   :  { %p17264_p1 = scmp.ne.s32.totalorder %s20226_s4, %s17263_s8  ;;  %p17267_p2 = scmp.lt.u32.totalorder %s17263_s8, %s20226_s4 }
0x1344   :  { %p17269_p3 = pnand %p17267_p2, %p17264_p1 }
0x1346   :  { %17272 = shalt.err (!%p17269_p3)
}
0x1347   :  { %14210 = dma.vmem_to_hbm [thread:$0]  %s14205_s30, 4096, %s20226_s4, [#allocation6], %s17283_s1, %s17283_s1, %s17284_s13  }
0x1348   :  { %17277 = dma.done.wait [#allocation6], 4096  }
0x1349   :  { %17278 = vsyncadd [#allocation6], 4294963200 }
0x134a   :  { %14214 = vsyncpa [#allocation5], 1 }
0x134b   :  { %14215 = vsyncpa [#allocation8], 1 }
0x134c   :  { %14216 = vsyncpa [#allocation6], 1 }

</bundles_post_ra>
